<compile_context>
chip_gen: v5e
topology: v5e:2x2
jax: 0.10.0
libtpu: 0.0.40
codegen_flags: <defaults>
</compile_context>

<pallas_src>
import math
import functools

import jax
import jax.numpy as jnp
from jax import lax
from jax.experimental import pallas as pl
from jax.experimental.pallas import tpu as pltpu


def _gelu_exact(x):
    # matches torch.nn.functional.gelu default (erf-based)
    return 0.5 * x * (1.0 + lax.erf(x * (1.0 / math.sqrt(2.0))))


def _encoder_kernel(x_ref, tri_ref, seg_sum_ref, seg_bcast_ref, gamma_ref, beta_ref,
                    out_ref, ctx_ref, *, num_layers, embed_size, eps=1e-5):
    x = x_ref[...]                      # (S, F)  F = TB*E, lane-dense
    tri = tri_ref[...]                  # (S, S)  lower-triangular ones (grid-invariant)
    seg_sum = seg_sum_ref[...]          # (F, G)  0/1: lane -> embed group
    seg_bcast = seg_bcast_ref[...]      # (G, F)  0/1: embed group -> lane
    S = x.shape[0]

    inv_e = 1.0 / embed_size
    inv_scaling = embed_size ** -0.5

    def _split(b):
        # bf16 hi/lo split: b == b_hi + b_lo exactly in f32, so two default-
        # precision MXU passes against exactly-representable 0/1 matrices give
        # ~f32 accuracy at 1/3 of the HIGHEST pass count.
        b_hi = b.astype(jnp.bfloat16).astype(jnp.float32)
        return b_hi, b - b_hi

    def dot01_l(m01, b):                # m01 @ b, m01 in {0, 1}
        b_hi, b_lo = _split(b)
        return (jnp.dot(m01, b_hi, preferred_element_type=jnp.float32)
                + jnp.dot(m01, b_lo, preferred_element_type=jnp.float32))

    def dot01_r(b, m01):                # b @ m01, m01 in {0, 1}
        b_hi, b_lo = _split(b)
        return (jnp.dot(b_hi, m01, preferred_element_type=jnp.float32)
                + jnp.dot(b_lo, m01, preferred_element_type=jnp.float32))

    def contextualise(v):
        # ctx = torch.cumsum(v, dim=1) along the sequence (sublane) axis via
        # the triangular matmul; rep = global_dot_score(v, ctx).
        ctx = dot01_l(tri, v)                                 # (S, F)
        energy = jnp.sum(v * ctx, axis=0, keepdims=True)      # (1, F)
        return energy * v, ctx

    def layer_norm(y, l):
        # LayerNorm over each E-lane segment of the lane axis via tiny segment
        # matmuls on the otherwise idle MXU (no in-kernel reshape/relayout).
        # Review #7: stats for y and y*y are independent; var = E[y^2] - mu^2
        # (benign at the 1e-5 eps scale), normalisation applied as
        # y * bcast(inv_std) - bcast(mu * inv_std).
        mu = dot01_r(y, seg_sum) * inv_e                      # (S, G) group means
        msq = dot01_r(y * y, seg_sum) * inv_e                 # (S, G) group E[y^2]
        inv_std = lax.rsqrt(msq - mu * mu + eps)              # (S, G)
        scale_b = dot01_r(inv_std, seg_bcast)                 # (S, F)
        shift_b = dot01_r(mu * inv_std, seg_bcast)            # (S, F)
        return (y * scale_b - shift_b) * gamma_ref[l:l + 1, :] + beta_ref[l:l + 1, :]

    out, ctx = contextualise(x)
    rep = out

    # TODO(synk): for deep stacks switch this unrolled loop to lax.fori_loop
    # indexing gamma/beta with pl.ds (bounds live ranges before scaling TB).
    for l in range(num_layers):
        # SelfAttention with feature_map = gelu(x) + 1
        q = _gelu_exact(out) + 1.0
        k = _gelu_exact(ctx) + 1.0
        energy = jnp.sum(q * k, axis=0, keepdims=True) * q * inv_scaling   # (S, F)
        # softmax over the sequence axis (torch dim=1)
        m = jnp.max(energy, axis=0, keepdims=True)
        e = jnp.exp(energy - m)
        p = e * pl.reciprocal(jnp.sum(e, axis=0, keepdims=True), approx=True)
        # LayerNorm(attention + residual); dropout is identity at inference
        out = layer_norm(p * rep + out, l)
        if l + 1 < num_layers:
            rep, ctx = contextualise(out)

    out_ref[...] = out                   # lane-dense (S, F) store
    ctx_ref[...] = ctx[S - 1:S, :]       # ctx[:, -1] for this batch tile


def _tpu_flavor():
    """Returns (is_v7x, vmem_limit_bytes) with conservative fallbacks."""
    try:
        kind = jax.devices()[0].device_kind.lower()
    except Exception:
        kind = ""
    is_v7 = "7" in kind
    big_vmem = any(t in kind for t in ("v4", "v5", "v6")) and not is_v7
    # v7x: 64 MiB physical VMEM -> cap the scoped limit at 48 MiB (review #3).
    # v4/v5e/v6e: 128 MiB physical -> ~96 MiB scoped (review #4); unknown -> 48.
    return is_v7, (96 if big_vmem else 48) * 1024 * 1024


def _pick_batch_tile(N, S, E, *, target_lanes, is_v7, vmem_limit_bytes, batch_tile):
    q = 128 // math.gcd(E, 128)          # smallest TB with TB*E % 128 == 0
    if batch_tile is None:
        # Review #1: fill the MXU N dimension (F >= 512, ideally 1024-2048).
        tb = max(q, -(-target_lanes // E))
        # Review #3: VMEM budget.  Working set per grid step is roughly
        # 16*S*F bytes of pipeline buffers (2 in + 2 out) plus ~48*S*F bytes of
        # live f32 temporaries (out/ctx/rep/q/k/energy/p/y + hi/lo splits),
        # plus the double-buffered (S, S) triangular matrix.
        avail = vmem_limit_bytes - 8 * S * S * 4 - (1 << 20)
        tb = min(tb, max(q, avail // (64 * S * E * 4)))
        tb = min(tb, max(N, 1))
        if is_v7 and N > q:
            # Review #2: keep >= 2 grid steps so both v7x TensorCores get work.
            tb = min(tb, -(-N // 2))
    else:
        tb = max(1, min(batch_tile, max(N, 1)))
    return q * (-(-tb // q))             # round up -> lane-dense (TB*E % 128 == 0)


def encoder_forward(tokens, mask, emb_table, gammas, betas, *,
                    batch_tile=None, target_lanes=2048):
    """Pallas-backed Encoder.forward (inference; dropout = identity)."""
    # NOTE: `mask` is accepted for API parity but never used by the reference
    # attention modules.
    del mask
    num_layers, E = gammas.shape
    N, S = tokens.shape

    is_v7, vmem_limit = _tpu_flavor()
    TB = _pick_batch_tile(N, S, E, target_lanes=target_lanes, is_v7=is_v7,
                          vmem_limit_bytes=vmem_limit, batch_tile=batch_tile)
    n_blocks = -(-N // TB)
    N_pad = n_blocks * TB
    F = TB * E
    G = 8 * (-(-TB // 8))                # group axis padded to sublane quantum

    # --- embedding gather + layout plumbing (outside the kernel, plain XLA)
    emb = jnp.take(emb_table, tokens, axis=0).astype(jnp.float32)       # (N, S, E)
    if N_pad != N:
        emb = jnp.pad(emb, ((0, N_pad - N), (0, 0), (0, 0)))
    x2d = jnp.transpose(emb, (1, 0, 2)).reshape(S, N_pad * E)           # (S, N_pad*E)

    # --- grid-invariant operands, built once (constant index_map in the kernel)
    r = lax.broadcasted_iota(jnp.int32, (S, S), 0)
    c = lax.broadcasted_iota(jnp.int32, (S, S), 1)
    tri = (r >= c).astype(jnp.float32)                                  # (S, S)
    lane_grp = lax.broadcasted_iota(jnp.int32, (F, G), 0) // E
    col_grp = lax.broadcasted_iota(jnp.int32, (F, G), 1)
    seg_sum = (lane_grp == col_grp).astype(jnp.float32)                 # (F, G)
    seg_bcast = seg_sum.T                                               # (G, F)
    gam = jnp.tile(gammas.astype(jnp.float32), (1, TB))                 # (L, F)
    bet = jnp.tile(betas.astype(jnp.float32), (1, TB))                  # (L, F)

    kernel = functools.partial(_encoder_kernel, num_layers=num_layers, embed_size=E)

    # advisory cost hint so XLA schedules the surrounding gather/transposes well
    flops = int(n_blocks * num_layers * (4 * S * S * F + 16 * S * F * G + 60 * S * F))
    transc = int(n_blocks * num_layers * 3 * S * F)
    bytes_acc = int(4 * (2 * S * N_pad * E + N_pad * E + S * S + 2 * F * G
                         + 2 * num_layers * F))

    def run(invariant_mode):
        # Review #5: grid-invariant operands never change block index, so
        # double-buffering them is pure VMEM waste -> request Buffered(1).
        inv = {} if invariant_mode is None else {"pipeline_mode": invariant_mode}
        grid_spec = pltpu.PrefetchScalarGridSpec(
            num_scalar_prefetch=0,
            grid=(n_blocks,),
            in_specs=[
                pl.BlockSpec((S, F), lambda b: (0, b)),                  # activations
                pl.BlockSpec((S, S), lambda b: (0, 0), **inv),           # tri
                pl.BlockSpec((F, G), lambda b: (0, 0), **inv),           # seg_sum
                pl.BlockSpec((G, F), lambda b: (0, 0), **inv),           # seg_bcast
                pl.BlockSpec((num_layers, F), lambda b: (0, 0), **inv),  # gammas
                pl.BlockSpec((num_layers, F), lambda b: (0, 0), **inv),  # betas
            ],
            out_specs=[
                pl.BlockSpec((S, F), lambda b: (0, b)),                  # out
                pl.BlockSpec((1, F), lambda b: (0, b)),                  # ctx[:, -1]
            ],
        )
        return pl.pallas_call(
            kernel,
            out_shape=(jax.ShapeDtypeStruct((S, N_pad * E), jnp.float32),
                       jax.ShapeDtypeStruct((1, N_pad * E), jnp.float32)),
            grid_spec=grid_spec,
            compiler_params=pltpu.CompilerParams(
                dimension_semantics=("parallel",),
                vmem_limit_bytes=vmem_limit),
            cost_estimate=pl.CostEstimate(flops=flops, transcendentals=transc,
                                          bytes_accessed=bytes_acc),
        )(x2d, tri, seg_sum, seg_bcast, gam, bet)

    try:
        mode = pl.Buffered(buffer_count=1) if hasattr(pl, "Buffered") else None
        out2d, ctx2d = run(mode)
    except Exception:
        # Some JAX builds reject single-buffered pipeline_mode specs; fall back
        # to the default double-buffered pipeline (identical math).
        out2d, ctx2d = run(None)

    # undo the layout plumbing
    out = out2d.reshape(S, N_pad, E).transpose(1, 0, 2)[:N]            # (N, S, E)
    ctx_last = ctx2d.reshape(1, N_pad, E).transpose(1, 0, 2)[:N]       # (N, 1, E)
    return out, ctx_last


def encoder_ref(tokens, emb_table, gammas, betas, eps=1e-5):
    """Pure-JAX reference mirroring the PyTorch forward (for validation)."""
    emb = jnp.take(emb_table, tokens, axis=0).astype(jnp.float32)
    E = emb.shape[-1]
    num_layers = gammas.shape[0]

    def contextualise(v):
        ctx = jnp.cumsum(v, axis=1)
        energy = jnp.sum(v * ctx, axis=1, keepdims=True)
        return energy * v, ctx

    out, ctx = contextualise(emb)
    rep = out
    for l in range(num_layers):
        q = _gelu_exact(out) + 1.0
        k = _gelu_exact(ctx) + 1.0
        energy = (jnp.sum(q * k, axis=1, keepdims=True) * q) / (E ** 0.5)
        attn = jax.nn.softmax(energy, axis=1) * rep
        y = attn + out
        mu = jnp.mean(y, axis=-1, keepdims=True)
        var = jnp.mean(jnp.square(y - mu), axis=-1, keepdims=True)
        out = (y - mu) * lax.rsqrt(var + eps) * gammas[l] + betas[l]
        if l + 1 < num_layers:
            rep, ctx = contextualise(out)
    return out, ctx[:, -1:, :]


if __name__ == "__main__":
    key = jax.random.PRNGKey(0)
    k_emb, k_tok, k_g, k_b = jax.random.split(key, 4)

    src_vocab_size = 50
    embed_size = 32
    num_layers = 2
    N, S = 16, 16        # small but big enough to exercise the batch-tiled grid

    emb_table = jax.random.normal(k_emb, (src_vocab_size, embed_size), jnp.float32)
    gammas = 1.0 + 0.05 * jax.random.normal(k_g, (num_layers, embed_size), jnp.float32)
    betas = 0.05 * jax.random.normal(k_b, (num_layers, embed_size), jnp.float32)

    tokens = jax.random.randint(k_tok, (N, S), 0, src_vocab_size, dtype=jnp.int32)
    mask = jnp.ones((N, S), jnp.float32)   # unused by the module's attention

    out, ctx_last = encoder_forward(tokens, mask, emb_table, gammas, betas)
    out = jax.block_until_ready(out)
    ctx_last = jax.block_until_ready(ctx_last)

    out_ref, ctx_ref_v = encoder_ref(tokens, emb_table, gammas, betas)
    assert out.shape == (N, S, embed_size)
    assert ctx_last.shape == (N, 1, embed_size)
    assert jnp.allclose(out, out_ref, rtol=2e-2, atol=2e-2), \
        float(jnp.max(jnp.abs(out - out_ref)))
    assert jnp.allclose(ctx_last, ctx_ref_v, rtol=2e-2, atol=2e-2), \
        float(jnp.max(jnp.abs(ctx_last - ctx_ref_v)))

    print("KERNEL_OK")
</pallas_src>

<mosaic_0001>
module attributes {stable_mosaic.version = 11 : i64} {
  func.func @_encoder_kernel(%arg0: i32, %arg1: memref<16x512xf32, #tpu.memory_space<vmem>>, %arg2: memref<16x16xf32, #tpu.memory_space<vmem>>, %arg3: memref<512x16xf32, #tpu.memory_space<vmem>>, %arg4: memref<16x512xf32, #tpu.memory_space<vmem>>, %arg5: memref<2x512xf32, #tpu.memory_space<vmem>>, %arg6: memref<2x512xf32, #tpu.memory_space<vmem>>, %arg7: memref<16x512xf32, #tpu.memory_space<vmem>>, %arg8: memref<1x512xf32, #tpu.memory_space<vmem>>) attributes {dimension_semantics = [#tpu.dimension_semantics<parallel>], iteration_bounds = array<i64: 1>, scalar_prefetch = 0 : i64, scratch_operands = 0 : i64, tpu.core_type = #tpu.core_type<tc>, window_params = [{transform_indices = @transform_0, window_bounds = array<i64: 16, 512>}, {pipeline_mode = #tpu.pipeline_mode<synchronous>, transform_indices = @transform_1, window_bounds = array<i64: 16, 16>}, {pipeline_mode = #tpu.pipeline_mode<synchronous>, transform_indices = @transform_2, window_bounds = array<i64: 512, 16>}, {pipeline_mode = #tpu.pipeline_mode<synchronous>, transform_indices = @transform_3, window_bounds = array<i64: 16, 512>}, {pipeline_mode = #tpu.pipeline_mode<synchronous>, transform_indices = @transform_4, window_bounds = array<i64: 2, 512>}, {pipeline_mode = #tpu.pipeline_mode<synchronous>, transform_indices = @transform_5, window_bounds = array<i64: 2, 512>}, {transform_indices = @transform_6, window_bounds = array<i64: 16, 512>}, {transform_indices = @transform_7, window_bounds = array<i64: 1, 512>}]} {
    %c0 = arith.constant 0 : index
    %c0_0 = arith.constant 0 : index
    %0 = vector.load %arg1[%c0, %c0_0] : memref<16x512xf32, #tpu.memory_space<vmem>>, vector<16x512xf32>
    %c0_1 = arith.constant 0 : index
    %c0_2 = arith.constant 0 : index
    %1 = vector.load %arg2[%c0_1, %c0_2] : memref<16x16xf32, #tpu.memory_space<vmem>>, vector<16x16xf32>
    %c0_3 = arith.constant 0 : index
    %c0_4 = arith.constant 0 : index
    %2 = vector.load %arg3[%c0_3, %c0_4] : memref<512x16xf32, #tpu.memory_space<vmem>>, vector<512x16xf32>
    %c0_5 = arith.constant 0 : index
    %c0_6 = arith.constant 0 : index
    %3 = vector.load %arg4[%c0_5, %c0_6] : memref<16x512xf32, #tpu.memory_space<vmem>>, vector<16x512xf32>
    %4 = arith.truncf %0 : vector<16x512xf32> to vector<16x512xbf16>
    %5 = arith.extf %4 : vector<16x512xbf16> to vector<16x512xf32>
    %6 = arith.subf %0, %5 : vector<16x512xf32>
    %cst = arith.constant dense<0.000000e+00> : vector<16x512xf32>
    %7 = tpu.matmul %1, %5, %cst {dimension_numbers = #tpu.dot_dimension_numbers<[1], [0], [0], [1], [0, 0, 1, 1], [], []>} : vector<16x16xf32>, vector<16x512xf32>, vector<16x512xf32> -> vector<16x512xf32>
    %cst_7 = arith.constant dense<0.000000e+00> : vector<16x512xf32>
    %8 = tpu.matmul %1, %6, %cst_7 {dimension_numbers = #tpu.dot_dimension_numbers<[1], [0], [0], [1], [0, 0, 1, 1], [], []>} : vector<16x16xf32>, vector<16x512xf32>, vector<16x512xf32> -> vector<16x512xf32>
    %9 = arith.addf %7, %8 : vector<16x512xf32>
    %10 = arith.mulf %0, %9 : vector<16x512xf32>
    %cst_8 = arith.constant dense<0.000000e+00> : vector<512xf32>
    %11 = vector.multi_reduction <add>, %10, %cst_8 [0] : vector<16x512xf32> to vector<512xf32>
    %12 = vector.shape_cast %11 : vector<512xf32> to vector<1x512xf32>
    %13 = vector.broadcast %12 : vector<1x512xf32> to vector<16x512xf32>
    %14 = arith.mulf %13, %0 : vector<16x512xf32>
    %cst_9 = arith.constant 5.000000e-01 : f32
    %15 = vector.broadcast %cst_9 : f32 to vector<16x512xf32>
    %16 = arith.mulf %15, %14 : vector<16x512xf32>
    %cst_10 = arith.constant 0.707106769 : f32
    %17 = vector.broadcast %cst_10 : f32 to vector<16x512xf32>
    %18 = arith.mulf %14, %17 : vector<16x512xf32>
    %19 = math.erf %18 : vector<16x512xf32>
    %cst_11 = arith.constant 1.000000e+00 : f32
    %20 = vector.broadcast %cst_11 : f32 to vector<16x512xf32>
    %21 = arith.addf %20, %19 : vector<16x512xf32>
    %22 = arith.mulf %16, %21 : vector<16x512xf32>
    %cst_12 = arith.constant 1.000000e+00 : f32
    %23 = vector.broadcast %cst_12 : f32 to vector<16x512xf32>
    %24 = arith.addf %22, %23 : vector<16x512xf32>
    %cst_13 = arith.constant 5.000000e-01 : f32
    %25 = vector.broadcast %cst_13 : f32 to vector<16x512xf32>
    %26 = arith.mulf %25, %9 : vector<16x512xf32>
    %cst_14 = arith.constant 0.707106769 : f32
    %27 = vector.broadcast %cst_14 : f32 to vector<16x512xf32>
    %28 = arith.mulf %9, %27 : vector<16x512xf32>
    %29 = math.erf %28 : vector<16x512xf32>
    %cst_15 = arith.constant 1.000000e+00 : f32
    %30 = vector.broadcast %cst_15 : f32 to vector<16x512xf32>
    %31 = arith.addf %30, %29 : vector<16x512xf32>
    %32 = arith.mulf %26, %31 : vector<16x512xf32>
    %cst_16 = arith.constant 1.000000e+00 : f32
    %33 = vector.broadcast %cst_16 : f32 to vector<16x512xf32>
    %34 = arith.addf %32, %33 : vector<16x512xf32>
    %35 = arith.mulf %24, %34 : vector<16x512xf32>
    %cst_17 = arith.constant dense<0.000000e+00> : vector<512xf32>
    %36 = vector.multi_reduction <add>, %35, %cst_17 [0] : vector<16x512xf32> to vector<512xf32>
    %37 = vector.shape_cast %36 : vector<512xf32> to vector<1x512xf32>
    %38 = vector.broadcast %37 : vector<1x512xf32> to vector<16x512xf32>
    %39 = arith.mulf %38, %24 : vector<16x512xf32>
    %cst_18 = arith.constant 0.176776692 : f32
    %40 = vector.broadcast %cst_18 : f32 to vector<16x512xf32>
    %41 = arith.mulf %39, %40 : vector<16x512xf32>
    %cst_19 = arith.constant dense<0xFF800000> : vector<512xf32>
    %42 = vector.multi_reduction <maximumf>, %41, %cst_19 [0] : vector<16x512xf32> to vector<512xf32>
    %43 = vector.shape_cast %42 : vector<512xf32> to vector<1x512xf32>
    %44 = vector.broadcast %43 : vector<1x512xf32> to vector<16x512xf32>
    %45 = arith.subf %41, %44 : vector<16x512xf32>
    %46 = math.exp %45 : vector<16x512xf32>
    %cst_20 = arith.constant dense<0.000000e+00> : vector<512xf32>
    %47 = vector.multi_reduction <add>, %46, %cst_20 [0] : vector<16x512xf32> to vector<512xf32>
    %48 = vector.shape_cast %47 : vector<512xf32> to vector<1x512xf32>
    %49 = tpu.reciprocal %48 {approx = true} : vector<1x512xf32> -> vector<1x512xf32>
    %50 = vector.broadcast %49 : vector<1x512xf32> to vector<16x512xf32>
    %51 = arith.mulf %46, %50 : vector<16x512xf32>
    %52 = arith.mulf %51, %14 : vector<16x512xf32>
    %53 = arith.addf %52, %14 : vector<16x512xf32>
    %54 = arith.truncf %53 : vector<16x512xf32> to vector<16x512xbf16>
    %55 = arith.extf %54 : vector<16x512xbf16> to vector<16x512xf32>
    %56 = arith.subf %53, %55 : vector<16x512xf32>
    %cst_21 = arith.constant dense<0.000000e+00> : vector<16x16xf32>
    %57 = tpu.matmul %55, %2, %cst_21 {dimension_numbers = #tpu.dot_dimension_numbers<[1], [0], [0], [1], [0, 0, 1, 1], [], []>} : vector<16x512xf32>, vector<512x16xf32>, vector<16x16xf32> -> vector<16x16xf32>
    %cst_22 = arith.constant dense<0.000000e+00> : vector<16x16xf32>
    %58 = tpu.matmul %56, %2, %cst_22 {dimension_numbers = #tpu.dot_dimension_numbers<[1], [0], [0], [1], [0, 0, 1, 1], [], []>} : vector<16x512xf32>, vector<512x16xf32>, vector<16x16xf32> -> vector<16x16xf32>
    %59 = arith.addf %57, %58 : vector<16x16xf32>
    %cst_23 = arith.constant 3.125000e-02 : f32
    %60 = vector.broadcast %cst_23 : f32 to vector<16x16xf32>
    %61 = arith.mulf %59, %60 : vector<16x16xf32>
    %62 = arith.mulf %53, %53 : vector<16x512xf32>
    %63 = arith.truncf %62 : vector<16x512xf32> to vector<16x512xbf16>
    %64 = arith.extf %63 : vector<16x512xbf16> to vector<16x512xf32>
    %65 = arith.subf %62, %64 : vector<16x512xf32>
    %cst_24 = arith.constant dense<0.000000e+00> : vector<16x16xf32>
    %66 = tpu.matmul %64, %2, %cst_24 {dimension_numbers = #tpu.dot_dimension_numbers<[1], [0], [0], [1], [0, 0, 1, 1], [], []>} : vector<16x512xf32>, vector<512x16xf32>, vector<16x16xf32> -> vector<16x16xf32>
    %cst_25 = arith.constant dense<0.000000e+00> : vector<16x16xf32>
    %67 = tpu.matmul %65, %2, %cst_25 {dimension_numbers = #tpu.dot_dimension_numbers<[1], [0], [0], [1], [0, 0, 1, 1], [], []>} : vector<16x512xf32>, vector<512x16xf32>, vector<16x16xf32> -> vector<16x16xf32>
    %68 = arith.addf %66, %67 : vector<16x16xf32>
    %cst_26 = arith.constant 3.125000e-02 : f32
    %69 = vector.broadcast %cst_26 : f32 to vector<16x16xf32>
    %70 = arith.mulf %68, %69 : vector<16x16xf32>
    %71 = arith.mulf %61, %61 : vector<16x16xf32>
    %72 = arith.subf %70, %71 : vector<16x16xf32>
    %cst_27 = arith.constant 9.99999974E-6 : f32
    %73 = vector.broadcast %cst_27 : f32 to vector<16x16xf32>
    %74 = arith.addf %72, %73 : vector<16x16xf32>
    %75 = math.rsqrt %74 : vector<16x16xf32>
    %76 = arith.truncf %75 : vector<16x16xf32> to vector<16x16xbf16>
    %77 = arith.extf %76 : vector<16x16xbf16> to vector<16x16xf32>
    %78 = arith.subf %75, %77 : vector<16x16xf32>
    %cst_28 = arith.constant dense<0.000000e+00> : vector<16x512xf32>
    %79 = tpu.matmul %77, %3, %cst_28 {dimension_numbers = #tpu.dot_dimension_numbers<[1], [0], [0], [1], [0, 0, 1, 1], [], []>} : vector<16x16xf32>, vector<16x512xf32>, vector<16x512xf32> -> vector<16x512xf32>
    %cst_29 = arith.constant dense<0.000000e+00> : vector<16x512xf32>
    %80 = tpu.matmul %78, %3, %cst_29 {dimension_numbers = #tpu.dot_dimension_numbers<[1], [0], [0], [1], [0, 0, 1, 1], [], []>} : vector<16x16xf32>, vector<16x512xf32>, vector<16x512xf32> -> vector<16x512xf32>
    %81 = arith.addf %79, %80 : vector<16x512xf32>
    %82 = arith.mulf %61, %75 : vector<16x16xf32>
    %83 = arith.truncf %82 : vector<16x16xf32> to vector<16x16xbf16>
    %84 = arith.extf %83 : vector<16x16xbf16> to vector<16x16xf32>
    %85 = arith.subf %82, %84 : vector<16x16xf32>
    %cst_30 = arith.constant dense<0.000000e+00> : vector<16x512xf32>
    %86 = tpu.matmul %84, %3, %cst_30 {dimension_numbers = #tpu.dot_dimension_numbers<[1], [0], [0], [1], [0, 0, 1, 1], [], []>} : vector<16x16xf32>, vector<16x512xf32>, vector<16x512xf32> -> vector<16x512xf32>
    %cst_31 = arith.constant dense<0.000000e+00> : vector<16x512xf32>
    %87 = tpu.matmul %85, %3, %cst_31 {dimension_numbers = #tpu.dot_dimension_numbers<[1], [0], [0], [1], [0, 0, 1, 1], [], []>} : vector<16x16xf32>, vector<16x512xf32>, vector<16x512xf32> -> vector<16x512xf32>
    %88 = arith.addf %86, %87 : vector<16x512xf32>
    %89 = arith.mulf %53, %81 : vector<16x512xf32>
    %90 = arith.subf %89, %88 : vector<16x512xf32>
    %c0_32 = arith.constant 0 : index
    %c0_33 = arith.constant 0 : index
    %91 = vector.load %arg5[%c0_32, %c0_33] : memref<2x512xf32, #tpu.memory_space<vmem>>, vector<1x512xf32>
    %92 = vector.broadcast %91 : vector<1x512xf32> to vector<16x512xf32>
    %93 = arith.mulf %90, %92 : vector<16x512xf32>
    %c0_34 = arith.constant 0 : index
    %c0_35 = arith.constant 0 : index
    %94 = vector.load %arg6[%c0_34, %c0_35] : memref<2x512xf32, #tpu.memory_space<vmem>>, vector<1x512xf32>
    %95 = vector.broadcast %94 : vector<1x512xf32> to vector<16x512xf32>
    %96 = arith.addf %93, %95 : vector<16x512xf32>
    %97 = arith.truncf %96 : vector<16x512xf32> to vector<16x512xbf16>
    %98 = arith.extf %97 : vector<16x512xbf16> to vector<16x512xf32>
    %99 = arith.subf %96, %98 : vector<16x512xf32>
    %cst_36 = arith.constant dense<0.000000e+00> : vector<16x512xf32>
    %100 = tpu.matmul %1, %98, %cst_36 {dimension_numbers = #tpu.dot_dimension_numbers<[1], [0], [0], [1], [0, 0, 1, 1], [], []>} : vector<16x16xf32>, vector<16x512xf32>, vector<16x512xf32> -> vector<16x512xf32>
    %cst_37 = arith.constant dense<0.000000e+00> : vector<16x512xf32>
    %101 = tpu.matmul %1, %99, %cst_37 {dimension_numbers = #tpu.dot_dimension_numbers<[1], [0], [0], [1], [0, 0, 1, 1], [], []>} : vector<16x16xf32>, vector<16x512xf32>, vector<16x512xf32> -> vector<16x512xf32>
    %102 = arith.addf %100, %101 : vector<16x512xf32>
    %103 = arith.mulf %96, %102 : vector<16x512xf32>
    %cst_38 = arith.constant dense<0.000000e+00> : vector<512xf32>
    %104 = vector.multi_reduction <add>, %103, %cst_38 [0] : vector<16x512xf32> to vector<512xf32>
    %105 = vector.shape_cast %104 : vector<512xf32> to vector<1x512xf32>
    %106 = vector.broadcast %105 : vector<1x512xf32> to vector<16x512xf32>
    %107 = arith.mulf %106, %96 : vector<16x512xf32>
    %cst_39 = arith.constant 5.000000e-01 : f32
    %108 = vector.broadcast %cst_39 : f32 to vector<16x512xf32>
    %109 = arith.mulf %108, %96 : vector<16x512xf32>
    %cst_40 = arith.constant 0.707106769 : f32
    %110 = vector.broadcast %cst_40 : f32 to vector<16x512xf32>
    %111 = arith.mulf %96, %110 : vector<16x512xf32>
    %112 = math.erf %111 : vector<16x512xf32>
    %cst_41 = arith.constant 1.000000e+00 : f32
    %113 = vector.broadcast %cst_41 : f32 to vector<16x512xf32>
    %114 = arith.addf %113, %112 : vector<16x512xf32>
    %115 = arith.mulf %109, %114 : vector<16x512xf32>
    %cst_42 = arith.constant 1.000000e+00 : f32
    %116 = vector.broadcast %cst_42 : f32 to vector<16x512xf32>
    %117 = arith.addf %115, %116 : vector<16x512xf32>
    %cst_43 = arith.constant 5.000000e-01 : f32
    %118 = vector.broadcast %cst_43 : f32 to vector<16x512xf32>
    %119 = arith.mulf %118, %102 : vector<16x512xf32>
    %cst_44 = arith.constant 0.707106769 : f32
    %120 = vector.broadcast %cst_44 : f32 to vector<16x512xf32>
    %121 = arith.mulf %102, %120 : vector<16x512xf32>
    %122 = math.erf %121 : vector<16x512xf32>
    %cst_45 = arith.constant 1.000000e+00 : f32
    %123 = vector.broadcast %cst_45 : f32 to vector<16x512xf32>
    %124 = arith.addf %123, %122 : vector<16x512xf32>
    %125 = arith.mulf %119, %124 : vector<16x512xf32>
    %cst_46 = arith.constant 1.000000e+00 : f32
    %126 = vector.broadcast %cst_46 : f32 to vector<16x512xf32>
    %127 = arith.addf %125, %126 : vector<16x512xf32>
    %128 = arith.mulf %117, %127 : vector<16x512xf32>
    %cst_47 = arith.constant dense<0.000000e+00> : vector<512xf32>
    %129 = vector.multi_reduction <add>, %128, %cst_47 [0] : vector<16x512xf32> to vector<512xf32>
    %130 = vector.shape_cast %129 : vector<512xf32> to vector<1x512xf32>
    %131 = vector.broadcast %130 : vector<1x512xf32> to vector<16x512xf32>
    %132 = arith.mulf %131, %117 : vector<16x512xf32>
    %cst_48 = arith.constant 0.176776692 : f32
    %133 = vector.broadcast %cst_48 : f32 to vector<16x512xf32>
    %134 = arith.mulf %132, %133 : vector<16x512xf32>
    %cst_49 = arith.constant dense<0xFF800000> : vector<512xf32>
    %135 = vector.multi_reduction <maximumf>, %134, %cst_49 [0] : vector<16x512xf32> to vector<512xf32>
    %136 = vector.shape_cast %135 : vector<512xf32> to vector<1x512xf32>
    %137 = vector.broadcast %136 : vector<1x512xf32> to vector<16x512xf32>
    %138 = arith.subf %134, %137 : vector<16x512xf32>
    %139 = math.exp %138 : vector<16x512xf32>
    %cst_50 = arith.constant dense<0.000000e+00> : vector<512xf32>
    %140 = vector.multi_reduction <add>, %139, %cst_50 [0] : vector<16x512xf32> to vector<512xf32>
    %141 = vector.shape_cast %140 : vector<512xf32> to vector<1x512xf32>
    %142 = tpu.reciprocal %141 {approx = true} : vector<1x512xf32> -> vector<1x512xf32>
    %143 = vector.broadcast %142 : vector<1x512xf32> to vector<16x512xf32>
    %144 = arith.mulf %139, %143 : vector<16x512xf32>
    %145 = arith.mulf %144, %107 : vector<16x512xf32>
    %146 = arith.addf %145, %96 : vector<16x512xf32>
    %147 = arith.truncf %146 : vector<16x512xf32> to vector<16x512xbf16>
    %148 = arith.extf %147 : vector<16x512xbf16> to vector<16x512xf32>
    %149 = arith.subf %146, %148 : vector<16x512xf32>
    %cst_51 = arith.constant dense<0.000000e+00> : vector<16x16xf32>
    %150 = tpu.matmul %148, %2, %cst_51 {dimension_numbers = #tpu.dot_dimension_numbers<[1], [0], [0], [1], [0, 0, 1, 1], [], []>} : vector<16x512xf32>, vector<512x16xf32>, vector<16x16xf32> -> vector<16x16xf32>
    %cst_52 = arith.constant dense<0.000000e+00> : vector<16x16xf32>
    %151 = tpu.matmul %149, %2, %cst_52 {dimension_numbers = #tpu.dot_dimension_numbers<[1], [0], [0], [1], [0, 0, 1, 1], [], []>} : vector<16x512xf32>, vector<512x16xf32>, vector<16x16xf32> -> vector<16x16xf32>
    %152 = arith.addf %150, %151 : vector<16x16xf32>
    %cst_53 = arith.constant 3.125000e-02 : f32
    %153 = vector.broadcast %cst_53 : f32 to vector<16x16xf32>
    %154 = arith.mulf %152, %153 : vector<16x16xf32>
    %155 = arith.mulf %146, %146 : vector<16x512xf32>
    %156 = arith.truncf %155 : vector<16x512xf32> to vector<16x512xbf16>
    %157 = arith.extf %156 : vector<16x512xbf16> to vector<16x512xf32>
    %158 = arith.subf %155, %157 : vector<16x512xf32>
    %cst_54 = arith.constant dense<0.000000e+00> : vector<16x16xf32>
    %159 = tpu.matmul %157, %2, %cst_54 {dimension_numbers = #tpu.dot_dimension_numbers<[1], [0], [0], [1], [0, 0, 1, 1], [], []>} : vector<16x512xf32>, vector<512x16xf32>, vector<16x16xf32> -> vector<16x16xf32>
    %cst_55 = arith.constant dense<0.000000e+00> : vector<16x16xf32>
    %160 = tpu.matmul %158, %2, %cst_55 {dimension_numbers = #tpu.dot_dimension_numbers<[1], [0], [0], [1], [0, 0, 1, 1], [], []>} : vector<16x512xf32>, vector<512x16xf32>, vector<16x16xf32> -> vector<16x16xf32>
    %161 = arith.addf %159, %160 : vector<16x16xf32>
    %cst_56 = arith.constant 3.125000e-02 : f32
    %162 = vector.broadcast %cst_56 : f32 to vector<16x16xf32>
    %163 = arith.mulf %161, %162 : vector<16x16xf32>
    %164 = arith.mulf %154, %154 : vector<16x16xf32>
    %165 = arith.subf %163, %164 : vector<16x16xf32>
    %cst_57 = arith.constant 9.99999974E-6 : f32
    %166 = vector.broadcast %cst_57 : f32 to vector<16x16xf32>
    %167 = arith.addf %165, %166 : vector<16x16xf32>
    %168 = math.rsqrt %167 : vector<16x16xf32>
    %169 = arith.truncf %168 : vector<16x16xf32> to vector<16x16xbf16>
    %170 = arith.extf %169 : vector<16x16xbf16> to vector<16x16xf32>
    %171 = arith.subf %168, %170 : vector<16x16xf32>
    %cst_58 = arith.constant dense<0.000000e+00> : vector<16x512xf32>
    %172 = tpu.matmul %170, %3, %cst_58 {dimension_numbers = #tpu.dot_dimension_numbers<[1], [0], [0], [1], [0, 0, 1, 1], [], []>} : vector<16x16xf32>, vector<16x512xf32>, vector<16x512xf32> -> vector<16x512xf32>
    %cst_59 = arith.constant dense<0.000000e+00> : vector<16x512xf32>
    %173 = tpu.matmul %171, %3, %cst_59 {dimension_numbers = #tpu.dot_dimension_numbers<[1], [0], [0], [1], [0, 0, 1, 1], [], []>} : vector<16x16xf32>, vector<16x512xf32>, vector<16x512xf32> -> vector<16x512xf32>
    %174 = arith.addf %172, %173 : vector<16x512xf32>
    %175 = arith.mulf %154, %168 : vector<16x16xf32>
    %176 = arith.truncf %175 : vector<16x16xf32> to vector<16x16xbf16>
    %177 = arith.extf %176 : vector<16x16xbf16> to vector<16x16xf32>
    %178 = arith.subf %175, %177 : vector<16x16xf32>
    %cst_60 = arith.constant dense<0.000000e+00> : vector<16x512xf32>
    %179 = tpu.matmul %177, %3, %cst_60 {dimension_numbers = #tpu.dot_dimension_numbers<[1], [0], [0], [1], [0, 0, 1, 1], [], []>} : vector<16x16xf32>, vector<16x512xf32>, vector<16x512xf32> -> vector<16x512xf32>
    %cst_61 = arith.constant dense<0.000000e+00> : vector<16x512xf32>
    %180 = tpu.matmul %178, %3, %cst_61 {dimension_numbers = #tpu.dot_dimension_numbers<[1], [0], [0], [1], [0, 0, 1, 1], [], []>} : vector<16x16xf32>, vector<16x512xf32>, vector<16x512xf32> -> vector<16x512xf32>
    %181 = arith.addf %179, %180 : vector<16x512xf32>
    %182 = arith.mulf %146, %174 : vector<16x512xf32>
    %183 = arith.subf %182, %181 : vector<16x512xf32>
    %c1 = arith.constant 1 : index
    %c0_62 = arith.constant 0 : index
    %184 = vector.load %arg5[%c1, %c0_62] : memref<2x512xf32, #tpu.memory_space<vmem>>, vector<1x512xf32>
    %185 = vector.broadcast %184 : vector<1x512xf32> to vector<16x512xf32>
    %186 = arith.mulf %183, %185 : vector<16x512xf32>
    %c1_63 = arith.constant 1 : index
    %c0_64 = arith.constant 0 : index
    %187 = vector.load %arg6[%c1_63, %c0_64] : memref<2x512xf32, #tpu.memory_space<vmem>>, vector<1x512xf32>
    %188 = vector.broadcast %187 : vector<1x512xf32> to vector<16x512xf32>
    %189 = arith.addf %186, %188 : vector<16x512xf32>
    %c0_65 = arith.constant 0 : index
    %c0_66 = arith.constant 0 : index
    %190 = vector.load %arg7[%c0_65, %c0_66] : memref<16x512xf32, #tpu.memory_space<vmem>>, vector<16x512xf32>
    tpu.vector_store %arg7[%c0_65, %c0_66], %189 {strides = array<i32>} : memref<16x512xf32, #tpu.memory_space<vmem>>, vector<16x512xf32>,
    %191 = vector.extract_strided_slice %102 {offsets = [15, 0], sizes = [1, 512], strides = [1, 1]} : vector<16x512xf32> to vector<1x512xf32>
    %c0_67 = arith.constant 0 : index
    %c0_68 = arith.constant 0 : index
    %192 = vector.load %arg8[%c0_67, %c0_68] : memref<1x512xf32, #tpu.memory_space<vmem>>, vector<1x512xf32>
    tpu.vector_store %arg8[%c0_67, %c0_68], %191 {strides = array<i32>} : memref<1x512xf32, #tpu.memory_space<vmem>>, vector<1x512xf32>,
    return
  }
  func.func @transform_0(%arg0: i32) -> (i32, i32) {
    %c0_i32 = arith.constant 0 : i32
    %c0_i32_0 = arith.constant 0 : i32
    return %c0_i32, %arg0 : i32, i32
  }
  func.func @transform_1(%arg0: i32) -> (i32, i32) {
    %c0_i32 = arith.constant 0 : i32
    %c0_i32_0 = arith.constant 0 : i32
    %c0_i32_1 = arith.constant 0 : i32
    return %c0_i32, %c0_i32_0 : i32, i32
  }
  func.func @transform_2(%arg0: i32) -> (i32, i32) {
    %c0_i32 = arith.constant 0 : i32
    %c0_i32_0 = arith.constant 0 : i32
    %c0_i32_1 = arith.constant 0 : i32
    return %c0_i32, %c0_i32_0 : i32, i32
  }
  func.func @transform_3(%arg0: i32) -> (i32, i32) {
    %c0_i32 = arith.constant 0 : i32
    %c0_i32_0 = arith.constant 0 : i32
    %c0_i32_1 = arith.constant 0 : i32
    return %c0_i32, %c0_i32_0 : i32, i32
  }
  func.func @transform_4(%arg0: i32) -> (i32, i32) {
    %c0_i32 = arith.constant 0 : i32
    %c0_i32_0 = arith.constant 0 : i32
    %c0_i32_1 = arith.constant 0 : i32
    return %c0_i32, %c0_i32_0 : i32, i32
  }
  func.func @transform_5(%arg0: i32) -> (i32, i32) {
    %c0_i32 = arith.constant 0 : i32
    %c0_i32_0 = arith.constant 0 : i32
    %c0_i32_1 = arith.constant 0 : i32
    return %c0_i32, %c0_i32_0 : i32, i32
  }
  func.func @transform_6(%arg0: i32) -> (i32, i32) {
    %c0_i32 = arith.constant 0 : i32
    %c0_i32_0 = arith.constant 0 : i32
    return %c0_i32, %arg0 : i32, i32
  }
  func.func @transform_7(%arg0: i32) -> (i32, i32) {
    %c0_i32 = arith.constant 0 : i32
    %c0_i32_0 = arith.constant 0 : i32
    return %c0_i32, %arg0 : i32, i32
  }
}

module attributes {stable_mosaic.version = 11 : i64} {
  func.func @_encoder_kernel(%arg0: i32, %arg1: memref<16x512xf32, #tpu.memory_space<vmem>>, %arg2: memref<16x16xf32, #tpu.memory_space<vmem>>, %arg3: memref<512x16xf32, #tpu.memory_space<vmem>>, %arg4: memref<16x512xf32, #tpu.memory_space<vmem>>, %arg5: memref<2x512xf32, #tpu.memory_space<vmem>>, %arg6: memref<2x512xf32, #tpu.memory_space<vmem>>, %arg7: memref<16x512xf32, #tpu.memory_space<vmem>>, %arg8: memref<1x512xf32, #tpu.memory_space<vmem>>) attributes {dimension_semantics = [#tpu.dimension_semantics<parallel>], iteration_bounds = array<i64: 1>, scalar_prefetch = 0 : i64, scratch_operands = 0 : i64, tpu.core_type = #tpu.core_type<tc>, window_params = [{transform_indices = @transform_0, window_bounds = array<i64: 16, 512>}, {pipeline_mode = #tpu.pipeline_mode<synchronous>, transform_indices = @transform_1, window_bounds = array<i64: 16, 16>}, {pipeline_mode = #tpu.pipeline_mode<synchronous>, transform_indices = @transform_2, window_bounds = array<i64: 512, 16>}, {pipeline_mode = #tpu.pipeline_mode<synchronous>, transform_indices = @transform_3, window_bounds = array<i64: 16, 512>}, {pipeline_mode = #tpu.pipeline_mode<synchronous>, transform_indices = @transform_4, window_bounds = array<i64: 2, 512>}, {pipeline_mode = #tpu.pipeline_mode<synchronous>, transform_indices = @transform_5, window_bounds = array<i64: 2, 512>}, {transform_indices = @transform_6, window_bounds = array<i64: 16, 512>}, {transform_indices = @transform_7, window_bounds = array<i64: 1, 512>}]} {
    %c0 = arith.constant 0 : index
    %c0_0 = arith.constant 0 : index
    %0 = vector.load %arg1[%c0, %c0_0] : memref<16x512xf32, #tpu.memory_space<vmem>>, vector<16x512xf32>
    %c0_1 = arith.constant 0 : index
    %c0_2 = arith.constant 0 : index
    %1 = vector.load %arg2[%c0_1, %c0_2] : memref<16x16xf32, #tpu.memory_space<vmem>>, vector<16x16xf32>
    %c0_3 = arith.constant 0 : index
    %c0_4 = arith.constant 0 : index
    %2 = vector.load %arg3[%c0_3, %c0_4] : memref<512x16xf32, #tpu.memory_space<vmem>>, vector<512x16xf32>
    %c0_5 = arith.constant 0 : index
    %c0_6 = arith.constant 0 : index
    %3 = vector.load %arg4[%c0_5, %c0_6] : memref<16x512xf32, #tpu.memory_space<vmem>>, vector<16x512xf32>
    %4 = arith.truncf %0 : vector<16x512xf32> to vector<16x512xbf16>
    %5 = arith.extf %4 : vector<16x512xbf16> to vector<16x512xf32>
    %6 = arith.subf %0, %5 : vector<16x512xf32>
    %cst = arith.constant dense<0.000000e+00> : vector<16x512xf32>
    %7 = tpu.matmul %1, %5, %cst {dimension_numbers = #tpu.dot_dimension_numbers<[1], [0], [0], [1], [0, 0, 1, 1], [], []>} : vector<16x16xf32>, vector<16x512xf32>, vector<16x512xf32> -> vector<16x512xf32>
    %cst_7 = arith.constant dense<0.000000e+00> : vector<16x512xf32>
    %8 = tpu.matmul %1, %6, %cst_7 {dimension_numbers = #tpu.dot_dimension_numbers<[1], [0], [0], [1], [0, 0, 1, 1], [], []>} : vector<16x16xf32>, vector<16x512xf32>, vector<16x512xf32> -> vector<16x512xf32>
    %9 = arith.addf %7, %8 : vector<16x512xf32>
    %10 = arith.mulf %0, %9 : vector<16x512xf32>
    %cst_8 = arith.constant dense<0.000000e+00> : vector<512xf32>
    %11 = vector.multi_reduction <add>, %10, %cst_8 [0] : vector<16x512xf32> to vector<512xf32>
    %12 = vector.shape_cast %11 : vector<512xf32> to vector<1x512xf32>
    %13 = vector.broadcast %12 : vector<1x512xf32> to vector<16x512xf32>
    %14 = arith.mulf %13, %0 : vector<16x512xf32>
    %cst_9 = arith.constant 5.000000e-01 : f32
    %15 = vector.broadcast %cst_9 : f32 to vector<16x512xf32>
    %16 = arith.mulf %15, %14 : vector<16x512xf32>
    %cst_10 = arith.constant 0.707106769 : f32
    %17 = vector.broadcast %cst_10 : f32 to vector<16x512xf32>
    %18 = arith.mulf %14, %17 : vector<16x512xf32>
    %19 = math.erf %18 : vector<16x512xf32>
    %cst_11 = arith.constant 1.000000e+00 : f32
    %20 = vector.broadcast %cst_11 : f32 to vector<16x512xf32>
    %21 = arith.addf %20, %19 : vector<16x512xf32>
    %22 = arith.mulf %16, %21 : vector<16x512xf32>
    %cst_12 = arith.constant 1.000000e+00 : f32
    %23 = vector.broadcast %cst_12 : f32 to vector<16x512xf32>
    %24 = arith.addf %22, %23 : vector<16x512xf32>
    %cst_13 = arith.constant 5.000000e-01 : f32
    %25 = vector.broadcast %cst_13 : f32 to vector<16x512xf32>
    %26 = arith.mulf %25, %9 : vector<16x512xf32>
    %cst_14 = arith.constant 0.707106769 : f32
    %27 = vector.broadcast %cst_14 : f32 to vector<16x512xf32>
    %28 = arith.mulf %9, %27 : vector<16x512xf32>
    %29 = math.erf %28 : vector<16x512xf32>
    %cst_15 = arith.constant 1.000000e+00 : f32
    %30 = vector.broadcast %cst_15 : f32 to vector<16x512xf32>
    %31 = arith.addf %30, %29 : vector<16x512xf32>
    %32 = arith.mulf %26, %31 : vector<16x512xf32>
    %cst_16 = arith.constant 1.000000e+00 : f32
    %33 = vector.broadcast %cst_16 : f32 to vector<16x512xf32>
    %34 = arith.addf %32, %33 : vector<16x512xf32>
    %35 = arith.mulf %24, %34 : vector<16x512xf32>
    %cst_17 = arith.constant dense<0.000000e+00> : vector<512xf32>
    %36 = vector.multi_reduction <add>, %35, %cst_17 [0] : vector<16x512xf32> to vector<512xf32>
    %37 = vector.shape_cast %36 : vector<512xf32> to vector<1x512xf32>
    %38 = vector.broadcast %37 : vector<1x512xf32> to vector<16x512xf32>
    %39 = arith.mulf %38, %24 : vector<16x512xf32>
    %cst_18 = arith.constant 0.176776692 : f32
    %40 = vector.broadcast %cst_18 : f32 to vector<16x512xf32>
    %41 = arith.mulf %39, %40 : vector<16x512xf32>
    %cst_19 = arith.constant dense<0xFF800000> : vector<512xf32>
    %42 = vector.multi_reduction <maximumf>, %41, %cst_19 [0] : vector<16x512xf32> to vector<512xf32>
    %43 = vector.shape_cast %42 : vector<512xf32> to vector<1x512xf32>
    %44 = vector.broadcast %43 : vector<1x512xf32> to vector<16x512xf32>
    %45 = arith.subf %41, %44 : vector<16x512xf32>
    %46 = math.exp %45 : vector<16x512xf32>
    %cst_20 = arith.constant dense<0.000000e+00> : vector<512xf32>
    %47 = vector.multi_reduction <add>, %46, %cst_20 [0] : vector<16x512xf32> to vector<512xf32>
    %48 = vector.shape_cast %47 : vector<512xf32> to vector<1x512xf32>
    %49 = tpu.reciprocal %48 {approx = true} : vector<1x512xf32> -> vector<1x512xf32>
    %50 = vector.broadcast %49 : vector<1x512xf32> to vector<16x512xf32>
    %51 = arith.mulf %46, %50 : vector<16x512xf32>
    %52 = arith.mulf %51, %14 : vector<16x512xf32>
    %53 = arith.addf %52, %14 : vector<16x512xf32>
    %54 = arith.truncf %53 : vector<16x512xf32> to vector<16x512xbf16>
    %55 = arith.extf %54 : vector<16x512xbf16> to vector<16x512xf32>
    %56 = arith.subf %53, %55 : vector<16x512xf32>
    %cst_21 = arith.constant dense<0.000000e+00> : vector<16x16xf32>
    %57 = tpu.matmul %55, %2, %cst_21 {dimension_numbers = #tpu.dot_dimension_numbers<[1], [0], [0], [1], [0, 0, 1, 1], [], []>} : vector<16x512xf32>, vector<512x16xf32>, vector<16x16xf32> -> vector<16x16xf32>
    %cst_22 = arith.constant dense<0.000000e+00> : vector<16x16xf32>
    %58 = tpu.matmul %56, %2, %cst_22 {dimension_numbers = #tpu.dot_dimension_numbers<[1], [0], [0], [1], [0, 0, 1, 1], [], []>} : vector<16x512xf32>, vector<512x16xf32>, vector<16x16xf32> -> vector<16x16xf32>
    %59 = arith.addf %57, %58 : vector<16x16xf32>
    %cst_23 = arith.constant 3.125000e-02 : f32
    %60 = vector.broadcast %cst_23 : f32 to vector<16x16xf32>
    %61 = arith.mulf %59, %60 : vector<16x16xf32>
    %62 = arith.mulf %53, %53 : vector<16x512xf32>
    %63 = arith.truncf %62 : vector<16x512xf32> to vector<16x512xbf16>
    %64 = arith.extf %63 : vector<16x512xbf16> to vector<16x512xf32>
    %65 = arith.subf %62, %64 : vector<16x512xf32>
    %cst_24 = arith.constant dense<0.000000e+00> : vector<16x16xf32>
    %66 = tpu.matmul %64, %2, %cst_24 {dimension_numbers = #tpu.dot_dimension_numbers<[1], [0], [0], [1], [0, 0, 1, 1], [], []>} : vector<16x512xf32>, vector<512x16xf32>, vector<16x16xf32> -> vector<16x16xf32>
    %cst_25 = arith.constant dense<0.000000e+00> : vector<16x16xf32>
    %67 = tpu.matmul %65, %2, %cst_25 {dimension_numbers = #tpu.dot_dimension_numbers<[1], [0], [0], [1], [0, 0, 1, 1], [], []>} : vector<16x512xf32>, vector<512x16xf32>, vector<16x16xf32> -> vector<16x16xf32>
    %68 = arith.addf %66, %67 : vector<16x16xf32>
    %cst_26 = arith.constant 3.125000e-02 : f32
    %69 = vector.broadcast %cst_26 : f32 to vector<16x16xf32>
    %70 = arith.mulf %68, %69 : vector<16x16xf32>
    %71 = arith.mulf %61, %61 : vector<16x16xf32>
    %72 = arith.subf %70, %71 : vector<16x16xf32>
    %cst_27 = arith.constant 9.99999974E-6 : f32
    %73 = vector.broadcast %cst_27 : f32 to vector<16x16xf32>
    %74 = arith.addf %72, %73 : vector<16x16xf32>
    %75 = math.rsqrt %74 : vector<16x16xf32>
    %76 = arith.truncf %75 : vector<16x16xf32> to vector<16x16xbf16>
    %77 = arith.extf %76 : vector<16x16xbf16> to vector<16x16xf32>
    %78 = arith.subf %75, %77 : vector<16x16xf32>
    %cst_28 = arith.constant dense<0.000000e+00> : vector<16x512xf32>
    %79 = tpu.matmul %77, %3, %cst_28 {dimension_numbers = #tpu.dot_dimension_numbers<[1], [0], [0], [1], [0, 0, 1, 1], [], []>} : vector<16x16xf32>, vector<16x512xf32>, vector<16x512xf32> -> vector<16x512xf32>
    %cst_29 = arith.constant dense<0.000000e+00> : vector<16x512xf32>
    %80 = tpu.matmul %78, %3, %cst_29 {dimension_numbers = #tpu.dot_dimension_numbers<[1], [0], [0], [1], [0, 0, 1, 1], [], []>} : vector<16x16xf32>, vector<16x512xf32>, vector<16x512xf32> -> vector<16x512xf32>
    %81 = arith.addf %79, %80 : vector<16x512xf32>
    %82 = arith.mulf %61, %75 : vector<16x16xf32>
    %83 = arith.truncf %82 : vector<16x16xf32> to vector<16x16xbf16>
    %84 = arith.extf %83 : vector<16x16xbf16> to vector<16x16xf32>
    %85 = arith.subf %82, %84 : vector<16x16xf32>
    %cst_30 = arith.constant dense<0.000000e+00> : vector<16x512xf32>
    %86 = tpu.matmul %84, %3, %cst_30 {dimension_numbers = #tpu.dot_dimension_numbers<[1], [0], [0], [1], [0, 0, 1, 1], [], []>} : vector<16x16xf32>, vector<16x512xf32>, vector<16x512xf32> -> vector<16x512xf32>
    %cst_31 = arith.constant dense<0.000000e+00> : vector<16x512xf32>
    %87 = tpu.matmul %85, %3, %cst_31 {dimension_numbers = #tpu.dot_dimension_numbers<[1], [0], [0], [1], [0, 0, 1, 1], [], []>} : vector<16x16xf32>, vector<16x512xf32>, vector<16x512xf32> -> vector<16x512xf32>
    %88 = arith.addf %86, %87 : vector<16x512xf32>
    %89 = arith.mulf %53, %81 : vector<16x512xf32>
    %90 = arith.subf %89, %88 : vector<16x512xf32>
    %c0_32 = arith.constant 0 : index
    %c0_33 = arith.constant 0 : index
    %91 = vector.load %arg5[%c0_32, %c0_33] : memref<2x512xf32, #tpu.memory_space<vmem>>, vector<1x512xf32>
    %92 = vector.broadcast %91 : vector<1x512xf32> to vector<16x512xf32>
    %93 = arith.mulf %90, %92 : vector<16x512xf32>
    %c0_34 = arith.constant 0 : index
    %c0_35 = arith.constant 0 : index
    %94 = vector.load %arg6[%c0_34, %c0_35] : memref<2x512xf32, #tpu.memory_space<vmem>>, vector<1x512xf32>
    %95 = vector.broadcast %94 : vector<1x512xf32> to vector<16x512xf32>
    %96 = arith.addf %93, %95 : vector<16x512xf32>
    %97 = arith.truncf %96 : vector<16x512xf32> to vector<16x512xbf16>
    %98 = arith.extf %97 : vector<16x512xbf16> to vector<16x512xf32>
    %99 = arith.subf %96, %98 : vector<16x512xf32>
    %cst_36 = arith.constant dense<0.000000e+00> : vector<16x512xf32>
    %100 = tpu.matmul %1, %98, %cst_36 {dimension_numbers = #tpu.dot_dimension_numbers<[1], [0], [0], [1], [0, 0, 1, 1], [], []>} : vector<16x16xf32>, vector<16x512xf32>, vector<16x512xf32> -> vector<16x512xf32>
    %cst_37 = arith.constant dense<0.000000e+00> : vector<16x512xf32>
    %101 = tpu.matmul %1, %99, %cst_37 {dimension_numbers = #tpu.dot_dimension_numbers<[1], [0], [0], [1], [0, 0, 1, 1], [], []>} : vector<16x16xf32>, vector<16x512xf32>, vector<16x512xf32> -> vector<16x512xf32>
    %102 = arith.addf %100, %101 : vector<16x512xf32>
    %103 = arith.mulf %96, %102 : vector<16x512xf32>
    %cst_38 = arith.constant dense<0.000000e+00> : vector<512xf32>
    %104 = vector.multi_reduction <add>, %103, %cst_38 [0] : vector<16x512xf32> to vector<512xf32>
    %105 = vector.shape_cast %104 : vector<512xf32> to vector<1x512xf32>
    %106 = vector.broadcast %105 : vector<1x512xf32> to vector<16x512xf32>
    %107 = arith.mulf %106, %96 : vector<16x512xf32>
    %cst_39 = arith.constant 5.000000e-01 : f32
    %108 = vector.broadcast %cst_39 : f32 to vector<16x512xf32>
    %109 = arith.mulf %108, %96 : vector<16x512xf32>
    %cst_40 = arith.constant 0.707106769 : f32
    %110 = vector.broadcast %cst_40 : f32 to vector<16x512xf32>
    %111 = arith.mulf %96, %110 : vector<16x512xf32>
    %112 = math.erf %111 : vector<16x512xf32>
    %cst_41 = arith.constant 1.000000e+00 : f32
    %113 = vector.broadcast %cst_41 : f32 to vector<16x512xf32>
    %114 = arith.addf %113, %112 : vector<16x512xf32>
    %115 = arith.mulf %109, %114 : vector<16x512xf32>
    %cst_42 = arith.constant 1.000000e+00 : f32
    %116 = vector.broadcast %cst_42 : f32 to vector<16x512xf32>
    %117 = arith.addf %115, %116 : vector<16x512xf32>
    %cst_43 = arith.constant 5.000000e-01 : f32
    %118 = vector.broadcast %cst_43 : f32 to vector<16x512xf32>
    %119 = arith.mulf %118, %102 : vector<16x512xf32>
    %cst_44 = arith.constant 0.707106769 : f32
    %120 = vector.broadcast %cst_44 : f32 to vector<16x512xf32>
    %121 = arith.mulf %102, %120 : vector<16x512xf32>
    %122 = math.erf %121 : vector<16x512xf32>
    %cst_45 = arith.constant 1.000000e+00 : f32
    %123 = vector.broadcast %cst_45 : f32 to vector<16x512xf32>
    %124 = arith.addf %123, %122 : vector<16x512xf32>
    %125 = arith.mulf %119, %124 : vector<16x512xf32>
    %cst_46 = arith.constant 1.000000e+00 : f32
    %126 = vector.broadcast %cst_46 : f32 to vector<16x512xf32>
    %127 = arith.addf %125, %126 : vector<16x512xf32>
    %128 = arith.mulf %117, %127 : vector<16x512xf32>
    %cst_47 = arith.constant dense<0.000000e+00> : vector<512xf32>
    %129 = vector.multi_reduction <add>, %128, %cst_47 [0] : vector<16x512xf32> to vector<512xf32>
    %130 = vector.shape_cast %129 : vector<512xf32> to vector<1x512xf32>
    %131 = vector.broadcast %130 : vector<1x512xf32> to vector<16x512xf32>
    %132 = arith.mulf %131, %117 : vector<16x512xf32>
    %cst_48 = arith.constant 0.176776692 : f32
    %133 = vector.broadcast %cst_48 : f32 to vector<16x512xf32>
    %134 = arith.mulf %132, %133 : vector<16x512xf32>
    %cst_49 = arith.constant dense<0xFF800000> : vector<512xf32>
    %135 = vector.multi_reduction <maximumf>, %134, %cst_49 [0] : vector<16x512xf32> to vector<512xf32>
    %136 = vector.shape_cast %135 : vector<512xf32> to vector<1x512xf32>
    %137 = vector.broadcast %136 : vector<1x512xf32> to vector<16x512xf32>
    %138 = arith.subf %134, %137 : vector<16x512xf32>
    %139 = math.exp %138 : vector<16x512xf32>
    %cst_50 = arith.constant dense<0.000000e+00> : vector<512xf32>
    %140 = vector.multi_reduction <add>, %139, %cst_50 [0] : vector<16x512xf32> to vector<512xf32>
    %141 = vector.shape_cast %140 : vector<512xf32> to vector<1x512xf32>
    %142 = tpu.reciprocal %141 {approx = true} : vector<1x512xf32> -> vector<1x512xf32>
    %143 = vector.broadcast %142 : vector<1x512xf32> to vector<16x512xf32>
    %144 = arith.mulf %139, %143 : vector<16x512xf32>
    %145 = arith.mulf %144, %107 : vector<16x512xf32>
    %146 = arith.addf %145, %96 : vector<16x512xf32>
    %147 = arith.truncf %146 : vector<16x512xf32> to vector<16x512xbf16>
    %148 = arith.extf %147 : vector<16x512xbf16> to vector<16x512xf32>
    %149 = arith.subf %146, %148 : vector<16x512xf32>
    %cst_51 = arith.constant dense<0.000000e+00> : vector<16x16xf32>
    %150 = tpu.matmul %148, %2, %cst_51 {dimension_numbers = #tpu.dot_dimension_numbers<[1], [0], [0], [1], [0, 0, 1, 1], [], []>} : vector<16x512xf32>, vector<512x16xf32>, vector<16x16xf32> -> vector<16x16xf32>
    %cst_52 = arith.constant dense<0.000000e+00> : vector<16x16xf32>
    %151 = tpu.matmul %149, %2, %cst_52 {dimension_numbers = #tpu.dot_dimension_numbers<[1], [0], [0], [1], [0, 0, 1, 1], [], []>} : vector<16x512xf32>, vector<512x16xf32>, vector<16x16xf32> -> vector<16x16xf32>
    %152 = arith.addf %150, %151 : vector<16x16xf32>
    %cst_53 = arith.constant 3.125000e-02 : f32
    %153 = vector.broadcast %cst_53 : f32 to vector<16x16xf32>
    %154 = arith.mulf %152, %153 : vector<16x16xf32>
    %155 = arith.mulf %146, %146 : vector<16x512xf32>
    %156 = arith.truncf %155 : vector<16x512xf32> to vector<16x512xbf16>
    %157 = arith.extf %156 : vector<16x512xbf16> to vector<16x512xf32>
    %158 = arith.subf %155, %157 : vector<16x512xf32>
    %cst_54 = arith.constant dense<0.000000e+00> : vector<16x16xf32>
    %159 = tpu.matmul %157, %2, %cst_54 {dimension_numbers = #tpu.dot_dimension_numbers<[1], [0], [0], [1], [0, 0, 1, 1], [], []>} : vector<16x512xf32>, vector<512x16xf32>, vector<16x16xf32> -> vector<16x16xf32>
    %cst_55 = arith.constant dense<0.000000e+00> : vector<16x16xf32>
    %160 = tpu.matmul %158, %2, %cst_55 {dimension_numbers = #tpu.dot_dimension_numbers<[1], [0], [0], [1], [0, 0, 1, 1], [], []>} : vector<16x512xf32>, vector<512x16xf32>, vector<16x16xf32> -> vector<16x16xf32>
    %161 = arith.addf %159, %160 : vector<16x16xf32>
    %cst_56 = arith.constant 3.125000e-02 : f32
    %162 = vector.broadcast %cst_56 : f32 to vector<16x16xf32>
    %163 = arith.mulf %161, %162 : vector<16x16xf32>
    %164 = arith.mulf %154, %154 : vector<16x16xf32>
    %165 = arith.subf %163, %164 : vector<16x16xf32>
    %cst_57 = arith.constant 9.99999974E-6 : f32
    %166 = vector.broadcast %cst_57 : f32 to vector<16x16xf32>
    %167 = arith.addf %165, %166 : vector<16x16xf32>
    %168 = math.rsqrt %167 : vector<16x16xf32>
    %169 = arith.truncf %168 : vector<16x16xf32> to vector<16x16xbf16>
    %170 = arith.extf %169 : vector<16x16xbf16> to vector<16x16xf32>
    %171 = arith.subf %168, %170 : vector<16x16xf32>
    %cst_58 = arith.constant dense<0.000000e+00> : vector<16x512xf32>
    %172 = tpu.matmul %170, %3, %cst_58 {dimension_numbers = #tpu.dot_dimension_numbers<[1], [0], [0], [1], [0, 0, 1, 1], [], []>} : vector<16x16xf32>, vector<16x512xf32>, vector<16x512xf32> -> vector<16x512xf32>
    %cst_59 = arith.constant dense<0.000000e+00> : vector<16x512xf32>
    %173 = tpu.matmul %171, %3, %cst_59 {dimension_numbers = #tpu.dot_dimension_numbers<[1], [0], [0], [1], [0, 0, 1, 1], [], []>} : vector<16x16xf32>, vector<16x512xf32>, vector<16x512xf32> -> vector<16x512xf32>
    %174 = arith.addf %172, %173 : vector<16x512xf32>
    %175 = arith.mulf %154, %168 : vector<16x16xf32>
    %176 = arith.truncf %175 : vector<16x16xf32> to vector<16x16xbf16>
    %177 = arith.extf %176 : vector<16x16xbf16> to vector<16x16xf32>
    %178 = arith.subf %175, %177 : vector<16x16xf32>
    %cst_60 = arith.constant dense<0.000000e+00> : vector<16x512xf32>
    %179 = tpu.matmul %177, %3, %cst_60 {dimension_numbers = #tpu.dot_dimension_numbers<[1], [0], [0], [1], [0, 0, 1, 1], [], []>} : vector<16x16xf32>, vector<16x512xf32>, vector<16x512xf32> -> vector<16x512xf32>
    %cst_61 = arith.constant dense<0.000000e+00> : vector<16x512xf32>
    %180 = tpu.matmul %178, %3, %cst_61 {dimension_numbers = #tpu.dot_dimension_numbers<[1], [0], [0], [1], [0, 0, 1, 1], [], []>} : vector<16x16xf32>, vector<16x512xf32>, vector<16x512xf32> -> vector<16x512xf32>
    %181 = arith.addf %179, %180 : vector<16x512xf32>
    %182 = arith.mulf %146, %174 : vector<16x512xf32>
    %183 = arith.subf %182, %181 : vector<16x512xf32>
    %c1 = arith.constant 1 : index
    %c0_62 = arith.constant 0 : index
    %184 = vector.load %arg5[%c1, %c0_62] : memref<2x512xf32, #tpu.memory_space<vmem>>, vector<1x512xf32>
    %185 = vector.broadcast %184 : vector<1x512xf32> to vector<16x512xf32>
    %186 = arith.mulf %183, %185 : vector<16x512xf32>
    %c1_63 = arith.constant 1 : index
    %c0_64 = arith.constant 0 : index
    %187 = vector.load %arg6[%c1_63, %c0_64] : memref<2x512xf32, #tpu.memory_space<vmem>>, vector<1x512xf32>
    %188 = vector.broadcast %187 : vector<1x512xf32> to vector<16x512xf32>
    %189 = arith.addf %186, %188 : vector<16x512xf32>
    %c0_65 = arith.constant 0 : index
    %c0_66 = arith.constant 0 : index
    %190 = vector.load %arg7[%c0_65, %c0_66] : memref<16x512xf32, #tpu.memory_space<vmem>>, vector<16x512xf32>
    tpu.vector_store %arg7[%c0_65, %c0_66], %189 {strides = array<i32>} : memref<16x512xf32, #tpu.memory_space<vmem>>, vector<16x512xf32>,
    %191 = vector.extract_strided_slice %102 {offsets = [15, 0], sizes = [1, 512], strides = [1, 1]} : vector<16x512xf32> to vector<1x512xf32>
    %c0_67 = arith.constant 0 : index
    %c0_68 = arith.constant 0 : index
    %192 = vector.load %arg8[%c0_67, %c0_68] : memref<1x512xf32, #tpu.memory_space<vmem>>, vector<1x512xf32>
    tpu.vector_store %arg8[%c0_67, %c0_68], %191 {strides = array<i32>} : memref<1x512xf32, #tpu.memory_space<vmem>>, vector<1x512xf32>,
    return
  }
  func.func @transform_0(%arg0: i32) -> (i32, i32) {
    %c0_i32 = arith.constant 0 : i32
    %c0_i32_0 = arith.constant 0 : i32
    return %c0_i32, %arg0 : i32, i32
  }
  func.func @transform_1(%arg0: i32) -> (i32, i32) {
    %c0_i32 = arith.constant 0 : i32
    %c0_i32_0 = arith.constant 0 : i32
    %c0_i32_1 = arith.constant 0 : i32
    return %c0_i32, %c0_i32_0 : i32, i32
  }
  func.func @transform_2(%arg0: i32) -> (i32, i32) {
    %c0_i32 = arith.constant 0 : i32
    %c0_i32_0 = arith.constant 0 : i32
    %c0_i32_1 = arith.constant 0 : i32
    return %c0_i32, %c0_i32_0 : i32, i32
  }
  func.func @transform_3(%arg0: i32) -> (i32, i32) {
    %c0_i32 = arith.constant 0 : i32
    %c0_i32_0 = arith.constant 0 : i32
    %c0_i32_1 = arith.constant 0 : i32
    return %c0_i32, %c0_i32_0 : i32, i32
  }
  func.func @transform_4(%arg0: i32) -> (i32, i32) {
    %c0_i32 = arith.constant 0 : i32
    %c0_i32_0 = arith.constant 0 : i32
    %c0_i32_1 = arith.constant 0 : i32
    return %c0_i32, %c0_i32_0 : i32, i32
  }
  func.func @transform_5(%arg0: i32) -> (i32, i32) {
    %c0_i32 = arith.constant 0 : i32
    %c0_i32_0 = arith.constant 0 : i32
    %c0_i32_1 = arith.constant 0 : i32
    return %c0_i32, %c0_i32_0 : i32, i32
  }
  func.func @transform_6(%arg0: i32) -> (i32, i32) {
    %c0_i32 = arith.constant 0 : i32
    %c0_i32_0 = arith.constant 0 : i32
    return %c0_i32, %arg0 : i32, i32
  }
  func.func @transform_7(%arg0: i32) -> (i32, i32) {
    %c0_i32 = arith.constant 0 : i32
    %c0_i32_0 = arith.constant 0 : i32
    return %c0_i32, %arg0 : i32, i32
  }
}

</mosaic_0001>

<bundles_post_ra>
// kernel: tpu_custom_call.1
= control target key start
LH: loop header
LB: loop body
LE: loop exit
PB: predicated region body
PF: predicated region fallthrough
CT: control target
= control target key end

     0   :  { %13 = vsyncpa [#allocation3], 0  ;;  %s8624_s0 = inlined_call_operand.vmem [shape: f32[16,512], index: 0, kind: input, shape index: {}]   ;;  %s8625_s1 = inlined_call_operand.vmem [shape: f32[16,16], index: 1, kind: input, shape index: {}]   ;;  %s8626_s2 = inlined_call_operand.vmem [shape: f32[512,16], index: 2, kind: input, shape index: {}]   ;;  %s8627_s3 = inlined_call_operand.vmem [shape: f32[16,512], index: 3, kind: input, shape index: {}]   ;;  %s8628_s4 = inlined_call_operand.vmem [shape: f32[2,512], index: 4, kind: input, shape index: {}]   ;;  %s8629_s5 = inlined_call_operand.vmem [shape: f32[2,512], index: 5, kind: input, shape index: {}]   ;;  %s8630_s6 = inlined_call_operand.hbm [shape: f32[16,512], index: 6, kind: output, shape index: {0}]   ;;  %s8631_s7 = inlined_call_operand.hbm [shape: f32[1,512], index: 7, kind: output, shape index: {1}]  }
   0x1   :  { %v4733_v0 = vld [vmem:[%s8624_s0 + $0x20] sm:$0xff]  ;;  %v4738_v1 = vld [vmem:[%s8624_s0 + $0x28] sm:$0xff]  ;;  %v4743_v2 = vld [vmem:[%s8624_s0 + $0x30] sm:$0xff] }
   0x2   :  { %v111_v3 = vpack.c.bf16 %v4738_v1, %v4733_v0  ;;  %v34_v4 = vld [vmem:[%s8624_s0 + $0x38] sm:$0xff]  ;;  %v4753_v5 = vld [vmem:[%s8624_s0] sm:$0xff]  ;;  %v4758_v6 = vld [vmem:[%s8624_s0 + $0x8] sm:$0xff] }
   0x3   :  { %v112_v7 = vpack.c.bf16 %v34_v4, %v4743_v2  ;;  %v109_v8 = vpack.c.bf16 %v4758_v6, %v4753_v5  ;;  %v4766_v9 = vld [vmem:[%s8624_s0 + $0x10] sm:$0xff]  ;;  %v30_v10 = vld [vmem:[%s8624_s0 + $0x18] sm:$0xff] }
   0x4   :  { %v117_v11 = vunpack.c.l.bf16 %v111_v3  ;;  %v118_v12 = vunpack.c.h.bf16 %v111_v3  ;;  %v110_v13 = vpack.c.bf16 %v30_v10, %v4766_v9 }
   0x5   :  { %14 = vsyncpa [#allocation5], 0  ;;  %v119_v14 = vunpack.c.l.bf16 %v112_v7  ;;  %v120_v15 = vunpack.c.h.bf16 %v112_v7  ;;  %v113_v16 = vunpack.c.l.bf16 %v109_v8  ;;  %v114_v17 = vunpack.c.h.bf16 %v109_v8  ;;  %v35_v28 = vld [vmem:[%s8625_s1] sm:$0xff]  ;;  %v36_v29 = vld [vmem:[%s8625_s1 + $0x8] sm:$0xff]  ;;  %s4226_s29 = sshll.u32 %s8631_s7, 4  ;;  %s4686_s30 = smov [#allocation4]   ;;  %s4227_s29 = int_to_ptr.hbm [resolvable:$true] %s4226_s29 }
   0x6   :  { %v125_v18 = vsub.f32 %v4733_v0, %v117_v11  ;;  %v126_v19 = vsub.f32 %v4738_v1, %v118_v12  ;;  %v115_v20 = vunpack.c.l.bf16 %v110_v13  ;;  %v116_v21 = vunpack.c.h.bf16 %v110_v13  ;;  %s4224_s8 = sshll.u32 %s4686_s30, 4  ;;  %s4212_s14 = sshll.u32 %s8630_s6, 4  ;;  %s4225_s8 = int_to_ptr.vmem [resolvable:$true] %s4224_s8  ;;  %s4213_s14 = int_to_ptr.hbm [resolvable:$true] %s4212_s14 }
   0x7   :  { %v127_v22 = vsub.f32 %v4743_v2, %v119_v14  ;;  %v128_v23 = vsub.f32 %v34_v4, %v120_v15  ;;  %v121_v24 = vsub.f32 %v4753_v5, %v113_v16  ;;  %v122_v25 = vsub.f32 %v4758_v6, %v114_v17  ;;  %s4688_s15 = smov 512   ;;  %s4689_s16 = smov 32  }
   0x8   :  { %150 = vmatpush.msra.mxu0 %v125_v18  ;;  %173 = vmatpush.msra.mxu1 %v126_v19  ;;  %v123_v26 = vsub.f32 %v4766_v9, %v115_v20  ;;  %v124_v27 = vsub.f32 %v30_v10, %v116_v21  ;;  %vm129_vm0 = vcmask 130048  }
   0x9   :  { %196 = vmatpush.msra.mxu2 %v127_v22  ;;  %219 = vmatpush.msra.mxu3 %v128_v23 }
   0xa   :  { %151 = vmatpush.msra.mxu0 %v121_v24  ;;  %174 = vmatpush.msra.mxu1 %v122_v25 }
   0xb   :  { %197 = vmatpush.msra.mxu2 %v123_v26  ;;  %220 = vmatpush.msra.mxu3 %v124_v27 }
   0xc   :  { %4240 = vmatmul.msk.f32.vlgmr.msra.gmra.mxu0 %vm129_vm0, %v35_v28  ;;  %4242 = vmatmul.msk.f32.vlgmr.msra.gmra.mxu1 %vm129_vm0, %v35_v28 }
   0xd   :  { %4244 = vmatmul.msk.f32.vlgmr.msra.gmra.mxu2 %vm129_vm0, %v35_v28  ;;  %4246 = vmatmul.msk.f32.vlgmr.msra.gmra.mxu3 %vm129_vm0, %v35_v28 }
   0xe   :  { %242 = vmatpush.msrb.mxu0 %v117_v11  ;;  %265 = vmatpush.msrb.mxu1 %v118_v12 }
   0xf   :  { %288 = vmatpush.msrb.mxu2 %v119_v14  ;;  %311 = vmatpush.msrb.mxu3 %v120_v15 }
  0x10   :  { %243 = vmatpush.msrb.mxu0 %v113_v16  ;;  %266 = vmatpush.msrb.mxu1 %v114_v17 }
  0x11   :  { %289 = vmatpush.msrb.mxu2 %v115_v20  ;;  %312 = vmatpush.msrb.mxu3 %v116_v21 }
  0x14   :  { %4241 = vmatmul.msk.f32.gmra.mxu0 %vm129_vm0, %v36_v29  ;;  %4243 = vmatmul.msk.f32.gmra.mxu1 %vm129_vm0, %v36_v29 }
  0x15   :  { %4245 = vmatmul.msk.f32.gmra.mxu2 %vm129_vm0, %v36_v29  ;;  %4247 = vmatmul.msk.f32.gmra.mxu3 %vm129_vm0, %v36_v29 }
  0x1c   :  { %4248 = vmatmul.msk.f32.vlgmr.msrb.gmra.mxu0 %vm129_vm0, %v35_v28  ;;  %4250 = vmatmul.msk.f32.vlgmr.msrb.gmra.mxu1 %vm129_vm0, %v35_v28 }
  0x1d   :  { %4252 = vmatmul.msk.f32.vlgmr.msrb.gmra.mxu2 %vm129_vm0, %v35_v28  ;;  %4254 = vmatmul.msk.f32.vlgmr.msrb.gmra.mxu3 %vm129_vm0, %v35_v28 }
  0x24   :  { %4249 = vmatmul.msk.f32.gmra.mxu0 %vm129_vm0, %v36_v29  ;;  %4251 = vmatmul.msk.f32.gmra.mxu1 %vm129_vm0, %v36_v29 }
  0x25   :  { %4253 = vmatmul.msk.f32.gmra.mxu2 %vm129_vm0, %v36_v29  ;;  %4255 = vmatmul.msk.f32.gmra.mxu3 %vm129_vm0, %v36_v29 }
  0x89   :  { %v153_v30 = vpop.f32.mrf.mxu0  ;;  %v176_v31 = vpop.f32.mrf.mxu1 }
  0x90   :  { %v199_v32 = vpop.f32.mrf.mxu2  ;;  %v222_v35 = vpop.f32.mrf.mxu3 }
  0x91   :  { %v156_v33 = vpop.f32.mrf.mxu0  ;;  %v4800_v34 = vpop.f32.mrf.mxu1 }
  0x98   :  { %v4802_v36 = vpop.f32.mrf.mxu2  ;;  %v4820_v47 = vpop.f32.mrf.mxu3 }
  0x99   :  { %v245_v37 = vpop.f32.mrf.mxu0  ;;  %v268_v38 = vpop.f32.mrf.mxu1 }
  0x9a   :  { %v4804_v39 = vadd.f32 %v245_v37, %v153_v30  ;;  %v4806_v40 = vadd.f32 %v268_v38, %v176_v31 }
  0x9c   :  { %v4809_v41 = vmul.f32 0.70710677, %v4804_v39  ;;  %v4812_v42 = vmul.f32 0.70710677, %v4806_v40  ;;  %v320_v13 = vmul.f32 %v4804_v39, %v4753_v5 }
  0x9e   :  { %v740_v43 = vmul.f32 %v4809_v41, %v4809_v41  ;;  %v780_v44 = vmul.f32 %v4812_v42, %v4812_v42 }
  0xa0   :  { %v4818_v45 = vmin.f32 %v740_v43, 16.0  ;;  %v291_v46 = vpop.f32.mrf.mxu2  ;;  %v4822_v48 = vmin.f32 %v780_v44, 16.0  ;;  %v314_v12 = vpop.f32.mrf.mxu3 }
  0xa1   :  { %v4824_v49 = vadd.f32 %v291_v46, %v199_v32  ;;  %v248_v54 = vpop.f32.mrf.mxu0  ;;  %v4849_v19 = vadd.f32 %v314_v12, %v222_v35 }
  0xa2   :  { %v742_v50 = vmul.f32 2.1237322e-06, %v4818_v45  ;;  %v753_v51 = vmul.f32 3.8918573e-05, %v4818_v45  ;;  %v782_v52 = vmul.f32 2.1237322e-06, %v4822_v48  ;;  %v4834_v61 = vadd.f32 %v248_v54, %v156_v33 }
  0xa3   :  { %v793_v53 = vmul.f32 3.8918573e-05, %v4822_v48  ;;  %v4831_v56 = vmul.f32 0.70710677, %v4824_v49  ;;  %v4857_v27 = vmul.f32 0.70710677, %v4849_v19 }
  0xa4   :  { %v754_v55 = vadd.f32 0.001143296, %v753_v51  ;;  %v743_v57 = vadd.f32 0.00028619796, %v742_v50  ;;  %v783_v60 = vadd.f32 0.00028619796, %v782_v52  ;;  %v324_v10 = vmul.f32 %v4834_v61, %v4733_v0 }
  0xa5   :  { %v794_v58 = vadd.f32 0.001143296, %v793_v53  ;;  %v820_v3 = vmul.f32 %v4831_v56, %v4831_v56  ;;  %v860_v37 = vmul.f32 %v4857_v27, %v4857_v27 }
  0xa6   :  { %v755_v59 = vmul.f32 %v754_v55, %v4818_v45  ;;  %v744_v4 = vmul.f32 %v743_v57, %v4818_v45  ;;  %v784_v8 = vmul.f32 %v783_v60, %v4822_v48  ;;  %v328_v20 = vadd.f32 %v324_v10, %v320_v13 }
  0xa7   :  { %v795_v62 = vmul.f32 %v794_v58, %v4822_v48  ;;  %v4846_v15 = vmin.f32 %v820_v3, 16.0  ;;  %v4869_v53 = vmin.f32 %v860_v37, 16.0  ;;  %v4911_v37 = vmul.f32 %v4824_v49, %v4766_v9 }
  0xa8   :  { %v756_v63 = vadd.f32 0.014752088, %v755_v59  ;;  %v745_v16 = vadd.f32 0.0036580483, %v744_v4  ;;  %v785_v18 = vadd.f32 0.0036580483, %v784_v8 }
  0xa9   :  { %v796_v11 = vadd.f32 0.014752088, %v795_v62  ;;  %v822_v23 = vmul.f32 2.1237322e-06, %v4846_v15  ;;  %v833_v26 = vmul.f32 3.8918573e-05, %v4846_v15 }
  0xaa   :  { %v757_v7 = vmul.f32 %v756_v63, %v4818_v45  ;;  %v746_v24 = vmul.f32 %v745_v16, %v4818_v45  ;;  %v786_v25 = vmul.f32 %v785_v18, %v4822_v48  ;;  %v329_v28 = vrot.slane %v328_v20, 4 }
  0xab   :  { %v797_v21 = vmul.f32 %v796_v11, %v4822_v48  ;;  %v823_v31 = vadd.f32 0.00028619796, %v822_v23  ;;  %v834_v35 = vadd.f32 0.001143296, %v833_v26  ;;  %v4873_v59 = vmul.f32 0.70710677, %v4834_v61 }
  0xac   :  { %v758_v14 = vadd.f32 0.112945676, %v757_v7  ;;  %v747_v32 = vadd.f32 0.05243302, %v746_v24  ;;  %v787_v33 = vadd.f32 0.05243302, %v786_v25  ;;  %v330_v38 = vadd.f32 %v329_v28, %v328_v20 }
  0xad   :  { %v798_v30 = vadd.f32 0.112945676, %v797_v21  ;;  %v824_v46 = vmul.f32 %v823_v31, %v4846_v15  ;;  %v835_v52 = vmul.f32 %v834_v35, %v4846_v15  ;;  %v862_v3 = vmul.f32 2.1237322e-06, %v4869_v53  ;;  %v271_v31 = vpop.f32.mrf.mxu1 }
  0xae   :  { %v759_v17 = vmul.f32 %v758_v14, %v4818_v45  ;;  %v748_v50 = vmul.f32 %v747_v32, %v4818_v45  ;;  %v788_v51 = vmul.f32 %v787_v33, %v4822_v48  ;;  %v331_v54 = vrot.slane %v330_v38, 2 }
  0xaf   :  { %v799_v44 = vmul.f32 %v798_v30, %v4822_v48  ;;  %v825_v57 = vadd.f32 0.0036580483, %v824_v46  ;;  %v836_v63 = vadd.f32 0.014752088, %v835_v52  ;;  %v873_v7 = vmul.f32 3.8918573e-05, %v4869_v53 }
  0xb0   :  { %v760_v22 = vadd.f32 0.4994258, %v759_v17  ;;  %v332_v58 = vadd.f32 %v331_v54, %v330_v38  ;;  %v749_v60 = vadd.f32 0.18741608, %v748_v50  ;;  %v789_v62 = vadd.f32 0.18741608, %v788_v51 }
  0xb1   :  { %v800_v55 = vadd.f32 0.4994258, %v799_v44  ;;  %v826_v10 = vmul.f32 %v825_v57, %v4846_v15  ;;  %v900_v11 = vmul.f32 %v4873_v59, %v4873_v59  ;;  %v837_v16 = vmul.f32 %v836_v63, %v4846_v15 }
  0xb2   :  { %v761_v29 = vmul.f32 %v760_v22, %v4818_v45  ;;  %v333_v8 = vrot.slane %v332_v58, 1  ;;  %v750_v13 = vmul.f32 %v749_v60, %v4818_v45  ;;  %v790_v14 = vmul.f32 %v789_v62, %v4822_v48 }
  0xb3   :  { %v801_v4 = vmul.f32 %v800_v55, %v4822_v48  ;;  %v863_v17 = vadd.f32 0.00028619796, %v862_v3  ;;  %v874_v20 = vadd.f32 0.001143296, %v873_v7  ;;  %v4888_v22 = vmin.f32 %v900_v11, 16.0 }
  0xb4   :  { %v4862_v43 = vadd.f32 1.0, %v761_v29  ;;  %v334_v21 = vadd.f32 %v333_v8, %v332_v58  ;;  %v827_v24 = vadd.f32 0.05243302, %v826_v10  ;;  %v4893_v25 = vmul.f32 0.5, %v4804_v39 }
  0xb5   :  { %v4886_v18 = vadd.f32 1.0, %v801_v4  ;;  %v751_v26 = vadd.f32 1.1283791, %v750_v13  ;;  %v4897_v45 = vmul.f32 %v4806_v40, %v4758_v6  ;;  %v791_v48 = vadd.f32 1.1283791, %v790_v14 }
  0xb6   :  { %4374 = vrcp.f32 %v4862_v43  ;;  %v838_v28 = vadd.f32 0.112945676, %v837_v16  ;;  %v864_v29 = vmul.f32 %v863_v17, %v4869_v53  ;;  %v4901_v30 = vmul.f32 %v334_v21, %v4753_v5 }
  0xb7   :  { %4376 = vrcp.f32 %v4886_v18  ;;  %v875_v32 = vmul.f32 %v874_v20, %v4869_v53  ;;  %v4906_v39 = vmul.f32 %v334_v21, %v4733_v0  ;;  %v902_v33 = vmul.f32 2.1237322e-06, %v4888_v22 }
  0xb8   :  { %v828_v38 = vmul.f32 %v827_v24, %v4846_v15  ;;  %v4915_v5 = vmul.f32 0.5, %v4834_v61  ;;  %v4918_v44 = vmul.f32 %v751_v26, %v4809_v41  ;;  %v772_v46 = vand.u32 2147483647, %v4862_v43 }
  0xb9   :  { %8743 = vst [vmem:[#allocation8_spill] sm:$0xff] %v4906_v39  ;;  %v774_v0 = vand.u32 2147483648, %v4862_v43  ;;  %v4923_v50 = vadd.f32 %v271_v31, %v4800_v34  ;;  %vm768_vm1 = vweird.f32 %v4862_v43  ;;  %v814_v51 = vand.u32 2147483648, %v4886_v18 }
  0xba   :  { %v839_v52 = vmul.f32 %v838_v28, %v4846_v15  ;;  %v865_v54 = vadd.f32 0.0036580483, %v864_v29  ;;  %v4929_v61 = vmul.f32 0.70710677, %v4901_v30  ;;  %v4932_v41 = vmul.f32 %v791_v48, %v4812_v42 }
  0xbb   :  { %v876_v55 = vadd.f32 0.014752088, %v875_v32  ;;  %v4935_v57 = vmul.f32 0.70710677, %v4906_v39  ;;  %v903_v58 = vadd.f32 0.00028619796, %v902_v33  ;;  %v325_v32 = vmul.f32 %v4923_v50, %v4738_v1 }
  0xbc   :  { %v4881_v12 = vpop.eup %4374  ;;  %v812_v60 = vand.u32 2147483647, %v4886_v18  ;;  %v829_v62 = vadd.f32 0.18741608, %v828_v38  ;;  %v380_v63 = vmul.f32 %v4929_v61, %v4929_v61  ;;  %v775_v4 = vor.u32 1.1754944e-38, %v774_v0 }
  0xbd   :  { %v764_v23 = vmul.f32 %v4881_v12, %v4862_v43  ;;  %v4941_v3 = vpop.eup %4376  ;;  %v540_v42 = vmul.f32 %v4935_v57, %v4935_v57  ;;  %v904_v7 = vmul.f32 %v903_v58, %v4888_v22  ;;  %v913_v8 = vmul.f32 3.8918573e-05, %v4888_v22 }
  0xbe   :  { %vm4947_vm2 = vcmp.eq.f32.partialorder %v772_v46, 8.507059e+37  ;;  %v4951_v11 = vor.u32 1.1754944e-38, %v814_v51  ;;  %v840_v13 = vadd.f32 0.4994258, %v839_v52  ;;  %v866_v14 = vmul.f32 %v865_v54, %v4869_v53 }
  0xbf   :  { %v765_v35 = vsub.f32 1.0, %v764_v23  ;;  %v4954_v16 = vmin.f32 %v380_v63, 16.0  ;;  %v877_v17 = vmul.f32 %v876_v55, %v4869_v53  ;;  %v4957_v20 = vmin.f32 %v540_v42, 16.0 }
  0xc0   :  { %v905_v21 = vadd.f32 0.0036580483, %v904_v7  ;;  %v914_v23 = vadd.f32 0.001143296, %v913_v8  ;;  %vm769_vm3 = vweird.f32 %v4881_v12  ;;  %v804_v26 = vmul.f32 %v4941_v3, %v4886_v18 }
  0xc1   :  { %v766_v34 = vmul.f32 %v4881_v12, %v765_v35  ;;  %v4964_v48 = vmul.f32 %v829_v62, %v4846_v15  ;;  %v382_v28 = vmul.f32 2.1237322e-06, %v4954_v16  ;;  %v393_v29 = vmul.f32 3.8918573e-05, %v4954_v16  ;;  %vm4976_vm4 = vmor %vm768_vm1, %vm769_vm3 }
  0xc2   :  { %v542_v31 = vmul.f32 2.1237322e-06, %v4957_v20  ;;  %v841_v33 = vmul.f32 %v840_v13, %v4846_v15  ;;  %v867_v35 = vadd.f32 0.05243302, %v866_v14  ;;  %v553_v38 = vmul.f32 3.8918573e-05, %v4957_v20 }
  0xc3   :  { %v767_v24 = vadd.f32 %v4881_v12, %v766_v34  ;;  %v906_v46 = vmul.f32 %v905_v21, %v4888_v22  ;;  %v383_v51 = vadd.f32 0.00028619796, %v382_v28  ;;  %v394_v52 = vadd.f32 0.001143296, %v393_v29 }
  0xc4   :  { %v543_v54 = vadd.f32 0.00028619796, %v542_v31  ;;  %v915_v55 = vmul.f32 %v914_v23, %v4888_v22  ;;  %v805_v58 = vsub.f32 1.0, %v804_v26  ;;  %v554_v34 = vadd.f32 0.001143296, %v553_v38 }
  0xc5   :  { %v771_v15 = vsel %vm4976_vm4, %v4881_v12, %v767_v24  ;;  %v907_v62 = vadd.f32 0.05243302, %v906_v46  ;;  %vm809_vm5 = vweird.f32 %v4941_v3  ;;  %v384_v43 = vmul.f32 %v383_v51, %v4954_v16 }
  0xc6   :  { %v395_v63 = vmul.f32 %v394_v52, %v4954_v16  ;;  %v544_v42 = vmul.f32 %v543_v54, %v4957_v20  ;;  %v916_v7 = vadd.f32 0.014752088, %v915_v55  ;;  %v4988_v8 = vadd.f32 1.0, %v841_v33 }
  0xc7   :  { %v878_v13 = vadd.f32 0.112945676, %v877_v17  ;;  %v555_v14 = vmul.f32 %v554_v34, %v4957_v20  ;;  %v908_v21 = vmul.f32 %v907_v62, %v4888_v22  ;;  %v776_v12 = vsel %vm4947_vm2, %v775_v4, %v771_v15 }
  0xc8   :  { %vm808_vm6 = vweird.f32 %v4886_v18  ;;  %v385_v23 = vadd.f32 0.0036580483, %v384_v43  ;;  %v396_v24 = vadd.f32 0.014752088, %v395_v63  ;;  %v545_v26 = vadd.f32 0.0036580483, %v544_v42  ;;  %v294_v42 = vpop.f32.mrf.mxu2 }
  0xc9   :  { %v806_v28 = vmul.f32 %v4941_v3, %v805_v58  ;;  %v868_v29 = vmul.f32 %v867_v35, %v4869_v53  ;;  %v556_v31 = vadd.f32 0.014752088, %v555_v14  ;;  %v335_v33 = vadd.f32 %v325_v32, %v4897_v45  ;;  %vm5025_vm8 = vmor %vm808_vm6, %vm809_vm5 }
  0xca   :  { %v386_v17 = vmul.f32 %v385_v23, %v4954_v16  ;;  %v397_v38 = vmul.f32 %v396_v24, %v4954_v16  ;;  %v546_v46 = vmul.f32 %v545_v26, %v4957_v20  ;;  %v917_v4 = vmul.f32 %v916_v7, %v4888_v22 }
  0xcb   :  { %v777_v10 = vmul.f32 %v776_v12, %v4918_v44  ;;  %v879_v0 = vmul.f32 %v878_v13, %v4869_v53  ;;  %v557_v51 = vmul.f32 %v556_v31, %v4957_v20  ;;  %v909_v52 = vadd.f32 0.18741608, %v908_v21 }
  0xcc   :  { %4378 = vrcp.f32 %v4988_v8  ;;  %v387_v35 = vadd.f32 0.05243302, %v386_v17  ;;  %v398_v54 = vadd.f32 0.112945676, %v397_v38  ;;  %v547_v45 = vadd.f32 0.05243302, %v546_v46 }
  0xcd   :  { %v807_v32 = vadd.f32 %v4941_v3, %v806_v28  ;;  %vm5009_vm7 = vcmp.eq.f32.partialorder %v812_v60, 8.507059e+37  ;;  %v5013_v15 = vadd.f32 0.18741608, %v868_v29  ;;  %v558_v44 = vadd.f32 0.112945676, %v557_v51 }
  0xce   :  { %v336_v58 = vrot.slane %v335_v33, 4  ;;  %v388_v34 = vmul.f32 %v387_v35, %v4954_v16  ;;  %v399_v62 = vmul.f32 %v398_v54, %v4954_v16  ;;  %v548_v43 = vmul.f32 %v547_v45, %v4957_v20 }
  0xcf   :  { %v918_v63 = vadd.f32 0.112945676, %v917_v4  ;;  %v4264_v7 = vclamps-f32 %v777_v10, 1.0  ;;  %v559_v13 = vmul.f32 %v558_v44, %v4957_v20  ;;  %v910_v60 = vmul.f32 %v909_v52, %v4888_v22 }
  0xd0   :  { %v337_v14 = vadd.f32 %v336_v58, %v335_v33  ;;  %v389_v21 = vadd.f32 0.18741608, %v388_v34  ;;  %v400_v12 = vadd.f32 0.4994258, %v399_v62  ;;  %v549_v23 = vadd.f32 0.18741608, %v548_v43 }
  0xd1   :  { %v919_v24 = vmul.f32 %v918_v63, %v4888_v22  ;;  %v5029_v28 = vadd.f32 0.4994258, %v879_v0  ;;  %v560_v29 = vadd.f32 0.4994258, %v559_v13  ;;  %v5032_v17 = vadd.f32 %v294_v42, %v4802_v36 }
  0xd2   :  { %v338_v31 = vrot.slane %v337_v14, 2  ;;  %v5034_v33 = vpop.eup %4378  ;;  %v811_v38 = vsel %vm5025_vm8, %v4941_v3, %v807_v32  ;;  %v390_v46 = vmul.f32 %v389_v21, %v4954_v16  ;;  %v401_v18 = vmul.f32 %v400_v12, %v4954_v16 }
  0xd3   :  { %v920_v4 = vadd.f32 0.4994258, %v919_v24  ;;  %v550_v10 = vmul.f32 %v549_v23, %v4957_v20  ;;  %v561_v0 = vmul.f32 %v560_v29, %v4957_v20  ;;  %v5044_v52 = vmul.f32 0.70710677, %v4923_v50 }
  0xd4   :  { %v339_v51 = vadd.f32 %v338_v31, %v337_v14  ;;  %v1060_v36 = vadd.f32 1.0, %v4264_v7  ;;  %v5046_v35 = vadd.f32 1.0, %v401_v18  ;;  %v911_v54 = vadd.f32 1.1283791, %v910_v60 }
  0xd5   :  { %v921_v45 = vmul.f32 %v920_v4, %v4888_v22  ;;  %v5049_v3 = vadd.f32 1.0, %v561_v0  ;;  %v940_v16 = vmul.f32 %v5044_v52, %v5044_v52  ;;  %v326_v44 = vmul.f32 %v5032_v17, %v4743_v2 }
  0xd6   :  { %v340_v32 = vrot.slane %v339_v51, 1  ;;  %v5058_v20 = vsel %vm5009_vm7, %v4951_v11, %v811_v38  ;;  %v5061_v58 = vmul.f32 0.5, %v4901_v30  ;;  %v391_v34 = vadd.f32 1.1283791, %v390_v46 }
  0xd7   :  { %4380 = vrcp.f32 %v5046_v35  ;;  %v5066_v22 = vmul.f32 %v5034_v33, %v4988_v8  ;;  %v5069_v62 = vmul.f32 0.5, %v4906_v39  ;;  %v551_v43 = vadd.f32 1.1283791, %v550_v10 }
  0xd8   :  { %4382 = vrcp.f32 %v5049_v3  ;;  %v5073_v55 = vmul.f32 %v1060_v36, %v4893_v25  ;;  %v412_v11 = vand.u32 2147483647, %v5046_v35  ;;  %v5077_v63 = vmul.f32 %v911_v54, %v4873_v59 }
  0xd9   :  { %v5079_v42 = vadd.f32 1.0, %v921_v45  ;;  %v414_v7 = vand.u32 2147483648, %v5046_v35  ;;  %v341_v13 = vadd.f32 %v340_v32, %v339_v51  ;;  %v5082_v60 = vmin.f32 %v940_v16, 16.0 }
  0xda   :  { %v342_v14 = vadd.f32 %v326_v44, %v4911_v37  ;;  %v392_v21 = vmul.f32 %v391_v34, %v4929_v61  ;;  %v572_v12 = vand.u32 2147483647, %v5049_v3  ;;  %v574_v25 = vand.u32 2147483648, %v5049_v3 }
  0xdb   :  { %4384 = vrcp.f32 %v5079_v42  ;;  %vm408_vm9 = vweird.f32 %v5046_v35  ;;  %v552_v59 = vmul.f32 %v551_v43, %v4935_v57  ;;  %v934_v23 = vand.u32 2147483648, %v5079_v42 }
  0xdc   :  { %v5093_v24 = vmul.f32 %v341_v13, %v4758_v6  ;;  %v5096_v26 = vmul.f32 %v341_v13, %v4738_v1  ;;  %vm568_vm10 = vweird.f32 %v5049_v3  ;;  %v942_v61 = vmul.f32 2.1237322e-06, %v5082_v60 }
  0xdd   :  { %v4381_v37 = vpop.eup %4380  ;;  %v953_v29 = vmul.f32 3.8918573e-05, %v5082_v60  ;;  %v343_v31 = vrot.slane %v342_v14, 4  ;;  %vm5102_vm11 = vcmp.eq.f32.partialorder %v412_v11, 8.507059e+37  ;;  %v415_v6 = vor.u32 1.1754944e-38, %v414_v7 }
  0xde   :  { %8752 = vst [vmem:[#allocation9_spill] sm:$0xff] %v5096_v26  ;;  %v4383_v38 = vpop.eup %4382  ;;  %v404_v46 = vmul.f32 %v4381_v37, %v5046_v35  ;;  %v932_v18 = vand.u32 2147483647, %v5079_v42  ;;  %vm409_vm12 = vweird.f32 %v4381_v37  ;;  %vm5108_vm13 = vcmp.eq.f32.partialorder %v572_v12, 8.507059e+37 }
  0xdf   :  { %v564_v1 = vmul.f32 %v4383_v38, %v5049_v3  ;;  %v575_v10 = vor.u32 1.1754944e-38, %v574_v25  ;;  %v935_v0 = vor.u32 1.1754944e-38, %v934_v23  ;;  %vm928_vm14 = vweird.f32 %v5079_v42  ;;  %vm410_vm3 = vmor %vm408_vm9, %vm409_vm12 }
  0xe0   :  { %v405_v51 = vsub.f32 1.0, %v404_v46  ;;  %v5114_v36 = vmul.f32 0.70710677, %v5093_v24  ;;  %v5117_v54 = vmul.f32 0.70710677, %v5096_v26  ;;  %v5119_v45 = vadd.f32 %v343_v31, %v342_v14 }
  0xe1   :  { %v4385_v32 = vpop.eup %4384  ;;  %v565_v16 = vsub.f32 1.0, %v564_v1  ;;  %vm569_vm15 = vweird.f32 %v4383_v38  ;;  %v943_v44 = vadd.f32 0.00028619796, %v942_v61  ;;  %v954_v34 = vadd.f32 0.001143296, %v953_v29 }
  0xe2   :  { %v406_v43 = vmul.f32 %v4381_v37, %v405_v51  ;;  %v924_v11 = vmul.f32 %v4385_v32, %v5079_v42  ;;  %vm929_vm1 = vweird.f32 %v4385_v32  ;;  %vm5122_vm2 = vcmp.eq.f32.partialorder %v932_v18, 8.507059e+37  ;;  %vm570_vm4 = vmor %vm568_vm10, %vm569_vm15 }
  0xe3   :  { %v420_v13 = vmul.f32 %v5114_v36, %v5114_v36  ;;  %v566_v12 = vmul.f32 %v4383_v38, %v565_v16  ;;  %v580_v14 = vmul.f32 %v5117_v54, %v5117_v54  ;;  %v944_v25 = vmul.f32 %v943_v44, %v5082_v60  ;;  %vm930_vm5 = vmor %vm928_vm14, %vm929_vm1 }
  0xe4   :  { %v955_v23 = vmul.f32 %v954_v34, %v5082_v60  ;;  %v407_v61 = vadd.f32 %v4381_v37, %v406_v43  ;;  %v925_v29 = vsub.f32 1.0, %v924_v11  ;;  %v345_v46 = vrot.slane %v5119_v45, 2 }
  0xe5   :  { %v5132_v31 = vmin.f32 %v420_v13, 16.0  ;;  %v567_v18 = vadd.f32 %v4383_v38, %v566_v12  ;;  %v5138_v1 = vmin.f32 %v580_v14, 16.0  ;;  %v945_v51 = vadd.f32 0.0036580483, %v944_v25 }
  0xe6   :  { %v956_v16 = vadd.f32 0.014752088, %v955_v23  ;;  %v411_v39 = vsel %vm410_vm3, %v4381_v37, %v407_v61  ;;  %v926_v44 = vmul.f32 %v4385_v32, %v925_v29  ;;  %vm848_vm14 = vweird.f32 %v4988_v8 }
  0xe7   :  { %v422_v34 = vmul.f32 2.1237322e-06, %v5132_v31  ;;  %v433_v43 = vmul.f32 3.8918573e-05, %v5132_v31  ;;  %v416_v11 = vsel %vm5102_vm11, %v415_v6, %v411_v39  ;;  %v571_v35 = vsel %vm570_vm4, %v4383_v38, %v567_v18 }
  0xe8   :  { %v582_v13 = vmul.f32 2.1237322e-06, %v5138_v1  ;;  %v593_v12 = vmul.f32 3.8918573e-05, %v5138_v1  ;;  %v417_v14 = vmul.f32 %v416_v11, %v392_v21  ;;  %v576_v37 = vsel %vm5108_vm13, %v575_v10, %v571_v35 }
  0xe9   :  { %v927_v25 = vadd.f32 %v4385_v32, %v926_v44  ;;  %v423_v3 = vadd.f32 0.00028619796, %v422_v34  ;;  %v577_v23 = vmul.f32 %v576_v37, %v552_v59  ;;  %v434_v61 = vadd.f32 0.001143296, %v433_v43 }
  0xea   :  { %v583_v29 = vadd.f32 0.00028619796, %v582_v13  ;;  %v594_v57 = vadd.f32 0.001143296, %v593_v12  ;;  %v4256_v39 = vclamps-f32 %v417_v14, 1.0  ;;  %v946_v18 = vmul.f32 %v945_v51, %v5082_v60 }
  0xeb   :  { %v931_v38 = vsel %vm930_vm5, %v4385_v32, %v927_v25  ;;  %v424_v6 = vmul.f32 %v423_v3, %v5132_v31  ;;  %v4260_v21 = vclamps-f32 %v577_v23, 1.0  ;;  %v435_v10 = vmul.f32 %v434_v61, %v5132_v31 }
  0xec   :  { %v936_v4 = vsel %vm5122_vm2, %v935_v0, %v931_v38  ;;  %v584_v59 = vmul.f32 %v583_v29, %v5138_v1  ;;  %v700_v44 = vadd.f32 1.0, %v4256_v39  ;;  %v595_v43 = vmul.f32 %v594_v57, %v5138_v1 }
  0xed   :  { %v937_v42 = vmul.f32 %v936_v4, %v5077_v63  ;;  %v425_v34 = vadd.f32 0.0036580483, %v424_v6  ;;  %v704_v11 = vadd.f32 1.0, %v4260_v21  ;;  %v436_v32 = vadd.f32 0.014752088, %v435_v10 }
  0xee   :  { %v585_v35 = vadd.f32 0.0036580483, %v584_v59  ;;  %v957_v13 = vmul.f32 %v956_v16, %v5082_v60  ;;  %v708_v51 = vmul.f32 %v700_v44, %v5061_v58  ;;  %v596_v7 = vadd.f32 0.014752088, %v595_v43 }
  0xef   :  { %v4268_v12 = vclamps-f32 %v937_v42, 1.0  ;;  %v426_v0 = vmul.f32 %v425_v34, %v5132_v31  ;;  %v712_v14 = vmul.f32 %v704_v11, %v5069_v62  ;;  %v437_v37 = vmul.f32 %v436_v32, %v5132_v31 }
  0xf0   :  { %v586_v63 = vmul.f32 %v585_v35, %v5138_v1  ;;  %v947_v25 = vadd.f32 0.05243302, %v946_v18  ;;  %v5168_v3 = vadd.f32 1.0, %v708_v51  ;;  %v597_v29 = vmul.f32 %v596_v7, %v5138_v1 }
  0xf1   :  { %v1064_v23 = vadd.f32 1.0, %v4268_v12  ;;  %v427_v61 = vadd.f32 0.05243302, %v426_v0  ;;  %v1076_v16 = vadd.f32 1.0, %v5073_v55  ;;  %v438_v58 = vadd.f32 0.112945676, %v437_v37 }
  0xf2   :  { %v587_v57 = vadd.f32 0.05243302, %v586_v63  ;;  %v948_v39 = vmul.f32 %v947_v25, %v5082_v60  ;;  %v5173_v38 = vadd.f32 1.0, %v712_v14  ;;  %v598_v21 = vadd.f32 0.112945676, %v597_v29 }
  0xf3   :  { %v1072_v62 = vmul.f32 %v1064_v23, %v4915_v5  ;;  %v428_v6 = vmul.f32 %v427_v61, %v5132_v31  ;;  %v1084_v18 = vmul.f32 %v1076_v16, %v5168_v3  ;;  %v439_v4 = vmul.f32 %v438_v58, %v5132_v31 }
  0xf4   :  { %v588_v10 = vmul.f32 %v587_v57, %v5138_v1  ;;  %v958_v59 = vadd.f32 0.112945676, %v957_v13  ;;  %v599_v55 = vmul.f32 %v598_v21, %v5138_v1  ;;  %v949_v42 = vadd.f32 0.18741608, %v948_v39 }
  0xf5   :  { %v1080_v44 = vadd.f32 1.0, %v1072_v62  ;;  %v346_v34 = vadd.f32 %v345_v46, %v5119_v45  ;;  %v817_v5 = vmul.f32 %v5058_v20, %v4932_v41  ;;  %v881_v43 = vmul.f32 %v5029_v28, %v4869_v53 }
  0xf6   :  { %v440_v11 = vadd.f32 0.4994258, %v439_v4  ;;  %v959_v32 = vmul.f32 %v958_v59, %v5082_v60  ;;  %v429_v13 = vadd.f32 0.18741608, %v428_v6  ;;  %v600_v51 = vadd.f32 0.4994258, %v599_v55 }
  0xf7   :  { %v1088_v35 = vmul.f32 %v1080_v44, %v5173_v38  ;;  %v347_v12 = vrot.slane %v346_v34, 1  ;;  %v845_v0 = vsub.f32 1.0, %v5066_v22  ;;  %v589_v14 = vadd.f32 0.18741608, %v588_v10 }
  0xf8   :  { %v441_v7 = vmul.f32 %v440_v11, %v5132_v31  ;;  %v960_v45 = vadd.f32 0.4994258, %v959_v32  ;;  %v601_v41 = vmul.f32 %v600_v51, %v5138_v1  ;;  %v950_v28 = vmul.f32 %v949_v42, %v5082_v60 }
  0xf9   :  { %v5192_v46 = vadd.f32 %v1088_v35, %v1084_v18  ;;  %v348_v20 = vadd.f32 %v347_v12, %v346_v34  ;;  %v831_v37 = vadd.f32 1.1283791, %v4964_v48  ;;  %v854_v63 = vand.u32 2147483648, %v4988_v8 }
  0xfa   :  { %v870_v25 = vmul.f32 %v5013_v15, %v4869_v53  ;;  %v5200_v23 = vadd.f32 1.0, %v441_v7  ;;  %v5202_v22 = vadd.f32 1.0, %v881_v43  ;;  %v430_v61 = vmul.f32 %v429_v13, %v5132_v31 }
  0xfb   :  { %v5205_v29 = vadd.f32 1.0, %v601_v41  ;;  %v961_v16 = vmul.f32 %v960_v45, %v5082_v60  ;;  %v4265_v58 = vclamps-f32 %v817_v5, 1.0  ;;  %v590_v48 = vmul.f32 %v589_v14, %v5138_v1 }
  0xfc   :  { %4386 = vrcp.f32 %v5200_v23  ;;  %v5211_v57 = vmul.f32 %v348_v20, %v4766_v9  ;;  %v5214_v53 = vmul.f32 0.5, %v4806_v40  ;;  %v846_v15 = vmul.f32 %v5034_v33, %v845_v0 }
  0xfd   :  { %4388 = vrcp.f32 %v5205_v29  ;;  %v951_v31 = vadd.f32 1.1283791, %v950_v28  ;;  %v5219_v39 = vmul.f32 0.5, %v4824_v49  ;;  %v5222_v60 = vmul.f32 %v831_v37, %v4831_v56 }
  0xfe   :  { %8759 = vst [vmem:[#allocation10_spill] sm:$0xff] %v5211_v57  ;;  %v852_v62 = vand.u32 2147483647, %v4988_v8  ;;  %v5225_v1 = vor.u32 1.1754944e-38, %v854_v63  ;;  %v5227_v9 = vadd.f32 1.1283791, %v870_v25  ;;  %v5232_v21 = vmul.f32 %v348_v20, %v4743_v2 }
  0xff   :  { %v431_v6 = vadd.f32 1.1283791, %v430_v61  ;;  %v5229_v40 = vadd.f32 1.0, %v961_v16  ;;  %v5234_v18 = vadd.f32 1.0, %v4265_v58  ;;  %4390 = vrcp.f32 %v5202_v22 }
 0x100   :  { %8760 = vst [vmem:[#allocation11_spill] sm:$0xff] %v5232_v21  ;;  %v591_v49 = vadd.f32 1.1283791, %v590_v48  ;;  %v5238_v56 = vmul.f32 0.70710677, %v5211_v57  ;;  %v5241_v4 = vadd.f32 %v5034_v33, %v846_v15  ;;  %v5244_v10 = vmul.f32 0.5, %v5093_v24 }
 0x101   :  { %v5247_v59 = vmul.f32 %v951_v31, %v5044_v52  ;;  %4392 = vrcp.f32 %v5229_v40  ;;  %v1093_v44 = vrot.slane %v5192_v46, 4  ;;  %v452_v55 = vand.u32 2147483647, %v5200_v23 }
 0x102   :  { %v4387_v2 = vpop.eup %4386  ;;  %v5253_v42 = vmul.f32 0.70710677, %v5232_v21  ;;  %v460_v34 = vmul.f32 %v5238_v56, %v5238_v56  ;;  %v432_v43 = vmul.f32 %v431_v6, %v5114_v36  ;;  %vm448_vm6 = vweird.f32 %v5200_v23 }
 0x103   :  { %v4389_v5 = vpop.eup %4388  ;;  %v444_v11 = vmul.f32 %v4387_v2, %v5200_v23  ;;  %v454_v52 = vand.u32 2147483648, %v5200_v23  ;;  %v592_v32 = vmul.f32 %v591_v49, %v5117_v54  ;;  %vm608_vm7 = vweird.f32 %v5205_v29 }
 0x104   :  { %v604_v35 = vmul.f32 %v4389_v5, %v5205_v29  ;;  %v5264_v13 = vmin.f32 %v460_v34, 16.0  ;;  %v612_v12 = vand.u32 2147483647, %v5205_v29  ;;  %v614_v0 = vand.u32 2147483648, %v5205_v29 }
 0x105   :  { %v445_v51 = vsub.f32 1.0, %v444_v11  ;;  %v620_v36 = vmul.f32 %v5253_v42, %v5253_v42  ;;  %v5270_v7 = vpop.eup %4390  ;;  %vm5272_vm8 = vcmp.eq.f32.partialorder %v452_v55, 8.507059e+37  ;;  %vm449_vm9 = vweird.f32 %v4387_v2 }
 0x106   :  { %v605_v54 = vsub.f32 1.0, %v604_v35  ;;  %v462_v45 = vmul.f32 2.1237322e-06, %v5264_v13  ;;  %v473_v41 = vmul.f32 3.8918573e-05, %v5264_v13  ;;  %v455_v37 = vor.u32 1.1754944e-38, %v454_v52  ;;  %vm450_vm13 = vmor %vm448_vm6, %vm449_vm9 }
 0x107   :  { %v4393_v28 = vpop.eup %4392  ;;  %v446_v20 = vmul.f32 %v4387_v2, %v445_v51  ;;  %v5278_v63 = vmin.f32 %v620_v36, 16.0  ;;  %vm609_vm10 = vweird.f32 %v4389_v5  ;;  %vm849_vm11 = vweird.f32 %v5034_v33 }
 0x108   :  { %v606_v25 = vmul.f32 %v4389_v5, %v605_v54  ;;  %v964_v61 = vmul.f32 %v4393_v28, %v5229_v40  ;;  %v463_v16 = vadd.f32 0.00028619796, %v462_v45  ;;  %vm5282_vm12 = vcmp.eq.f32.partialorder %v612_v12, 8.507059e+37  ;;  %vm610_vm15 = vmor %vm608_vm7, %vm609_vm10 }
 0x109   :  { %v447_v58 = vadd.f32 %v4387_v2, %v446_v20  ;;  %v615_v15 = vor.u32 1.1754944e-38, %v614_v0  ;;  %v474_v31 = vadd.f32 0.001143296, %v473_v41  ;;  %v974_v55 = vand.u32 2147483648, %v5229_v40  ;;  %vm5328_vm6 = vmor %vm848_vm14, %vm849_vm11 }
 0x10a   :  { %v607_v6 = vadd.f32 %v4389_v5, %v606_v25  ;;  %v965_v49 = vsub.f32 1.0, %v964_v61  ;;  %v464_v34 = vmul.f32 %v463_v16, %v5264_v13  ;;  %v972_v52 = vand.u32 2147483647, %v5229_v40 }
 0x10b   :  { %v451_v11 = vsel %vm450_vm13, %v4387_v2, %v447_v58  ;;  %v475_v35 = vmul.f32 %v474_v31, %v5264_v13  ;;  %v633_v23 = vmul.f32 3.8918573e-05, %v5278_v63  ;;  %vm969_vm1 = vweird.f32 %v4393_v28 }
 0x10c   :  { %v456_v51 = vsel %vm5272_vm8, %v455_v37, %v451_v11  ;;  %v611_v12 = vsel %vm610_vm15, %v4389_v5, %v607_v6  ;;  %v966_v0 = vmul.f32 %v4393_v28, %v965_v49  ;;  %vm968_vm2 = vweird.f32 %v5229_v40 }
 0x10d   :  { %v457_v36 = vmul.f32 %v456_v51, %v432_v43  ;;  %v616_v2 = vsel %vm5282_vm12, %v615_v15, %v611_v12  ;;  %v476_v29 = vadd.f32 0.014752088, %v475_v35  ;;  %v975_v41 = vor.u32 1.1754944e-38, %v974_v55  ;;  %vm970_vm3 = vmor %vm968_vm2, %vm969_vm1 }
 0x10e   :  { %v617_v54 = vmul.f32 %v616_v2, %v592_v32  ;;  %v967_v45 = vadd.f32 %v4393_v28, %v966_v0  ;;  %v465_v20 = vadd.f32 0.0036580483, %v464_v34  ;;  %v622_v14 = vmul.f32 2.1237322e-06, %v5278_v63 }
 0x10f   :  { %v4257_v25 = vclamps-f32 %v457_v36, 1.0  ;;  %v477_v61 = vmul.f32 %v476_v29, %v5264_v13  ;;  %v634_v5 = vadd.f32 0.001143296, %v633_v23  ;;  %vm5306_vm4 = vcmp.eq.f32.partialorder %v852_v62, 8.507059e+37 }
 0x110   :  { %v4261_v37 = vclamps-f32 %v617_v54, 1.0  ;;  %v971_v40 = vsel %vm970_vm3, %v4393_v28, %v967_v45  ;;  %vm973_vm5 = vcmp.eq.f32.partialorder %v972_v52, 8.507059e+37  ;;  %v5311_v32 = vmul.f32 0.70710677, %v5032_v17 }
 0x111   :  { %v1094_v16 = vadd.f32 %v1093_v44, %v5192_v46  ;;  %v701_v58 = vadd.f32 1.0, %v4257_v25  ;;  %v976_v48 = vsel %vm973_vm5, %v975_v41, %v971_v40  ;;  %v478_v15 = vadd.f32 0.112945676, %v477_v61 }
 0x112   :  { %v369_v31 = vmul.f32 0.5, %v5096_v26  ;;  %v705_v6 = vadd.f32 1.0, %v4261_v37  ;;  %v977_v62 = vmul.f32 %v976_v48, %v5247_v59  ;;  %v466_v49 = vmul.f32 %v465_v20, %v5264_v13  ;;  %v5360_v48 = vld [vmem:[%s8624_s0 + $0x18] sm:$0xff] }
 0x113   :  { %v709_v28 = vmul.f32 %v701_v58, %v5244_v10  ;;  %v479_v55 = vmul.f32 %v478_v15, %v5264_v13  ;;  %v623_v34 = vadd.f32 0.00028619796, %v622_v14  ;;  %v635_v11 = vmul.f32 %v634_v5, %v5278_v63  ;;  %v317_v14 = vpop.f32.mrf.mxu3 }
 0x114   :  { %v1069_v46 = vmul.f32 %v5234_v18, %v5214_v53  ;;  %v713_v59 = vmul.f32 %v705_v6, %v369_v31  ;;  %v4269_v52 = vclamps-f32 %v977_v62, 1.0  ;;  %v980_v10 = vmul.f32 %v5311_v32, %v5311_v32 }
 0x115   :  { %v851_v35 = vsel %vm5328_vm6, %v5034_v33, %v5241_v4  ;;  %v1095_v23 = vrot.slane %v1094_v16, 2  ;;  %v480_v53 = vadd.f32 0.4994258, %v479_v55  ;;  %v636_v18 = vadd.f32 0.014752088, %v635_v11 }
 0x116   :  { %v5338_v51 = vadd.f32 1.0, %v709_v28  ;;  %v729_v8 = vmul.f32 0.5, %v4923_v50  ;;  %v1065_v12 = vadd.f32 1.0, %v4269_v52  ;;  %v467_v0 = vadd.f32 0.05243302, %v466_v49 }
 0x117   :  { %v894_v36 = vand.u32 2147483648, %v5202_v22  ;;  %v481_v2 = vmul.f32 %v480_v53, %v5264_v13  ;;  %v624_v29 = vmul.f32 %v623_v34, %v5278_v63  ;;  %v637_v54 = vmul.f32 %v636_v18, %v5278_v63 }
 0x118   :  { %v1077_v45 = vadd.f32 1.0, %v1069_v46  ;;  %v5345_v41 = vadd.f32 1.0, %v713_v59  ;;  %v1073_v33 = vmul.f32 %v1065_v12, %v729_v8  ;;  %v5347_v4 = vmin.f32 %v980_v10, 16.0 }
 0x119   :  { %v856_v50 = vsel %vm5306_vm4, %v5225_v1, %v851_v35  ;;  %v1096_v20 = vadd.f32 %v1095_v23, %v1094_v16  ;;  %v5352_v25 = vadd.f32 1.0, %v481_v2  ;;  %v638_v61 = vadd.f32 0.112945676, %v637_v54  ;;  %v5386_v23 = vld [vmem:[%s8624_s0 + $0x38] sm:$0xff] }
 0x11a   :  { %v1081_v5 = vadd.f32 1.0, %v1073_v33  ;;  %v1085_v37 = vmul.f32 %v1077_v45, %v5338_v51  ;;  %v468_v40 = vmul.f32 %v467_v0, %v5264_v13  ;;  %v982_v58 = vmul.f32 2.1237322e-06, %v5347_v4 }
 0x11b   :  { %v323_v1 = vmul.f32 %v5360_v48, %v4849_v19  ;;  %v5366_v43 = vmul.f32 %v5227_v9, %v4857_v27  ;;  %4394 = vrcp.f32 %v5352_v25  ;;  %v625_v16 = vadd.f32 0.0036580483, %v624_v29 }
 0x11c   :  { %v857_v15 = vmul.f32 %v856_v50, %v5222_v60  ;;  %v884_v31 = vmul.f32 %v5270_v7, %v5202_v22  ;;  %v1089_v6 = vmul.f32 %v1081_v5, %v5345_v41  ;;  %v5374_v62 = vadd.f32 %v317_v14, %v4820_v47 }
 0x11d   :  { %v1097_v49 = vrot.slane %v1096_v20, 1  ;;  %v639_v28 = vmul.f32 %v638_v61, %v5278_v63  ;;  %v983_v55 = vadd.f32 0.00028619796, %v982_v58  ;;  %v993_v27 = vmul.f32 3.8918573e-05, %v5347_v4 }
 0x11e   :  { %v892_v9 = vand.u32 2147483647, %v5202_v22  ;;  %v5379_v34 = vor.u32 1.1754944e-38, %v894_v36  ;;  %v1099_v11 = vadd.f32 %v1089_v6, %v1085_v37  ;;  %v469_v60 = vadd.f32 0.18741608, %v468_v40 }
 0x11f   :  { %v626_v46 = vmul.f32 %v625_v16, %v5278_v63  ;;  %v640_v44 = vadd.f32 0.4994258, %v639_v28  ;;  %v984_v59 = vmul.f32 %v983_v55, %v5347_v4  ;;  %v994_v52 = vadd.f32 0.001143296, %v993_v27 }
 0x120   :  { %v4266_v47 = vclamps-f32 %v857_v15, 1.0  ;;  %v885_v10 = vsub.f32 1.0, %v884_v31  ;;  %v1100_v35 = vrot.slane %v1099_v11, 4  ;;  %v327_v53 = vmul.f32 %v5386_v23, %v5374_v62 }
 0x121   :  { %v4395_v18 = vpop.eup %4394  ;;  %v1098_v8 = vadd.f32 %v1097_v49, %v1096_v20  ;;  %v641_v12 = vmul.f32 %v640_v44, %v5278_v63  ;;  %v985_v0 = vadd.f32 0.0036580483, %v984_v59  ;;  %v995_v36 = vmul.f32 %v994_v52, %v5347_v4 }
 0x122   :  { %v1101_v2 = vadd.f32 %v1100_v35, %v1099_v11  ;;  %v470_v29 = vmul.f32 %v469_v60, %v5264_v13  ;;  %v484_v54 = vmul.f32 %v4395_v18, %v5352_v25  ;;  %v349_v45 = vadd.f32 %v327_v53, %v323_v1 }
 0x123   :  { %v627_v33 = vadd.f32 0.05243302, %v626_v46  ;;  %v5394_v50 = vadd.f32 1.0, %v641_v12  ;;  %v986_v61 = vmul.f32 %v985_v0, %v5347_v4  ;;  %v996_v14 = vadd.f32 0.014752088, %v995_v36 }
 0x124   :  { %v1102_v5 = vrot.slane %v1101_v2, 2  ;;  %v485_v37 = vsub.f32 1.0, %v484_v54  ;;  %v350_v20 = vrot.slane %v349_v45, 4  ;;  %v5398_v40 = vmul.f32 0.70710677, %v5374_v62 }
 0x125   :  { %v5401_v58 = vmul.f32 %v5270_v7, %v885_v10  ;;  %v1120_v13 = vmul.f32 %v1098_v8, %v5168_v3  ;;  %v1124_v16 = vmul.f32 %v1098_v8, %v5173_v38  ;;  %4396 = vrcp.f32 %v5394_v50 }
 0x126   :  { %v1103_v1 = vadd.f32 %v1102_v5, %v1101_v2  ;;  %v471_v15 = vadd.f32 1.1283791, %v470_v29  ;;  %v486_v31 = vmul.f32 %v4395_v18, %v485_v37  ;;  %v987_v6 = vadd.f32 0.05243302, %v986_v61 }
 0x127   :  { %vm489_vm7 = vweird.f32 %v4395_v18  ;;  %v628_v49 = vmul.f32 %v627_v33, %v5278_v63  ;;  %v997_v28 = vmul.f32 %v996_v14, %v5347_v4  ;;  %v351_v55 = vadd.f32 %v350_v20, %v349_v45 }
 0x128   :  { %v1104_v27 = vrot.slane %v1103_v1, 1  ;;  %v487_v11 = vadd.f32 %v4395_v18, %v486_v31  ;;  %v494_v60 = vand.u32 2147483648, %v5352_v25  ;;  %v1020_v3 = vmul.f32 %v5398_v40, %v5398_v40 }
 0x129   :  { %vm488_vm8 = vweird.f32 %v5352_v25  ;;  %v492_v38 = vand.u32 2147483647, %v5352_v25  ;;  %v998_v46 = vadd.f32 0.112945676, %v997_v28  ;;  %v352_v44 = vrot.slane %v351_v55, 2 }
 0x12a   :  { %v1062_v59 = vadd.f32 1.0, %v4266_v47  ;;  %v5413_v52 = vmul.f32 0.17677669, %v1120_v13  ;;  %v1105_v10 = vadd.f32 %v1104_v27, %v1103_v1  ;;  %vm5416_vm9 = vmor %vm488_vm8, %vm489_vm7  ;;  %v988_v53 = vmul.f32 %v987_v6, %v5347_v4 }
 0x12b   :  { %v4397_v8 = vpop.eup %4396  ;;  %v491_v12 = vsel %vm5416_vm9, %v4395_v18, %v487_v11  ;;  %v629_v0 = vadd.f32 0.18741608, %v628_v49  ;;  %v999_v25 = vmul.f32 %v998_v46, %v5347_v4  ;;  %v353_v36 = vadd.f32 %v352_v44, %v351_v55 }
 0x12c   :  { %v5424_v2 = vmul.f32 0.17677669, %v1124_v16  ;;  %v495_v47 = vor.u32 1.1754944e-38, %v494_v60  ;;  %v644_v29 = vmul.f32 %v4397_v8, %v5394_v50  ;;  %v5427_v54 = vmin.f32 %v1020_v3, 16.0 }
 0x12d   :  { %v472_v45 = vmul.f32 %v471_v15, %v5238_v56  ;;  %vm493_vm10 = vcmp.eq.f32.partialorder %v492_v38, 8.507059e+37  ;;  %v1000_v33 = vadd.f32 0.4994258, %v999_v25  ;;  %v354_v61 = vrot.slane %v353_v36, 1 }
 0x12e   :  { %v1121_v14 = vmul.f32 %v1105_v10, %v5338_v51  ;;  %v496_v5 = vsel %vm493_vm10, %v495_v47, %v491_v12  ;;  %v645_v18 = vsub.f32 1.0, %v644_v29  ;;  %v989_v37 = vadd.f32 0.18741608, %v988_v53 }
 0x12f   :  { %v1125_v20 = vmul.f32 %v1105_v10, %v5345_v41  ;;  %v630_v13 = vmul.f32 %v629_v0, %v5278_v63  ;;  %v1001_v16 = vmul.f32 %v1000_v33, %v5347_v4  ;;  %v355_v1 = vadd.f32 %v354_v61, %v353_v36 }
 0x130   :  { %v646_v31 = vmul.f32 %v4397_v8, %v645_v18  ;;  %vm648_vm11 = vweird.f32 %v5394_v50  ;;  %vm649_vm12 = vweird.f32 %v4397_v8  ;;  %v1022_v56 = vmul.f32 2.1237322e-06, %v5427_v54 }
 0x131   :  { %v497_v15 = vmul.f32 %v496_v5, %v472_v45  ;;  %v652_v6 = vand.u32 2147483647, %v5394_v50  ;;  %v654_v51 = vand.u32 2147483648, %v5394_v50  ;;  %v5438_v49 = vadd.f32 1.0, %v1001_v16  ;;  %vm5448_vm13 = vmor %vm648_vm11, %vm649_vm12 }
 0x132   :  { %v5440_v28 = vmul.f32 0.17677669, %v1121_v14  ;;  %v647_v41 = vadd.f32 %v4397_v8, %v646_v31  ;;  %v990_v63 = vmul.f32 %v989_v37, %v5347_v4  ;;  %v5444_v55 = vmul.f32 %v5360_v48, %v355_v1 }
 0x133   :  { %v5446_v27 = vmul.f32 0.17677669, %v1125_v20  ;;  %4398 = vrcp.f32 %v5438_v49  ;;  %v5454_v50 = vmul.f32 %v5386_v23, %v355_v1  ;;  %v1033_v60 = vmul.f32 3.8918573e-05, %v5427_v54 }
 0x134   :  { %8771 = vst [vmem:[#allocation12_spill] sm:$0xff] %v5444_v55  ;;  %v5459_v3 = vadd.f32 %v5270_v7, %v5401_v58  ;;  %v631_v4 = vadd.f32 1.1283791, %v630_v13  ;;  %v651_v48 = vsel %vm5448_vm13, %v4397_v8, %v647_v41  ;;  %v1023_v38 = vadd.f32 0.00028619796, %v1022_v56 }
 0x135   :  { %8774 = vst [vmem:[#allocation13_spill] sm:$0xff] %v5454_v50  ;;  %v5464_v46 = vmul.f32 %v1062_v59, %v5219_v39  ;;  %v5468_v44 = vmax.f32 %v5413_v52, %v5424_v2  ;;  %v655_v23 = vor.u32 1.1754944e-38, %v654_v51  ;;  %v5471_v10 = vmul.f32 0.5, %v5032_v17 }
 0x136   :  { %v4258_v35 = vclamps-f32 %v497_v15, 1.0  ;;  %vm653_vm14 = vcmp.eq.f32.partialorder %v652_v6, 8.507059e+37  ;;  %v991_v58 = vadd.f32 1.1283791, %v990_v63  ;;  %v5474_v53 = vmul.f32 0.70710677, %v5444_v55 }
 0x137   :  { %v1143_v8 = vmax.f32 %v5440_v28, %v5446_v27  ;;  %v656_v12 = vsel %vm653_vm14, %v655_v23, %v651_v48  ;;  %v5479_v39 = vmul.f32 0.70710677, %v5454_v50  ;;  %v1034_v59 = vadd.f32 0.001143296, %v1033_v60 }
 0x138   :  { %v366_v0 = vmul.f32 0.5, %v5211_v57  ;;  %v632_v25 = vmul.f32 %v631_v4, %v5253_v42  ;;  %v500_v17 = vmul.f32 %v5474_v53, %v5474_v53  ;;  %v1024_v36 = vmul.f32 %v1023_v38, %v5427_v54 }
 0x139   :  { %v4399_v47 = vpop.eup %4398  ;;  %v1137_v29 = vrot.slane %v5468_v44, 4  ;;  %v370_v45 = vmul.f32 0.5, %v5232_v21  ;;  %v660_v33 = vmul.f32 %v5479_v39, %v5479_v39  ;;  %v1035_v61 = vmul.f32 %v1034_v59, %v5427_v54  ;;  %v5937_v21 = vld [vmem:[%s8626_s2 + $0x90] sm:$0xff] }
 0x13a   :  { %v657_v14 = vmul.f32 %v656_v12, %v632_v25  ;;  %v702_v5 = vadd.f32 1.0, %v4258_v35  ;;  %v992_v18 = vmul.f32 %v991_v58, %v5311_v32  ;;  %v1004_v42 = vmul.f32 %v4399_v47, %v5438_v49  ;;  %8799 = vst [vmem:[#allocation32_spill] sm:$0xff] %v5937_v21 }
 0x13b   :  { %vm889_vm15 = vweird.f32 %v5270_v7  ;;  %v1144_v37 = vrot.slane %v1143_v8, 4  ;;  %v5494_v20 = vmin.f32 %v500_v17, 16.0  ;;  %v5496_v13 = vmin.f32 %v660_v33, 16.0 }
 0x13c   :  { %v1036_v16 = vadd.f32 0.014752088, %v1035_v61  ;;  %v1005_v1 = vsub.f32 1.0, %v1004_v42  ;;  %v1012_v31 = vand.u32 2147483647, %v5438_v49  ;;  %v1014_v56 = vand.u32 2147483648, %v5438_v49 }
 0x13d   :  { %v1025_v15 = vadd.f32 0.0036580483, %v1024_v36  ;;  %vm888_vm1 = vweird.f32 %v5202_v22  ;;  %vm1008_vm2 = vweird.f32 %v5438_v49  ;;  %v502_v32 = vmul.f32 2.1237322e-06, %v5494_v20 }
 0x13e   :  { %v513_v6 = vmul.f32 3.8918573e-05, %v5494_v20  ;;  %v662_v51 = vmul.f32 2.1237322e-06, %v5496_v13  ;;  %v4262_v41 = vclamps-f32 %v657_v14, 1.0  ;;  %v1006_v63 = vmul.f32 %v4399_v47, %v1005_v1  ;;  %vm5527_vm7 = vmor %vm888_vm1, %vm889_vm15 }
 0x13f   :  { %vm1009_vm3 = vweird.f32 %v4399_v47  ;;  %v1037_v11 = vmul.f32 %v1036_v16, %v5427_v54  ;;  %v1145_v60 = vmax.f32 %v1143_v8, %v1144_v37  ;;  %v503_v4 = vadd.f32 0.00028619796, %v502_v32 }
 0x140   :  { %v514_v48 = vadd.f32 0.001143296, %v513_v6  ;;  %v663_v38 = vadd.f32 0.00028619796, %v662_v51  ;;  %v1007_v23 = vadd.f32 %v4399_v47, %v1006_v63  ;;  %vm1013_vm4 = vcmp.eq.f32.partialorder %v1012_v31, 8.507059e+37  ;;  %vm1010_vm5 = vmor %vm1008_vm2, %vm1009_vm3 }
 0x141   :  { %v673_v35 = vmul.f32 3.8918573e-05, %v5496_v13  ;;  %v1026_v58 = vmul.f32 %v1025_v15, %v5427_v54  ;;  %v1015_v12 = vor.u32 1.1754944e-38, %v1014_v56  ;;  %v504_v59 = vmul.f32 %v503_v4, %v5494_v20 }
 0x142   :  { %v515_v25 = vmul.f32 %v514_v48, %v5494_v20  ;;  %v664_v17 = vmul.f32 %v663_v38, %v5496_v13  ;;  %vm5515_vm6 = vcmp.eq.f32.partialorder %v892_v9, 8.507059e+37  ;;  %v706_v36 = vadd.f32 1.0, %v4262_v41 }
 0x143   :  { %v1011_v33 = vsel %vm1010_vm5, %v4399_v47, %v1007_v23  ;;  %v674_v61 = vadd.f32 0.001143296, %v673_v35  ;;  %v1038_v14 = vadd.f32 0.112945676, %v1037_v11  ;;  %v710_v42 = vmul.f32 %v702_v5, %v366_v0 }
 0x144   :  { %v1016_v49 = vsel %vm1013_vm4, %v1015_v12, %v1011_v33  ;;  %v505_v37 = vadd.f32 0.0036580483, %v504_v59  ;;  %v516_v16 = vadd.f32 0.014752088, %v515_v25  ;;  %v665_v31 = vadd.f32 0.0036580483, %v664_v17 }
 0x145   :  { %v1017_v1 = vmul.f32 %v1016_v49, %v992_v18  ;;  %v675_v56 = vmul.f32 %v674_v61, %v5496_v13  ;;  %v1027_v15 = vadd.f32 0.05243302, %v1026_v58  ;;  %v1146_v32 = vrot.slane %v1145_v60, 2 }
 0x146   :  { %v506_v6 = vmul.f32 %v505_v37, %v5494_v20  ;;  %v517_v9 = vmul.f32 %v516_v16, %v5494_v20  ;;  %v1039_v51 = vmul.f32 %v1038_v14, %v5427_v54  ;;  %v714_v47 = vmul.f32 %v706_v36, %v370_v45 }
 0x147   :  { %v4270_v5 = vclamps-f32 %v1017_v1, 1.0  ;;  %v666_v18 = vmul.f32 %v665_v31, %v5496_v13  ;;  %v676_v41 = vadd.f32 0.014752088, %v675_v56  ;;  %v891_v63 = vsel %vm5527_vm7, %v5270_v7, %v5459_v3 }
 0x148   :  { %v507_v11 = vadd.f32 0.05243302, %v506_v6  ;;  %v518_v4 = vadd.f32 0.112945676, %v517_v9  ;;  %v1040_v48 = vadd.f32 0.4994258, %v1039_v51  ;;  %v1028_v35 = vmul.f32 %v1027_v15, %v5427_v54 }
 0x149   :  { %v5536_v38 = vadd.f32 1.0, %v710_v42  ;;  %v1066_v22 = vadd.f32 1.0, %v4270_v5  ;;  %v677_v23 = vmul.f32 %v676_v41, %v5496_v13  ;;  %v667_v12 = vadd.f32 0.05243302, %v666_v18 }
 0x14a   :  { %v508_v45 = vmul.f32 %v507_v11, %v5494_v20  ;;  %v519_v58 = vmul.f32 %v518_v4, %v5494_v20  ;;  %v1041_v59 = vmul.f32 %v1040_v48, %v5427_v54  ;;  %v1078_v25 = vadd.f32 1.0, %v5464_v46 }
 0x14b   :  { %v5544_v7 = vadd.f32 1.0, %v714_v47  ;;  %v1074_v3 = vmul.f32 %v1066_v22, %v5471_v10  ;;  %v678_v17 = vadd.f32 0.112945676, %v677_v23  ;;  %v896_v36 = vsel %vm5515_vm6, %v5379_v34, %v891_v63 }
 0x14c   :  { %v1138_v33 = vmax.f32 %v5468_v44, %v1137_v29  ;;  %v1147_v61 = vmax.f32 %v1145_v60, %v1146_v32  ;;  %v520_v14 = vadd.f32 0.4994258, %v519_v58  ;;  %v1086_v49 = vmul.f32 %v1078_v25, %v5536_v38 }
 0x14d   :  { %v1082_v42 = vadd.f32 1.0, %v1074_v3  ;;  %v679_v46 = vmul.f32 %v678_v17, %v5496_v13  ;;  %v1029_v37 = vadd.f32 0.18741608, %v1028_v35  ;;  %v509_v16 = vadd.f32 0.18741608, %v508_v45 }
 0x14e   :  { %v521_v10 = vmul.f32 %v520_v14, %v5494_v20  ;;  %v668_v1 = vmul.f32 %v667_v12, %v5496_v13  ;;  %v5557_v31 = vadd.f32 1.0, %v1041_v59  ;;  %v897_v34 = vmul.f32 %v896_v36, %v5366_v43 }
 0x14f   :  { %v1090_v8 = vmul.f32 %v1082_v42, %v5544_v7  ;;  %v680_v44 = vadd.f32 0.4994258, %v679_v46  ;;  %v1139_v29 = vrot.slane %v1138_v33, 2  ;;  %v1148_v60 = vrot.slane %v1147_v61, 1 }
 0x150   :  { %v522_v56 = vadd.f32 1.0, %v521_v10  ;;  %4400 = vrcp.f32 %v5557_v31  ;;  %v1030_v6 = vmul.f32 %v1029_v37, %v5427_v54  ;;  %v510_v9 = vmul.f32 %v509_v16, %v5494_v20 }
 0x151   :  { %v1106_v15 = vadd.f32 %v1090_v8, %v1086_v49  ;;  %v681_v32 = vmul.f32 %v680_v44, %v5496_v13  ;;  %v669_v51 = vadd.f32 0.18741608, %v668_v1  ;;  %v4267_v47 = vclamps-f32 %v897_v34, 1.0 }
 0x152   :  { %4402 = vrcp.f32 %v522_v56  ;;  %v5565_v43 = vmax.f32 %v1138_v33, %v1139_v29  ;;  %v5567_v5 = vmax.f32 %v1147_v61, %v1148_v60  ;;  %v1031_v63 = vadd.f32 1.1283791, %v1030_v6 }
 0x153   :  { %v1107_v0 = vrot.slane %v1106_v15, 4  ;;  %v5569_v18 = vadd.f32 1.0, %v681_v32  ;;  %v511_v4 = vadd.f32 1.1283791, %v510_v9  ;;  %v670_v48 = vmul.f32 %v669_v51, %v5496_v13 }
 0x154   :  { %v5574_v54 = vmul.f32 0.5, %v4849_v19  ;;  %v5577_v35 = vadd.f32 1.0, %v4267_v47  ;;  %v1141_v45 = vrot.slane %v5565_v43, 1  ;;  %v1165_v58 = vsub.f32 %v5440_v28, %v5567_v5 }
 0x155   :  { %v1108_v41 = vadd.f32 %v1107_v0, %v1106_v15  ;;  %4404 = vrcp.f32 %v5569_v18  ;;  %v532_v12 = vand.u32 2147483647, %v522_v56  ;;  %v1032_v13 = vmul.f32 %v1031_v63, %v5398_v40 }
 0x156   :  { %v4401_v11 = vpop.eup %4400  ;;  %v512_v19 = vmul.f32 %v511_v4, %v5474_v53  ;;  %v534_v17 = vand.u32 2147483648, %v522_v56  ;;  %v671_v36 = vadd.f32 1.1283791, %v670_v48  ;;  %vm1048_vm8 = vweird.f32 %v5557_v31 }
 0x157   :  { %v1109_v20 = vrot.slane %v1108_v41, 2  ;;  %v1044_v22 = vmul.f32 %v4401_v11, %v5557_v31  ;;  %vm528_vm9 = vweird.f32 %v522_v56  ;;  %vm5585_vm10 = vcmp.eq.f32.partialorder %v532_v12, 8.507059e+37 }
 0x158   :  { %v4403_v23 = vpop.eup %4402  ;;  %vm1049_vm11 = vweird.f32 %v4401_v11  ;;  %v1052_v28 = vand.u32 2147483647, %v5557_v31  ;;  %v1054_v40 = vand.u32 2147483648, %v5557_v31  ;;  %v535_v16 = vor.u32 1.1754944e-38, %v534_v17 }
 0x159   :  { %v1110_v59 = vadd.f32 %v1109_v20, %v1108_v41  ;;  %v524_v25 = vmul.f32 %v4403_v23, %v522_v56  ;;  %v1045_v3 = vsub.f32 1.0, %v1044_v22  ;;  %vm529_vm12 = vweird.f32 %v4403_v23  ;;  %vm1050_vm13 = vmor %vm1048_vm8, %vm1049_vm11 }
 0x15a   :  { %v692_v10 = vand.u32 2147483647, %v5569_v18  ;;  %v694_v1 = vand.u32 2147483648, %v5569_v18  ;;  %vm530_vm14 = vmor %vm528_vm9, %vm529_vm12  ;;  %vm1053_vm1 = vcmp.eq.f32.partialorder %v1052_v28, 8.507059e+37  ;;  %v1055_v32 = vor.u32 1.1754944e-38, %v1054_v40 }
 0x15b   :  { %v1111_v33 = vrot.slane %v1110_v59, 1  ;;  %v525_v61 = vsub.f32 1.0, %v524_v25  ;;  %v1046_v14 = vmul.f32 %v4401_v11, %v1045_v3  ;;  %v4405_v42 = vpop.eup %4404  ;;  %vm688_vm2 = vweird.f32 %v5569_v18 }
 0x15c   :  { %v684_v37 = vmul.f32 %v4405_v42, %v5569_v18  ;;  %vm689_vm15 = vweird.f32 %v4405_v42  ;;  %v672_v4 = vmul.f32 %v671_v36, %v5479_v39  ;;  %vm693_vm4 = vcmp.eq.f32.partialorder %v692_v10, 8.507059e+37 }
 0x15d   :  { %v1112_v46 = vadd.f32 %v1111_v33, %v1110_v59  ;;  %v526_v53 = vmul.f32 %v4403_v23, %v525_v61  ;;  %v1047_v34 = vadd.f32 %v4401_v11, %v1046_v14  ;;  %vm690_vm3 = vmor %vm688_vm2, %vm689_vm15  ;;  %v695_v48 = vor.u32 1.1754944e-38, %v694_v1 }
 0x15e   :  { %v685_v60 = vsub.f32 1.0, %v684_v37  ;;  %v1142_v18 = vmax.f32 %v5565_v43, %v1141_v45  ;;  %v367_v12 = vmul.f32 0.5, %v5444_v55  ;;  %v1071_v39 = vmul.f32 %v5577_v35, %v5574_v54  ;;  %v5631_v54 = vld [vmem:[%s8626_s2 + $0xf8] sm:$0xff]  ;;  %v5942_v55 = vld [vmem:[%s8626_s2 + $0x128] sm:$0xff] }
 0x15f   :  { %v1122_v8 = vmul.f32 %v1112_v46, %v5536_v38  ;;  %v1126_v44 = vmul.f32 %v1112_v46, %v5544_v7  ;;  %v527_v29 = vadd.f32 %v4403_v23, %v526_v53  ;;  %v1051_v15 = vsel %vm1050_vm13, %v4401_v11, %v1047_v34  ;;  %1287 = vmatpush.msra.mxu1 %v5631_v54  ;;  %v5638_v46 = vld [vmem:[%s8626_s2 + $0x70] sm:$0xff] }
 0x160   :  { %v686_v38 = vmul.f32 %v4405_v42, %v685_v60  ;;  %v1169_v7 = vsub.f32 %v5446_v27, %v5567_v5  ;;  %v1056_v31 = vsel %vm1053_vm1, %v1055_v32, %v1051_v15  ;;  %v1174_v11 = vmul.f32 1.442695, %v1165_v58  ;;  %8781 = vst [vmem:[#allocation14_spill] sm:$0xff] %v5638_v46  ;;  %v5643_v53 = vld [vmem:[%s8626_s2 + $0xf0] sm:$0xff]  ;;  %v5670_v32 = vld [vmem:[%s8626_s2 + $0x60] sm:$0xff] }
 0x161   :  { %v5600_v6 = vmul.f32 0.17677669, %v1122_v8  ;;  %v5602_v9 = vmul.f32 0.17677669, %v1126_v44  ;;  %v531_v51 = vsel %vm530_vm14, %v4403_v23, %v527_v29  ;;  %v1057_v63 = vmul.f32 %v1056_v31, %v1032_v13  ;;  %8782 = vst [vmem:[#allocation15_spill] sm:$0xff] %v5643_v53  ;;  %1288 = vmatpush.msra.mxu1 %v5643_v53  ;;  %v5657_v44 = vld [vmem:[%s8626_s2 + $0x68] sm:$0xff] }
 0x162   :  { %v536_v0 = vsel %vm5585_vm10, %v535_v16, %v531_v51  ;;  %v687_v41 = vadd.f32 %v4405_v42, %v686_v38  ;;  %v1182_v23 = vmul.f32 1.442695, %v1169_v7  ;;  %4406 = vpow2.f32 %v1174_v11  ;;  %v5662_v29 = vld [vmem:[%s8626_s2 + $0xe8] sm:$0xff]  ;;  %8784 = vst [vmem:[#allocation17_spill] sm:$0xff] %v5670_v32  ;;  %v5675_v51 = vld [vmem:[%s8626_s2 + $0xe0] sm:$0xff]  ;;  %v5680_v38 = vld [vmem:[%s8626_s2 + $0x178] sm:$0xff] }
 0x163   :  { %v1150_v56 = vmax.f32 %v5600_v6, %v5602_v9  ;;  %v537_v47 = vmul.f32 %v536_v0, %v512_v19  ;;  %v4271_v22 = vclamps-f32 %v1057_v63, 1.0  ;;  %v731_v19 = vmul.f32 0.5, %v5374_v62  ;;  %v5626_v62 = vld [vmem:[%s8626_s2 + $0x78] sm:$0xff]  ;;  %8783 = vst [vmem:[#allocation16_spill] sm:$0xff] %v5662_v29  ;;  %1289 = vmatpush.msra.mxu1 %v5662_v29  ;;  %1310 = vmatpush.msra.mxu2 %v5680_v38  ;;  %v5713_v11 = vld [vmem:[%s8626_s2 + $0x1f0] sm:$0xff] }
 0x164   :  { %v691_v20 = vsel %vm690_vm3, %v4405_v42, %v687_v41  ;;  %v1164_v61 = vsub.f32 %v5413_v52, %v1142_v18  ;;  %v1168_v43 = vsub.f32 %v5424_v2, %v1142_v18  ;;  %4408 = vpow2.f32 %v1182_v23  ;;  %1264 = vmatpush.msra.mxu0 %v5626_v62  ;;  %v5687_v0 = vld [vmem:[%s8626_s2 + $0x1f8] sm:$0xff]  ;;  %v5706_v41 = vld [vmem:[%s8626_s2 + $0x170] sm:$0xff]  ;;  %8800 = vst [vmem:[#allocation33_spill] sm:$0xff] %v5942_v55 }
 0x165   :  { %v1151_v27 = vrot.slane %v1150_v56, 4  ;;  %v4259_v5 = vclamps-f32 %v537_v47, 1.0  ;;  %v696_v59 = vsel %vm693_vm4, %v695_v48, %v691_v20  ;;  %v1067_v58 = vadd.f32 1.0, %v4271_v22  ;;  %1290 = vmatpush.msra.mxu1 %v5675_v51  ;;  %1333 = vmatpush.msra.mxu3 %v5687_v0  ;;  %v5701_v47 = vld [vmem:[%s8626_s2 + $0xd8] sm:$0xff]  ;;  %v5721_v48 = vld [vmem:[%s8626_s2 + $0x50] sm:$0xff]  ;;  %v5739_v22 = vld [vmem:[%s8626_s2 + $0x1e8] sm:$0xff] }
 0x166   :  { %v697_v3 = vmul.f32 %v696_v59, %v672_v4  ;;  %v371_v45 = vmul.f32 0.5, %v5454_v50  ;;  %v1079_v52 = vadd.f32 1.0, %v1071_v39  ;;  %v1172_v35 = vmul.f32 1.442695, %v1164_v61  ;;  %1265 = vmatpush.msra.mxu0 %v5638_v46  ;;  %1311 = vmatpush.msra.mxu2 %v5706_v41  ;;  %v5758_v59 = vld [vmem:[%s8626_s2 + $0x160] sm:$0xff]  ;;  %v5791_v61 = vld [vmem:[%s8626_s2 + $0x1d8] sm:$0xff] }
 0x167   :  { %v1152_v25 = vmax.f32 %v1150_v56, %v1151_v27  ;;  %v703_v13 = vadd.f32 1.0, %v4259_v5  ;;  %v1075_v28 = vmul.f32 %v1067_v58, %v731_v19  ;;  %v1180_v16 = vmul.f32 1.442695, %v1168_v43  ;;  %v5696_v56 = vld [vmem:[%s8626_s2 + $0x58] sm:$0xff]  ;;  %1291 = vmatpush.msra.mxu1 %v5701_v47  ;;  %1334 = vmatpush.msra.mxu3 %v5713_v11  ;;  %v5726_v27 = vld [vmem:[%s8626_s2 + $0xd0] sm:$0xff]  ;;  %v5731_v5 = vld [vmem:[%s8626_s2 + $0x168] sm:$0xff] }
 0x168   :  { %v4263_v36 = vclamps-f32 %v697_v3, 1.0  ;;  %v5645_v37 = vpop.eup %4406  ;;  %1266 = vmatpush.msra.mxu0 %v5657_v44  ;;  %4410 = vpow2.f32 %v1172_v35  ;;  %1312 = vmatpush.msra.mxu2 %v5731_v5  ;;  %v5774_v39 = vld [vmem:[%s8626_s2 + $0x40] sm:$0xff]  ;;  %v5824_v35 = vld [vmem:[%s8626_s2 + $0x30] sm:$0xff] }
 0x169   :  { %v1153_v17 = vrot.slane %v1152_v25, 2  ;;  %v711_v33 = vmul.f32 %v703_v13, %v367_v12  ;;  %v1083_v1 = vadd.f32 1.0, %v1075_v28  ;;  %4412 = vpow2.f32 %v1180_v16  ;;  %1292 = vmatpush.msra.mxu1 %v5726_v27  ;;  %1335 = vmatpush.msra.mxu3 %v5739_v22  ;;  %v5753_v12 = vld [vmem:[%s8626_s2 + $0xc8] sm:$0xff]  ;;  %v5767_v13 = vld [vmem:[%s8626_s2 + $0x1e0] sm:$0xff]  ;;  %v5810_v28 = vld [vmem:[%s8626_s2 + $0x150] sm:$0xff] }
 0x16a   :  { %v707_v42 = vadd.f32 1.0, %v4263_v36  ;;  %v5652_v8 = vpop.eup %4408  ;;  %1267 = vmatpush.msra.mxu0 %v5670_v32  ;;  %1313 = vmatpush.msra.mxu2 %v5758_v59  ;;  %v5779_v19 = vld [vmem:[%s8626_s2 + $0xc0] sm:$0xff]  ;;  %v5834_v16 = vld [vmem:[%s8626_s2 + $0x148] sm:$0xff]  ;;  %v5914_v50 = vld [vmem:[%s8626_s2 + $0x130] sm:$0xff] }
 0x16b   :  { %v1154_v14 = vmax.f32 %v1152_v25, %v1153_v17  ;;  %v5621_v49 = vadd.f32 1.0, %v711_v33  ;;  %v1195_v31 = vadd.f32 %v5652_v8, %v5645_v37  ;;  %1293 = vmatpush.msra.mxu1 %v5753_v12  ;;  %1336 = vmatpush.msra.mxu3 %v5767_v13  ;;  %v5784_v17 = vld [vmem:[%s8626_s2 + $0x158] sm:$0xff]  ;;  %8785 = vst [vmem:[#allocation18_spill] sm:$0xff] %v5834_v16 }
 0x16c   :  { %v715_v2 = vmul.f32 %v707_v42, %v371_v45  ;;  %1268 = vmatpush.msra.mxu0 %v5696_v56  ;;  %1314 = vmatpush.msra.mxu2 %v5784_v17  ;;  %v5805_v42 = vld [vmem:[%s8626_s2 + $0xb8] sm:$0xff]  ;;  %8795 = vst [vmem:[#allocation28_spill] sm:$0xff] %v5914_v50 }
 0x16d   :  { %v1155_v40 = vrot.slane %v1154_v14, 1  ;;  %v1087_v34 = vmul.f32 %v1079_v52, %v5621_v49  ;;  %v1196_v23 = vrot.slane %v1195_v31, 4  ;;  %1294 = vmatpush.msra.mxu1 %v5779_v19  ;;  %1337 = vmatpush.msra.mxu3 %v5791_v61 }
 0x16e   :  { %v5647_v10 = vadd.f32 1.0, %v715_v2  ;;  %1269 = vmatpush.msra.mxu0 %v5721_v48  ;;  %v5741_v18 = vpop.eup %4410  ;;  %v5817_v2 = vld [vmem:[%s8626_s2 + $0x1d0] sm:$0xff]  ;;  %1315 = vmatpush.msra.mxu2 %v5810_v28 }
 0x16f   :  { %v1156_v15 = vmax.f32 %v1154_v14, %v1155_v40  ;;  %v5760_v25 = vpop.eup %4412  ;;  %v1197_v45 = vadd.f32 %v1196_v23, %v1195_v31  ;;  %v5800_v14 = vld [vmem:[%s8626_s2 + $0x38] sm:$0xff]  ;;  %1295 = vmatpush.msra.mxu1 %v5805_v42  ;;  %1338 = vmatpush.msra.mxu3 %v5817_v2  ;;  %v5829_v40 = vld [vmem:[%s8626_s2 + $0xb0] sm:$0xff]  ;;  %v5853_v31 = vld [vmem:[%s8626_s2 + $0xa8] sm:$0xff] }
 0x170   :  { %v1091_v60 = vmul.f32 %v1083_v1, %v5647_v10  ;;  %v1188_v43 = vadd.f32 %v5760_v25, %v5741_v18  ;;  %1316 = vmatpush.msra.mxu2 %v5834_v16  ;;  %v5874_v23 = vld [vmem:[%s8626_s2 + $0x20] sm:$0xff] }
 0x171   :  { %v1166_v4 = vsub.f32 %v5600_v6, %v1156_v15  ;;  %v1170_v6 = vsub.f32 %v5602_v9, %v1156_v15  ;;  %v5748_v9 = vld [vmem:[%s8626_s2 + $0x48] sm:$0xff]  ;;  %1296 = vmatpush.msra.mxu1 %v5829_v40  ;;  %v1198_v15 = vrot.slane %v1197_v45, 2 }
 0x172   :  { %v1113_v7 = vadd.f32 %v1091_v60, %v1087_v34  ;;  %1270 = vmatpush.msra.mxu0 %v5748_v9  ;;  %v5841_v34 = vld [vmem:[%s8626_s2 + $0x1c8] sm:$0xff]  ;;  %v1189_v60 = vrot.slane %v1188_v43, 4 }
 0x173   :  { %v1176_v58 = vmul.f32 1.442695, %v1166_v4  ;;  %v1184_v36 = vmul.f32 1.442695, %v1170_v6  ;;  %8786 = vst [vmem:[#allocation19_spill] sm:$0xff] %v5841_v34  ;;  %1339 = vmatpush.msra.mxu3 %v5841_v34  ;;  %1297 = vmatpush.msra.mxu1 %v5853_v31 }
 0x174   :  { %v1114_v63 = vrot.slane %v1113_v7, 4  ;;  %1271 = vmatpush.msra.mxu0 %v5774_v39 }
 0x175   :  { %4414 = vpow2.f32 %v1176_v58 }
 0x176   :  { %v1115_v20 = vadd.f32 %v1114_v63, %v1113_v7  ;;  %1272 = vmatpush.msra.mxu0 %v5800_v14  ;;  %4416 = vpow2.f32 %v1184_v36  ;;  %v5848_v7 = vld [vmem:[%s8626_s2 + $0x28] sm:$0xff]  ;;  %v5858_v63 = vld [vmem:[%s8626_s2 + $0x140] sm:$0xff]  ;;  %v5895_v36 = vld [vmem:[%s8626_s2 + $0x1b8] sm:$0xff] }
 0x177   :  { %8787 = vst [vmem:[#allocation20_spill] sm:$0xff] %v5858_v63  ;;  %1317 = vmatpush.msra.mxu2 %v5858_v63 }
 0x178   :  { %v1116_v3 = vrot.slane %v1115_v20, 2  ;;  %1273 = vmatpush.msra.mxu0 %v5824_v35  ;;  %8791 = vst [vmem:[#allocation24_spill] sm:$0xff] %v5895_v36 }
 0x17a   :  { %v1117_v33 = vadd.f32 %v1116_v3, %v1115_v20  ;;  %1274 = vmatpush.msra.mxu0 %v5848_v7  ;;  %v5867_v20 = vld [vmem:[%s8626_s2 + $0x1c0] sm:$0xff] }
 0x17b   :  { %8788 = vst [vmem:[#allocation21_spill] sm:$0xff] %v5867_v20  ;;  %1340 = vmatpush.msra.mxu3 %v5867_v20 }
 0x17c   :  { %v1118_v52 = vrot.slane %v1117_v33, 1  ;;  %1275 = vmatpush.msra.mxu0 %v5874_v23 }
 0x17d   :  { %1341 = vmatpush.msra.mxu3 %v5895_v36  ;;  %v5968_v36 = vld [vmem:[%s8626_s2 + $0x120] sm:$0xff] }
 0x17e   :  { %v1119_v1 = vadd.f32 %v1118_v52, %v1117_v33  ;;  %v5897_v33 = vpop.eup %4414  ;;  %v1190_v52 = vadd.f32 %v1189_v60, %v1188_v43  ;;  %v5925_v60 = vld [vmem:[%s8626_s2 + $0x1b0] sm:$0xff]  ;;  %8804 = vst [vmem:[#allocation37_spill] sm:$0xff] %v5968_v36 }
 0x17f   :  { %8792 = vst [vmem:[#allocation25_spill] sm:$0xff] %v5897_v33  ;;  %v5916_v43 = vpop.eup %4416  ;;  %1342 = vmatpush.msra.mxu3 %v5925_v60 }
 0x180   :  { %v1123_v4 = vmul.f32 %v1119_v1, %v5621_v49  ;;  %v1127_v6 = vmul.f32 %v1119_v1, %v5647_v10  ;;  %v5879_v49 = vld [vmem:[%s8626_s2 + $0xa0] sm:$0xff]  ;;  %v5884_v10 = vld [vmem:[%s8626_s2 + $0x138] sm:$0xff]  ;;  %v1199_v1 = vadd.f32 %v1198_v15, %v1197_v45  ;;  %8796 = vst [vmem:[#allocation29_spill] sm:$0xff] %v5916_v43  ;;  %v5932_v15 = vld [vmem:[%s8626_s2 + $0x10] sm:$0xff] }
 0x181   :  { %8789 = vst [vmem:[#allocation22_spill] sm:$0xff] %v5879_v49  ;;  %1298 = vmatpush.msra.mxu1 %v5879_v49  ;;  %1318 = vmatpush.msra.mxu2 %v5884_v10  ;;  %v6023_v49 = vld [vmem:[%s8626_s2 + $0x188] sm:$0xff] }
 0x182   :  { %8790 = vst [vmem:[#allocation23_spill] sm:$0xff] %v5884_v10  ;;  %v5886_v3 = vmul.f32 0.17677669, %v1123_v4  ;;  %v5888_v58 = vmul.f32 0.17677669, %v1127_v6  ;;  %v5904_v4 = vld [vmem:[%s8626_s2 + $0x18] sm:$0xff] }
 0x183   :  { %8793 = vst [vmem:[#allocation26_spill] sm:$0xff] %v5904_v4  ;;  %v5909_v6 = vld [vmem:[%s8626_s2 + $0x98] sm:$0xff]  ;;  %1276 = vmatpush.msra.mxu0 %v5904_v4  ;;  %1319 = vmatpush.msra.mxu2 %v5914_v50  ;;  %v1191_v50 = vrot.slane %v1190_v52, 2  ;;  %v1202_v4 = vadd.f32 %v5916_v43, %v5897_v33  ;;  %v5975_v33 = vld [vmem:[%s8626_s2 + $0x1a0] sm:$0xff] }
 0x184   :  { %8794 = vst [vmem:[#allocation27_spill] sm:$0xff] %v5909_v6  ;;  %v1157_v45 = vmax.f32 %v5886_v3, %v5888_v58  ;;  %1299 = vmatpush.msra.mxu1 %v5909_v6  ;;  %v1200_v6 = vrot.slane %v1199_v1, 1 }
 0x185   :  { %8797 = vst [vmem:[#allocation30_spill] sm:$0xff] %v5925_v60  ;;  %1277 = vmatpush.msra.mxu0 %v5932_v15  ;;  %v5949_v60 = vld [vmem:[%s8626_s2 + $0x1a8] sm:$0xff]  ;;  %1320 = vmatpush.msra.mxu2 %v5942_v55  ;;  %v5985_v55 = vld [vmem:[%s8626_s2 + $0x80] sm:$0xff]  ;;  %v1192_v10 = vadd.f32 %v1191_v50, %v1190_v52 }
 0x186   :  { %8798 = vst [vmem:[#allocation31_spill] sm:$0xff] %v5932_v15  ;;  %v1158_v57 = vrot.slane %v1157_v45, 4  ;;  %1300 = vmatpush.msra.mxu1 %v5937_v21  ;;  %1343 = vmatpush.msra.mxu3 %v5949_v60  ;;  %v5958_v15 = vld [vmem:[%s8626_s2 + $0x8] sm:$0xff]  ;;  %v1201_v26 = vadd.f32 %v1200_v6, %v1199_v1  ;;  %v6032_v52 = vld [vmem:[%s8626_s2 + $0x100] sm:$0xff] }
 0x187   :  { %8801 = vst [vmem:[#allocation34_spill] sm:$0xff] %v5949_v60  ;;  %v5963_v21 = vld [vmem:[%s8626_s2 + $0x88] sm:$0xff]  ;;  %1278 = vmatpush.msra.mxu0 %v5958_v15  ;;  %v5980_v60 = vld [vmem:[%s8626_s2] sm:$0xff]  ;;  %1321 = vmatpush.msra.mxu2 %v5968_v36  ;;  %v6004_v36 = vld [vmem:[%s8626_s2 + $0x110] sm:$0xff]  ;;  %v1193_v50 = vrot.slane %v1192_v10, 1 }
 0x188   :  { %8802 = vst [vmem:[#allocation35_spill] sm:$0xff] %v5958_v15  ;;  %v1159_v43 = vmax.f32 %v1157_v45, %v1158_v57  ;;  %1301 = vmatpush.msra.mxu1 %v5963_v21  ;;  %1344 = vmatpush.msra.mxu3 %v5975_v33  ;;  %v5992_v57 = vld [vmem:[%s8626_s2 + $0x118] sm:$0xff]  ;;  %v1203_v15 = vrot.slane %v1202_v4, 4  ;;  %4418 = vrcp.f32 %v1201_v26  ;;  %v6037_v1 = vld [vmem:[%s8626_s2 + $0x180] sm:$0xff] }
 0x189   :  { %8803 = vst [vmem:[#allocation36_spill] sm:$0xff] %v5963_v21  ;;  %v5997_v45 = vld [vmem:[%s8626_s2 + $0x198] sm:$0xff]  ;;  %1279 = vmatpush.msra.mxu0 %v5980_v60  ;;  %1322 = vmatpush.msra.mxu2 %v5992_v57  ;;  %v1194_v26 = vadd.f32 %v1193_v50, %v1192_v10 }
 0x18a   :  { %8805 = vst [vmem:[#allocation38_spill] sm:$0xff] %v5975_v33  ;;  %v1160_v21 = vrot.slane %v1159_v43, 2  ;;  %1302 = vmatpush.msra.mxu1 %v5985_v55  ;;  %v6009_v33 = vld [vmem:[%s8626_s2 + $0x190] sm:$0xff]  ;;  %1345 = vmatpush.msra.mxu3 %v5997_v45  ;;  %v1204_v6 = vadd.f32 %v1203_v15, %v1202_v4 }
 0x18b   :  { %8806 = vst [vmem:[#allocation39_spill] sm:$0xff] %v5980_v60  ;;  %1356 = vmatpush.msrb.mxu0 %v5626_v62  ;;  %1323 = vmatpush.msra.mxu2 %v6004_v36  ;;  %4420 = vrcp.f32 %v1194_v26 }
 0x18c   :  { %8807 = vst [vmem:[#allocation40_spill] sm:$0xff] %v5985_v55  ;;  %v1161_v60 = vmax.f32 %v1159_v43, %v1160_v21  ;;  %1379 = vmatpush.msrb.mxu1 %v5631_v54  ;;  %v6018_v55 = vld [vmem:[%s8626_s2 + $0x108] sm:$0xff]  ;;  %1346 = vmatpush.msra.mxu3 %v6009_v33  ;;  %v1205_v10 = vrot.slane %v1204_v6, 2 }
 0x18d   :  { %8808 = vst [vmem:[#allocation41_spill] sm:$0xff] %v5992_v57  ;;  %1357 = vmatpush.msrb.mxu0 %v5638_v46  ;;  %1324 = vmatpush.msra.mxu2 %v6018_v55 }
 0x18e   :  { %8809 = vst [vmem:[#allocation42_spill] sm:$0xff] %v5997_v45  ;;  %v1162_v21 = vrot.slane %v1161_v60, 1  ;;  %1380 = vmatpush.msrb.mxu1 %v5643_v53  ;;  %1347 = vmatpush.msra.mxu3 %v6023_v49  ;;  %v4419_v4 = vpop.eup %4418 }
 0x18f   :  { %8810 = vst [vmem:[#allocation43_spill] sm:$0xff] %v6009_v33  ;;  %1358 = vmatpush.msrb.mxu0 %v5657_v44  ;;  %1325 = vmatpush.msra.mxu2 %v6032_v52 }
 0x190   :  { %8811 = vst [vmem:[#allocation44_spill] sm:$0xff] %v6018_v55  ;;  %v1163_v43 = vmax.f32 %v1161_v60, %v1162_v21  ;;  %1381 = vmatpush.msrb.mxu1 %v5662_v29  ;;  %1348 = vmatpush.msra.mxu3 %v6037_v1 }
 0x191   :  { %8812 = vst [vmem:[#allocation45_spill] sm:$0xff] %v6023_v49  ;;  %1359 = vmatpush.msrb.mxu0 %v5670_v32  ;;  %1402 = vmatpush.msrb.mxu2 %v5680_v38 }
 0x192   :  { %8813 = vst [vmem:[#allocation46_spill] sm:$0xff] %v6032_v52  ;;  %v1167_v53 = vsub.f32 %v5886_v3, %v1163_v43  ;;  %v1171_v46 = vsub.f32 %v5888_v58, %v1163_v43  ;;  %1382 = vmatpush.msrb.mxu1 %v5675_v51  ;;  %1425 = vmatpush.msrb.mxu3 %v5687_v0  ;;  %v4421_v58 = vpop.eup %4420 }
 0x193   :  { %8814 = vst [vmem:[#allocation47_spill] sm:$0xff] %v6037_v1  ;;  %1360 = vmatpush.msrb.mxu0 %v5696_v56  ;;  %v1221_v3 = vmul.f32 %v4419_v4, %v5645_v37  ;;  %1403 = vmatpush.msrb.mxu2 %v5706_v41 }
 0x194   :  { %v1178_v60 = vmul.f32 1.442695, %v1167_v53  ;;  %v1186_v15 = vmul.f32 1.442695, %v1171_v46  ;;  %1383 = vmatpush.msrb.mxu1 %v5701_v47  ;;  %1426 = vmatpush.msrb.mxu3 %v5713_v11  ;;  %v1206_v46 = vadd.f32 %v1205_v10, %v1204_v6  ;;  %v1220_v53 = vmul.f32 %v4421_v58, %v5741_v18 }
 0x195   :  { %1361 = vmatpush.msrb.mxu0 %v5721_v48  ;;  %1404 = vmatpush.msrb.mxu2 %v5731_v5  ;;  %v1229_v37 = vmul.f32 %v1221_v3, %v5093_v24 }
 0x196   :  { %4422 = vpow2.f32 %v1178_v60  ;;  %1384 = vmatpush.msrb.mxu1 %v5726_v27  ;;  %1427 = vmatpush.msrb.mxu3 %v5739_v22  ;;  %v1228_v50 = vmul.f32 %v1220_v53, %v4901_v30  ;;  %v1207_v21 = vrot.slane %v1206_v46, 1  ;;  %v1224_v60 = vmul.f32 %v4421_v58, %v5760_v25  ;;  %v8817_v58 = vld [vmem:[#allocation22_spill] sm:$0xff] }
 0x197   :  { %4424 = vpow2.f32 %v1186_v15  ;;  %1362 = vmatpush.msrb.mxu0 %v5748_v9  ;;  %1405 = vmatpush.msrb.mxu2 %v5758_v59  ;;  %v6079_v26 = vadd.f32 %v1229_v37, %v5093_v24  ;;  %v1225_v24 = vmul.f32 %v4419_v4, %v5652_v8  ;;  %v8819_v4 = vld [vmem:[#allocation9_spill] sm:$0xff]  ;;  %v8820_v37 = vld [vmem:[#allocation23_spill] sm:$0xff] }
 0x198   :  { %1385 = vmatpush.msrb.mxu1 %v5753_v12  ;;  %1428 = vmatpush.msrb.mxu3 %v5767_v13  ;;  %v6076_v18 = vadd.f32 %v1228_v50, %v4901_v30  ;;  %v1208_v30 = vadd.f32 %v1207_v21, %v1206_v46  ;;  %v8818_v46 = vld [vmem:[#allocation8_spill] sm:$0xff] }
 0x199   :  { %1363 = vmatpush.msrb.mxu0 %v5774_v39  ;;  %1406 = vmatpush.msrb.mxu2 %v5784_v17  ;;  %8816 = vst [vmem:[#allocation49_spill] sm:$0xff] %v6079_v26  ;;  %v1232_v8 = vmul.f32 %v1224_v60, %v8818_v46  ;;  %v1233_v53 = vmul.f32 %v1225_v24, %v8819_v4  ;;  %v8821_v50 = vld [vmem:[#allocation24_spill] sm:$0xff]  ;;  %v8826_v24 = vld [vmem:[#allocation31_spill] sm:$0xff] }
 0x19a   :  { %1386 = vmatpush.msrb.mxu1 %v5779_v19  ;;  %1429 = vmatpush.msrb.mxu3 %v5791_v61  ;;  %8815 = vst [vmem:[#allocation48_spill] sm:$0xff] %v6076_v18  ;;  %v6097_v3 = vpack.c.bf16 %v6079_v26, %v6076_v18  ;;  %4426 = vrcp.f32 %v1208_v30 }
 0x19b   :  { %1364 = vmatpush.msrb.mxu0 %v5800_v14  ;;  %1407 = vmatpush.msrb.mxu2 %v5810_v28  ;;  %v6116_v30 = vadd.f32 %v1232_v8, %v8818_v46 }
 0x19c   :  { %v6071_v6 = vpop.eup %4422  ;;  %1387 = vmatpush.msrb.mxu1 %v5805_v42  ;;  %1430 = vmatpush.msrb.mxu3 %v5817_v2 }
 0x19d   :  { %v6081_v43 = vpop.eup %4424  ;;  %1365 = vmatpush.msrb.mxu0 %v5824_v35  ;;  %1408 = vmatpush.msrb.mxu2 %v5834_v16  ;;  %v8825_v16 = vld [vmem:[#allocation30_spill] sm:$0xff]  ;;  %8828 = vst [vmem:[#allocation22_spill] sm:$0xff] %v6116_v30 }
 0x19e   :  { %v1209_v10 = vadd.f32 %v6081_v43, %v6071_v6  ;;  %1388 = vmatpush.msrb.mxu1 %v5829_v40  ;;  %1431 = vmatpush.msrb.mxu3 %v5841_v34  ;;  %v8822_v34 = vld [vmem:[#allocation26_spill] sm:$0xff] }
 0x19f   :  { %1366 = vmatpush.msrb.mxu0 %v5848_v7  ;;  %1409 = vmatpush.msrb.mxu2 %v5858_v63  ;;  %v8823_v63 = vld [vmem:[#allocation27_spill] sm:$0xff] }
 0x1a0   :  { %v1210_v15 = vrot.slane %v1209_v10, 4  ;;  %1389 = vmatpush.msrb.mxu1 %v5853_v31  ;;  %1432 = vmatpush.msrb.mxu3 %v5867_v20  ;;  %v8824_v20 = vld [vmem:[#allocation28_spill] sm:$0xff]  ;;  %v4427_v8 = vpop.eup %4426 }
 0x1a1   :  { %1367 = vmatpush.msrb.mxu0 %v5874_v23  ;;  %1410 = vmatpush.msrb.mxu2 %v8820_v37  ;;  %v8827_v37 = vld [vmem:[#allocation32_spill] sm:$0xff] }
 0x1a2   :  { %v1211_v25 = vadd.f32 %v1210_v15, %v1209_v10  ;;  %1390 = vmatpush.msrb.mxu1 %v8817_v58  ;;  %1433 = vmatpush.msrb.mxu3 %v8821_v50  ;;  %v6119_v50 = vadd.f32 %v1233_v53, %v8819_v4  ;;  %v8831_v10 = vld [vmem:[#allocation34_spill] sm:$0xff]  ;;  %v8836_v4 = vld [vmem:[#allocation37_spill] sm:$0xff] }
 0x1a3   :  { %1368 = vmatpush.msrb.mxu0 %v8822_v34  ;;  %1411 = vmatpush.msrb.mxu2 %v8824_v20  ;;  %v8832_v34 = vld [vmem:[#allocation35_spill] sm:$0xff]  ;;  %v8833_v20 = vld [vmem:[#allocation36_spill] sm:$0xff]  ;;  %v8837_v53 = vld [vmem:[#allocation38_spill] sm:$0xff] }
 0x1a4   :  { %v1212_v21 = vrot.slane %v1211_v25, 2  ;;  %1391 = vmatpush.msrb.mxu1 %v8823_v63  ;;  %1434 = vmatpush.msrb.mxu3 %v8825_v16  ;;  %8829 = vst [vmem:[#allocation8_spill] sm:$0xff] %v6119_v50  ;;  %v8830_v63 = vld [vmem:[#allocation33_spill] sm:$0xff]  ;;  %v8835_v16 = vunpack.c.h.bf16 %v6097_v3 }
 0x1a5   :  { %1369 = vmatpush.msrb.mxu0 %v8826_v24  ;;  %1412 = vmatpush.msrb.mxu2 %v8830_v63  ;;  %v8838_v63 = vld [vmem:[#allocation39_spill] sm:$0xff] }
 0x1a6   :  { %v1213_v60 = vadd.f32 %v1212_v21, %v1211_v25  ;;  %1392 = vmatpush.msrb.mxu1 %v8827_v37  ;;  %1435 = vmatpush.msrb.mxu3 %v8831_v10  ;;  %v8834_v25 = vunpack.c.l.bf16 %v6097_v3  ;;  %v1257_v46 = vsub.f32 %v6079_v26, %v8835_v16  ;;  %v8839_v10 = vld [vmem:[#allocation40_spill] sm:$0xff]  ;;  %v8840_v16 = vld [vmem:[#allocation25_spill] sm:$0xff] }
 0x1a7   :  { %1370 = vmatpush.msrb.mxu0 %v8832_v34  ;;  %1413 = vmatpush.msrb.mxu2 %v8836_v4 }
 0x1a8   :  { %v1214_v15 = vrot.slane %v1213_v60, 1  ;;  %1393 = vmatpush.msrb.mxu1 %v8833_v20  ;;  %v1256_v21 = vsub.f32 %v6076_v18, %v8834_v25  ;;  %1436 = vmatpush.msrb.mxu3 %v8837_v53  ;;  %v6137_v20 = vpack.c.bf16 %v6119_v50, %v6116_v30  ;;  %v1222_v25 = vmul.f32 %v4427_v8, %v8840_v16 }
 0x1a9   :  { %1371 = vmatpush.msrb.mxu0 %v8838_v63  ;;  %1414 = vmatpush.msrb.mxu2 %v5992_v57  ;;  %v8841_v57 = vld [vmem:[#allocation14_spill] sm:$0xff] }
 0x1aa   :  { %1394 = vmatpush.msrb.mxu1 %v8839_v10  ;;  %v1215_v34 = vadd.f32 %v1214_v15, %v1213_v60  ;;  %1437 = vmatpush.msrb.mxu3 %v5997_v45  ;;  %v8706_v15 = vunpack.c.l.bf16 %v6137_v20  ;;  %v8842_v45 = vld [vmem:[#allocation15_spill] sm:$0xff] }
 0x1ab   :  { %1280 = vmatmul.f32.vlgmr.msra.gmra.mxu0 %v1256_v21  ;;  %1303 = vmatmul.f32.vlgmr.msra.gmra.mxu1 %v1257_v46  ;;  %v8844_v46 = vld [vmem:[#allocation29_spill] sm:$0xff] }
 0x1ac   :  { %4428 = vrcp.f32 %v1215_v34  ;;  %1478 = vmatpush.msra.mxu0 %v5626_v62  ;;  %1501 = vmatpush.msra.mxu1 %v5631_v54  ;;  %v8843_v34 = vld [vmem:[#allocation10_spill] sm:$0xff]  ;;  %v1226_v16 = vmul.f32 %v4427_v8, %v8844_v46  ;;  %v1260_v60 = vsub.f32 %v6116_v30, %v8706_v15 }
 0x1ad   :  { %1415 = vmatpush.msrb.mxu2 %v6004_v36  ;;  %1438 = vmatpush.msrb.mxu3 %v6009_v33  ;;  %v1230_v21 = vmul.f32 %v1222_v25, %v8843_v34 }
 0x1ae   :  { %1479 = vmatpush.msra.mxu0 %v8841_v57  ;;  %1502 = vmatpush.msra.mxu1 %v8842_v45 }
 0x1af   :  { %1416 = vmatpush.msrb.mxu2 %v6018_v55  ;;  %1439 = vmatpush.msrb.mxu3 %v6023_v49  ;;  %v8845_v55 = vunpack.c.h.bf16 %v6137_v20  ;;  %v6169_v46 = vadd.f32 %v1230_v21, %v8843_v34  ;;  %v8854_v34 = vunpack.c.h.bf16 %v6097_v3 }
 0x1b0   :  { %1480 = vmatpush.msra.mxu0 %v5657_v44  ;;  %1503 = vmatpush.msra.mxu1 %v5662_v29 }
 0x1b1   :  { %1417 = vmatpush.msrb.mxu2 %v6032_v52  ;;  %1440 = vmatpush.msrb.mxu3 %v6037_v1  ;;  %v1261_v49 = vsub.f32 %v6119_v50, %v8845_v55  ;;  %8846 = vst [vmem:[#allocation9_spill] sm:$0xff] %v6169_v46  ;;  %v8847_v1 = vld [vmem:[#allocation12_spill] sm:$0xff]  ;;  %v8848_v55 = vld [vmem:[#allocation11_spill] sm:$0xff] }
 0x1b2   :  { %v4429_v33 = vpop.eup %4428  ;;  %1481 = vmatpush.msra.mxu0 %v5670_v32  ;;  %1504 = vmatpush.msra.mxu1 %v5675_v51  ;;  %v1234_v15 = vmul.f32 %v1226_v16, %v8848_v55 }
 0x1b3   :  { %v1223_v25 = vmul.f32 %v4429_v33, %v6071_v6  ;;  %v1227_v8 = vmul.f32 %v4429_v33, %v6081_v43  ;;  %1283 = vmatmul.f32.gmra.mxu0 %v1260_v60  ;;  %1306 = vmatmul.f32.gmra.mxu1 %v1261_v49  ;;  %v8849_v6 = vld [vmem:[#allocation13_spill] sm:$0xff] }
 0x1b4   :  { %1482 = vmatpush.msra.mxu0 %v5696_v56  ;;  %1505 = vmatpush.msra.mxu1 %v5701_v47  ;;  %v6186_v33 = vadd.f32 %v1234_v15, %v8848_v55  ;;  %v8855_v55 = vunpack.c.l.bf16 %v6137_v20 }
 0x1b5   :  { %v1231_v52 = vmul.f32 %v1223_v25, %v8847_v1  ;;  %v1235_v29 = vmul.f32 %v1227_v8, %v8849_v6 }
 0x1b6   :  { %1483 = vmatpush.msra.mxu0 %v5721_v48  ;;  %1506 = vmatpush.msra.mxu1 %v5726_v27  ;;  %8851 = vst [vmem:[#allocation25_spill] sm:$0xff] %v6186_v33 }
 0x1b7   :  { %v6177_v32 = vadd.f32 %v1231_v52, %v8847_v1  ;;  %v6189_v43 = vadd.f32 %v1235_v29, %v8849_v6  ;;  %v8853_v1 = vunpack.c.l.bf16 %v6097_v3  ;;  %v8856_v6 = vunpack.c.h.bf16 %v6137_v20  ;;  %v8861_v20 = vld [vmem:[#allocation20_spill] sm:$0xff] }
 0x1b8   :  { %1484 = vmatpush.msra.mxu0 %v5748_v9  ;;  %1507 = vmatpush.msra.mxu1 %v5753_v12 }
 0x1b9   :  { %8850 = vst [vmem:[#allocation38_spill] sm:$0xff] %v6177_v32  ;;  %v1245_v49 = vpack.c.bf16 %v6177_v32, %v6169_v46  ;;  %v6201_v29 = vpack.c.bf16 %v6189_v43, %v6186_v33 }
 0x1ba   :  { %8852 = vst [vmem:[#allocation14_spill] sm:$0xff] %v6189_v43  ;;  %1485 = vmatpush.msra.mxu0 %v5774_v39  ;;  %1508 = vmatpush.msra.mxu1 %v5779_v19 }
 0x1bb   :  { %v1250_v60 = vunpack.c.l.bf16 %v1245_v49  ;;  %v1251_v52 = vunpack.c.h.bf16 %v1245_v49  ;;  %1372 = vmatmul.f32.vlgmr.msrb.gmra.mxu0 %v8853_v1  ;;  %1395 = vmatmul.f32.vlgmr.msrb.gmra.mxu1 %v8854_v34  ;;  %v1254_v3 = vunpack.c.l.bf16 %v6201_v29  ;;  %v1255_v16 = vunpack.c.h.bf16 %v6201_v29  ;;  %v8857_v49 = vld [vmem:[#allocation26_spill] sm:$0xff]  ;;  %v8858_v1 = vld [vmem:[#allocation27_spill] sm:$0xff] }
 0x1bc   :  { %1486 = vmatpush.msra.mxu0 %v5800_v14  ;;  %1509 = vmatpush.msra.mxu1 %v5805_v42  ;;  %v1450_v34 = vmul.f32 %v6076_v18, %v6076_v18  ;;  %v8860_v29 = vld [vmem:[#allocation19_spill] sm:$0xff]  ;;  %v8866_v18 = vld [vmem:[#allocation36_spill] sm:$0xff] }
 0x1bd   :  { %v1258_v21 = vsub.f32 %v6169_v46, %v1250_v60  ;;  %v1259_v15 = vsub.f32 %v6177_v32, %v1251_v52  ;;  %v1262_v25 = vsub.f32 %v6186_v33, %v1254_v3  ;;  %v1263_v8 = vsub.f32 %v6189_v43, %v1255_v16 }
 0x1be   :  { %1487 = vmatpush.msra.mxu0 %v5824_v35  ;;  %1510 = vmatpush.msra.mxu1 %v5829_v40 }
 0x1bf   :  { %1326 = vmatmul.f32.vlgmr.msra.gmra.mxu2 %v1258_v21  ;;  %1349 = vmatmul.f32.vlgmr.msra.gmra.mxu3 %v1259_v15  ;;  %v1451_v21 = vmul.f32 %v6079_v26, %v6079_v26  ;;  %v8859_v15 = vld [vmem:[#allocation18_spill] sm:$0xff]  ;;  %v8865_v26 = vld [vmem:[#allocation35_spill] sm:$0xff] }
 0x1c0   :  { %1524 = vmatpush.msra.mxu2 %v5680_v38  ;;  %1547 = vmatpush.msra.mxu3 %v5687_v0 }
 0x1c1   :  { %1488 = vmatpush.msra.mxu0 %v5848_v7  ;;  %1511 = vmatpush.msra.mxu1 %v5853_v31 }
 0x1c2   :  { %1525 = vmatpush.msra.mxu2 %v5706_v41  ;;  %1548 = vmatpush.msra.mxu3 %v5713_v11 }
 0x1c3   :  { %1489 = vmatpush.msra.mxu0 %v5874_v23  ;;  %1512 = vmatpush.msra.mxu1 %v8817_v58 }
 0x1c4   :  { %1526 = vmatpush.msra.mxu2 %v5731_v5  ;;  %1549 = vmatpush.msra.mxu3 %v5739_v22 }
 0x1c5   :  { %1375 = vmatmul.f32.gmra.mxu0 %v8855_v55  ;;  %1398 = vmatmul.f32.gmra.mxu1 %v8856_v6  ;;  %v8863_v55 = vld [vmem:[#allocation23_spill] sm:$0xff]  ;;  %v8864_v6 = vld [vmem:[#allocation24_spill] sm:$0xff] }
 0x1c6   :  { %1527 = vmatpush.msra.mxu2 %v5758_v59  ;;  %1550 = vmatpush.msra.mxu3 %v5767_v13 }
 0x1c7   :  { %1329 = vmatmul.f32.gmra.mxu2 %v1262_v25  ;;  %1352 = vmatmul.f32.gmra.mxu3 %v1263_v8  ;;  %v8862_v25 = vld [vmem:[#allocation21_spill] sm:$0xff]  ;;  %v6243_v8 = vpack.c.bf16 %v1451_v21, %v1450_v34 }
 0x1c8   :  { %1528 = vmatpush.msra.mxu2 %v5784_v17  ;;  %1551 = vmatpush.msra.mxu3 %v5791_v61 }
 0x1c9   :  { %1490 = vmatpush.msra.mxu0 %v8857_v49  ;;  %1513 = vmatpush.msra.mxu1 %v8858_v1  ;;  %v8867_v1 = vld [vmem:[#allocation28_spill] sm:$0xff]  ;;  %v8869_v49 = vld [vmem:[#allocation33_spill] sm:$0xff] }
 0x1ca   :  { %1529 = vmatpush.msra.mxu2 %v5810_v28  ;;  %1552 = vmatpush.msra.mxu3 %v5817_v2 }
 0x1cb   :  { %1491 = vmatpush.msra.mxu0 %v8826_v24  ;;  %1514 = vmatpush.msra.mxu1 %v8827_v37  ;;  %v8868_v24 = vld [vmem:[#allocation30_spill] sm:$0xff]  ;;  %v1452_v37 = vmul.f32 %v6169_v46, %v6169_v46 }
 0x1cc   :  { %1530 = vmatpush.msra.mxu2 %v8859_v15  ;;  %1553 = vmatpush.msra.mxu3 %v8860_v29 }
 0x1cd   :  { %1492 = vmatpush.msra.mxu0 %v8865_v26  ;;  %1515 = vmatpush.msra.mxu1 %v8866_v18  ;;  %v1453_v26 = vmul.f32 %v6177_v32, %v6177_v32  ;;  %v8870_v18 = vld [vmem:[#allocation34_spill] sm:$0xff]  ;;  %v8871_v32 = vunpack.c.l.bf16 %v6243_v8 }
 0x1ce   :  { %1531 = vmatpush.msra.mxu2 %v8861_v20  ;;  %1554 = vmatpush.msra.mxu3 %v8862_v25 }
 0x1cf   :  { %1418 = vmatmul.f32.vlgmr.msrb.gmra.mxu2 %v1250_v60  ;;  %1441 = vmatmul.f32.vlgmr.msrb.gmra.mxu3 %v1251_v52  ;;  %v1454_v52 = vmul.f32 %v6116_v30, %v6116_v30  ;;  %v1455_v60 = vmul.f32 %v6119_v50, %v6119_v50  ;;  %v1470_v46 = vsub.f32 %v1450_v34, %v8871_v32  ;;  %v8875_v30 = vld [vmem:[#allocation43_spill] sm:$0xff]  ;;  %v8877_v34 = vld [vmem:[#allocation45_spill] sm:$0xff] }
 0x1d0   :  { %1532 = vmatpush.msra.mxu2 %v8863_v55  ;;  %1555 = vmatpush.msra.mxu3 %v8864_v6  ;;  %v8881_v50 = vld [vmem:[#allocation17_spill] sm:$0xff] }
 0x1d1   :  { %1493 = vmatpush.msra.mxu0 %v8838_v63  ;;  %1516 = vmatpush.msra.mxu1 %v8839_v10  ;;  %v8872_v10 = vunpack.c.h.bf16 %v6243_v8  ;;  %v6273_v63 = vpack.c.bf16 %v1453_v26, %v1452_v37 }
 0x1d2   :  { %1533 = vmatpush.msra.mxu2 %v8867_v1  ;;  %1556 = vmatpush.msra.mxu3 %v8868_v24 }
 0x1d3   :  { %1570 = vmatpush.msrb.mxu0 %v5626_v62  ;;  %1593 = vmatpush.msrb.mxu1 %v5631_v54  ;;  %v1471_v62 = vsub.f32 %v1451_v21, %v8872_v10  ;;  %v8873_v54 = vld [vmem:[#allocation41_spill] sm:$0xff]  ;;  %v1456_v21 = vmul.f32 %v6186_v33, %v6186_v33  ;;  %v8883_v33 = vunpack.c.h.bf16 %v6273_v63 }
 0x1d4   :  { %1534 = vmatpush.msra.mxu2 %v8869_v49  ;;  %1557 = vmatpush.msra.mxu3 %v8870_v18 }
 0x1d5   :  { %1494 = vmatmul.f32.vlgmr.msra.gmra.mxu0 %v1470_v46  ;;  %1517 = vmatmul.f32.vlgmr.msra.gmra.mxu1 %v1471_v62  ;;  %v8878_v46 = vld [vmem:[#allocation16_spill] sm:$0xff]  ;;  %v8879_v62 = vld [vmem:[#allocation46_spill] sm:$0xff] }
 0x1d6   :  { %1535 = vmatpush.msra.mxu2 %v8836_v4  ;;  %1558 = vmatpush.msra.mxu3 %v8837_v53  ;;  %v8874_v4 = vld [vmem:[#allocation42_spill] sm:$0xff] }
 0x1d7   :  { %1421 = vmatmul.f32.gmra.mxu2 %v1254_v3  ;;  %1444 = vmatmul.f32.gmra.mxu3 %v1255_v16  ;;  %v6279_v3 = vpack.c.bf16 %v1455_v60, %v1454_v52  ;;  %v8876_v16 = vld [vmem:[#allocation44_spill] sm:$0xff] }
 0x1d8   :  { %1536 = vmatpush.msra.mxu2 %v8873_v54  ;;  %1559 = vmatpush.msra.mxu3 %v8874_v4 }
 0x1d9   :  { %1571 = vmatpush.msrb.mxu0 %v8841_v57  ;;  %1594 = vmatpush.msrb.mxu1 %v8842_v45  ;;  %v1457_v57 = vmul.f32 %v6189_v43, %v6189_v43  ;;  %v8880_v45 = vld [vmem:[#allocation47_spill] sm:$0xff]  ;;  %v1466_v10 = vunpack.c.l.bf16 %v6279_v3  ;;  %v1467_v32 = vunpack.c.h.bf16 %v6279_v3 }
 0x1da   :  { %1537 = vmatpush.msra.mxu2 %v6004_v36  ;;  %1560 = vmatpush.msra.mxu3 %v8875_v30 }
 0x1db   :  { %1572 = vmatpush.msrb.mxu0 %v5657_v44  ;;  %1595 = vmatpush.msrb.mxu1 %v8878_v46  ;;  %v8882_v44 = vunpack.c.l.bf16 %v6273_v63  ;;  %v6305_v43 = vpack.c.bf16 %v1457_v57, %v1456_v21 }
 0x1dc   :  { %1538 = vmatpush.msra.mxu2 %v8876_v16  ;;  %1561 = vmatpush.msra.mxu3 %v8877_v34  ;;  %v1473_v34 = vsub.f32 %v1453_v26, %v8883_v33 }
 0x1dd   :  { %1573 = vmatpush.msrb.mxu0 %v8881_v50  ;;  %1596 = vmatpush.msrb.mxu1 %v5675_v51  ;;  %v1472_v46 = vsub.f32 %v1452_v37, %v8882_v44  ;;  %v1474_v51 = vsub.f32 %v1454_v52, %v1466_v10  ;;  %v1475_v37 = vsub.f32 %v1455_v60, %v1467_v32 }
 0x1de   :  { %1539 = vmatpush.msra.mxu2 %v8879_v62  ;;  %1562 = vmatpush.msra.mxu3 %v8880_v45 }
 0x1df   :  { %1540 = vmatmul.f32.vlgmr.msra.gmra.mxu2 %v1472_v46  ;;  %1563 = vmatmul.f32.vlgmr.msra.gmra.mxu3 %v1473_v34 }
 0x1e0   :  { %1616 = vmatpush.msrb.mxu2 %v5680_v38  ;;  %1639 = vmatpush.msrb.mxu3 %v5687_v0  ;;  %v1468_v38 = vunpack.c.l.bf16 %v6305_v43  ;;  %v1469_v0 = vunpack.c.h.bf16 %v6305_v43 }
 0x1e1   :  { %1574 = vmatpush.msrb.mxu0 %v5696_v56  ;;  %1597 = vmatpush.msrb.mxu1 %v5701_v47 }
 0x1e2   :  { %1617 = vmatpush.msrb.mxu2 %v5706_v41  ;;  %1640 = vmatpush.msrb.mxu3 %v5713_v11  ;;  %v1476_v56 = vsub.f32 %v1456_v21, %v1468_v38  ;;  %v1477_v47 = vsub.f32 %v1457_v57, %v1469_v0  ;;  %v8884_v41 = vld [vmem:[#allocation26_spill] sm:$0xff]  ;;  %v8885_v11 = vld [vmem:[#allocation27_spill] sm:$0xff] }
 0x1e3   :  { %1497 = vmatmul.f32.gmra.mxu0 %v1474_v51  ;;  %1520 = vmatmul.f32.gmra.mxu1 %v1475_v37 }
 0x1e4   :  { %1575 = vmatpush.msrb.mxu0 %v5721_v48  ;;  %1598 = vmatpush.msrb.mxu1 %v5726_v27  ;;  %v8886_v48 = vld [vmem:[#allocation31_spill] sm:$0xff]  ;;  %v8887_v27 = vld [vmem:[#allocation32_spill] sm:$0xff] }
 0x1e5   :  { %1618 = vmatpush.msrb.mxu2 %v5731_v5  ;;  %1641 = vmatpush.msrb.mxu3 %v5739_v22  ;;  %v8888_v5 = vld [vmem:[#allocation35_spill] sm:$0xff]  ;;  %v8889_v22 = vld [vmem:[#allocation36_spill] sm:$0xff] }
 0x1e6   :  { %1576 = vmatpush.msrb.mxu0 %v5748_v9  ;;  %1599 = vmatpush.msrb.mxu1 %v5753_v12  ;;  %v8890_v9 = vld [vmem:[#allocation37_spill] sm:$0xff]  ;;  %v8891_v12 = vld [vmem:[#allocation39_spill] sm:$0xff] }
 0x1e7   :  { %1619 = vmatpush.msrb.mxu2 %v5758_v59  ;;  %1642 = vmatpush.msrb.mxu3 %v5767_v13  ;;  %v8892_v59 = vld [vmem:[#allocation40_spill] sm:$0xff]  ;;  %v8893_v13 = vunpack.c.l.bf16 %v6243_v8 }
 0x1e8   :  { %1577 = vmatpush.msrb.mxu0 %v5774_v39  ;;  %1600 = vmatpush.msrb.mxu1 %v5779_v19  ;;  %v8894_v39 = vunpack.c.h.bf16 %v6243_v8  ;;  %v8895_v19 = vld [vmem:[#allocation45_spill] sm:$0xff] }
 0x1e9   :  { %1620 = vmatpush.msrb.mxu2 %v5784_v17  ;;  %1643 = vmatpush.msrb.mxu3 %v5791_v61  ;;  %v8896_v17 = vmov %v8882_v44  ;;  %v8897_v61 = vmov %v8883_v33 }
 0x1ea   :  { %1543 = vmatmul.f32.gmra.mxu2 %v1476_v56  ;;  %1566 = vmatmul.f32.gmra.mxu3 %v1477_v47  ;;  %v6382_v56 = vld [vmem:[%s8627_s3 + $0x20] sm:$0xff]  ;;  %v6387_v47 = vld [vmem:[%s8627_s3 + $0x28] sm:$0xff] }
 0x1eb   :  { %1578 = vmatpush.msrb.mxu0 %v5800_v14  ;;  %1601 = vmatpush.msrb.mxu1 %v5805_v42 }
 0x1ec   :  { %1621 = vmatpush.msrb.mxu2 %v5810_v28  ;;  %1644 = vmatpush.msrb.mxu3 %v5817_v2 }
 0x1ed   :  { %1579 = vmatpush.msrb.mxu0 %v5824_v35  ;;  %1602 = vmatpush.msrb.mxu1 %v5829_v40 }
 0x1ee   :  { %1622 = vmatpush.msrb.mxu2 %v8859_v15  ;;  %1645 = vmatpush.msrb.mxu3 %v8860_v29 }
 0x1ef   :  { %1580 = vmatpush.msrb.mxu0 %v5848_v7  ;;  %1603 = vmatpush.msrb.mxu1 %v5853_v31 }
 0x1f0   :  { %1623 = vmatpush.msrb.mxu2 %v8861_v20  ;;  %1646 = vmatpush.msrb.mxu3 %v8862_v25 }
 0x1f1   :  { %1581 = vmatpush.msrb.mxu0 %v5874_v23  ;;  %1604 = vmatpush.msrb.mxu1 %v8817_v58 }
 0x1f2   :  { %1624 = vmatpush.msrb.mxu2 %v8863_v55  ;;  %1647 = vmatpush.msrb.mxu3 %v8864_v6 }
 0x1f3   :  { %1582 = vmatpush.msrb.mxu0 %v8884_v41  ;;  %1605 = vmatpush.msrb.mxu1 %v8885_v11  ;;  %v6392_v41 = vld [vmem:[%s8627_s3 + $0x30] sm:$0xff] }
 0x1f4   :  { %1625 = vmatpush.msrb.mxu2 %v8867_v1  ;;  %1648 = vmatpush.msrb.mxu3 %v8868_v24 }
 0x1f5   :  { %1583 = vmatpush.msrb.mxu0 %v8886_v48  ;;  %1606 = vmatpush.msrb.mxu1 %v8887_v27 }
 0x1f6   :  { %1626 = vmatpush.msrb.mxu2 %v8869_v49  ;;  %1649 = vmatpush.msrb.mxu3 %v8870_v18 }
 0x1f7   :  { %1584 = vmatpush.msrb.mxu0 %v8888_v5  ;;  %1607 = vmatpush.msrb.mxu1 %v8889_v22  ;;  %v6401_v22 = vld [vmem:[%s8627_s3 + $0x38] sm:$0xff] }
 0x1f8   :  { %1627 = vmatpush.msrb.mxu2 %v8890_v9  ;;  %1650 = vmatpush.msrb.mxu3 %v8837_v53  ;;  %v6406_v9 = vld [vmem:[%s8627_s3] sm:$0xff] }
 0x1f9   :  { %1585 = vmatpush.msrb.mxu0 %v8891_v12  ;;  %1608 = vmatpush.msrb.mxu1 %v8892_v59  ;;  %v6411_v12 = vld [vmem:[%s8627_s3 + $0x8] sm:$0xff]  ;;  %v6418_v59 = vld [vmem:[%s8627_s3 + $0x10] sm:$0xff] }
 0x1fa   :  { %1628 = vmatpush.msrb.mxu2 %v8873_v54  ;;  %1651 = vmatpush.msrb.mxu3 %v8874_v4 }
 0x1fb   :  { %1586 = vmatmul.f32.vlgmr.msrb.gmra.mxu0 %v8893_v13  ;;  %1609 = vmatmul.f32.vlgmr.msrb.gmra.mxu1 %v8894_v39  ;;  %v6423_v13 = vld [vmem:[%s8627_s3 + $0x18] sm:$0xff] }
 0x1fc   :  { %1629 = vmatpush.msrb.mxu2 %v6004_v36  ;;  %1652 = vmatpush.msrb.mxu3 %v8875_v30 }
 0x1fd   :  { %1716 = vmatpush.msra.mxu0 %v6382_v56  ;;  %1739 = vmatpush.msra.mxu1 %v6387_v47 }
 0x1fe   :  { %1630 = vmatpush.msrb.mxu2 %v8876_v16  ;;  %1653 = vmatpush.msrb.mxu3 %v8895_v19 }
 0x1ff   :  { %1717 = vmatpush.msra.mxu0 %v6406_v9  ;;  %1740 = vmatpush.msra.mxu1 %v6411_v12 }
 0x200   :  { %1631 = vmatpush.msrb.mxu2 %v8879_v62  ;;  %1654 = vmatpush.msrb.mxu3 %v8880_v45 }
 0x201   :  { %1632 = vmatmul.f32.vlgmr.msrb.gmra.mxu2 %v8896_v17  ;;  %1655 = vmatmul.f32.vlgmr.msrb.gmra.mxu3 %v8897_v61 }
 0x202   :  { %1762 = vmatpush.msra.mxu2 %v6392_v41  ;;  %1785 = vmatpush.msra.mxu3 %v6401_v22 }
 0x203   :  { %1589 = vmatmul.f32.gmra.mxu0 %v1466_v10  ;;  %1612 = vmatmul.f32.gmra.mxu1 %v1467_v32 }
 0x204   :  { %1763 = vmatpush.msra.mxu2 %v6418_v59  ;;  %1786 = vmatpush.msra.mxu3 %v6423_v13 }
 0x205   :  { %1814 = vmatpush.msrb.mxu0 %v6382_v56  ;;  %1837 = vmatpush.msrb.mxu1 %v6387_v47 }
 0x206   :  { %1860 = vmatpush.msrb.mxu2 %v6392_v41  ;;  %1883 = vmatpush.msrb.mxu3 %v6401_v22 }
 0x207   :  { %1815 = vmatpush.msrb.mxu0 %v6406_v9  ;;  %1838 = vmatpush.msrb.mxu1 %v6411_v12 }
 0x208   :  { %1861 = vmatpush.msrb.mxu2 %v6418_v59  ;;  %1884 = vmatpush.msrb.mxu3 %v6423_v13 }
 0x209   :  { %1635 = vmatmul.f32.gmra.mxu2 %v1468_v38  ;;  %1658 = vmatmul.f32.gmra.mxu3 %v1469_v0 }
 0x228   :  { %v1281_v14 = vpop.f32.mrf.mxu0  ;;  %v1304_v42 = vpop.f32.mrf.mxu1 }
 0x229   :  { %v1305_v4 = vadd.f32 %v1304_v42, %v1281_v14 }
 0x230   :  { %v1284_v28 = vpop.f32.mrf.mxu0  ;;  %v1307_v40 = vpop.f32.mrf.mxu1 }
 0x231   :  { %v1308_v29 = vadd.f32 %v1307_v40, %v1284_v28 }
 0x238   :  { %v1373_v7 = vpop.f32.mrf.mxu0  ;;  %v1396_v36 = vpop.f32.mrf.mxu1 }
 0x242   :  { %v1327_v2 = vpop.f32.mrf.mxu2  ;;  %v1350_v35 = vpop.f32.mrf.mxu3 }
 0x243   :  { %v1376_v63 = vpop.f32.mrf.mxu0  ;;  %v1399_v58 = vpop.f32.mrf.mxu1  ;;  %v1328_v33 = vadd.f32 %v1327_v2, %v1305_v4 }
 0x245   :  { %v1351_v15 = vadd.f32 %v1350_v35, %v1328_v33 }
 0x247   :  { %v1374_v20 = vadd.f32 %v1373_v7, %v1351_v15 }
 0x249   :  { %v1397_v52 = vadd.f32 %v1396_v36, %v1374_v20 }
 0x24a   :  { %v1330_v31 = vpop.f32.mrf.mxu2  ;;  %v1353_v23 = vpop.f32.mrf.mxu3 }
 0x24b   :  { %v1331_v25 = vadd.f32 %v1330_v31, %v1308_v29 }
 0x24d   :  { %v1354_v54 = vadd.f32 %v1353_v23, %v1331_v25 }
 0x24f   :  { %v1377_v34 = vadd.f32 %v1376_v63, %v1354_v54 }
 0x251   :  { %v1400_v46 = vadd.f32 %v1399_v58, %v1377_v34 }
 0x252   :  { %v1419_v18 = vpop.f32.mrf.mxu2  ;;  %v1442_v26 = vpop.f32.mrf.mxu3 }
 0x253   :  { %v1495_v50 = vpop.f32.mrf.mxu0  ;;  %v1518_v53 = vpop.f32.mrf.mxu1  ;;  %v1420_v10 = vadd.f32 %v1419_v18, %v1397_v52 }
 0x254   :  { %v1519_v8 = vadd.f32 %v1518_v53, %v1495_v50 }
 0x255   :  { %v1443_v45 = vadd.f32 %v1442_v26, %v1420_v10 }
 0x257   :  { %v6394_v11 = vmul.f32 0.03125, %v1443_v45 }
 0x259   :  { %v1664_v17 = vmul.f32 %v6394_v11, %v6394_v11 }
 0x25a   :  { %v1422_v24 = vpop.f32.mrf.mxu2  ;;  %v1445_v30 = vpop.f32.mrf.mxu3 }
 0x25b   :  { %v1423_v48 = vadd.f32 %v1422_v24, %v1400_v46 }
 0x25d   :  { %v1446_v61 = vadd.f32 %v1445_v30, %v1423_v48 }
 0x25f   :  { %v6439_v40 = vmul.f32 0.03125, %v1446_v61 }
 0x260   :  { %v1498_v43 = vpop.f32.mrf.mxu0  ;;  %v1521_v55 = vpop.f32.mrf.mxu1 }
 0x261   :  { %v1522_v21 = vadd.f32 %v1521_v55, %v1498_v43  ;;  %v1665_v63 = vmul.f32 %v6439_v40, %v6439_v40 }
 0x262   :  { %v1541_v49 = vpop.f32.mrf.mxu2  ;;  %v1564_v1 = vpop.f32.mrf.mxu3 }
 0x263   :  { %v1542_v6 = vadd.f32 %v1541_v49, %v1519_v8 }
 0x265   :  { %v1565_v16 = vadd.f32 %v1564_v1, %v1542_v6 }
 0x26d   :  { %v1544_v3 = vpop.f32.mrf.mxu2  ;;  %v1567_v32 = vpop.f32.mrf.mxu3 }
 0x26e   :  { %v1545_v44 = vadd.f32 %v1544_v3, %v1522_v21 }
 0x270   :  { %v1568_v27 = vadd.f32 %v1567_v32, %v1545_v44 }
 0x278   :  { %v1587_v60 = vpop.f32.mrf.mxu0  ;;  %v1610_v62 = vpop.f32.mrf.mxu1 }
 0x279   :  { %v1588_v57 = vadd.f32 %v1587_v60, %v1565_v16 }
 0x27b   :  { %v1611_v51 = vadd.f32 %v1610_v62, %v1588_v57 }
 0x280   :  { %v1590_v37 = vpop.f32.mrf.mxu0  ;;  %v1613_v42 = vpop.f32.mrf.mxu1 }
 0x281   :  { %v1591_v39 = vadd.f32 %v1590_v37, %v1568_v27 }
 0x283   :  { %v1614_v28 = vadd.f32 %v1613_v42, %v1591_v39 }
 0x284   :  { %v1633_v38 = vpop.f32.mrf.mxu2  ;;  %v1656_v0 = vpop.f32.mrf.mxu3 }
 0x285   :  { %v1634_v5 = vadd.f32 %v1633_v38, %v1611_v51 }
 0x287   :  { %v1657_v19 = vadd.f32 %v1656_v0, %v1634_v5 }
 0x289   :  { %v1662_v14 = vmul.f32 0.03125, %v1657_v19 }
 0x28b   :  { %v1666_v2 = vsub.f32 %v1662_v14, %v1664_v17 }
 0x28c   :  { %v1636_v35 = vpop.f32.mrf.mxu2  ;;  %v1659_v23 = vpop.f32.mrf.mxu3 }
 0x28d   :  { %v1668_v7 = vadd.f32 1e-05, %v1666_v2  ;;  %v1637_v31 = vadd.f32 %v1636_v35, %v1614_v28 }
 0x28f   :  { %4430 = vrsqrt.f32 %v1668_v7  ;;  %v1660_v36 = vadd.f32 %v1659_v23, %v1637_v31  ;;  %vm1676_vm6 = vweird.f32 %v1668_v7  ;;  %v8898_v31 = vld [vmem:[#allocation48_spill] sm:$0xff] }
 0x291   :  { %v1663_v18 = vmul.f32 0.03125, %v1660_v36  ;;  %v8899_v36 = vld [vmem:[#allocation49_spill] sm:$0xff] }
 0x293   :  { %v1667_v26 = vsub.f32 %v1663_v18, %v1665_v63 }
 0x295   :  { %v4431_v58 = vpop.eup %4430  ;;  %v1669_v50 = vadd.f32 1e-05, %v1667_v26 }
 0x296   :  { %v1671_v24 = vmul.f32 %v4431_v58, %v1668_v7  ;;  %vm1677_vm5 = vweird.f32 %v4431_v58 }
 0x297   :  { %4432 = vrsqrt.f32 %v1669_v50  ;;  %vm1678_vm7 = vmor %vm1676_vm6, %vm1677_vm5  ;;  %vm1686_vm9 = vweird.f32 %v1669_v50 }
 0x298   :  { %v1672_v30 = vmul.f32 %v4431_v58, %v1671_v24 }
 0x29a   :  { %v1673_v4 = vmul.f32 0.5, %v1672_v30 }
 0x29c   :  { %v1674_v53 = vsub.f32 1.5, %v1673_v4 }
 0x29d   :  { %v4433_v33 = vpop.eup %4432 }
 0x29e   :  { %v1675_v43 = vmul.f32 %v4431_v58, %v1674_v53  ;;  %v1681_v49 = vmul.f32 %v4433_v33, %v1669_v50  ;;  %vm1687_vm8 = vweird.f32 %v4433_v33 }
 0x29f   :  { %vm1688_vm10 = vmor %vm1686_vm9, %vm1687_vm8 }
 0x2a0   :  { %v1679_v1 = vsel %vm1678_vm7, %v4431_v58, %v1675_v43  ;;  %v1682_v15 = vmul.f32 %v4433_v33, %v1681_v49 }
 0x2a1   :  { %v1690_v29 = vpack.c.bf16 %v1679_v1, %v1679_v1  ;;  %v1892_v32 = vmul.f32 %v1679_v1, %v6394_v11 }
 0x2a2   :  { %v1683_v20 = vmul.f32 0.5, %v1682_v15 }
 0x2a3   :  { %v1692_v25 = vunpack.c.l.bf16 %v1690_v29  ;;  %v1894_v10 = vpack.c.bf16 %v1892_v32, %v1892_v32 }
 0x2a4   :  { %v1684_v8 = vsub.f32 1.5, %v1683_v20 }
 0x2a5   :  { %v1694_v55 = vsub.f32 %v1679_v1, %v1692_v25  ;;  %v1896_v16 = vunpack.c.l.bf16 %v1894_v10 }
 0x2a6   :  { %v1685_v6 = vmul.f32 %v4433_v33, %v1684_v8 }
 0x2a7   :  { %4272 = vmatmul.msk.f32.vlgmr.msra.gmra.mxu0 %vm129_vm0, %v1694_v55  ;;  %4274 = vmatmul.msk.f32.vlgmr.msra.gmra.mxu1 %vm129_vm0, %v1694_v55  ;;  %v1898_v21 = vsub.f32 %v1892_v32, %v1896_v16 }
 0x2a8   :  { %4276 = vmatmul.msk.f32.vlgmr.msra.gmra.mxu2 %vm129_vm0, %v1694_v55  ;;  %4278 = vmatmul.msk.f32.vlgmr.msra.gmra.mxu3 %vm129_vm0, %v1694_v55  ;;  %v1689_v60 = vsel %vm1688_vm10, %v4433_v33, %v1685_v6  ;;  %v2130_v33 = vld [vmem:[%s8629_s5] ss:$2 sm:$0xf]  ;;  %v8900_v55 = vld [vmem:[#allocation9_spill] sm:$0xff] }
 0x2a9   :  { %v1691_v52 = vpack.c.bf16 %v1689_v60, %v1689_v60  ;;  %1920 = vmatpush.msra.mxu0 %v6382_v56  ;;  %1943 = vmatpush.msra.mxu1 %v6387_v47  ;;  %v1893_v34 = vmul.f32 %v1689_v60, %v6439_v40  ;;  %v6496_v40 = vld [vmem:[%s8628_s4] ss:$2 sm:$0xf]  ;;  %v2132_v15 = vperm.slane %v2130_v33, 0  ;;  %v2133_v20 = vperm.slane %v2130_v33, 1 }
 0x2aa   :  { %1966 = vmatpush.msra.mxu2 %v6392_v41  ;;  %1989 = vmatpush.msra.mxu3 %v6401_v22  ;;  %v2114_v50 = vperm.slane %v6496_v40, 0  ;;  %v2115_v30 = vperm.slane %v6496_v40, 1 }
 0x2ab   :  { %v1693_v54 = vunpack.c.l.bf16 %v1691_v52  ;;  %1921 = vmatpush.msra.mxu0 %v6406_v9  ;;  %1944 = vmatpush.msra.mxu1 %v6411_v12  ;;  %v1895_v57 = vpack.c.bf16 %v1893_v34, %v1893_v34 }
 0x2ac   :  { %1967 = vmatpush.msra.mxu2 %v6418_v59  ;;  %1990 = vmatpush.msra.mxu3 %v6423_v13 }
 0x2ad   :  { %v1695_v3 = vsub.f32 %v1689_v60, %v1693_v54  ;;  %v1897_v62 = vunpack.c.l.bf16 %v1895_v57  ;;  %v8901_v60 = vld [vmem:[#allocation38_spill] sm:$0xff] }
 0x2af   :  { %4273 = vmatmul.msk.f32.gmra.mxu0 %vm129_vm0, %v1695_v3  ;;  %4275 = vmatmul.msk.f32.gmra.mxu1 %vm129_vm0, %v1695_v3  ;;  %v1899_v45 = vsub.f32 %v1893_v34, %v1897_v62 }
 0x2b0   :  { %4277 = vmatmul.msk.f32.gmra.mxu2 %vm129_vm0, %v1695_v3  ;;  %4279 = vmatmul.msk.f32.gmra.mxu3 %vm129_vm0, %v1695_v3 }
 0x2b7   :  { %4280 = vmatmul.msk.f32.vlgmr.msrb.gmra.mxu0 %vm129_vm0, %v1692_v25  ;;  %4282 = vmatmul.msk.f32.vlgmr.msrb.gmra.mxu1 %vm129_vm0, %v1692_v25 }
 0x2b8   :  { %4284 = vmatmul.msk.f32.vlgmr.msrb.gmra.mxu2 %vm129_vm0, %v1692_v25  ;;  %4286 = vmatmul.msk.f32.vlgmr.msrb.gmra.mxu3 %vm129_vm0, %v1692_v25 }
 0x2b9   :  { %2018 = vmatpush.msrb.mxu0 %v6382_v56  ;;  %2041 = vmatpush.msrb.mxu1 %v6387_v47 }
 0x2ba   :  { %2064 = vmatpush.msrb.mxu2 %v6392_v41  ;;  %2087 = vmatpush.msrb.mxu3 %v6401_v22 }
 0x2bb   :  { %2019 = vmatpush.msrb.mxu0 %v6406_v9  ;;  %2042 = vmatpush.msrb.mxu1 %v6411_v12 }
 0x2bc   :  { %2065 = vmatpush.msrb.mxu2 %v6418_v59  ;;  %2088 = vmatpush.msrb.mxu3 %v6423_v13 }
 0x2bf   :  { %4281 = vmatmul.msk.f32.gmra.mxu0 %vm129_vm0, %v1693_v54  ;;  %4283 = vmatmul.msk.f32.gmra.mxu1 %vm129_vm0, %v1693_v54 }
 0x2c0   :  { %4285 = vmatmul.msk.f32.gmra.mxu2 %vm129_vm0, %v1693_v54  ;;  %4287 = vmatmul.msk.f32.gmra.mxu3 %vm129_vm0, %v1693_v54 }
 0x2c7   :  { %4288 = vmatmul.msk.f32.vlgmr.msra.gmra.mxu0 %vm129_vm0, %v1898_v21  ;;  %4290 = vmatmul.msk.f32.vlgmr.msra.gmra.mxu1 %vm129_vm0, %v1898_v21 }
 0x2c8   :  { %4292 = vmatmul.msk.f32.vlgmr.msra.gmra.mxu2 %vm129_vm0, %v1898_v21  ;;  %4294 = vmatmul.msk.f32.vlgmr.msra.gmra.mxu3 %vm129_vm0, %v1898_v21  ;;  %v8903_v21 = vld [vmem:[#allocation8_spill] sm:$0xff] }
 0x2cf   :  { %4289 = vmatmul.msk.f32.gmra.mxu0 %vm129_vm0, %v1899_v45  ;;  %4291 = vmatmul.msk.f32.gmra.mxu1 %vm129_vm0, %v1899_v45 }
 0x2d0   :  { %4293 = vmatmul.msk.f32.gmra.mxu2 %vm129_vm0, %v1899_v45  ;;  %4295 = vmatmul.msk.f32.gmra.mxu3 %vm129_vm0, %v1899_v45 }
 0x2d7   :  { %4296 = vmatmul.msk.f32.vlgmr.msrb.gmra.mxu0 %vm129_vm0, %v1896_v16  ;;  %4298 = vmatmul.msk.f32.vlgmr.msrb.gmra.mxu1 %vm129_vm0, %v1896_v16 }
 0x2d8   :  { %4300 = vmatmul.msk.f32.vlgmr.msrb.gmra.mxu2 %vm129_vm0, %v1896_v16  ;;  %4302 = vmatmul.msk.f32.vlgmr.msrb.gmra.mxu3 %vm129_vm0, %v1896_v16  ;;  %v8902_v16 = vld [vmem:[#allocation22_spill] sm:$0xff] }
 0x2df   :  { %4297 = vmatmul.msk.f32.gmra.mxu0 %vm129_vm0, %v1897_v62  ;;  %4299 = vmatmul.msk.f32.gmra.mxu1 %vm129_vm0, %v1897_v62 }
 0x2e0   :  { %4301 = vmatmul.msk.f32.gmra.mxu2 %vm129_vm0, %v1897_v62  ;;  %4303 = vmatmul.msk.f32.gmra.mxu3 %vm129_vm0, %v1897_v62 }
 0x324   :  { %v1719_v44 = vpop.f32.mrf.mxu0  ;;  %v1742_v46 = vpop.f32.mrf.mxu1 }
 0x32b   :  { %v1765_v51 = vpop.f32.mrf.mxu2  ;;  %v1788_v37 = vpop.f32.mrf.mxu3 }
 0x32c   :  { %v1722_v38 = vpop.f32.mrf.mxu0  ;;  %v1745_v0 = vpop.f32.mrf.mxu1 }
 0x333   :  { %v1768_v56 = vpop.f32.mrf.mxu2  ;;  %v1791_v47 = vpop.f32.mrf.mxu3 }
 0x334   :  { %v1817_v41 = vpop.f32.mrf.mxu0  ;;  %v1840_v11 = vpop.f32.mrf.mxu1 }
 0x335   :  { %v1818_v14 = vadd.f32 %v1817_v41, %v1719_v44  ;;  %v1841_v42 = vadd.f32 %v1840_v11, %v1742_v46  ;;  %v2116_v46 = vperm.slane %v6496_v40, 2 }
 0x337   :  { %v2096_v23 = vmul.f32 %v1818_v14, %v8898_v31  ;;  %v2097_v63 = vmul.f32 %v1841_v42, %v8899_v36  ;;  %v8909_v31 = vld [vmem:[#allocation14_spill] sm:$0xff] }
 0x33b   :  { %v1863_v48 = vpop.f32.mrf.mxu2  ;;  %v1886_v27 = vpop.f32.mrf.mxu3 }
 0x33c   :  { %v1820_v5 = vpop.f32.mrf.mxu0  ;;  %v1843_v22 = vpop.f32.mrf.mxu1  ;;  %v1864_v4 = vadd.f32 %v1863_v48, %v1765_v51  ;;  %v1887_v53 = vadd.f32 %v1886_v27, %v1788_v37  ;;  %v2117_v37 = vperm.slane %v6496_v40, 3  ;;  %v8908_v40 = vld [vmem:[#allocation25_spill] sm:$0xff] }
 0x33d   :  { %v1821_v43 = vadd.f32 %v1820_v5, %v1722_v38  ;;  %v1844_v49 = vadd.f32 %v1843_v22, %v1745_v0 }
 0x33e   :  { %v2098_v6 = vmul.f32 %v1864_v4, %v8900_v55  ;;  %v2099_v52 = vmul.f32 %v1887_v53, %v8901_v60 }
 0x33f   :  { %v2100_v34 = vmul.f32 %v1821_v43, %v8902_v16  ;;  %v2101_v57 = vmul.f32 %v1844_v49, %v8903_v21  ;;  %v6582_v16 = vld [vmem:[%s8626_s2 + $0x70] sm:$0xff]  ;;  %v6594_v21 = vld [vmem:[%s8626_s2 + $0x178] sm:$0xff] }
 0x343   :  { %v1866_v9 = vpop.f32.mrf.mxu2  ;;  %v1889_v12 = vpop.f32.mrf.mxu3 }
 0x344   :  { %v1923_v59 = vpop.f32.mrf.mxu0  ;;  %v1946_v13 = vpop.f32.mrf.mxu1  ;;  %v1867_v48 = vadd.f32 %v1866_v9, %v1768_v56  ;;  %v1890_v27 = vadd.f32 %v1889_v12, %v1791_v47 }
 0x346   :  { %v2103_v56 = vmul.f32 %v1890_v27, %v8909_v31  ;;  %v6668_v27 = vld [vmem:[%s8626_s2 + $0x1e8] sm:$0xff]  ;;  %v6748_v31 = vld [vmem:[%s8626_s2 + $0x1d8] sm:$0xff] }
 0x34b   :  { %v1969_v39 = vpop.f32.mrf.mxu2  ;;  %v1992_v19 = vpop.f32.mrf.mxu3 }
 0x34c   :  { %v1926_v17 = vpop.f32.mrf.mxu0  ;;  %v1949_v61 = vpop.f32.mrf.mxu1 }
 0x353   :  { %v1972_v28 = vpop.f32.mrf.mxu2  ;;  %v1995_v2 = vpop.f32.mrf.mxu3 }
 0x354   :  { %v2021_v35 = vpop.f32.mrf.mxu0  ;;  %v2044_v7 = vpop.f32.mrf.mxu1 }
 0x355   :  { %v2022_v18 = vadd.f32 %v2021_v35, %v1923_v59  ;;  %v2045_v26 = vadd.f32 %v2044_v7, %v1946_v13  ;;  %v2134_v13 = vperm.slane %v2130_v33, 2  ;;  %v2102_v7 = vmul.f32 %v1867_v48, %v8908_v40  ;;  %v6662_v48 = vld [vmem:[%s8626_s2 + $0x168] sm:$0xff]  ;;  %v6736_v40 = vld [vmem:[%s8626_s2 + $0xb8] sm:$0xff] }
 0x357   :  { %v2104_v58 = vsub.f32 %v2096_v23, %v2022_v18  ;;  %v2105_v24 = vsub.f32 %v2097_v63, %v2045_v26 }
 0x359   :  { %v2122_v1 = vmul.f32 %v2114_v50, %v2104_v58  ;;  %v2123_v29 = vmul.f32 %v2115_v30, %v2105_v24 }
 0x35b   :  { %v2067_v25 = vpop.f32.mrf.mxu2  ;;  %v2090_v8 = vpop.f32.mrf.mxu3  ;;  %v6511_v38 = vadd.f32 %v2132_v15, %v2122_v1  ;;  %v6513_v0 = vadd.f32 %v2133_v20, %v2123_v29  ;;  %v6544_v29 = vld [vmem:[%s8625_s1] sm:$0xff] }
 0x35c   :  { %v2068_v54 = vadd.f32 %v2067_v25, %v1969_v39  ;;  %v2091_v3 = vadd.f32 %v2090_v8, %v1992_v19  ;;  %v2024_v32 = vpop.f32.mrf.mxu0  ;;  %v2047_v10 = vpop.f32.mrf.mxu1  ;;  %v2135_v19 = vperm.slane %v2130_v33, 3 }
 0x35d   :  { %v2025_v62 = vadd.f32 %v2024_v32, %v1926_v17  ;;  %v2048_v45 = vadd.f32 %v2047_v10, %v1949_v61  ;;  %8904 = vst [vmem:[#allocation15_spill] sm:$0xff] %v6511_v38  ;;  %v2148_v35 = vpack.c.bf16 %v6513_v0, %v6511_v38  ;;  %v6563_v32 = vld [vmem:[%s8626_s2 + $0xf8] sm:$0xff]  ;;  %v6573_v10 = vld [vmem:[%s8625_s1 + $0x8] sm:$0xff] }
 0x35e   :  { %v2106_v44 = vsub.f32 %v2098_v6, %v2068_v54  ;;  %v2107_v51 = vsub.f32 %v2099_v52, %v2091_v3  ;;  %8905 = vst [vmem:[#allocation10_spill] sm:$0xff] %v6513_v0  ;;  %v6557_v3 = vld [vmem:[%s8626_s2 + $0x78] sm:$0xff] }
 0x35f   :  { %v2108_v41 = vsub.f32 %v2100_v34, %v2025_v62  ;;  %v2109_v11 = vsub.f32 %v2101_v57, %v2048_v45  ;;  %v2153_v24 = vunpack.c.h.bf16 %v2148_v35  ;;  %v6588_v34 = vld [vmem:[%s8626_s2 + $0xf0] sm:$0xff]  ;;  %v6600_v57 = vld [vmem:[%s8626_s2 + $0x1f8] sm:$0xff]  ;;  %v6606_v62 = vld [vmem:[%s8626_s2 + $0x68] sm:$0xff] }
 0x360   :  { %v2124_v59 = vmul.f32 %v2116_v46, %v2106_v44  ;;  %v2125_v39 = vmul.f32 %v2117_v37, %v2107_v51  ;;  %v6612_v45 = vld [vmem:[%s8626_s2 + $0xe8] sm:$0xff]  ;;  %v6618_v44 = vld [vmem:[%s8626_s2 + $0x170] sm:$0xff]  ;;  %v6634_v51 = vld [vmem:[%s8626_s2 + $0x60] sm:$0xff] }
 0x361   :  { %v2126_v5 = vmul.f32 %v2114_v50, %v2108_v41  ;;  %v2127_v22 = vmul.f32 %v2115_v30, %v2109_v11  ;;  %v2152_v50 = vunpack.c.l.bf16 %v2148_v35  ;;  %v2161_v1 = vsub.f32 %v6513_v0, %v2153_v24  ;;  %v6650_v41 = vld [vmem:[%s8626_s2 + $0x58] sm:$0xff] }
 0x362   :  { %v6525_v23 = vadd.f32 %v2134_v13, %v2124_v59  ;;  %v6527_v36 = vadd.f32 %v2135_v19, %v2125_v39  ;;  %v6656_v11 = vld [vmem:[%s8626_s2 + $0xd8] sm:$0xff]  ;;  %v6686_v59 = vld [vmem:[%s8626_s2 + $0x160] sm:$0xff]  ;;  %v6698_v39 = vld [vmem:[%s8626_s2 + $0x48] sm:$0xff] }
 0x363   :  { %v6515_v17 = vadd.f32 %v2132_v15, %v2126_v5  ;;  %v6517_v61 = vadd.f32 %v2133_v20, %v2127_v22  ;;  %v2070_v14 = vpop.f32.mrf.mxu2  ;;  %v2093_v42 = vpop.f32.mrf.mxu3  ;;  %v2160_v49 = vsub.f32 %v6511_v38, %v2152_v50  ;;  %v6674_v5 = vld [vmem:[%s8626_s2 + $0x50] sm:$0xff]  ;;  %v6730_v35 = vld [vmem:[%s8626_s2 + $0x38] sm:$0xff] }
 0x364   :  { %v2071_v47 = vadd.f32 %v2070_v14, %v1972_v28  ;;  %v2094_v9 = vadd.f32 %v2093_v42, %v1995_v2  ;;  %v2149_v43 = vpack.c.bf16 %v6527_v36, %v6525_v23  ;;  %v6680_v22 = vld [vmem:[%s8626_s2 + $0xd0] sm:$0xff]  ;;  %v6714_v14 = vld [vmem:[%s8626_s2 + $0x40] sm:$0xff] }
 0x365   :  { %8906 = vst [vmem:[#allocation29_spill] sm:$0xff] %v6515_v17  ;;  %v2150_v12 = vpack.c.bf16 %v6517_v61, %v6515_v17  ;;  %v6720_v42 = vld [vmem:[%s8626_s2 + $0xc0] sm:$0xff] }
 0x366   :  { %8907 = vst [vmem:[#allocation12_spill] sm:$0xff] %v6517_v61  ;;  %v2110_v63 = vsub.f32 %v2102_v7, %v2071_v47  ;;  %v2111_v18 = vsub.f32 %v2103_v56, %v2094_v9  ;;  %v2154_v8 = vunpack.c.l.bf16 %v2149_v43  ;;  %v2155_v55 = vunpack.c.h.bf16 %v2149_v43  ;;  %v6742_v7 = vld [vmem:[%s8626_s2 + $0x158] sm:$0xff]  ;;  %v6754_v56 = vld [vmem:[%s8626_s2 + $0x30] sm:$0xff] }
 0x367   :  { %v2156_v26 = vunpack.c.l.bf16 %v2150_v12  ;;  %v2157_v58 = vunpack.c.h.bf16 %v2150_v12  ;;  %v6760_v47 = vld [vmem:[%s8626_s2 + $0xb0] sm:$0xff] }
 0x368   :  { %v2128_v30 = vmul.f32 %v2116_v46, %v2110_v63  ;;  %v2129_v4 = vmul.f32 %v2117_v37, %v2111_v18  ;;  %v2162_v52 = vsub.f32 %v6525_v23, %v2154_v8  ;;  %v2163_v54 = vsub.f32 %v6527_v36, %v2155_v55  ;;  %v6624_v46 = vld [vmem:[%s8626_s2 + $0x1f0] sm:$0xff]  ;;  %v6640_v37 = vld [vmem:[%s8626_s2 + $0xe0] sm:$0xff]  ;;  %v6778_v63 = vld [vmem:[%s8626_s2 + $0x28] sm:$0xff] }
 0x369   :  { %v2164_v53 = vsub.f32 %v6515_v17, %v2156_v26  ;;  %v2165_v28 = vsub.f32 %v6517_v61, %v2157_v58  ;;  %v6766_v9 = vld [vmem:[%s8626_s2 + $0x150] sm:$0xff]  ;;  %v6784_v18 = vld [vmem:[%s8626_s2 + $0xa8] sm:$0xff] }
 0x36a   :  { %v6531_v2 = vadd.f32 %v2134_v13, %v2128_v30  ;;  %v6533_v33 = vadd.f32 %v2135_v19, %v2129_v4  ;;  %v6692_v13 = vld [vmem:[%s8626_s2 + $0x1e0] sm:$0xff]  ;;  %v6704_v19 = vld [vmem:[%s8626_s2 + $0xc8] sm:$0xff]  ;;  %v6772_v12 = vld [vmem:[%s8626_s2 + $0x1d0] sm:$0xff] }
 0x36b   :  { %2182 = vmatpush.msra.mxu0 %v2164_v53  ;;  %2205 = vmatpush.msra.mxu1 %v2165_v28  ;;  %v6818_v30 = vld [vmem:[%s8626_s2 + $0x18] sm:$0xff]  ;;  %v6830_v53 = vld [vmem:[%s8626_s2 + $0x140] sm:$0xff]  ;;  %v6842_v43 = vld [vmem:[%s8626_s2 + $0x10] sm:$0xff] }
 0x36c   :  { %8910 = vst [vmem:[#allocation11_spill] sm:$0xff] %v6531_v2  ;;  %v2151_v15 = vpack.c.bf16 %v6533_v33, %v6531_v2  ;;  %v6824_v4 = vld [vmem:[%s8626_s2 + $0x98] sm:$0xff]  ;;  %v6836_v28 = vld [vmem:[%s8626_s2 + $0x1c0] sm:$0xff] }
 0x36d   :  { %8911 = vst [vmem:[#allocation13_spill] sm:$0xff] %v6533_v33  ;;  %2183 = vmatpush.msra.mxu0 %v2160_v49  ;;  %2206 = vmatpush.msra.mxu1 %v2161_v1  ;;  %v6848_v49 = vld [vmem:[%s8626_s2 + $0x90] sm:$0xff]  ;;  %v6854_v1 = vld [vmem:[%s8626_s2 + $0x138] sm:$0xff] }
 0x36e   :  { %4304 = vmatmul.msk.f32.vlgmr.msra.gmra.mxu0 %vm129_vm0, %v6544_v29  ;;  %4306 = vmatmul.msk.f32.vlgmr.msra.gmra.mxu1 %vm129_vm0, %v6544_v29  ;;  %v2158_v20 = vunpack.c.l.bf16 %v2151_v15  ;;  %v2159_v25 = vunpack.c.h.bf16 %v2151_v15  ;;  %v6860_v15 = vld [vmem:[%s8626_s2 + $0x1b8] sm:$0xff] }
 0x36f   :  { %2274 = vmatpush.msrb.mxu0 %v2156_v26  ;;  %2297 = vmatpush.msrb.mxu1 %v2157_v58  ;;  %v6794_v26 = vld [vmem:[%s8626_s2 + $0x20] sm:$0xff] }
 0x370   :  { %v2166_v6 = vsub.f32 %v6531_v2, %v2158_v20  ;;  %v2167_v60 = vsub.f32 %v6533_v33, %v2159_v25  ;;  %v6800_v58 = vld [vmem:[%s8626_s2 + $0xa0] sm:$0xff]  ;;  %v6961_v33 = vld [vmem:[%s8626_s2 + $0x110] sm:$0xff] }
 0x371   :  { %2275 = vmatpush.msrb.mxu0 %v2152_v50  ;;  %2298 = vmatpush.msrb.mxu1 %v2153_v24  ;;  %v6806_v50 = vld [vmem:[%s8626_s2 + $0x148] sm:$0xff] }
 0x372   :  { %2228 = vmatpush.msra.mxu2 %v2166_v6  ;;  %2251 = vmatpush.msra.mxu3 %v2167_v60  ;;  %v6812_v24 = vld [vmem:[%s8626_s2 + $0x1c8] sm:$0xff]  ;;  %v6893_v6 = vld [vmem:[%s8626_s2] sm:$0xff] }
 0x373   :  { %3296 = vmatpush.msra.mxu0 %v6557_v3  ;;  %3319 = vmatpush.msra.mxu1 %v6563_v32  ;;  %v6899_v60 = vld [vmem:[%s8626_s2 + $0x80] sm:$0xff] }
 0x374   :  { %2229 = vmatpush.msra.mxu2 %v2162_v52  ;;  %2252 = vmatpush.msra.mxu3 %v2163_v54  ;;  %v6905_v52 = vmul.f32 0.70710677, %v6513_v0  ;;  %v6910_v54 = vld [vmem:[%s8626_s2 + $0x128] sm:$0xff]  ;;  %v6932_v0 = vld [vmem:[%s8626_s2 + $0x1a0] sm:$0xff] }
 0x375   :  { %4308 = vmatmul.msk.f32.vlgmr.msra.gmra.mxu2 %vm129_vm0, %v6544_v29  ;;  %4310 = vmatmul.msk.f32.vlgmr.msra.gmra.mxu3 %vm129_vm0, %v6544_v29 }
 0x376   :  { %2320 = vmatpush.msrb.mxu2 %v2158_v20  ;;  %2343 = vmatpush.msrb.mxu3 %v2159_v25  ;;  %v6872_v20 = vld [vmem:[%s8626_s2 + $0x88] sm:$0xff]  ;;  %v6878_v25 = vld [vmem:[%s8626_s2 + $0x130] sm:$0xff]  ;;  %8912 = vst [vmem:[#allocation18_spill] sm:$0xff] %v6905_v52 }
 0x377   :  { %4305 = vmatmul.msk.f32.gmra.mxu0 %vm129_vm0, %v6573_v10  ;;  %4307 = vmatmul.msk.f32.gmra.mxu1 %vm129_vm0, %v6573_v10 }
 0x378   :  { %2321 = vmatpush.msrb.mxu2 %v2154_v8  ;;  %2344 = vmatpush.msrb.mxu3 %v2155_v55  ;;  %v6884_v8 = vld [vmem:[%s8626_s2 + $0x1b0] sm:$0xff]  ;;  %v6888_v55 = vmul.f32 0.70710677, %v6511_v38  ;;  %v6948_v38 = vld [vmem:[%s8626_s2 + $0x198] sm:$0xff] }
 0x379   :  { %3297 = vmatpush.msra.mxu0 %v6582_v16  ;;  %3320 = vmatpush.msra.mxu1 %v6588_v34 }
 0x37a   :  { %3342 = vmatpush.msra.mxu2 %v6594_v21  ;;  %3365 = vmatpush.msra.mxu3 %v6600_v57 }
 0x37b   :  { %3298 = vmatpush.msra.mxu0 %v6606_v62  ;;  %3321 = vmatpush.msra.mxu1 %v6612_v45 }
 0x37c   :  { %3343 = vmatpush.msra.mxu2 %v6618_v44  ;;  %3366 = vmatpush.msra.mxu3 %v6624_v46 }
 0x37d   :  { %4309 = vmatmul.msk.f32.gmra.mxu2 %vm129_vm0, %v6573_v10  ;;  %4311 = vmatmul.msk.f32.gmra.mxu3 %vm129_vm0, %v6573_v10 }
 0x37e   :  { %3299 = vmatpush.msra.mxu0 %v6634_v51  ;;  %3322 = vmatpush.msra.mxu1 %v6640_v37 }
 0x37f   :  { %4312 = vmatmul.msk.f32.vlgmr.msrb.gmra.mxu0 %vm129_vm0, %v6544_v29  ;;  %4314 = vmatmul.msk.f32.vlgmr.msrb.gmra.mxu1 %vm129_vm0, %v6544_v29 }
 0x380   :  { %3300 = vmatpush.msra.mxu0 %v6650_v41  ;;  %3323 = vmatpush.msra.mxu1 %v6656_v11 }
 0x381   :  { %3344 = vmatpush.msra.mxu2 %v6662_v48  ;;  %3367 = vmatpush.msra.mxu3 %v6668_v27 }
 0x382   :  { %3301 = vmatpush.msra.mxu0 %v6674_v5  ;;  %3324 = vmatpush.msra.mxu1 %v6680_v22 }
 0x383   :  { %3345 = vmatpush.msra.mxu2 %v6686_v59  ;;  %3368 = vmatpush.msra.mxu3 %v6692_v13 }
 0x384   :  { %3302 = vmatpush.msra.mxu0 %v6698_v39  ;;  %3325 = vmatpush.msra.mxu1 %v6704_v19 }
 0x385   :  { %4316 = vmatmul.msk.f32.vlgmr.msrb.gmra.mxu2 %vm129_vm0, %v6544_v29  ;;  %4318 = vmatmul.msk.f32.vlgmr.msrb.gmra.mxu3 %vm129_vm0, %v6544_v29  ;;  %v6866_v29 = vld [vmem:[%s8626_s2 + $0x8] sm:$0xff] }
 0x386   :  { %3303 = vmatpush.msra.mxu0 %v6714_v14  ;;  %3326 = vmatpush.msra.mxu1 %v6720_v42 }
 0x387   :  { %4313 = vmatmul.msk.f32.gmra.mxu0 %vm129_vm0, %v6573_v10  ;;  %4315 = vmatmul.msk.f32.gmra.mxu1 %vm129_vm0, %v6573_v10 }
 0x388   :  { %3304 = vmatpush.msra.mxu0 %v6730_v35  ;;  %3327 = vmatpush.msra.mxu1 %v6736_v40 }
 0x389   :  { %3346 = vmatpush.msra.mxu2 %v6742_v7  ;;  %3369 = vmatpush.msra.mxu3 %v6748_v31 }
 0x38a   :  { %3305 = vmatpush.msra.mxu0 %v6754_v56  ;;  %3328 = vmatpush.msra.mxu1 %v6760_v47 }
 0x38b   :  { %3347 = vmatpush.msra.mxu2 %v6766_v9  ;;  %3370 = vmatpush.msra.mxu3 %v6772_v12 }
 0x38c   :  { %3306 = vmatpush.msra.mxu0 %v6778_v63  ;;  %3329 = vmatpush.msra.mxu1 %v6784_v18 }
 0x38d   :  { %4317 = vmatmul.msk.f32.gmra.mxu2 %vm129_vm0, %v6573_v10  ;;  %4319 = vmatmul.msk.f32.gmra.mxu3 %vm129_vm0, %v6573_v10  ;;  %v6916_v10 = vld [vmem:[%s8626_s2 + $0x1a8] sm:$0xff] }
 0x38e   :  { %3307 = vmatpush.msra.mxu0 %v6794_v26  ;;  %3330 = vmatpush.msra.mxu1 %v6800_v58 }
 0x38f   :  { %3348 = vmatpush.msra.mxu2 %v6806_v50  ;;  %3371 = vmatpush.msra.mxu3 %v6812_v24 }
 0x390   :  { %3308 = vmatpush.msra.mxu0 %v6818_v30  ;;  %3331 = vmatpush.msra.mxu1 %v6824_v4 }
 0x391   :  { %3349 = vmatpush.msra.mxu2 %v6830_v53  ;;  %3372 = vmatpush.msra.mxu3 %v6836_v28 }
 0x392   :  { %3309 = vmatpush.msra.mxu0 %v6842_v43  ;;  %3332 = vmatpush.msra.mxu1 %v6848_v49 }
 0x393   :  { %3350 = vmatpush.msra.mxu2 %v6854_v1  ;;  %3373 = vmatpush.msra.mxu3 %v6860_v15 }
 0x394   :  { %3310 = vmatpush.msra.mxu0 %v6866_v29  ;;  %3333 = vmatpush.msra.mxu1 %v6872_v20 }
 0x395   :  { %3351 = vmatpush.msra.mxu2 %v6878_v25  ;;  %3374 = vmatpush.msra.mxu3 %v6884_v8 }
 0x396   :  { %3311 = vmatpush.msra.mxu0 %v6893_v6  ;;  %3334 = vmatpush.msra.mxu1 %v6899_v60 }
 0x397   :  { %3352 = vmatpush.msra.mxu2 %v6910_v54  ;;  %3375 = vmatpush.msra.mxu3 %v6916_v10 }
 0x398   :  { %3388 = vmatpush.msrb.mxu0 %v6557_v3  ;;  %3411 = vmatpush.msrb.mxu1 %v6563_v32  ;;  %v2412_v3 = vmul.f32 %v6888_v55, %v6888_v55  ;;  %v6926_v32 = vld [vmem:[%s8626_s2 + $0x120] sm:$0xff] }
 0x399   :  { %3353 = vmatpush.msra.mxu2 %v6926_v32  ;;  %3376 = vmatpush.msra.mxu3 %v6932_v0 }
 0x39a   :  { %3389 = vmatpush.msrb.mxu0 %v6582_v16  ;;  %3412 = vmatpush.msrb.mxu1 %v6588_v34  ;;  %v2452_v16 = vmul.f32 %v6905_v52, %v6905_v52  ;;  %v6942_v34 = vld [vmem:[%s8626_s2 + $0x118] sm:$0xff]  ;;  %v6967_v52 = vld [vmem:[%s8626_s2 + $0x190] sm:$0xff] }
 0x39b   :  { %3354 = vmatpush.msra.mxu2 %v6942_v34  ;;  %3377 = vmatpush.msra.mxu3 %v6948_v38 }
 0x39c   :  { %3390 = vmatpush.msrb.mxu0 %v6606_v62  ;;  %3413 = vmatpush.msrb.mxu1 %v6612_v45  ;;  %v6953_v62 = vmin.f32 %v2412_v3, 16.0  ;;  %v6956_v45 = vmul.f32 0.70710677, %v6515_v17  ;;  %v6983_v3 = vld [vmem:[%s8626_s2 + $0x188] sm:$0xff]  ;;  %v7000_v17 = vld [vmem:[%s8626_s2 + $0x180] sm:$0xff] }
 0x39d   :  { %3355 = vmatpush.msra.mxu2 %v6961_v33  ;;  %3378 = vmatpush.msra.mxu3 %v6967_v52 }
 0x39e   :  { %3391 = vmatpush.msrb.mxu0 %v6634_v51  ;;  %3414 = vmatpush.msrb.mxu1 %v6640_v37  ;;  %8913 = vst [vmem:[#allocation19_spill] sm:$0xff] %v6956_v45  ;;  %v6971_v51 = vmin.f32 %v2452_v16, 16.0  ;;  %v6977_v37 = vld [vmem:[%s8626_s2 + $0x108] sm:$0xff]  ;;  %v6994_v16 = vld [vmem:[%s8626_s2 + $0x100] sm:$0xff] }
 0x39f   :  { %3356 = vmatpush.msra.mxu2 %v6977_v37  ;;  %3379 = vmatpush.msra.mxu3 %v6983_v3 }
 0x3a0   :  { %3392 = vmatpush.msrb.mxu0 %v6650_v41  ;;  %3415 = vmatpush.msrb.mxu1 %v6656_v11  ;;  %v2425_v41 = vmul.f32 3.8918573e-05, %v6953_v62  ;;  %v2572_v11 = vmul.f32 %v6956_v45, %v6956_v45 }
 0x3a1   :  { %3357 = vmatpush.msra.mxu2 %v6994_v16  ;;  %3380 = vmatpush.msra.mxu3 %v7000_v17 }
 0x3a2   :  { %3393 = vmatpush.msrb.mxu0 %v6674_v5  ;;  %3416 = vmatpush.msrb.mxu1 %v6680_v22  ;;  %v2465_v5 = vmul.f32 3.8918573e-05, %v6971_v51  ;;  %v7006_v22 = vmul.f32 0.70710677, %v6517_v61  ;;  %v2426_v45 = vadd.f32 0.001143296, %v2425_v41 }
 0x3a3   :  { %3434 = vmatpush.msrb.mxu2 %v6594_v21  ;;  %3457 = vmatpush.msrb.mxu3 %v6600_v57  ;;  %v7012_v2 = vmin.f32 %v2572_v11, 16.0 }
 0x3a4   :  { %3394 = vmatpush.msrb.mxu0 %v6698_v39  ;;  %3417 = vmatpush.msrb.mxu1 %v6704_v19  ;;  %v2466_v39 = vadd.f32 0.001143296, %v2465_v5  ;;  %v2612_v19 = vmul.f32 %v7006_v22, %v7006_v22  ;;  %v2427_v21 = vmul.f32 %v2426_v45, %v6953_v62 }
 0x3a5   :  { %3435 = vmatpush.msrb.mxu2 %v6618_v44  ;;  %3458 = vmatpush.msrb.mxu3 %v6624_v46  ;;  %v2585_v57 = vmul.f32 3.8918573e-05, %v7012_v2 }
 0x3a6   :  { %3395 = vmatpush.msrb.mxu0 %v6714_v14  ;;  %3418 = vmatpush.msrb.mxu1 %v6720_v42  ;;  %v2467_v44 = vmul.f32 %v2466_v39, %v6971_v51  ;;  %v7031_v46 = vmin.f32 %v2612_v19, 16.0 }
 0x3a7   :  { %3436 = vmatpush.msrb.mxu2 %v6662_v48  ;;  %3459 = vmatpush.msrb.mxu3 %v6668_v27  ;;  %v2428_v48 = vadd.f32 0.014752088, %v2427_v21  ;;  %v2586_v27 = vadd.f32 0.001143296, %v2585_v57 }
 0x3a8   :  { %3396 = vmatpush.msrb.mxu0 %v6730_v35  ;;  %3419 = vmatpush.msrb.mxu1 %v6736_v40  ;;  %v2414_v35 = vmul.f32 2.1237322e-06, %v6953_v62 }
 0x3a9   :  { %3437 = vmatpush.msrb.mxu2 %v6686_v59  ;;  %3460 = vmatpush.msrb.mxu3 %v6692_v13  ;;  %v2468_v59 = vadd.f32 0.014752088, %v2467_v44  ;;  %v2625_v13 = vmul.f32 3.8918573e-05, %v7031_v46  ;;  %v2429_v14 = vmul.f32 %v2428_v48, %v6953_v62  ;;  %v2587_v42 = vmul.f32 %v2586_v27, %v7012_v2 }
 0x3aa   :  { %3397 = vmatpush.msrb.mxu0 %v6754_v56  ;;  %3420 = vmatpush.msrb.mxu1 %v6760_v47  ;;  %v2415_v47 = vadd.f32 0.00028619796, %v2414_v35 }
 0x3ab   :  { %3438 = vmatpush.msrb.mxu2 %v6742_v7  ;;  %3461 = vmatpush.msrb.mxu3 %v6748_v31  ;;  %v2469_v40 = vmul.f32 %v2468_v59, %v6971_v51  ;;  %v2626_v7 = vadd.f32 0.001143296, %v2625_v13  ;;  %v2430_v31 = vadd.f32 0.112945676, %v2429_v14  ;;  %v2588_v56 = vadd.f32 0.014752088, %v2587_v42 }
 0x3ac   :  { %3398 = vmatpush.msrb.mxu0 %v6778_v63  ;;  %3421 = vmatpush.msrb.mxu1 %v6784_v18  ;;  %v2454_v63 = vmul.f32 2.1237322e-06, %v6971_v51  ;;  %v7112_v13 = vmul.f32 0.70710677, %v6527_v36 }
 0x3ad   :  { %3439 = vmatpush.msrb.mxu2 %v6766_v9  ;;  %3462 = vmatpush.msrb.mxu3 %v6772_v12  ;;  %v2470_v9 = vadd.f32 0.112945676, %v2469_v40  ;;  %v2627_v12 = vmul.f32 %v2626_v7, %v7031_v46  ;;  %v2431_v18 = vmul.f32 %v2430_v31, %v6953_v62 }
 0x3ae   :  { %3399 = vmatpush.msrb.mxu0 %v6794_v26  ;;  %3422 = vmatpush.msrb.mxu1 %v6800_v58  ;;  %v2589_v26 = vmul.f32 %v2588_v56, %v7012_v2  ;;  %v2416_v58 = vmul.f32 %v2415_v47, %v6953_v62 }
 0x3af   :  { %3440 = vmatpush.msrb.mxu2 %v6806_v50  ;;  %3463 = vmatpush.msrb.mxu3 %v6812_v24  ;;  %v2471_v50 = vmul.f32 %v2470_v9, %v6971_v51  ;;  %v2628_v24 = vadd.f32 0.014752088, %v2627_v12  ;;  %v2532_v9 = vmul.f32 %v7112_v13, %v7112_v13 }
 0x3b0   :  { %3400 = vmatpush.msrb.mxu0 %v6818_v30  ;;  %3423 = vmatpush.msrb.mxu1 %v6824_v4  ;;  %v2455_v30 = vadd.f32 0.00028619796, %v2454_v63  ;;  %v7073_v4 = vmul.f32 0.70710677, %v6525_v23 }
 0x3b1   :  { %3441 = vmatpush.msrb.mxu2 %v6830_v53  ;;  %3464 = vmatpush.msrb.mxu3 %v6836_v28  ;;  %v2432_v53 = vadd.f32 0.4994258, %v2431_v18  ;;  %v2590_v28 = vadd.f32 0.112945676, %v2589_v26 }
 0x3b2   :  { %3401 = vmatpush.msrb.mxu0 %v6842_v43  ;;  %3424 = vmatpush.msrb.mxu1 %v6848_v49  ;;  %v2417_v43 = vadd.f32 0.0036580483, %v2416_v58  ;;  %v2472_v49 = vadd.f32 0.4994258, %v2471_v50 }
 0x3b3   :  { %3442 = vmatpush.msrb.mxu2 %v6854_v1  ;;  %3465 = vmatpush.msrb.mxu3 %v6860_v15  ;;  %v2456_v1 = vmul.f32 %v2455_v30, %v6971_v51  ;;  %v2492_v15 = vmul.f32 %v7073_v4, %v7073_v4 }
 0x3b4   :  { %3402 = vmatpush.msrb.mxu0 %v6866_v29  ;;  %3425 = vmatpush.msrb.mxu1 %v6872_v20  ;;  %v2574_v29 = vmul.f32 2.1237322e-06, %v7012_v2  ;;  %v2418_v20 = vmul.f32 %v2417_v43, %v6953_v62 }
 0x3b5   :  { %3443 = vmatpush.msrb.mxu2 %v6878_v25  ;;  %3466 = vmatpush.msrb.mxu3 %v6884_v8  ;;  %v2473_v25 = vmul.f32 %v2472_v49, %v6971_v51 }
 0x3b6   :  { %3403 = vmatpush.msrb.mxu0 %v6893_v6  ;;  %3426 = vmatpush.msrb.mxu1 %v6899_v60  ;;  %v2457_v6 = vadd.f32 0.0036580483, %v2456_v1  ;;  %v7091_v60 = vmin.f32 %v2492_v15, 16.0 }
 0x3b7   :  { %3444 = vmatpush.msrb.mxu2 %v6910_v54  ;;  %3467 = vmatpush.msrb.mxu3 %v6916_v10  ;;  %v2575_v54 = vadd.f32 0.00028619796, %v2574_v29 }
 0x3b9   :  { %3445 = vmatpush.msrb.mxu2 %v6926_v32  ;;  %3468 = vmatpush.msrb.mxu3 %v6932_v0  ;;  %v2629_v0 = vmul.f32 %v2628_v24, %v7031_v46  ;;  %v2419_v32 = vadd.f32 0.05243302, %v2418_v20 }
 0x3bb   :  { %3446 = vmatpush.msrb.mxu2 %v6942_v34  ;;  %3469 = vmatpush.msrb.mxu3 %v6948_v38  ;;  %v2433_v38 = vmul.f32 %v2432_v53, %v6953_v62  ;;  %v2630_v8 = vadd.f32 0.112945676, %v2629_v0  ;;  %v7095_v34 = vadd.f32 1.0, %v2473_v25  ;;  %v2420_v11 = vmul.f32 %v2419_v32, %v6953_v62 }
 0x3bc   :  { %v7134_v53 = vmin.f32 %v2532_v9, 16.0 }
 0x3bd   :  { %3447 = vmatpush.msrb.mxu2 %v6961_v33  ;;  %3470 = vmatpush.msrb.mxu3 %v6967_v52  ;;  %v2591_v33 = vmul.f32 %v2590_v28, %v7012_v2  ;;  %v7093_v52 = vadd.f32 1.0, %v2433_v38  ;;  %v2631_v45 = vmul.f32 %v2630_v8, %v7031_v46  ;;  %v2421_v44 = vadd.f32 0.18741608, %v2420_v11 }
 0x3be   :  { %v2545_v8 = vmul.f32 3.8918573e-05, %v7134_v53  ;;  %vm2480_vm1 = vweird.f32 %v7095_v34 }
 0x3bf   :  { %3448 = vmatpush.msrb.mxu2 %v6977_v37  ;;  %3471 = vmatpush.msrb.mxu3 %v6983_v3  ;;  %v2592_v10 = vadd.f32 0.4994258, %v2591_v33  ;;  %v2458_v37 = vmul.f32 %v2457_v6, %v6971_v51  ;;  %v2505_v3 = vmul.f32 3.8918573e-05, %v7091_v60  ;;  %4434 = vrcp.f32 %v7093_v52 }
 0x3c0   :  { %4436 = vrcp.f32 %v7095_v34  ;;  %v2632_v5 = vadd.f32 0.4994258, %v2631_v45  ;;  %v2422_v7 = vmul.f32 %v2421_v44, %v6953_v62  ;;  %v2494_v62 = vmul.f32 2.1237322e-06, %v7091_v60 }
 0x3c1   :  { %3449 = vmatpush.msrb.mxu2 %v6994_v16  ;;  %3472 = vmatpush.msrb.mxu3 %v7000_v17  ;;  %v2576_v17 = vmul.f32 %v2575_v54, %v7012_v2  ;;  %v2593_v41 = vmul.f32 %v2592_v10, %v7012_v2  ;;  %v2614_v16 = vmul.f32 2.1237322e-06, %v7031_v46  ;;  %v2459_v39 = vadd.f32 0.05243302, %v2458_v37 }
 0x3c2   :  { %v2506_v19 = vadd.f32 0.001143296, %v2505_v3  ;;  %v2633_v59 = vmul.f32 %v2632_v5, %v7031_v46  ;;  %v2423_v58 = vadd.f32 1.1283791, %v2422_v7  ;;  %v2444_v28 = vand.u32 2147483647, %v7093_v52 }
 0x3c3   :  { %v2577_v21 = vadd.f32 0.0036580483, %v2576_v17  ;;  %v7106_v57 = vadd.f32 1.0, %v2593_v41  ;;  %v2615_v27 = vadd.f32 0.00028619796, %v2614_v16  ;;  %v2460_v14 = vmul.f32 %v2459_v39, %v6971_v51 }
 0x3c4   :  { %v2507_v42 = vmul.f32 %v2506_v19, %v7091_v60  ;;  %v7124_v47 = vadd.f32 1.0, %v2633_v59  ;;  %v2424_v15 = vmul.f32 %v2423_v58, %v6888_v55  ;;  %v2495_v33 = vadd.f32 0.00028619796, %v2494_v62 }
 0x3c5   :  { %v7108_v48 = vpop.eup %4434  ;;  %v2578_v40 = vmul.f32 %v2577_v21, %v7012_v2  ;;  %4438 = vrcp.f32 %v7106_v57  ;;  %v2616_v56 = vmul.f32 %v2615_v27, %v7031_v46  ;;  %v2461_v12 = vadd.f32 0.18741608, %v2460_v14 }
 0x3c6   :  { %v7116_v35 = vpop.eup %4436  ;;  %v2436_v31 = vmul.f32 %v7108_v48, %v7093_v52  ;;  %v2508_v18 = vadd.f32 0.014752088, %v2507_v42  ;;  %4440 = vrcp.f32 %v7124_v47  ;;  %v2446_v20 = vand.u32 2147483648, %v7093_v52 }
 0x3c7   :  { %v2476_v63 = vmul.f32 %v7116_v35, %v7095_v34  ;;  %v2579_v26 = vadd.f32 0.05243302, %v2578_v40  ;;  %v2617_v30 = vadd.f32 0.0036580483, %v2616_v56  ;;  %v2462_v43 = vmul.f32 %v2461_v12, %v6971_v51  ;;  %v8914_v51 = vld [vmem:[#allocation11_spill] sm:$0xff]  ;;  %v8919_v40 = vld [vmem:[#allocation18_spill] sm:$0xff] }
 0x3c8   :  { %v2437_v50 = vsub.f32 1.0, %v2436_v31  ;;  %v2509_v0 = vmul.f32 %v2508_v18, %v7091_v60  ;;  %v7148_v6 = vmul.f32 0.70710677, %v8914_v51  ;;  %vm7150_vm11 = vcmp.eq.f32.partialorder %v2444_v28, 8.507059e+37 }
 0x3c9   :  { %v2477_v49 = vsub.f32 1.0, %v2476_v63  ;;  %v2580_v1 = vmul.f32 %v2579_v26, %v7012_v2  ;;  %v2618_v25 = vmul.f32 %v2617_v30, %v7031_v46  ;;  %v2463_v55 = vadd.f32 1.1283791, %v2462_v43 }
 0x3ca   :  { %v2438_v38 = vmul.f32 %v7108_v48, %v2437_v50  ;;  %v2510_v32 = vadd.f32 0.112945676, %v2509_v0  ;;  %vm2440_vm12 = vweird.f32 %v7093_v52  ;;  %v2484_v37 = vand.u32 2147483647, %v7095_v34 }
 0x3cb   :  { %v7131_v24 = vpop.eup %4438  ;;  %v2478_v10 = vmul.f32 %v7116_v35, %v2477_v49  ;;  %v2581_v3 = vadd.f32 0.18741608, %v2580_v1  ;;  %v2534_v17 = vmul.f32 2.1237322e-06, %v7134_v53  ;;  %vm2441_vm13 = vweird.f32 %v7108_v48 }
 0x3cc   :  { %v2596_v29 = vmul.f32 %v7131_v24, %v7106_v57  ;;  %v7155_v45 = vpop.eup %4440  ;;  %v2439_v41 = vadd.f32 %v7108_v48, %v2438_v38  ;;  %v2496_v16 = vmul.f32 %v2495_v33, %v7091_v60  ;;  %v2486_v5 = vand.u32 2147483648, %v7095_v34  ;;  %vm7173_vm15 = vmor %vm2440_vm12, %vm2441_vm13 }
 0x3cd   :  { %v2619_v39 = vadd.f32 0.05243302, %v2618_v25  ;;  %v2546_v19 = vadd.f32 0.001143296, %v2545_v8  ;;  %v2652_v21 = vmul.f32 %v7148_v6, %v7148_v6  ;;  %v2479_v44 = vadd.f32 %v7116_v35, %v2478_v10 }
 0x3ce   :  { %v2597_v11 = vsub.f32 1.0, %v2596_v29  ;;  %vm2481_vm14 = vweird.f32 %v7116_v35  ;;  %v2636_v27 = vmul.f32 %v7155_v45, %v7124_v47  ;;  %v2511_v59 = vmul.f32 %v2510_v32, %v7091_v60 }
 0x3cf   :  { %v2447_v42 = vor.u32 1.1754944e-38, %v2446_v20  ;;  %v2464_v7 = vmul.f32 %v2463_v55, %v8919_v40  ;;  %v2582_v31 = vmul.f32 %v2581_v3, %v7012_v2  ;;  %v2535_v56 = vadd.f32 0.00028619796, %v2534_v17  ;;  %vm7184_vm2 = vmor %vm2480_vm1, %vm2481_vm14  ;;  %v8924_v55 = vld [vmem:[#allocation19_spill] sm:$0xff] }
 0x3d0   :  { %v2443_v9 = vsel %vm7173_vm15, %v7108_v48, %v2439_v41  ;;  %v2598_v12 = vmul.f32 %v7131_v24, %v2597_v11  ;;  %v2497_v63 = vadd.f32 0.0036580483, %v2496_v16  ;;  %vm7188_vm3 = vcmp.eq.f32.partialorder %v2484_v37, 8.507059e+37 }
 0x3d1   :  { %v2620_v2 = vmul.f32 %v2619_v39, %v7031_v46  ;;  %v2547_v26 = vmul.f32 %v2546_v19, %v7134_v53  ;;  %v7194_v58 = vmin.f32 %v2652_v21, 16.0  ;;  %v2483_v34 = vsel %vm7184_vm2, %v7116_v35, %v2479_v44 }
 0x3d2   :  { %v2487_v48 = vor.u32 1.1754944e-38, %v2486_v5  ;;  %v2637_v50 = vsub.f32 1.0, %v2636_v27  ;;  %v2512_v62 = vadd.f32 0.4994258, %v2511_v59  ;;  %v2448_v30 = vsel %vm7150_vm11, %v2447_v42, %v2443_v9 }
 0x3d3   :  { %v2583_v28 = vadd.f32 1.1283791, %v2582_v31  ;;  %v2604_v43 = vand.u32 2147483647, %v7106_v57  ;;  %v2536_v49 = vmul.f32 %v2535_v56, %v7134_v53  ;;  %v2599_v0 = vadd.f32 %v7131_v24, %v2598_v12 }
 0x3d4   :  { %vm2601_vm4 = vweird.f32 %v7131_v24  ;;  %v2606_v1 = vand.u32 2147483648, %v7106_v57  ;;  %v2498_v38 = vmul.f32 %v2497_v63, %v7091_v60  ;;  %v2488_v35 = vsel %vm7188_vm3, %v2487_v48, %v2483_v34  ;;  %v8931_v63 = vld [vmem:[#allocation13_spill] sm:$0xff] }
 0x3d5   :  { %v2621_v29 = vadd.f32 0.18741608, %v2620_v2  ;;  %v2548_v33 = vadd.f32 0.014752088, %v2547_v26  ;;  %v2665_v20 = vmul.f32 3.8918573e-05, %v7194_v58  ;;  %v2449_v25 = vmul.f32 %v2448_v30, %v2424_v15 }
 0x3d6   :  { %vm2600_vm5 = vweird.f32 %v7106_v57  ;;  %v2638_v8 = vmul.f32 %v7155_v45, %v2637_v50  ;;  %v2513_v54 = vmul.f32 %v2512_v62, %v7091_v60  ;;  %v2584_v10 = vmul.f32 %v2583_v28, %v8924_v55 }
 0x3d7   :  { %vm7214_vm6 = vmor %vm2600_vm5, %vm2601_vm4  ;;  %vm7218_vm7 = vcmp.eq.f32.partialorder %v2604_v43, 8.507059e+37  ;;  %v2537_v3 = vadd.f32 0.0036580483, %v2536_v49  ;;  %v2489_v57 = vmul.f32 %v2488_v35, %v2464_v7  ;;  %v2499_v11 = vadd.f32 0.05243302, %v2498_v38  ;;  %v8932_v38 = vld [vmem:[#allocation15_spill] sm:$0xff] }
 0x3d8   :  { %v2603_v41 = vsel %vm7214_vm6, %v7131_v24, %v2599_v0  ;;  %v2654_v16 = vmul.f32 2.1237322e-06, %v7194_v58  ;;  %v2607_v5 = vor.u32 1.1754944e-38, %v2606_v1  ;;  %v2622_v39 = vmul.f32 %v2621_v29, %v7031_v46 }
 0x3d9   :  { %v2549_v19 = vmul.f32 %v2548_v33, %v7134_v53  ;;  %v2666_v21 = vadd.f32 0.001143296, %v2665_v20  ;;  %v4320_v44 = vclamps-f32 %v2449_v25, 1.0  ;;  %v2639_v27 = vadd.f32 %v7155_v45, %v2638_v8  ;;  %v8933_v20 = vld [vmem:[#allocation10_spill] sm:$0xff] }
 0x3da   :  { %vm2641_vm8 = vweird.f32 %v7155_v45  ;;  %v7234_v59 = vadd.f32 1.0, %v2513_v54  ;;  %v2608_v14 = vsel %vm7218_vm7, %v2607_v5, %v2603_v41  ;;  %vm2640_vm9 = vweird.f32 %v7124_v47 }
 0x3db   :  { %v2646_v24 = vand.u32 2147483648, %v7124_v47  ;;  %v2538_v42 = vmul.f32 %v2537_v3, %v7134_v53  ;;  %v4321_v46 = vclamps-f32 %v2489_v57, 1.0  ;;  %v2644_v40 = vand.u32 2147483647, %v7124_v47  ;;  %vm7243_vm10 = vmor %vm2640_vm9, %vm2641_vm8 }
 0x3dc   :  { %v2500_v7 = vmul.f32 %v2499_v11, %v7091_v60  ;;  %v2655_v31 = vadd.f32 0.00028619796, %v2654_v16  ;;  %v2550_v9 = vadd.f32 0.112945676, %v2549_v19  ;;  %v2667_v12 = vmul.f32 %v2666_v21, %v7194_v58  ;;  %v8934_v16 = vld [vmem:[#allocation29_spill] sm:$0xff] }
 0x3dd   :  { %v7249_v52 = vmul.f32 0.70710677, %v8931_v63  ;;  %v2609_v18 = vmul.f32 %v2608_v14, %v2584_v10  ;;  %v2623_v2 = vadd.f32 1.1283791, %v2622_v39  ;;  %v2643_v26 = vsel %vm7243_vm10, %v7155_v45, %v2639_v27 }
 0x3de   :  { %4442 = vrcp.f32 %v7234_v59  ;;  %v2732_v47 = vadd.f32 1.0, %v4320_v44  ;;  %v2647_v34 = vor.u32 1.1754944e-38, %v2646_v24  ;;  %v2539_v48 = vadd.f32 0.05243302, %v2538_v42 }
 0x3df   :  { %v2733_v50 = vadd.f32 1.0, %v4321_v46  ;;  %vm2645_vm11 = vcmp.eq.f32.partialorder %v2644_v40, 8.507059e+37  ;;  %v2501_v62 = vadd.f32 0.18741608, %v2500_v7  ;;  %v2656_v30 = vmul.f32 %v2655_v31, %v7194_v58 }
 0x3e0   :  { %v2648_v49 = vsel %vm2645_vm11, %v2647_v34, %v2643_v26  ;;  %v2551_v0 = vmul.f32 %v2550_v9, %v7134_v53  ;;  %v2668_v1 = vadd.f32 0.014752088, %v2667_v12  ;;  %v2692_v45 = vmul.f32 %v7249_v52, %v7249_v52 }
 0x3e1   :  { %v2396_v35 = vmul.f32 0.5, %v8932_v38  ;;  %v4324_v29 = vclamps-f32 %v2609_v18, 1.0  ;;  %v2624_v33 = vmul.f32 %v2623_v2, %v7006_v22  ;;  %v2397_v25 = vmul.f32 0.5, %v8933_v20 }
 0x3e2   :  { %v2540_v8 = vmul.f32 %v2539_v48, %v7134_v53  ;;  %v2502_v32 = vmul.f32 %v2501_v62, %v7091_v60  ;;  %v2657_v37 = vadd.f32 0.0036580483, %v2656_v30  ;;  %v2552_v57 = vadd.f32 0.4994258, %v2551_v0 }
 0x3e3   :  { %v2740_v55 = vmul.f32 %v2732_v47, %v2396_v35  ;;  %v2649_v10 = vmul.f32 %v2648_v49, %v2624_v33  ;;  %v2741_v3 = vmul.f32 %v2733_v50, %v2397_v25  ;;  %v2669_v41 = vmul.f32 %v2668_v1, %v7194_v58 }
 0x3e4   :  { %v7267_v54 = vpop.eup %4442  ;;  %v7271_v11 = vmin.f32 %v2692_v45, 16.0  ;;  %v2400_v5 = vmul.f32 0.5, %v8934_v16  ;;  %v2736_v22 = vadd.f32 1.0, %v4324_v29  ;;  %v2401_v39 = vmul.f32 0.5, %v6517_v61 }
 0x3e5   :  { %v7276_v19 = vmul.f32 0.5, %v6525_v23  ;;  %v2516_v21 = vmul.f32 %v7267_v54, %v7234_v59  ;;  %v2541_v44 = vadd.f32 0.18741608, %v2540_v8  ;;  %v7281_v60 = vmul.f32 0.5, %v8914_v51 }
 0x3e6   :  { %v7283_v27 = vadd.f32 1.0, %v2740_v55  ;;  %v4325_v14 = vclamps-f32 %v2649_v10, 1.0  ;;  %v2503_v24 = vadd.f32 1.1283791, %v2502_v32  ;;  %v2658_v42 = vmul.f32 %v2657_v37, %v7194_v58 }
 0x3e7   :  { %8935 = vst [vmem:[#allocation20_spill] sm:$0xff] %v7281_v60  ;;  %v7286_v7 = vadd.f32 1.0, %v2741_v3  ;;  %v2553_v31 = vmul.f32 %v2552_v57, %v7134_v53  ;;  %v2670_v56 = vadd.f32 0.112945676, %v2669_v41  ;;  %v2694_v9 = vmul.f32 2.1237322e-06, %v7271_v11 }
 0x3e8   :  { %v2744_v2 = vmul.f32 %v2736_v22, %v2400_v5  ;;  %v2526_v26 = vand.u32 2147483648, %v7234_v59  ;;  %v2517_v47 = vsub.f32 1.0, %v2516_v21  ;;  %v2524_v34 = vand.u32 2147483647, %v7234_v59 }
 0x3e9   :  { %v2542_v48 = vmul.f32 %v2541_v44, %v7134_v53  ;;  %v2705_v50 = vmul.f32 3.8918573e-05, %v7271_v11  ;;  %v2737_v30 = vadd.f32 1.0, %v4325_v14  ;;  %v2659_v49 = vadd.f32 0.05243302, %v2658_v42 }
 0x3ea   :  { %v7309_v0 = vadd.f32 1.0, %v2553_v31  ;;  %v2671_v1 = vmul.f32 %v2670_v56, %v7194_v58  ;;  %v2695_v45 = vadd.f32 0.00028619796, %v2694_v9  ;;  %v7314_v35 = vadd.f32 1.0, %v2744_v2 }
 0x3eb   :  { %v7222_v17 = vpop.f32.mrf.mxu0  ;;  %v7224_v15 = vpop.f32.mrf.mxu1  ;;  %vm2520_vm12 = vweird.f32 %v7234_v59  ;;  %v2527_v29 = vor.u32 1.1754944e-38, %v2526_v26  ;;  %v2518_v33 = vmul.f32 %v7267_v54, %v2517_v47  ;;  %v2543_v25 = vadd.f32 1.1283791, %v2542_v48 }
 0x3ec   :  { %v2706_v8 = vadd.f32 0.001143296, %v2705_v50  ;;  %v2745_v32 = vmul.f32 %v2737_v30, %v2401_v39  ;;  %vm2521_vm13 = vweird.f32 %v7267_v54  ;;  %v2660_v37 = vmul.f32 %v2659_v49, %v7194_v58 }
 0x3ed   :  { %vm7328_vm14 = vcmp.eq.f32.partialorder %v2524_v34, 8.507059e+37  ;;  %4444 = vrcp.f32 %v7309_v0  ;;  %v2672_v22 = vadd.f32 0.4994258, %v2671_v1  ;;  %v2696_v21 = vmul.f32 %v2695_v45, %v7271_v11  ;;  %vm7367_vm15 = vmor %vm2520_vm12, %vm2521_vm13 }
 0x3ee   :  { %v2707_v31 = vmul.f32 %v2706_v8, %v7271_v11  ;;  %v7384_v59 = vmul.f32 %v2543_v25, %v7112_v13  ;;  %vm2560_vm1 = vweird.f32 %v7309_v0 }
 0x3f0   :  { %8942 = vst [vmem:[#allocation24_spill] sm:$0xff] %v7384_v59 }
 0x3f3   :  { %v7371_v45 = vpop.eup %4444 }
 0x3f4   :  { %v7256_v28 = vpop.f32.mrf.mxu0  ;;  %v7258_v43 = vpop.f32.mrf.mxu1  ;;  %vm2561_vm2 = vweird.f32 %v7371_v45 }
 0x3f5   :  { %vm7469_vm3 = vmor %vm2560_vm1, %vm2561_vm2 }
 0x3f8   :  { %v7320_v55 = vpop.f32.mrf.mxu2 }
 0x3fc   :  { %v2277_v46 = vpop.f32.mrf.mxu0  ;;  %v2300_v40 = vpop.f32.mrf.mxu1 }
 0x3fd   :  { %v7291_v12 = vadd.f32 %v2277_v46, %v7222_v17  ;;  %v7294_v18 = vadd.f32 %v2300_v40, %v7224_v15  ;;  %v7304_v17 = vmul.f32 %v2503_v24, %v7073_v4  ;;  %v2519_v40 = vadd.f32 %v7267_v54, %v2518_v33 }
 0x3ff   :  { %v7301_v62 = vmul.f32 0.70710677, %v7291_v12  ;;  %v7307_v15 = vmul.f32 0.70710677, %v7294_v18  ;;  %v2352_v56 = vmul.f32 %v7291_v12, %v8932_v38  ;;  %v2523_v8 = vsel %vm7367_vm15, %v7267_v54, %v2519_v40 }
 0x400   :  { %v2528_v54 = vsel %vm7328_vm14, %v2527_v29, %v2523_v8 }
 0x401   :  { %v2772_v53 = vmul.f32 %v7301_v62, %v7301_v62  ;;  %v2812_v4 = vmul.f32 %v7307_v15, %v7307_v15  ;;  %v2529_v29 = vmul.f32 %v2528_v54, %v7304_v17 }
 0x403   :  { %v7322_v10 = vmin.f32 %v2772_v53, 16.0  ;;  %v7326_v3 = vmin.f32 %v2812_v4, 16.0 }
 0x404   :  { %v2280_v57 = vpop.f32.mrf.mxu0  ;;  %v2303_v41 = vpop.f32.mrf.mxu1 }
 0x405   :  { %v2774_v44 = vmul.f32 2.1237322e-06, %v7322_v10  ;;  %v2785_v39 = vmul.f32 3.8918573e-05, %v7322_v10  ;;  %v7337_v14 = vadd.f32 %v2280_v57, %v7256_v28  ;;  %v7340_v24 = vadd.f32 %v2303_v41, %v7258_v43 }
 0x406   :  { %v2814_v42 = vmul.f32 2.1237322e-06, %v7326_v3  ;;  %v2825_v46 = vmul.f32 3.8918573e-05, %v7326_v3  ;;  %v2353_v43 = vmul.f32 %v7294_v18, %v8933_v20  ;;  %v7381_v41 = vadd.f32 1.0, %v2745_v32 }
 0x407   :  { %v2775_v9 = vadd.f32 0.00028619796, %v2774_v44  ;;  %v2786_v2 = vadd.f32 0.001143296, %v2785_v39  ;;  %v2356_v28 = vmul.f32 %v7337_v14, %v8934_v16  ;;  %4194 = vst [vmem:[#allocation1] sm:$0xff] %v7337_v14  ;;  %v2357_v34 = vmul.f32 %v7340_v24, %v6517_v61 }
 0x408   :  { %v2826_v26 = vadd.f32 0.001143296, %v2825_v46  ;;  %v7354_v47 = vmul.f32 0.70710677, %v7337_v14  ;;  %v2815_v30 = vadd.f32 0.00028619796, %v2814_v42  ;;  %v2673_v46 = vmul.f32 %v2672_v22, %v7194_v58 }
 0x409   :  { %v2776_v48 = vmul.f32 %v2775_v9, %v7322_v10  ;;  %v2787_v50 = vmul.f32 %v2786_v2, %v7322_v10  ;;  %v7360_v49 = vadd.f32 %v2356_v28, %v2352_v56  ;;  %4195 = vst [vmem:[#allocation1 + $0x9] sm:$0xff] %v7340_v24  ;;  %v7376_v33 = vadd.f32 %v2357_v34, %v2353_v43  ;;  %v7391_v43 = vpop.f32.mrf.mxu2  ;;  %v7402_v34 = vpop.f32.mrf.mxu3 }
 0x40a   :  { %v2827_v53 = vmul.f32 %v2826_v26, %v7326_v3  ;;  %v2932_v4 = vmul.f32 %v7354_v47, %v7354_v47  ;;  %v2661_v44 = vadd.f32 0.18741608, %v2660_v37  ;;  %v2697_v56 = vadd.f32 0.0036580483, %v2696_v21 }
 0x40b   :  { %8938 = vst [vmem:[#allocation21_spill] sm:$0xff] %v7360_v49  ;;  %v2788_v57 = vadd.f32 0.014752088, %v2787_v50  ;;  %v2777_v9 = vadd.f32 0.0036580483, %v2776_v48  ;;  %v2816_v28 = vmul.f32 %v2815_v30, %v7326_v3  ;;  %v2556_v22 = vmul.f32 %v7371_v45, %v7309_v0 }
 0x40c   :  { %8941 = vst [vmem:[#allocation23_spill] sm:$0xff] %v7376_v33  ;;  %v2828_v39 = vadd.f32 0.014752088, %v2827_v53  ;;  %v7386_v42 = vmin.f32 %v2932_v4, 16.0  ;;  %v2708_v37 = vadd.f32 0.014752088, %v2707_v31  ;;  %v2662_v8 = vmul.f32 %v2661_v44, %v7194_v58 }
 0x40d   :  { %v2789_v2 = vmul.f32 %v2788_v57, %v7322_v10  ;;  %v2566_v26 = vand.u32 2147483648, %v7309_v0  ;;  %v7405_v50 = vadd.f32 1.0, %v2673_v46  ;;  %v2778_v30 = vmul.f32 %v2777_v9, %v7322_v10 }
 0x40e   :  { %v2829_v13 = vmul.f32 %v2828_v39, %v7326_v3  ;;  %v2934_v25 = vmul.f32 2.1237322e-06, %v7386_v42  ;;  %v2945_v32 = vmul.f32 3.8918573e-05, %v7386_v42  ;;  %v2817_v1 = vadd.f32 0.0036580483, %v2816_v28 }
 0x40f   :  { %v2790_v40 = vadd.f32 0.112945676, %v2789_v2  ;;  %v2698_v57 = vmul.f32 %v2697_v56, %v7271_v11  ;;  %v2709_v39 = vmul.f32 %v2708_v37, %v7271_v11  ;;  %v2557_v46 = vsub.f32 1.0, %v2556_v22 }
 0x410   :  { %v2830_v48 = vadd.f32 0.112945676, %v2829_v13  ;;  %v2935_v5 = vadd.f32 0.00028619796, %v2934_v25  ;;  %v2946_v53 = vadd.f32 0.001143296, %v2945_v32  ;;  %4446 = vrcp.f32 %v7405_v50 }
 0x411   :  { %v2791_v31 = vmul.f32 %v2790_v40, %v7322_v10  ;;  %v7416_v9 = vmul.f32 0.70710677, %v7340_v24  ;;  %v4322_v28 = vclamps-f32 %v2529_v29, 1.0  ;;  %v2779_v25 = vadd.f32 0.05243302, %v2778_v30  ;;  %v2323_v29 = vpop.f32.mrf.mxu2 }
 0x412   :  { %v2831_v4 = vmul.f32 %v2830_v48, %v7326_v3  ;;  %v2936_v13 = vmul.f32 %v2935_v5, %v7386_v42  ;;  %v2947_v17 = vmul.f32 %v2946_v53, %v7386_v42  ;;  %v2818_v44 = vmul.f32 %v2817_v1, %v7326_v3 }
 0x413   :  { %v2792_v2 = vadd.f32 0.4994258, %v2791_v31  ;;  %v7423_v37 = vor.u32 1.1754944e-38, %v2566_v26  ;;  %v2699_v40 = vadd.f32 0.05243302, %v2698_v57  ;;  %v2558_v31 = vmul.f32 %v7371_v45, %v2557_v46 }
 0x414   :  { %v2832_v54 = vadd.f32 0.4994258, %v2831_v4  ;;  %v2948_v56 = vadd.f32 0.014752088, %v2947_v17  ;;  %v2710_v22 = vadd.f32 0.112945676, %v2709_v39  ;;  %v2780_v17 = vmul.f32 %v2779_v25, %v7322_v10 }
 0x415   :  { %v2793_v58 = vmul.f32 %v2792_v2, %v7322_v10  ;;  %v2937_v5 = vadd.f32 0.0036580483, %v2936_v13  ;;  %v2663_v30 = vadd.f32 1.1283791, %v2662_v8  ;;  %v2734_v4 = vadd.f32 1.0, %v4322_v28  ;;  %v7439_v8 = vpop.f32.mrf.mxu3 }
 0x416   :  { %v2833_v32 = vmul.f32 %v2832_v54, %v7326_v3  ;;  %v2949_v1 = vmul.f32 %v2948_v56, %v7386_v42  ;;  %v2686_v2 = vand.u32 2147483648, %v7405_v50  ;;  %v2819_v26 = vadd.f32 0.05243302, %v2818_v44  ;;  %v7436_v39 = vpop.eup %4446 }
 0x417   :  { %v7425_v48 = vadd.f32 1.0, %v2793_v58  ;;  %v2972_v57 = vmul.f32 %v7416_v9, %v7416_v9  ;;  %v7442_v13 = vadd.f32 %v2323_v29, %v7320_v55  ;;  %v2700_v46 = vmul.f32 %v2699_v40, %v7271_v11 }
 0x418   :  { %v7428_v53 = vadd.f32 1.0, %v2833_v32  ;;  %v2711_v54 = vmul.f32 %v2710_v22, %v7271_v11  ;;  %v2938_v28 = vmul.f32 %v2937_v5, %v7386_v42  ;;  %v7448_v25 = vadd.f32 %v7371_v45, %v2558_v31 }
 0x419   :  { %4448 = vrcp.f32 %v7425_v48  ;;  %v7452_v58 = vmul.f32 %v2663_v30, %v7148_v6  ;;  %v2950_v44 = vadd.f32 0.112945676, %v2949_v1  ;;  %v2742_v56 = vmul.f32 %v2734_v4, %v7276_v19 }
 0x41a   :  { %4450 = vrcp.f32 %v7428_v53  ;;  %v7456_v32 = vor.u32 1.1754944e-38, %v2686_v2  ;;  %v2781_v40 = vadd.f32 0.18741608, %v2780_v17  ;;  %v2820_v22 = vmul.f32 %v2819_v26, %v7326_v3 }
 0x41b   :  { %v7459_v29 = vmin.f32 %v2972_v57, 16.0  ;;  %v2676_v5 = vmul.f32 %v7436_v39, %v7405_v50  ;;  %v2951_v31 = vmul.f32 %v2950_v44, %v7386_v42  ;;  %v7465_v6 = vmul.f32 0.70710677, %v7442_v13 }
 0x41c   :  { %v7473_v30 = vadd.f32 0.18741608, %v2700_v46  ;;  %v2712_v1 = vadd.f32 0.4994258, %v2711_v54  ;;  %v2939_v2 = vadd.f32 0.05243302, %v2938_v28  ;;  %v2782_v54 = vmul.f32 %v2781_v40, %v7322_v10 }
 0x41d   :  { %8943 = vst [vmem:[#allocation28_spill] sm:$0xff] %v7465_v6  ;;  %v2974_v17 = vmul.f32 2.1237322e-06, %v7459_v29  ;;  %v2985_v26 = vmul.f32 3.8918573e-05, %v7459_v29  ;;  %v7484_v16 = vadd.f32 1.0, %v2742_v56  ;;  %v2852_v46 = vmul.f32 %v7465_v6, %v7465_v6 }
 0x41e   :  { %v2952_v21 = vadd.f32 0.4994258, %v2951_v31  ;;  %v2821_v28 = vadd.f32 0.18741608, %v2820_v22  ;;  %v2804_v31 = vand.u32 2147483647, %v7425_v48  ;;  %vm2800_vm5 = vweird.f32 %v7425_v48 }
 0x41f   :  { %v4449_v4 = vpop.eup %4448  ;;  %8946 = vst [vmem:[#allocation30_spill] sm:$0xff] %v7484_v16  ;;  %v2975_v20 = vadd.f32 0.00028619796, %v2974_v17  ;;  %v2986_v33 = vadd.f32 0.001143296, %v2985_v26  ;;  %v7492_v59 = vmin.f32 %v2852_v46, 16.0  ;;  %v2940_v16 = vmul.f32 %v2939_v2, %v7386_v42 }
 0x420   :  { %v7481_v44 = vpop.eup %4450  ;;  %v2796_v55 = vmul.f32 %v4449_v4, %v7425_v48  ;;  %v2953_v57 = vmul.f32 %v2952_v21, %v7386_v42  ;;  %v2806_v56 = vand.u32 2147483648, %v7425_v48  ;;  %vm2801_vm4 = vweird.f32 %v4449_v4  ;;  %v2326_v48 = vpop.f32.mrf.mxu2 }
 0x421   :  { %v2836_v61 = vmul.f32 %v7481_v44, %v7428_v53  ;;  %v2976_v60 = vmul.f32 %v2975_v20, %v7459_v29  ;;  %v2987_v22 = vmul.f32 %v2986_v33, %v7459_v29  ;;  %v2783_v17 = vadd.f32 1.1283791, %v2782_v54  ;;  %vm2802_vm6 = vmor %vm2800_vm5, %vm2801_vm4 }
 0x422   :  { %v2797_v38 = vsub.f32 1.0, %v2796_v55  ;;  %v7498_v40 = vadd.f32 1.0, %v2953_v57  ;;  %v2346_v55 = vpop.f32.mrf.mxu3  ;;  %v2822_v21 = vmul.f32 %v2821_v28, %v7326_v3  ;;  %v2865_v26 = vmul.f32 3.8918573e-05, %v7492_v59 }
 0x423   :  { %v2677_v46 = vsub.f32 1.0, %v2676_v5  ;;  %v2837_v49 = vsub.f32 1.0, %v2836_v61  ;;  %v2977_v20 = vadd.f32 0.0036580483, %v2976_v60  ;;  %v2988_v2 = vadd.f32 0.014752088, %v2987_v22 }
 0x424   :  { %v2798_v10 = vmul.f32 %v4449_v4, %v2797_v38  ;;  %4452 = vrcp.f32 %v7498_v40  ;;  %v2807_v38 = vor.u32 1.1754944e-38, %v2806_v56  ;;  %v7506_v57 = vadd.f32 %v2346_v55, %v7402_v34 }
 0x425   :  { %vm2805_vm7 = vcmp.eq.f32.partialorder %v2804_v31, 8.507059e+37  ;;  %v2941_v54 = vadd.f32 0.18741608, %v2940_v16  ;;  %v2866_v3 = vadd.f32 0.001143296, %v2865_v26  ;;  %v2784_v28 = vmul.f32 %v2783_v17, %v7301_v62 }
 0x426   :  { %v2799_v6 = vadd.f32 %v4449_v4, %v2798_v10  ;;  %v2844_v10 = vand.u32 2147483647, %v7428_v53  ;;  %v7511_v61 = vmul.f32 %v2712_v1, %v7271_v11  ;;  %v2756_v56 = vmul.f32 0.5, %v7291_v12 }
 0x427   :  { %v2838_v60 = vmul.f32 %v7481_v44, %v2837_v49  ;;  %v2989_v34 = vmul.f32 %v2988_v2, %v7459_v29  ;;  %v2867_v62 = vmul.f32 %v2866_v3, %v7492_v59  ;;  %v7522_v31 = vmul.f32 0.70710677, %v7506_v57 }
 0x428   :  { %v2803_v33 = vsel %vm2802_vm6, %v4449_v4, %v2799_v6  ;;  %v7517_v6 = vmul.f32 %v7436_v39, %v2677_v46  ;;  %v2978_v4 = vmul.f32 %v2977_v20, %v7459_v29  ;;  %v2823_v1 = vadd.f32 1.1283791, %v2822_v21 }
 0x429   :  { %v2808_v5 = vsel %vm2805_vm7, %v2807_v38, %v2803_v33  ;;  %v2942_v55 = vmul.f32 %v2941_v54, %v7386_v42  ;;  %v2990_v12 = vadd.f32 0.112945676, %v2989_v34  ;;  %v7526_v49 = vadd.f32 %v2326_v48, %v7391_v43 }
 0x42a   :  { %v2809_v16 = vmul.f32 %v2808_v5, %v2784_v28  ;;  %v4453_v22 = vpop.eup %4452  ;;  %vm2840_vm8 = vweird.f32 %v7428_v53  ;;  %vm7529_vm9 = vcmp.eq.f32.partialorder %v2844_v10, 8.507059e+37  ;;  %v2846_v26 = vand.u32 2147483648, %v7428_v53 }
 0x42b   :  { %v2956_v46 = vmul.f32 %v4453_v22, %v7498_v40  ;;  %v2839_v38 = vadd.f32 %v7481_v44, %v2838_v60  ;;  %vm2841_vm10 = vweird.f32 %v7481_v44  ;;  %v2991_v42 = vmul.f32 %v2990_v12, %v7459_v29  ;;  %4196 = vst [vmem:[#allocation1 + $0x12] sm:$0xff] %v7526_v49 }
 0x42c   :  { %v2868_v21 = vadd.f32 0.014752088, %v2867_v62  ;;  %v4328_v43 = vclamps-f32 %v2809_v16, 1.0  ;;  %v2979_v2 = vadd.f32 0.05243302, %v2978_v4  ;;  %v2892_v33 = vmul.f32 %v7522_v31, %v7522_v31  ;;  %vm7550_vm12 = vmor %vm2840_vm8, %vm2841_vm10 }
 0x42d   :  { %v2957_v20 = vsub.f32 1.0, %v2956_v46  ;;  %v2943_v54 = vadd.f32 1.1283791, %v2942_v55  ;;  %v2966_v3 = vand.u32 2147483648, %v7498_v40  ;;  %v2992_v28 = vadd.f32 0.4994258, %v2991_v42 }
 0x42e   :  { %v2869_v5 = vmul.f32 %v2868_v21, %v7492_v59  ;;  %vm2961_vm11 = vweird.f32 %v4453_v22  ;;  %v2964_v48 = vand.u32 2147483647, %v7498_v40  ;;  %v7544_v60 = vmin.f32 %v2892_v33, 16.0 }
 0x42f   :  { %v2958_v10 = vmul.f32 %v4453_v22, %v2957_v20  ;;  %vm2960_vm13 = vweird.f32 %v7498_v40  ;;  %v2993_v16 = vmul.f32 %v2992_v28, %v7459_v29  ;;  %v2854_v4 = vmul.f32 2.1237322e-06, %v7492_v59 }
 0x430   :  { %v2870_v62 = vadd.f32 0.112945676, %v2869_v5  ;;  %vm2681_vm14 = vweird.f32 %v7436_v39  ;;  %v3092_v55 = vadd.f32 1.0, %v4328_v43  ;;  %v2843_v12 = vsel %vm7550_vm12, %v7481_v44, %v2839_v38  ;;  %vm2962_vm15 = vmor %vm2960_vm13, %vm2961_vm11 }
 0x431   :  { %v2959_v46 = vadd.f32 %v4453_v22, %v2958_v10  ;;  %v2980_v53 = vmul.f32 %v2979_v2, %v7459_v29  ;;  %v2847_v42 = vor.u32 1.1754944e-38, %v2846_v26  ;;  %v2967_v21 = vor.u32 1.1754944e-38, %v2966_v3 }
 0x432   :  { %v7562_v20 = vadd.f32 1.0, %v2993_v16  ;;  %v2871_v40 = vmul.f32 %v2870_v62, %v7492_v59  ;;  %v8951_v33 = vand.u32 2147483647, %v7309_v0  ;;  %vm2680_vm2 = vweird.f32 %v7405_v50 }
 0x433   :  { %v2944_v44 = vmul.f32 %v2943_v54, %v7354_v47  ;;  %v2963_v38 = vsel %vm2962_vm15, %v4453_v22, %v2959_v46  ;;  %vm2965_vm4 = vcmp.eq.f32.partialorder %v2964_v48, 8.507059e+37  ;;  %v2905_v26 = vmul.f32 3.8918573e-05, %v7544_v60  ;;  %vm7623_vm6 = vmor %vm2680_vm2, %vm2681_vm14 }
 0x434   :  { %vm7567_vm1 = vcmp.eq.f32.partialorder %v8951_v33, 8.507059e+37  ;;  %v2848_v43 = vsel %vm7529_vm9, %v2847_v42, %v2843_v12  ;;  %v2968_v2 = vsel %vm2965_vm4, %v2967_v21, %v2963_v38  ;;  %4454 = vrcp.f32 %v7562_v20 }
 0x435   :  { %v2855_v3 = vadd.f32 0.00028619796, %v2854_v4  ;;  %v3100_v0 = vmul.f32 %v3092_v55, %v2756_v56  ;;  %v2969_v5 = vmul.f32 %v2968_v2, %v2944_v44  ;;  %v2981_v10 = vadd.f32 0.18741608, %v2980_v53 }
 0x436   :  { %v2872_v34 = vadd.f32 0.4994258, %v2871_v40  ;;  %v2824_v16 = vmul.f32 %v2823_v1, %v7307_v15  ;;  %v2354_v47 = vmul.f32 %v7442_v13, %v6525_v23  ;;  %v2906_v22 = vadd.f32 0.001143296, %v2905_v26  ;;  %v2349_v15 = vpop.f32.mrf.mxu3 }
 0x437   :  { %v2358_v54 = vmul.f32 %v7526_v49, %v8914_v51  ;;  %v4332_v48 = vclamps-f32 %v2969_v5, 1.0  ;;  %v2679_v62 = vadd.f32 %v7436_v39, %v7517_v6  ;;  %v8954_v56 = vand.u32 2147483647, %v7405_v50 }
 0x438   :  { %v2873_v17 = vmul.f32 %v2872_v34, %v7492_v59  ;;  %v7592_v1 = vadd.f32 1.0, %v7511_v61  ;;  %v2849_v55 = vmul.f32 %v2848_v43, %v2824_v16  ;;  %v2856_v12 = vmul.f32 %v2855_v3, %v7492_v59 }
 0x439   :  { %vm7587_vm5 = vcmp.eq.f32.partialorder %v8954_v56, 8.507059e+37  ;;  %v2907_v46 = vmul.f32 %v2906_v22, %v7544_v60  ;;  %v7596_v53 = vadd.f32 %v2358_v54, %v2354_v47  ;;  %v3108_v42 = vadd.f32 1.0, %v3100_v0 }
 0x43a   :  { %v2760_v6 = vmul.f32 0.5, %v7337_v14  ;;  %v3096_v21 = vadd.f32 1.0, %v4332_v48  ;;  %v2982_v40 = vmul.f32 %v2981_v10, %v7459_v29  ;;  %v4455_v33 = vpop.eup %4454  ;;  %v7600_v44 = vadd.f32 1.0, %v2873_v17 }
 0x43b   :  { %v2908_v38 = vadd.f32 0.014752088, %v2907_v46  ;;  %v7603_v61 = vmul.f32 0.70710677, %v7526_v49  ;;  %v7606_v26 = vadd.f32 %v2349_v15, %v7439_v8  ;;  %v2996_v2 = vmul.f32 %v4455_v33, %v7562_v20 }
 0x43c   :  { %v3104_v43 = vmul.f32 %v3096_v21, %v2760_v6  ;;  %v8957_v14 = vsel %vm7469_vm3, %v7371_v45, %v7448_v25  ;;  %v2702_v3 = vmul.f32 %v7473_v30, %v7271_v11  ;;  %v4329_v19 = vclamps-f32 %v2849_v55, 1.0 }
 0x43d   :  { %v7617_v29 = vsel %vm7567_vm1, %v7423_v37, %v8957_v14  ;;  %v2857_v0 = vadd.f32 0.0036580483, %v2856_v12  ;;  %v2683_v45 = vsel %vm7623_vm6, %v7436_v39, %v2679_v62  ;;  %4456 = vrcp.f32 %v7592_v1  ;;  %4197 = vst [vmem:[#allocation1 + $0x1b] sm:$0xff] %v7606_v26 }
 0x43e   :  { %v3112_v37 = vadd.f32 1.0, %v3104_v43  ;;  %v2983_v25 = vadd.f32 1.1283791, %v2982_v40  ;;  %v2997_v50 = vsub.f32 1.0, %v2996_v2  ;;  %v2909_v28 = vmul.f32 %v2908_v38, %v7544_v60 }
 0x43f   :  { %v3116_v5 = vmul.f32 %v3108_v42, %v7283_v27  ;;  %v3006_v10 = vand.u32 2147483648, %v7562_v20  ;;  %4458 = vrcp.f32 %v7600_v44  ;;  %v3012_v11 = vmul.f32 %v7603_v61, %v7603_v61 }
 0x440   :  { %v3120_v39 = vmul.f32 %v3112_v37, %v7314_v35  ;;  %v2998_v30 = vmul.f32 %v4455_v33, %v2997_v50  ;;  %vm3001_vm3 = vweird.f32 %v4455_v33  ;;  %v3004_v34 = vand.u32 2147483647, %v7562_v20 }
 0x441   :  { %v2757_v16 = vmul.f32 0.5, %v7294_v18  ;;  %v2910_v47 = vadd.f32 0.112945676, %v2909_v28  ;;  %v2688_v22 = vsel %vm7587_vm5, %v7456_v32, %v2683_v45  ;;  %v7646_v54 = vmin.f32 %v3012_v11, 16.0 }
 0x442   :  { %v3124_v48 = vadd.f32 %v3120_v39, %v3116_v5  ;;  %v2999_v17 = vadd.f32 %v4455_v33, %v2998_v30  ;;  %vm3000_vm7 = vweird.f32 %v7562_v20  ;;  %v2858_v62 = vmul.f32 %v2857_v0, %v7492_v59 }
 0x443   :  { %v7650_v56 = vpop.eup %4456  ;;  %v3093_v15 = vadd.f32 1.0, %v4329_v19  ;;  %vm3002_vm8 = vmor %vm3000_vm7, %vm3001_vm3  ;;  %v3007_v55 = vor.u32 1.1754944e-38, %v3006_v10  ;;  %v2894_v18 = vmul.f32 2.1237322e-06, %v7544_v60  ;;  %v3014_v12 = vmul.f32 2.1237322e-06, %v7646_v54 }
 0x444   :  { %v3125_v46 = vrot.slane %v3124_v48, 4  ;;  %v2984_v32 = vmul.f32 %v2983_v25, %v7416_v9  ;;  %v3003_v4 = vsel %vm3002_vm8, %v4455_v33, %v2999_v17  ;;  %vm3005_vm9 = vcmp.eq.f32.partialorder %v3004_v34, 8.507059e+37 }
 0x445   :  { %v7655_v42 = vpop.eup %4458  ;;  %v3008_v6 = vsel %vm3005_vm9, %v3007_v55, %v3003_v4  ;;  %v2911_v20 = vmul.f32 %v2910_v47, %v7544_v60  ;;  %v3015_v21 = vadd.f32 0.00028619796, %v3014_v12  ;;  %v2359_v40 = vmul.f32 %v7606_v26, %v8931_v63 }
 0x446   :  { %v3126_v38 = vadd.f32 %v3125_v46, %v3124_v48  ;;  %v3009_v43 = vmul.f32 %v3008_v6, %v2984_v32  ;;  %v2355_v2 = vmul.f32 %v7506_v57, %v6527_v36  ;;  %v2703_v14 = vadd.f32 1.1283791, %v2702_v3 }
 0x447   :  { %v3101_v8 = vmul.f32 %v3093_v15, %v2757_v16  ;;  %v2859_v19 = vadd.f32 0.05243302, %v2858_v62  ;;  %v2895_v9 = vadd.f32 0.00028619796, %v2894_v18  ;;  %v3025_v33 = vmul.f32 3.8918573e-05, %v7646_v54 }
 0x448   :  { %v3127_v0 = vrot.slane %v3126_v38, 2  ;;  %v4333_v45 = vclamps-f32 %v3009_v43, 1.0  ;;  %v2876_v37 = vmul.f32 %v7655_v42, %v7600_v44  ;;  %v2689_v25 = vmul.f32 %v2688_v22, %v7452_v58 }
 0x449   :  { %v2912_v50 = vadd.f32 0.4994258, %v2911_v20  ;;  %v3016_v28 = vmul.f32 %v3015_v21, %v7646_v54  ;;  %v3026_v5 = vadd.f32 0.001143296, %v3025_v33  ;;  %v7667_v10 = vadd.f32 %v2359_v40, %v2355_v2 }
 0x44a   :  { %v3128_v11 = vadd.f32 %v3127_v0, %v3126_v38  ;;  %v2761_v3 = vmul.f32 0.5, %v7340_v24  ;;  %v3097_v39 = vadd.f32 1.0, %v4333_v45  ;;  %v2716_v30 = vmul.f32 %v7650_v56, %v7592_v1 }
 0x44b   :  { %v3109_v34 = vadd.f32 1.0, %v3101_v8  ;;  %v2860_v16 = vmul.f32 %v2859_v19, %v7492_v59  ;;  %v2896_v47 = vmul.f32 %v2895_v9, %v7544_v60  ;;  %v7675_v58 = vmul.f32 %v2703_v14, %v7249_v52 }
 0x44c   :  { %v3129_v22 = vrot.slane %v3128_v11, 1  ;;  %v3105_v48 = vmul.f32 %v3097_v39, %v2761_v3  ;;  %v3027_v17 = vmul.f32 %v3026_v5, %v7646_v54  ;;  %v2724_v62 = vand.u32 2147483647, %v7592_v1 }
 0x44d   :  { %v2877_v15 = vsub.f32 1.0, %v2876_v37  ;;  %v2913_v24 = vmul.f32 %v2912_v50, %v7544_v60  ;;  %v4326_v55 = vclamps-f32 %v2689_v25, 1.0  ;;  %v3017_v18 = vadd.f32 0.0036580483, %v3016_v28 }
 0x44e   :  { %v3130_v12 = vadd.f32 %v3129_v22, %v3128_v11  ;;  %v3113_v46 = vadd.f32 1.0, %v3105_v48  ;;  %v3028_v32 = vadd.f32 0.014752088, %v3027_v17  ;;  %v2717_v4 = vsub.f32 1.0, %v2716_v30 }
 0x44f   :  { %v3117_v6 = vmul.f32 %v3109_v34, %v7286_v7  ;;  %v2861_v20 = vadd.f32 0.18741608, %v2860_v16  ;;  %v2897_v52 = vadd.f32 0.0036580483, %v2896_v47  ;;  %v7682_v21 = vmul.f32 0.70710677, %v7606_v26 }
 0x450   :  { %v3152_v40 = vmul.f32 %v3130_v12, %v7283_v27  ;;  %v3156_v38 = vmul.f32 %v3130_v12, %v7314_v35  ;;  %v3121_v43 = vmul.f32 %v3113_v46, %v7381_v41  ;;  %v3029_v2 = vmul.f32 %v3028_v32, %v7646_v54 }
 0x451   :  { %v2878_v14 = vmul.f32 %v7655_v42, %v2877_v15  ;;  %v7689_v8 = vadd.f32 1.0, %v2913_v24  ;;  %v2738_v19 = vadd.f32 1.0, %v4326_v55  ;;  %v3018_v9 = vmul.f32 %v3017_v18, %v7646_v54 }
 0x452   :  { %v7692_v33 = vmul.f32 0.17677669, %v3152_v40  ;;  %v7694_v0 = vmul.f32 0.17677669, %v3156_v38  ;;  %v3131_v45 = vadd.f32 %v3121_v43, %v3117_v6  ;;  %v3030_v37 = vadd.f32 0.112945676, %v3029_v2 }
 0x453   :  { %vm2721_vm10 = vweird.f32 %v7650_v56  ;;  %v2862_v27 = vmul.f32 %v2861_v20, %v7492_v59  ;;  %v2886_v35 = vand.u32 2147483648, %v7600_v44  ;;  %v2898_v25 = vmul.f32 %v2897_v52, %v7544_v60  ;;  %v8962_v43 = vld [vmem:[#allocation21_spill] sm:$0xff] }
 0x454   :  { %v2718_v50 = vmul.f32 %v7650_v56, %v2717_v4  ;;  %v3168_v28 = vmax.f32 %v7692_v33, %v7694_v0  ;;  %v3132_v5 = vrot.slane %v3131_v45, 4  ;;  %v3031_v11 = vmul.f32 %v3030_v37, %v7646_v54 }
 0x455   :  { %vm2720_vm11 = vweird.f32 %v7592_v1  ;;  %v3052_v3 = vmul.f32 %v7682_v21, %v7682_v21  ;;  %v2879_v39 = vadd.f32 %v7655_v42, %v2878_v14  ;;  %vm2881_vm12 = vweird.f32 %v7655_v42 }
 0x456   :  { %4460 = vrcp.f32 %v7689_v8  ;;  %v3019_v59 = vadd.f32 0.05243302, %v3018_v9  ;;  %v3169_v30 = vrot.slane %v3168_v28, 4  ;;  %v3133_v34 = vadd.f32 %v3132_v5, %v3131_v45  ;;  %vm7742_vm1 = vmor %vm2720_vm11, %vm2721_vm10 }
 0x457   :  { %v3032_v16 = vadd.f32 0.4994258, %v3031_v11  ;;  %v7710_v47 = vmin.f32 %v3052_v3, 16.0  ;;  %v2863_v22 = vadd.f32 1.1283791, %v2862_v27  ;;  %vm2880_vm13 = vweird.f32 %v7600_v44  ;;  %v8963_v27 = vld [vmem:[#allocation28_spill] sm:$0xff] }
 0x458   :  { %v2884_v48 = vand.u32 2147483647, %v7600_v44  ;;  %v7715_v17 = vadd.f32 %v7650_v56, %v2718_v50  ;;  %v3170_v15 = vmax.f32 %v3168_v28, %v3169_v30  ;;  %v3134_v24 = vrot.slane %v3133_v34, 2  ;;  %vm7717_vm14 = vmor %vm2880_vm13, %vm2881_vm12  ;;  %v8964_v50 = vld [vmem:[#allocation20_spill] sm:$0xff] }
 0x459   :  { %v3033_v18 = vmul.f32 %v3032_v16, %v7646_v54  ;;  %v3054_v12 = vmul.f32 2.1237322e-06, %v7710_v47  ;;  %v2883_v46 = vsel %vm7717_vm14, %v7655_v42, %v2879_v39  ;;  %v2899_v32 = vadd.f32 0.05243302, %v2898_v25 }
 0x45a   :  { %v3020_v44 = vmul.f32 %v3019_v59, %v7646_v54  ;;  %v3065_v4 = vmul.f32 3.8918573e-05, %v7710_v47  ;;  %v3171_v6 = vrot.slane %v3170_v15, 2  ;;  %v3135_v20 = vadd.f32 %v3134_v24, %v3133_v34 }
 0x45b   :  { %v2887_v52 = vor.u32 1.1754944e-38, %v2886_v35  ;;  %v7728_v40 = vadd.f32 1.0, %v3033_v18  ;;  %v2361_v2 = vrot.slane %v8962_v43, 4  ;;  %vm2885_vm15 = vcmp.eq.f32.partialorder %v2884_v48, 8.507059e+37 }
 0x45c   :  { %v7730_v38 = vpop.eup %4460  ;;  %v3055_v14 = vadd.f32 0.00028619796, %v3054_v12  ;;  %v3066_v9 = vadd.f32 0.001143296, %v3065_v4  ;;  %v3172_v45 = vmax.f32 %v3170_v15, %v3171_v6  ;;  %v3136_v37 = vrot.slane %v3135_v20, 1 }
 0x45d   :  { %v2888_v42 = vsel %vm2885_vm15, %v2887_v52, %v2883_v46  ;;  %4462 = vrcp.f32 %v7728_v40  ;;  %v2864_v25 = vmul.f32 %v2863_v22, %v8963_v27  ;;  %v7736_v28 = vmul.f32 %v2738_v19, %v8964_v50 }
 0x45e   :  { %v3021_v35 = vadd.f32 0.18741608, %v3020_v44  ;;  %v2726_v11 = vand.u32 2147483648, %v7592_v1  ;;  %v3173_v3 = vrot.slane %v3172_v45, 1  ;;  %v3137_v39 = vadd.f32 %v3136_v37, %v3135_v20 }
 0x45f   :  { %v2723_v59 = vsel %vm7742_vm1, %v7650_v56, %v7715_v17  ;;  %v3056_v19 = vmul.f32 %v3055_v14, %v7710_v47  ;;  %v2889_v30 = vmul.f32 %v2888_v42, %v2864_v25  ;;  %v2900_v34 = vmul.f32 %v2899_v32, %v7544_v60 }
 0x460   :  { %v2916_v16 = vmul.f32 %v7730_v38, %v7689_v8  ;;  %v3067_v22 = vmul.f32 %v3066_v9, %v7710_v47  ;;  %v7757_v48 = vadd.f32 %v2361_v2, %v8962_v43  ;;  %v3174_v15 = vmax.f32 %v3172_v45, %v3173_v3 }
 0x461   :  { %v3153_v24 = vmul.f32 %v3137_v39, %v7286_v7  ;;  %v3157_v55 = vmul.f32 %v3137_v39, %v7381_v41  ;;  %v3022_v18 = vmul.f32 %v3021_v35, %v7646_v54  ;;  %v3057_v12 = vadd.f32 0.0036580483, %v3056_v19  ;;  %v4199_v41 = vld [vmem:[#allocation1 + $0x7] ss:$9 sm:$0xff] }
 0x462   :  { %v3068_v46 = vadd.f32 0.014752088, %v3067_v22  ;;  %v4201_v44 = vlaneseq  ;;  %v3196_v32 = vsub.f32 %v7692_v33, %v3174_v15  ;;  %v3200_v6 = vsub.f32 %v7694_v0, %v3174_v15 }
 0x463   :  { %v4463_v4 = vpop.eup %4462  ;;  %v7764_v20 = vmul.f32 0.17677669, %v3153_v24  ;;  %v7766_v52 = vmul.f32 0.17677669, %v3157_v55  ;;  %v4330_v43 = vclamps-f32 %v2889_v30, 1.0  ;;  %v2917_v14 = vsub.f32 1.0, %v2916_v16 }
 0x464   :  { %v2901_v2 = vadd.f32 0.18741608, %v2900_v34  ;;  %v3036_v7 = vmul.f32 %v4463_v4, %v7728_v40  ;;  %v3204_v9 = vmul.f32 1.442695, %v3196_v32  ;;  %v3212_v54 = vmul.f32 1.442695, %v3200_v6 }
 0x465   :  { %v3175_v45 = vmax.f32 %v7764_v20, %v7766_v52  ;;  %v3069_v37 = vmul.f32 %v3068_v46, %v7710_v47  ;;  %v3023_v33 = vadd.f32 1.1283791, %v3022_v18  ;;  %v3046_v0 = vand.u32 2147483648, %v7728_v40 }
 0x466   :  { %v3037_v42 = vsub.f32 1.0, %v3036_v7  ;;  %vm4203_vm2 = vcmp.lt.s32.totalorder %v4201_v44, 512  ;;  %4464 = vpow2.f32 %v3204_v9  ;;  %v3058_v25 = vmul.f32 %v3057_v12, %v7710_v47 }
 0x467   :  { %v3176_v27 = vrot.slane %v3175_v45, 4  ;;  %v3070_v50 = vadd.f32 0.112945676, %v3069_v37  ;;  %4205 = vst.msk [vmem:[#allocation4] sm:$0xf] %vm4203_vm2, %v4199_v41  ;;  %4466 = vpow2.f32 %v3212_v54  ;;  %vm3041_vm4 = vweird.f32 %v4463_v4 }
 0x468   :  { %v3038_v35 = vmul.f32 %v4463_v4, %v3037_v42  ;;  %v3044_v3 = vand.u32 2147483647, %v7728_v40  ;;  %v2758_v19 = vmul.f32 0.5, %v7442_v13  ;;  %v2918_v30 = vmul.f32 %v7730_v38, %v2917_v14  ;;  %4229 = dma.vmem_to_hbm [thread:$0]  %s4225_s8, 64, %s4227_s29, [#allocation5]  }
 0x469   :  { %v3177_v39 = vmax.f32 %v3175_v45, %v3176_v27  ;;  %v3071_v34 = vmul.f32 %v3070_v50, %v7710_v47  ;;  %v3094_v16 = vadd.f32 1.0, %v4330_v43  ;;  %v2902_v22 = vmul.f32 %v2901_v2, %v7544_v60 }
 0x46a   :  { %v3039_v15 = vadd.f32 %v4463_v4, %v3038_v35  ;;  %vm3040_vm5 = vweird.f32 %v7728_v40  ;;  %v3047_v55 = vor.u32 1.1754944e-38, %v3046_v0  ;;  %v3059_v18 = vadd.f32 0.05243302, %v3058_v25 }
 0x46b   :  { %v3178_v24 = vrot.slane %v3177_v39, 2  ;;  %vm3042_vm6 = vmor %vm3040_vm5, %vm3041_vm4  ;;  %v3072_v12 = vadd.f32 0.4994258, %v3071_v34  ;;  %vm2921_vm3 = vweird.f32 %v7730_v38  ;;  %v3024_v46 = vmul.f32 %v3023_v33, %v7603_v61 }
 0x46c   :  { %v3043_v13 = vsel %vm3042_vm6, %v4463_v4, %v3039_v15  ;;  %vm3045_vm7 = vcmp.eq.f32.partialorder %v3044_v3, 8.507059e+37  ;;  %v7782_v44 = vpop.eup %4464  ;;  %v2919_v6 = vadd.f32 %v7730_v38, %v2918_v30  ;;  %vm7787_vm8 = vcmp.eq.f32.partialorder %v2724_v62, 8.507059e+37 }
 0x46d   :  { %v3179_v32 = vmax.f32 %v3177_v39, %v3178_v24  ;;  %v3048_v60 = vsel %vm3045_vm7, %v3047_v55, %v3043_v13  ;;  %v3073_v43 = vmul.f32 %v3072_v12, %v7710_v47  ;;  %v7792_v2 = vpop.eup %4466  ;;  %vm2920_vm9 = vweird.f32 %v7689_v8 }
 0x46e   :  { %v2924_v61 = vand.u32 2147483647, %v7689_v8  ;;  %v2926_v4 = vand.u32 2147483648, %v7689_v8  ;;  %v3049_v14 = vmul.f32 %v3048_v60, %v3024_v46  ;;  %v3220_v7 = vadd.f32 %v7792_v2, %v7782_v44  ;;  %vm7805_vm10 = vmor %vm2920_vm9, %vm2921_vm3  ;;  %v8973_v60 = vld [vmem:[#allocation23_spill] sm:$0xff] }
 0x46f   :  { %v3180_v41 = vrot.slane %v3179_v32, 1  ;;  %v3060_v62 = vmul.f32 %v3059_v18, %v7710_v47  ;;  %v7800_v9 = vadd.f32 1.0, %v3073_v43  ;;  %v2363_v54 = vrot.slane %v7757_v48, 2 }
 0x470   :  { %v3102_v45 = vmul.f32 %v3094_v16, %v2758_v19  ;;  %v2903_v37 = vadd.f32 1.1283791, %v2902_v22  ;;  %v4334_v8 = vclamps-f32 %v3049_v14, 1.0  ;;  %v3221_v42 = vrot.slane %v3220_v7, 4 }
 0x471   :  { %v3181_v0 = vmax.f32 %v3179_v32, %v3180_v41  ;;  %v2923_v27 = vsel %vm7805_vm10, %v7730_v38, %v2919_v6  ;;  %4468 = vrcp.f32 %v7800_v9  ;;  %vm2925_vm11 = vcmp.eq.f32.partialorder %v2924_v61, 8.507059e+37  ;;  %v8972_v6 = vld [vmem:[#allocation24_spill] sm:$0xff] }
 0x472   :  { %v2927_v25 = vor.u32 1.1754944e-38, %v2926_v4  ;;  %v2762_v50 = vmul.f32 0.5, %v7526_v49  ;;  %v3098_v35 = vadd.f32 1.0, %v4334_v8  ;;  %v3222_v3 = vadd.f32 %v3221_v42, %v3220_v7 }
 0x473   :  { %v3197_v39 = vsub.f32 %v7764_v20, %v3181_v0  ;;  %v3201_v19 = vsub.f32 %v7766_v52, %v3181_v0  ;;  %v3061_v30 = vadd.f32 0.18741608, %v3060_v62  ;;  %v3110_v34 = vadd.f32 1.0, %v3102_v45 }
 0x474   :  { %v2928_v16 = vsel %vm2925_vm11, %v2927_v25, %v2923_v27  ;;  %v3106_v22 = vmul.f32 %v3098_v35, %v2762_v50  ;;  %v2727_v15 = vor.u32 1.1754944e-38, %v2726_v11  ;;  %v3223_v38 = vrot.slane %v3222_v3, 2 }
 0x475   :  { %v3206_v24 = vmul.f32 1.442695, %v3197_v39  ;;  %v3214_v55 = vmul.f32 1.442695, %v3201_v19  ;;  %v2904_v18 = vmul.f32 %v2903_v37, %v7522_v31  ;;  %v2364_v49 = vadd.f32 %v2363_v54, %v7757_v48  ;;  %v8971_v48 = vld [vmem:[#allocation30_spill] sm:$0xff] }
 0x476   :  { %v7821_v12 = vadd.f32 1.0, %v7736_v28  ;;  %v3114_v20 = vadd.f32 1.0, %v3106_v22  ;;  %v2728_v1 = vsel %vm7787_vm8, %v2727_v15, %v2723_v59  ;;  %v3224_v52 = vadd.f32 %v3223_v38, %v3222_v3 }
 0x477   :  { %v4469_v11 = vpop.eup %4468  ;;  %4470 = vpow2.f32 %v3206_v24  ;;  %v2929_v46 = vmul.f32 %v2928_v16, %v2904_v18  ;;  %v3062_v31 = vmul.f32 %v3061_v30, %v7710_v47  ;;  %v3118_v13 = vmul.f32 %v3110_v34, %v8971_v48 }
 0x478   :  { %4472 = vpow2.f32 %v3214_v55  ;;  %v3122_v28 = vmul.f32 %v3114_v20, %v7821_v12  ;;  %v3076_v32 = vmul.f32 %v4469_v11, %v7800_v9  ;;  %v3225_v5 = vrot.slane %v3224_v52, 1  ;;  %v8974_v55 = vld [vmem:[#allocation15_spill] sm:$0xff] }
 0x479   :  { %v2569_v56 = vmul.f32 %v7617_v29, %v8972_v6  ;;  %v2729_v17 = vmul.f32 %v2728_v1, %v7675_v58  ;;  %v2365_v59 = vrot.slane %v2364_v49, 1  ;;  %v2368_v40 = vrot.slane %v8973_v60, 4 }
 0x47a   :  { %v3138_v43 = vadd.f32 %v3122_v28, %v3118_v13  ;;  %v3077_v61 = vsub.f32 1.0, %v3076_v32  ;;  %v3226_v4 = vadd.f32 %v3225_v5, %v3224_v52  ;;  %v4331_v47 = vclamps-f32 %v2929_v46, 1.0 }
 0x47b   :  { %v3063_v14 = vadd.f32 1.1283791, %v3062_v31  ;;  %v3086_v7 = vand.u32 2147483648, %v7800_v9  ;;  %vm3081_vm12 = vweird.f32 %v4469_v11  ;;  %v3084_v54 = vand.u32 2147483647, %v7800_v9 }
 0x47c   :  { %v3139_v41 = vrot.slane %v3138_v43, 4  ;;  %v3078_v62 = vmul.f32 %v4469_v11, %v3077_v61  ;;  %4474 = vrcp.f32 %v3226_v4  ;;  %v4323_v29 = vclamps-f32 %v2569_v56, 1.0 }
 0x47d   :  { %v7840_v45 = vpop.eup %4470  ;;  %v4327_v58 = vclamps-f32 %v2729_v17, 1.0  ;;  %v2369_v33 = vadd.f32 %v2368_v40, %v8973_v60  ;;  %vm3080_vm13 = vweird.f32 %v7800_v9  ;;  %v7846_v0 = vadd.f32 %v2365_v59, %v2364_v49 }
 0x47e   :  { %v7842_v37 = vpop.eup %4472  ;;  %v3140_v8 = vadd.f32 %v3139_v41, %v3138_v43  ;;  %v3079_v42 = vadd.f32 %v4469_v11, %v3078_v62  ;;  %v3095_v25 = vadd.f32 1.0, %v4331_v47  ;;  %vm3082_vm14 = vmor %vm3080_vm13, %vm3081_vm12  ;;  %v3087_v50 = vor.u32 1.1754944e-38, %v3086_v7 }
 0x47f   :  { %v3227_v27 = vadd.f32 %v7842_v37, %v7840_v45  ;;  %v3064_v3 = vmul.f32 %v3063_v14, %v7682_v21  ;;  %vm3085_vm15 = vcmp.eq.f32.partialorder %v3084_v54, 8.507059e+37  ;;  %v2735_v30 = vadd.f32 1.0, %v4323_v29 }
 0x480   :  { %v3141_v35 = vrot.slane %v3140_v8, 2  ;;  %v3083_v39 = vsel %vm3082_vm14, %v4469_v11, %v3079_v42  ;;  %v2739_v34 = vadd.f32 1.0, %v4327_v58  ;;  %v2399_v22 = vmul.f32 0.5, %v6527_v36 }
 0x481   :  { %v3228_v19 = vrot.slane %v3227_v27, 4  ;;  %v3088_v16 = vsel %vm3085_vm15, %v3087_v50, %v3083_v39  ;;  %v2759_v9 = vmul.f32 0.5, %v7506_v57  ;;  %v2388_v18 = vmul.f32 %v7846_v0, %v8974_v55  ;;  %v8975_v50 = vld [vmem:[#allocation10_spill] sm:$0xff] }
 0x482   :  { %v3142_v15 = vadd.f32 %v3141_v35, %v3140_v8  ;;  %v3089_v38 = vmul.f32 %v3088_v16, %v3064_v3  ;;  %v7853_v24 = vpop.eup %4474  ;;  %v2370_v49 = vrot.slane %v2369_v33, 2  ;;  %v2403_v21 = vmul.f32 0.5, %v8931_v63 }
 0x483   :  { %v3229_v20 = vadd.f32 %v3228_v19, %v3227_v27  ;;  %v3252_v1 = vmul.f32 %v7853_v24, %v7782_v44  ;;  %v3103_v11 = vmul.f32 %v3095_v25, %v2759_v9  ;;  %v2743_v13 = vmul.f32 %v2735_v30, %v2399_v22 }
 0x484   :  { %v3143_v52 = vrot.slane %v3142_v15, 1  ;;  %v4335_v46 = vclamps-f32 %v3089_v38, 1.0  ;;  %v2747_v57 = vmul.f32 %v2739_v34, %v2403_v21  ;;  %v2763_v5 = vmul.f32 0.5, %v7606_v26 }
 0x485   :  { %v3230_v31 = vrot.slane %v3229_v20, 2  ;;  %v7860_v28 = vmul.f32 %v3252_v1, %v2388_v18  ;;  %v2371_v56 = vadd.f32 %v2370_v49, %v2369_v33  ;;  %v3111_v59 = vadd.f32 1.0, %v3103_v11 }
 0x486   :  { %v3144_v32 = vadd.f32 %v3143_v52, %v3142_v15  ;;  %v3099_v6 = vadd.f32 1.0, %v4335_v46  ;;  %v2751_v61 = vadd.f32 1.0, %v2743_v13  ;;  %v2755_v14 = vadd.f32 1.0, %v2747_v57 }
 0x487   :  { %v3231_v17 = vadd.f32 %v3230_v31, %v3229_v20  ;;  %v2372_v62 = vrot.slane %v2371_v56, 1  ;;  %v2375_v57 = vrot.slane %v7596_v53, 4 }
 0x488   :  { %v3154_v60 = vmul.f32 %v3144_v32, %v8971_v48  ;;  %v3158_v40 = vmul.f32 %v3144_v32, %v7821_v12  ;;  %v3107_v44 = vmul.f32 %v3099_v6, %v2763_v5  ;;  %v3119_v54 = vmul.f32 %v3111_v59, %v2751_v61  ;;  %v8977_v32 = vld [vmem:[#allocation29_spill] sm:$0xff] }
 0x489   :  { %v3232_v43 = vrot.slane %v3231_v17, 1  ;;  %v2373_v8 = vadd.f32 %v2372_v62, %v2371_v56  ;;  %v2392_v5 = vmul.f32 %v7846_v0, %v8977_v32  ;;  %v3256_v6 = vmul.f32 %v7853_v24, %v7792_v2 }
 0x48a   :  { %v3162_v4 = vmul.f32 0.17677669, %v3154_v60  ;;  %v3166_v47 = vmul.f32 0.17677669, %v3158_v40  ;;  %v3115_v7 = vadd.f32 1.0, %v3107_v44  ;;  %v2376_v0 = vadd.f32 %v2375_v57, %v7596_v53 }
 0x48b   :  { %v3233_v41 = vadd.f32 %v3232_v43, %v3231_v17  ;;  %v2389_v35 = vmul.f32 %v2373_v8, %v8975_v50  ;;  %v3264_v44 = vmul.f32 %v3256_v6, %v2392_v5  ;;  %v7886_v2 = vadd.f32 %v7860_v28, %v8974_v55  ;;  %v7995_v5 = vld [vmem:[%s8626_s2 + $0xd0] sm:$0xff] }
 0x48c   :  { %v3182_v29 = vmax.f32 %v3162_v4, %v3166_v47  ;;  %v3123_v26 = vmul.f32 %v3115_v7, %v2755_v14 }
 0x48d   :  { %4476 = vrcp.f32 %v3233_v41 }
 0x48e   :  { %v3183_v58 = vrot.slane %v3182_v29, 4  ;;  %v3145_v33 = vadd.f32 %v3123_v26, %v3119_v54  ;;  %v2377_v54 = vrot.slane %v2376_v0, 2 }
 0x490   :  { %v3184_v42 = vmax.f32 %v3182_v29, %v3183_v58  ;;  %v3146_v48 = vrot.slane %v3145_v33, 4 }
 0x492   :  { %v3185_v27 = vrot.slane %v3184_v42, 2  ;;  %v3147_v12 = vadd.f32 %v3146_v48, %v3145_v33 }
 0x493   :  { %v4477_v25 = vpop.eup %4476 }
 0x494   :  { %v3253_v3 = vmul.f32 %v4477_v25, %v7840_v45  ;;  %v3186_v39 = vmax.f32 %v3184_v42, %v3185_v27  ;;  %v3148_v19 = vrot.slane %v3147_v12, 2  ;;  %v8976_v45 = vld [vmem:[#allocation12_spill] sm:$0xff]  ;;  %v3257_v56 = vmul.f32 %v4477_v25, %v7842_v37 }
 0x495   :  { %v2393_v31 = vmul.f32 %v2373_v8, %v8976_v45  ;;  %v2378_v27 = vadd.f32 %v2377_v54, %v2376_v0  ;;  %v8043_v54 = vld [vmem:[%s8626_s2 + $0xb8] sm:$0xff] }
 0x496   :  { %v3261_v30 = vmul.f32 %v3253_v3, %v2389_v35  ;;  %v3187_v34 = vrot.slane %v3186_v39, 1  ;;  %v3149_v16 = vadd.f32 %v3148_v19, %v3147_v12  ;;  %v7913_v35 = vld [vmem:[%s8626_s2 + $0x78] sm:$0xff] }
 0x497   :  { %v3265_v43 = vmul.f32 %v3257_v56, %v2393_v31  ;;  %v7919_v3 = vld [vmem:[%s8626_s2 + $0xf8] sm:$0xff] }
 0x498   :  { %v3188_v22 = vmax.f32 %v3186_v39, %v3187_v34  ;;  %v3150_v9 = vrot.slane %v3149_v16, 1  ;;  %v7879_v40 = vadd.f32 %v3261_v30, %v8975_v50  ;;  %v7927_v34 = vld [vmem:[%s8626_s2 + $0x70] sm:$0xff] }
 0x499   :  { %v7896_v7 = vadd.f32 %v3265_v43, %v8976_v45  ;;  %v8005_v43 = vld [vmem:[%s8626_s2 + $0x48] sm:$0xff] }
 0x49a   :  { %v3198_v15 = vsub.f32 %v3162_v4, %v3188_v22  ;;  %v3202_v38 = vsub.f32 %v3166_v47, %v3188_v22  ;;  %v3151_v18 = vadd.f32 %v3150_v9, %v3149_v16  ;;  %v7890_v47 = vpack.c.bf16 %v7879_v40, %v7886_v2  ;;  %v7933_v16 = vld [vmem:[%s8626_s2 + $0xf0] sm:$0xff]  ;;  %v7939_v9 = vld [vmem:[%s8626_s2 + $0x68] sm:$0xff] }
 0x49b   :  { %v2379_v22 = vrot.slane %v2378_v27, 1 }
 0x49c   :  { %v3208_v49 = vmul.f32 1.442695, %v3198_v15  ;;  %v3216_v20 = vmul.f32 1.442695, %v3202_v38  ;;  %v3155_v21 = vmul.f32 %v3151_v18, %v2751_v61  ;;  %v3159_v1 = vmul.f32 %v3151_v18, %v2755_v14  ;;  %v7945_v15 = vld [vmem:[%s8626_s2 + $0xe8] sm:$0xff] }
 0x49d   :  { %v7893_v14 = vadd.f32 %v3264_v44, %v8977_v32  ;;  %v3280_v53 = vunpack.c.l.bf16 %v7890_v47  ;;  %v3281_v55 = vunpack.c.h.bf16 %v7890_v47  ;;  %v2382_v38 = vrot.slane %v7667_v10, 4  ;;  %v7989_v32 = vld [vmem:[%s8626_s2 + $0x50] sm:$0xff] }
 0x49e   :  { %4478 = vpow2.f32 %v3208_v49  ;;  %v3163_v11 = vmul.f32 0.17677669, %v3155_v21  ;;  %v3167_v52 = vmul.f32 0.17677669, %v3159_v1  ;;  %v7964_v21 = vld [vmem:[%s8626_s2 + $0xe0] sm:$0xff]  ;;  %v2380_v1 = vadd.f32 %v2379_v22, %v2378_v27  ;;  %v8049_v47 = vld [vmem:[%s8626_s2 + $0x30] sm:$0xff] }
 0x49f   :  { %4480 = vpow2.f32 %v3216_v20  ;;  %v3288_v26 = vsub.f32 %v7886_v2, %v3280_v53  ;;  %v3289_v58 = vsub.f32 %v7879_v40, %v3281_v55  ;;  %v7908_v33 = vpack.c.bf16 %v7896_v7, %v7893_v14  ;;  %v7958_v20 = vld [vmem:[%s8626_s2 + $0x60] sm:$0xff]  ;;  %v8101_v22 = vld [vmem:[%s8626_s2 + $0x98] sm:$0xff] }
 0x4a0   :  { %v3189_v46 = vmax.f32 %v3163_v11, %v3167_v52  ;;  %v2383_v31 = vadd.f32 %v2382_v38, %v7667_v10  ;;  %v2390_v10 = vmul.f32 %v2380_v1, %v6525_v23  ;;  %v2394_v56 = vmul.f32 %v2380_v1, %v8914_v51 }
 0x4a1   :  { %3312 = vmatmul.f32.vlgmr.msra.gmra.mxu0 %v3288_v26  ;;  %3335 = vmatmul.f32.vlgmr.msra.gmra.mxu1 %v3289_v58  ;;  %v3284_v39 = vunpack.c.l.bf16 %v7908_v33  ;;  %v3285_v19 = vunpack.c.h.bf16 %v7908_v33  ;;  %v3483_v26 = vmul.f32 %v7879_v40, %v7879_v40  ;;  %v8107_v33 = vld [vmem:[%s8626_s2 + $0x10] sm:$0xff]  ;;  %v3487_v1 = vmul.f32 %v7896_v7, %v7896_v7 }
 0x4a2   :  { %v3190_v13 = vrot.slane %v3189_v46, 4  ;;  %3510 = vmatpush.msra.mxu0 %v7913_v35  ;;  %3533 = vmatpush.msra.mxu1 %v7919_v3 }
 0x4a3   :  { %v3292_v18 = vsub.f32 %v7893_v14, %v3284_v39  ;;  %v3293_v49 = vsub.f32 %v7896_v7, %v3285_v19 }
 0x4a4   :  { %v7874_v17 = vpop.eup %4478  ;;  %v3191_v59 = vmax.f32 %v3189_v46, %v3190_v13  ;;  %3511 = vmatpush.msra.mxu0 %v7927_v34  ;;  %3534 = vmatpush.msra.mxu1 %v7933_v16  ;;  %v7978_v46 = vld [vmem:[%s8626_s2 + $0xd8] sm:$0xff] }
 0x4a5   :  { %v7876_v60 = vpop.eup %4480 }
 0x4a6   :  { %v3234_v61 = vadd.f32 %v7876_v60, %v7874_v17  ;;  %v3192_v4 = vrot.slane %v3191_v59, 2  ;;  %3512 = vmatpush.msra.mxu0 %v7939_v9  ;;  %3535 = vmatpush.msra.mxu1 %v7945_v15 }
 0x4a8   :  { %v3235_v37 = vrot.slane %v3234_v61, 4  ;;  %v3193_v24 = vmax.f32 %v3191_v59, %v3192_v4  ;;  %3513 = vmatpush.msra.mxu0 %v7958_v20  ;;  %3536 = vmatpush.msra.mxu1 %v7964_v21  ;;  %v2384_v4 = vrot.slane %v2383_v31, 2 }
 0x4a9   :  { %3315 = vmatmul.f32.gmra.mxu0 %v3292_v18  ;;  %3338 = vmatmul.f32.gmra.mxu1 %v3293_v49  ;;  %v3486_v49 = vmul.f32 %v7893_v14, %v7893_v14 }
 0x4aa   :  { %v3236_v41 = vadd.f32 %v3235_v37, %v3234_v61  ;;  %v3194_v62 = vrot.slane %v3193_v24, 1  ;;  %3537 = vmatpush.msra.mxu1 %v7978_v46  ;;  %v8011_v61 = vld [vmem:[%s8626_s2 + $0xc8] sm:$0xff]  ;;  %v8021_v37 = vld [vmem:[%s8626_s2 + $0x40] sm:$0xff] }
 0x4ac   :  { %v3237_v28 = vrot.slane %v3236_v41, 2  ;;  %v3195_v29 = vmax.f32 %v3193_v24, %v3194_v62  ;;  %3538 = vmatpush.msra.mxu1 %v7995_v5  ;;  %v8027_v24 = vld [vmem:[%s8626_s2 + $0xc0] sm:$0xff]  ;;  %v8037_v62 = vld [vmem:[%s8626_s2 + $0x38] sm:$0xff] }
 0x4ae   :  { %v3238_v8 = vadd.f32 %v3237_v28, %v3236_v41  ;;  %v3199_v42 = vsub.f32 %v3163_v11, %v3195_v29  ;;  %v3203_v48 = vsub.f32 %v3167_v52, %v3195_v29  ;;  %v7972_v52 = vld [vmem:[%s8626_s2 + $0x58] sm:$0xff]  ;;  %3539 = vmatpush.msra.mxu1 %v8011_v61  ;;  %v2385_v28 = vadd.f32 %v2384_v4, %v2383_v31  ;;  %v8125_v31 = vld [vmem:[%s8626_s2 + $0x8] sm:$0xff] }
 0x4af   :  { %3514 = vmatpush.msra.mxu0 %v7972_v52  ;;  %v3482_v29 = vmul.f32 %v7886_v2, %v7886_v2  ;;  %v8151_v4 = vpack.c.bf16 %v3487_v1, %v3486_v49 }
 0x4b0   :  { %v3239_v12 = vrot.slane %v3238_v8, 1  ;;  %v3210_v25 = vmul.f32 1.442695, %v3199_v42  ;;  %v3218_v50 = vmul.f32 1.442695, %v3203_v48  ;;  %3540 = vmatpush.msra.mxu1 %v8027_v24  ;;  %v8071_v42 = vld [vmem:[%s8626_s2 + $0xa8] sm:$0xff] }
 0x4b1   :  { %3515 = vmatpush.msra.mxu0 %v7989_v32  ;;  %3427 = vmatmul.f32.vlgmr.msrb.gmra.mxu1 %v3281_v55  ;;  %v8055_v55 = vld [vmem:[%s8626_s2 + $0xb0] sm:$0xff]  ;;  %v2386_v48 = vrot.slane %v2385_v28, 1 }
 0x4b2   :  { %v3240_v30 = vadd.f32 %v3239_v12, %v3238_v8  ;;  %4482 = vpow2.f32 %v3210_v25  ;;  %3404 = vmatmul.f32.vlgmr.msrb.gmra.mxu0 %v3280_v53  ;;  %3541 = vmatpush.msra.mxu1 %v8043_v54  ;;  %v8065_v8 = vld [vmem:[%s8626_s2 + $0x28] sm:$0xff]  ;;  %v8077_v12 = vld [vmem:[%s8626_s2 + $0x20] sm:$0xff] }
 0x4b3   :  { %4484 = vpow2.f32 %v3218_v50  ;;  %3516 = vmatpush.msra.mxu0 %v8005_v43  ;;  %v8083_v25 = vld [vmem:[%s8626_s2 + $0xa0] sm:$0xff]  ;;  %v8086_v50 = vpack.c.bf16 %v3483_v26, %v3482_v29  ;;  %v2387_v38 = vadd.f32 %v2386_v48, %v2385_v28  ;;  %v8279_v48 = vld [vmem:[%s8626_s2 + $0x150] sm:$0xff] }
 0x4b4   :  { %4486 = vrcp.f32 %v3240_v30  ;;  %3542 = vmatpush.msra.mxu1 %v8055_v55  ;;  %v8095_v30 = vld [vmem:[%s8626_s2 + $0x18] sm:$0xff] }
 0x4b5   :  { %3517 = vmatpush.msra.mxu0 %v8021_v37  ;;  %v3495_v18 = vunpack.c.h.bf16 %v8086_v50 }
 0x4b6   :  { %3543 = vmatpush.msra.mxu1 %v8071_v42 }
 0x4b7   :  { %3518 = vmatpush.msra.mxu0 %v8037_v62 }
 0x4b8   :  { %v7967_v11 = vpop.eup %4482  ;;  %3544 = vmatpush.msra.mxu1 %v8083_v25 }
 0x4b9   :  { %v7981_v45 = vpop.eup %4484  ;;  %3519 = vmatpush.msra.mxu0 %v8049_v47  ;;  %3430 = vmatmul.f32.gmra.mxu1 %v3285_v19  ;;  %v3494_v19 = vunpack.c.l.bf16 %v8086_v50  ;;  %v8431_v50 = vld [vmem:[%s8627_s3 + $0x28] sm:$0xff] }
 0x4ba   :  { %v4487_v13 = vpop.eup %4486  ;;  %v3241_v57 = vadd.f32 %v7981_v45, %v7967_v11  ;;  %3407 = vmatmul.f32.gmra.mxu0 %v3284_v39  ;;  %3545 = vmatpush.msra.mxu1 %v8101_v22  ;;  %v8113_v39 = vld [vmem:[%s8626_s2 + $0x90] sm:$0xff] }
 0x4bb   :  { %v3254_v6 = vmul.f32 %v4487_v13, %v7874_v17  ;;  %v3258_v59 = vmul.f32 %v4487_v13, %v7876_v60  ;;  %3520 = vmatpush.msra.mxu0 %v8065_v8  ;;  %v8131_v13 = vld [vmem:[%s8626_s2 + $0x88] sm:$0xff] }
 0x4bc   :  { %v3242_v44 = vrot.slane %v3241_v57, 4  ;;  %3546 = vmatpush.msra.mxu1 %v8113_v39 }
 0x4bd   :  { %v8014_v17 = vmul.f32 %v3254_v6, %v2390_v10  ;;  %v8016_v0 = vmul.f32 %v3258_v59, %v2394_v56  ;;  %3521 = vmatpush.msra.mxu0 %v8077_v12  ;;  %v8138_v6 = vld [vmem:[%s8626_s2] sm:$0xff]  ;;  %v3502_v59 = vsub.f32 %v3482_v29, %v3494_v19 }
 0x4be   :  { %v3243_v60 = vadd.f32 %v3242_v44, %v3241_v57  ;;  %3547 = vmatpush.msra.mxu1 %v8131_v13  ;;  %v2391_v57 = vmul.f32 %v2387_v38, %v6527_v36  ;;  %v8144_v56 = vld [vmem:[%s8626_s2 + $0x80] sm:$0xff]  ;;  %v3503_v44 = vsub.f32 %v3483_v26, %v3495_v18 }
 0x4bf   :  { %3522 = vmatpush.msra.mxu0 %v8095_v30  ;;  %v8160_v29 = vadd.f32 %v8014_v17, %v6525_v23  ;;  %v8225_v17 = vld [vmem:[%s8626_s2 + $0x1f0] sm:$0xff] }
 0x4c0   :  { %v3244_v41 = vrot.slane %v3243_v60, 2  ;;  %3548 = vmatpush.msra.mxu1 %v8144_v56 }
 0x4c1   :  { %3523 = vmatpush.msra.mxu0 %v8107_v33  ;;  %3549 = vmatmul.f32.vlgmr.msra.gmra.mxu1 %v3503_v44  ;;  %v8403_v44 = vld [vmem:[%s8626_s2 + $0x190] sm:$0xff] }
 0x4c2   :  { %v3245_v53 = vadd.f32 %v3244_v41, %v3243_v60  ;;  %v2395_v60 = vmul.f32 %v2387_v38, %v8931_v63  ;;  %3625 = vmatpush.msrb.mxu1 %v7919_v3  ;;  %v8177_v3 = vadd.f32 %v8016_v0, %v8914_v51  ;;  %v8333_v38 = vld [vmem:[%s8626_s2 + $0x130] sm:$0xff] }
 0x4c3   :  { %3524 = vmatpush.msra.mxu0 %v8125_v31 }
 0x4c4   :  { %v3246_v58 = vrot.slane %v3245_v53, 1  ;;  %3626 = vmatpush.msrb.mxu1 %v7933_v16 }
 0x4c5   :  { %3525 = vmatpush.msra.mxu0 %v8138_v6 }
 0x4c6   :  { %v3247_v27 = vadd.f32 %v3246_v58, %v3245_v53  ;;  %3526 = vmatmul.f32.vlgmr.msra.gmra.mxu0 %v3502_v59  ;;  %3627 = vmatpush.msrb.mxu1 %v7945_v15  ;;  %v8259_v58 = vld [vmem:[%s8626_s2 + $0x1e0] sm:$0xff]  ;;  %v8397_v59 = vld [vmem:[%s8626_s2 + $0x110] sm:$0xff] }
 0x4c7   :  { %3602 = vmatpush.msrb.mxu0 %v7913_v35 }
 0x4c8   :  { %4488 = vrcp.f32 %v3247_v27  ;;  %3628 = vmatpush.msrb.mxu1 %v7964_v21  ;;  %v8203_v21 = vld [vmem:[%s8626_s2 + $0x178] sm:$0xff]  ;;  %v8285_v27 = vld [vmem:[%s8626_s2 + $0x1d0] sm:$0xff] }
 0x4c9   :  { %3603 = vmatpush.msrb.mxu0 %v7927_v34 }
 0x4ca   :  { %3629 = vmatpush.msrb.mxu1 %v7978_v46 }
 0x4cb   :  { %3604 = vmatpush.msrb.mxu0 %v7939_v9 }
 0x4cc   :  { %3630 = vmatpush.msrb.mxu1 %v7995_v5  ;;  %v8219_v5 = vld [vmem:[%s8626_s2 + $0x170] sm:$0xff] }
 0x4cd   :  { %3605 = vmatpush.msrb.mxu0 %v7958_v20 }
 0x4ce   :  { %v4489_v10 = vpop.eup %4488  ;;  %3631 = vmatpush.msrb.mxu1 %v8011_v61  ;;  %v8239_v61 = vld [vmem:[%s8626_s2 + $0x1e8] sm:$0xff] }
 0x4cf   :  { %v3255_v41 = vmul.f32 %v4489_v10, %v7967_v11  ;;  %v3259_v28 = vmul.f32 %v4489_v10, %v7981_v45  ;;  %v3498_v11 = vunpack.c.l.bf16 %v8151_v4  ;;  %v3499_v45 = vunpack.c.h.bf16 %v8151_v4  ;;  %3606 = vmatpush.msrb.mxu0 %v7972_v52  ;;  %v8209_v52 = vld [vmem:[%s8626_s2 + $0x1f8] sm:$0xff]  ;;  %v8503_v4 = vld [vmem:[%s8627_s3 + $0x30] sm:$0xff] }
 0x4d0   :  { %3632 = vmatpush.msrb.mxu1 %v8027_v24  ;;  %v8253_v24 = vld [vmem:[%s8626_s2 + $0x160] sm:$0xff] }
 0x4d1   :  { %v3263_v53 = vmul.f32 %v3255_v41, %v2391_v57  ;;  %v3267_v26 = vmul.f32 %v3259_v28, %v2395_v60  ;;  %v3507_v16 = vsub.f32 %v3487_v1, %v3499_v45  ;;  %3607 = vmatpush.msrb.mxu0 %v7989_v32  ;;  %v3484_v1 = vmul.f32 %v8160_v29, %v8160_v29  ;;  %v8357_v57 = vld [vmem:[%s8626_s2 + $0x1a8] sm:$0xff] }
 0x4d2   :  { %3633 = vmatpush.msrb.mxu1 %v8043_v54  ;;  %v8271_v54 = vld [vmem:[%s8626_s2 + $0x1d8] sm:$0xff]  ;;  %v4622_v28 = vld [vmem:[%s8626_s2 + $0x108] sm:$0xff] }
 0x4d3   :  { %v8167_v35 = vadd.f32 %v3263_v53, %v6527_v36  ;;  %v8180_v34 = vadd.f32 %v3267_v26, %v8931_v63  ;;  %v3506_v36 = vsub.f32 %v3486_v49, %v3498_v11  ;;  %3552 = vmatmul.f32.gmra.mxu1 %v3507_v16  ;;  %3608 = vmatpush.msrb.mxu0 %v8005_v43  ;;  %v8233_v43 = vld [vmem:[%s8626_s2 + $0x168] sm:$0xff]  ;;  %v8339_v49 = vld [vmem:[%s8626_s2 + $0x1b0] sm:$0xff]  ;;  %v8425_v26 = vld [vmem:[%s8627_s3 + $0x20] sm:$0xff] }
 0x4d4   :  { %3634 = vmatpush.msrb.mxu1 %v8055_v55  ;;  %v8299_v55 = vld [vmem:[%s8626_s2 + $0x1c8] sm:$0xff] }
 0x4d5   :  { %v8173_v23 = vpack.c.bf16 %v8167_v35, %v8160_v29  ;;  %3529 = vmatmul.f32.gmra.mxu0 %v3506_v36  ;;  %v8196_v20 = vpack.c.bf16 %v8180_v34, %v8177_v3  ;;  %v3489_v41 = vmul.f32 %v8180_v34, %v8180_v34  ;;  %v4623_v53 = vld [vmem:[%s8626_s2 + $0x188] sm:$0xff] }
 0x4d6   :  { %3609 = vmatpush.msrb.mxu0 %v8021_v37  ;;  %3635 = vmatpush.msrb.mxu1 %v8071_v42  ;;  %v8313_v42 = vld [vmem:[%s8626_s2 + $0x1c0] sm:$0xff] }
 0x4d7   :  { %v3282_v9 = vunpack.c.l.bf16 %v8173_v23  ;;  %v3283_v15 = vunpack.c.h.bf16 %v8173_v23  ;;  %v3286_v46 = vunpack.c.l.bf16 %v8196_v20  ;;  %v3287_v32 = vunpack.c.h.bf16 %v8196_v20 }
 0x4d8   :  { %3610 = vmatpush.msrb.mxu0 %v8037_v62  ;;  %v8265_v62 = vld [vmem:[%s8626_s2 + $0x158] sm:$0xff]  ;;  %3636 = vmatpush.msrb.mxu1 %v8083_v25 }
 0x4d9   :  { %v3290_v51 = vsub.f32 %v8160_v29, %v3282_v9  ;;  %v3291_v63 = vsub.f32 %v8167_v35, %v3283_v15  ;;  %v3294_v0 = vsub.f32 %v8177_v3, %v3286_v46  ;;  %v3295_v37 = vsub.f32 %v8180_v34, %v3287_v32  ;;  %v8325_v25 = vld [vmem:[%s8626_s2 + $0x1b8] sm:$0xff] }
 0x4da   :  { %3611 = vmatpush.msrb.mxu0 %v8049_v47  ;;  %v8293_v47 = vld [vmem:[%s8626_s2 + $0x148] sm:$0xff]  ;;  %3637 = vmatpush.msrb.mxu1 %v8101_v22 }
 0x4db   :  { %3358 = vmatmul.f32.vlgmr.msra.gmra.mxu2 %v3290_v51  ;;  %3381 = vmatmul.f32.vlgmr.msra.gmra.mxu3 %v3291_v63  ;;  %v8351_v22 = vld [vmem:[%s8626_s2 + $0x128] sm:$0xff]  ;;  %v8455_v51 = vld [vmem:[%s8627_s3] sm:$0xff] }
 0x4dc   :  { %3556 = vmatpush.msra.mxu2 %v8203_v21  ;;  %3579 = vmatpush.msra.mxu3 %v8209_v52  ;;  %v8461_v63 = vld [vmem:[%s8627_s3 + $0x8] sm:$0xff] }
 0x4dd   :  { %3612 = vmatpush.msrb.mxu0 %v8065_v8  ;;  %v8307_v8 = vld [vmem:[%s8626_s2 + $0x140] sm:$0xff]  ;;  %3638 = vmatpush.msrb.mxu1 %v8113_v39 }
 0x4de   :  { %3557 = vmatpush.msra.mxu2 %v8219_v5  ;;  %3580 = vmatpush.msra.mxu3 %v8225_v17  ;;  %v8371_v39 = vld [vmem:[%s8626_s2 + $0x1a0] sm:$0xff] }
 0x4df   :  { %3613 = vmatpush.msrb.mxu0 %v8077_v12  ;;  %v8319_v12 = vld [vmem:[%s8626_s2 + $0x138] sm:$0xff]  ;;  %3639 = vmatpush.msrb.mxu1 %v8131_v13 }
 0x4e0   :  { %3558 = vmatpush.msra.mxu2 %v8233_v43  ;;  %3581 = vmatpush.msra.mxu3 %v8239_v61  ;;  %v8389_v13 = vld [vmem:[%s8626_s2 + $0x198] sm:$0xff] }
 0x4e1   :  { %3614 = vmatpush.msrb.mxu0 %v8095_v30  ;;  %v3485_v30 = vmul.f32 %v8167_v35, %v8167_v35  ;;  %3640 = vmatpush.msrb.mxu1 %v8144_v56  ;;  %v3488_v56 = vmul.f32 %v8177_v3, %v8177_v3 }
 0x4e2   :  { %3559 = vmatpush.msra.mxu2 %v8253_v24  ;;  %3582 = vmatpush.msra.mxu3 %v8259_v58 }
 0x4e3   :  { %3361 = vmatmul.f32.gmra.mxu2 %v3294_v0  ;;  %3384 = vmatmul.f32.gmra.mxu3 %v3295_v37  ;;  %v8374_v10 = vpack.c.bf16 %v3485_v30, %v3484_v1  ;;  %v8444_v16 = vpack.c.bf16 %v3489_v41, %v3488_v56 }
 0x4e4   :  { %3560 = vmatpush.msra.mxu2 %v8265_v62  ;;  %3583 = vmatpush.msra.mxu3 %v8271_v54 }
 0x4e5   :  { %3615 = vmatpush.msrb.mxu0 %v8107_v33  ;;  %v8365_v33 = vld [vmem:[%s8626_s2 + $0x120] sm:$0xff]  ;;  %v3496_v60 = vunpack.c.l.bf16 %v8374_v10  ;;  %3641 = vmatmul.f32.vlgmr.msrb.gmra.mxu1 %v3495_v18 }
 0x4e6   :  { %3561 = vmatpush.msra.mxu2 %v8279_v48  ;;  %3584 = vmatpush.msra.mxu3 %v8285_v27  ;;  %v4627_v18 = vld [vmem:[%s8626_s2 + $0x180] sm:$0xff] }
 0x4e7   :  { %3616 = vmatpush.msrb.mxu0 %v8125_v31  ;;  %v8383_v31 = vld [vmem:[%s8626_s2 + $0x118] sm:$0xff]  ;;  %3771 = vmatpush.msra.mxu1 %v8431_v50  ;;  %v3504_v23 = vsub.f32 %v3484_v1, %v3496_v60 }
 0x4e8   :  { %3562 = vmatpush.msra.mxu2 %v8293_v47  ;;  %3585 = vmatpush.msra.mxu3 %v8299_v55 }
 0x4e9   :  { %3617 = vmatpush.msrb.mxu0 %v8138_v6  ;;  %v3497_v6 = vunpack.c.h.bf16 %v8374_v10  ;;  %3772 = vmatpush.msra.mxu1 %v8461_v63 }
 0x4ea   :  { %3563 = vmatpush.msra.mxu2 %v8307_v8  ;;  %3586 = vmatpush.msra.mxu3 %v8313_v42 }
 0x4eb   :  { %3450 = vmatmul.f32.vlgmr.msrb.gmra.mxu2 %v3282_v9  ;;  %3473 = vmatmul.f32.vlgmr.msrb.gmra.mxu3 %v3283_v15  ;;  %v3505_v36 = vsub.f32 %v3485_v30, %v3497_v6  ;;  %v3500_v9 = vunpack.c.l.bf16 %v8444_v16  ;;  %v3501_v15 = vunpack.c.h.bf16 %v8444_v16 }
 0x4ec   :  { %3564 = vmatpush.msra.mxu2 %v8319_v12  ;;  %3587 = vmatpush.msra.mxu3 %v8325_v25 }
 0x4ed   :  { %3618 = vmatmul.f32.vlgmr.msrb.gmra.mxu0 %v3494_v19  ;;  %v4626_v19 = vld [vmem:[%s8626_s2 + $0x100] sm:$0xff]  ;;  %3644 = vmatmul.f32.gmra.mxu1 %v3499_v45  ;;  %v3508_v20 = vsub.f32 %v3488_v56, %v3500_v9  ;;  %v8515_v45 = vld [vmem:[%s8627_s3 + $0x10] sm:$0xff] }
 0x4ee   :  { %3565 = vmatpush.msra.mxu2 %v8333_v38  ;;  %3588 = vmatpush.msra.mxu3 %v8339_v49 }
 0x4ef   :  { %3748 = vmatpush.msra.mxu0 %v8425_v26  ;;  %3869 = vmatpush.msrb.mxu1 %v8431_v50 }
 0x4f0   :  { %3566 = vmatpush.msra.mxu2 %v8351_v22  ;;  %3589 = vmatpush.msra.mxu3 %v8357_v57 }
 0x4f1   :  { %3749 = vmatpush.msra.mxu0 %v8455_v51  ;;  %3870 = vmatpush.msrb.mxu1 %v8461_v63 }
 0x4f2   :  { %3567 = vmatpush.msra.mxu2 %v8365_v33  ;;  %3590 = vmatpush.msra.mxu3 %v8371_v39 }
 0x4f3   :  { %3453 = vmatmul.f32.gmra.mxu2 %v3286_v46  ;;  %3476 = vmatmul.f32.gmra.mxu3 %v3287_v32 }
 0x4f4   :  { %3568 = vmatpush.msra.mxu2 %v8383_v31  ;;  %3591 = vmatpush.msra.mxu3 %v8389_v13 }
 0x4f5   :  { %3621 = vmatmul.f32.gmra.mxu0 %v3498_v11  ;;  %v8509_v11 = vld [vmem:[%s8627_s3 + $0x38] sm:$0xff] }
 0x4f6   :  { %3569 = vmatpush.msra.mxu2 %v8397_v59  ;;  %3592 = vmatpush.msra.mxu3 %v8403_v44 }
 0x4f7   :  { %3846 = vmatpush.msrb.mxu0 %v8425_v26 }
 0x4f8   :  { %3570 = vmatpush.msra.mxu2 %v4622_v28  ;;  %3593 = vmatpush.msra.mxu3 %v4623_v53 }
 0x4f9   :  { %3847 = vmatpush.msrb.mxu0 %v8455_v51 }
 0x4fa   :  { %3571 = vmatpush.msra.mxu2 %v4626_v19  ;;  %3594 = vmatpush.msra.mxu3 %v4627_v18 }
 0x4fb   :  { %3572 = vmatmul.f32.vlgmr.msra.gmra.mxu2 %v3504_v23  ;;  %3595 = vmatmul.f32.vlgmr.msra.gmra.mxu3 %v3505_v36 }
 0x4fc   :  { %3648 = vmatpush.msrb.mxu2 %v8203_v21  ;;  %3671 = vmatpush.msrb.mxu3 %v8209_v52  ;;  %v3509_v21 = vsub.f32 %v3489_v41, %v3501_v15  ;;  %v8521_v52 = vld [vmem:[%s8627_s3 + $0x18] sm:$0xff] }
 0x4fe   :  { %3649 = vmatpush.msrb.mxu2 %v8219_v5  ;;  %3672 = vmatpush.msrb.mxu3 %v8225_v17 }
 0x500   :  { %3650 = vmatpush.msrb.mxu2 %v8233_v43  ;;  %3673 = vmatpush.msrb.mxu3 %v8239_v61 }
 0x502   :  { %3651 = vmatpush.msrb.mxu2 %v8253_v24  ;;  %3674 = vmatpush.msrb.mxu3 %v8259_v58 }
 0x503   :  { %3575 = vmatmul.f32.gmra.mxu2 %v3508_v20  ;;  %3598 = vmatmul.f32.gmra.mxu3 %v3509_v21 }
 0x504   :  { %3652 = vmatpush.msrb.mxu2 %v8265_v62  ;;  %3675 = vmatpush.msrb.mxu3 %v8271_v54 }
 0x506   :  { %3653 = vmatpush.msrb.mxu2 %v8279_v48  ;;  %3676 = vmatpush.msrb.mxu3 %v8285_v27 }
 0x508   :  { %3654 = vmatpush.msrb.mxu2 %v8293_v47  ;;  %3677 = vmatpush.msrb.mxu3 %v8299_v55 }
 0x50a   :  { %3655 = vmatpush.msrb.mxu2 %v8307_v8  ;;  %3678 = vmatpush.msrb.mxu3 %v8313_v42 }
 0x50c   :  { %3656 = vmatpush.msrb.mxu2 %v8319_v12  ;;  %3679 = vmatpush.msrb.mxu3 %v8325_v25 }
 0x50e   :  { %3657 = vmatpush.msrb.mxu2 %v8333_v38  ;;  %3680 = vmatpush.msrb.mxu3 %v8339_v49 }
 0x510   :  { %3658 = vmatpush.msrb.mxu2 %v8351_v22  ;;  %3681 = vmatpush.msrb.mxu3 %v8357_v57 }
 0x512   :  { %3659 = vmatpush.msrb.mxu2 %v8365_v33  ;;  %3682 = vmatpush.msrb.mxu3 %v8371_v39 }
 0x514   :  { %3660 = vmatpush.msrb.mxu2 %v8383_v31  ;;  %3683 = vmatpush.msrb.mxu3 %v8389_v13 }
 0x516   :  { %3661 = vmatpush.msrb.mxu2 %v8397_v59  ;;  %3684 = vmatpush.msrb.mxu3 %v8403_v44 }
 0x518   :  { %3662 = vmatpush.msrb.mxu2 %v4622_v28  ;;  %3685 = vmatpush.msrb.mxu3 %v4623_v53 }
 0x51a   :  { %3663 = vmatpush.msrb.mxu2 %v4626_v19  ;;  %3686 = vmatpush.msrb.mxu3 %v4627_v18 }
 0x51b   :  { %3664 = vmatmul.f32.vlgmr.msrb.gmra.mxu2 %v3496_v60  ;;  %3687 = vmatmul.f32.vlgmr.msrb.gmra.mxu3 %v3497_v6 }
 0x51c   :  { %3794 = vmatpush.msra.mxu2 %v8503_v4  ;;  %3817 = vmatpush.msra.mxu3 %v8509_v11 }
 0x51e   :  { %3795 = vmatpush.msra.mxu2 %v8515_v45  ;;  %3818 = vmatpush.msra.mxu3 %v8521_v52  ;;  %v3313_v46 = vpop.f32.mrf.mxu0  ;;  %v3336_v32 = vpop.f32.mrf.mxu1 }
 0x51f   :  { %v3337_v42 = vadd.f32 %v3336_v32, %v3313_v46 }
 0x520   :  { %3892 = vmatpush.msrb.mxu2 %v8503_v4  ;;  %3915 = vmatpush.msrb.mxu3 %v8509_v11 }
 0x522   :  { %3893 = vmatpush.msrb.mxu2 %v8515_v45  ;;  %3916 = vmatpush.msrb.mxu3 %v8521_v52 }
 0x523   :  { %3667 = vmatmul.f32.gmra.mxu2 %v3500_v9  ;;  %3690 = vmatmul.f32.gmra.mxu3 %v3501_v15 }
 0x526   :  { %v3316_v5 = vpop.f32.mrf.mxu0  ;;  %v3339_v61 = vpop.f32.mrf.mxu1 }
 0x527   :  { %v3340_v22 = vadd.f32 %v3339_v61, %v3316_v5 }
 0x52e   :  { %v3428_v58 = vpop.f32.mrf.mxu1 }
 0x52f   :  { %v3405_v0 = vpop.f32.mrf.mxu0 }
 0x536   :  { %v3431_v27 = vpop.f32.mrf.mxu1 }
 0x537   :  { %v3408_v62 = vpop.f32.mrf.mxu0 }
 0x53e   :  { %v3550_v12 = vpop.f32.mrf.mxu1 }
 0x543   :  { %v3527_v47 = vpop.f32.mrf.mxu0 }
 0x544   :  { %v3551_v39 = vadd.f32 %v3550_v12, %v3527_v47 }
 0x550   :  { %v3553_v10 = vpop.f32.mrf.mxu1 }
 0x552   :  { %v3530_v38 = vpop.f32.mrf.mxu0 }
 0x553   :  { %v3554_v53 = vadd.f32 %v3553_v10, %v3530_v38 }
 0x55e   :  { %v3359_v17 = vpop.f32.mrf.mxu2  ;;  %v3382_v43 = vpop.f32.mrf.mxu3 }
 0x55f   :  { %v3360_v25 = vadd.f32 %v3359_v17, %v3337_v42 }
 0x561   :  { %v3383_v30 = vadd.f32 %v3382_v43, %v3360_v25 }
 0x562   :  { %v3642_v18 = vpop.f32.mrf.mxu1 }
 0x563   :  { %v3406_v57 = vadd.f32 %v3405_v0, %v3383_v30 }
 0x565   :  { %v3429_v44 = vadd.f32 %v3428_v58, %v3406_v57 }
 0x566   :  { %v3362_v37 = vpop.f32.mrf.mxu2  ;;  %v3385_v24 = vpop.f32.mrf.mxu3 }
 0x567   :  { %v3363_v33 = vadd.f32 %v3362_v37, %v3340_v22 }
 0x569   :  { %v3386_v59 = vadd.f32 %v3385_v24, %v3363_v33 }
 0x56a   :  { %v3619_v13 = vpop.f32.mrf.mxu0  ;;  %v3645_v58 = vpop.f32.mrf.mxu1 }
 0x56b   :  { %v3409_v28 = vadd.f32 %v3408_v62, %v3386_v59 }
 0x56d   :  { %v3432_v16 = vadd.f32 %v3431_v27, %v3409_v28 }
 0x56e   :  { %v3451_v54 = vpop.f32.mrf.mxu2  ;;  %v3474_v48 = vpop.f32.mrf.mxu3 }
 0x56f   :  { %v3452_v56 = vadd.f32 %v3451_v54, %v3429_v44 }
 0x571   :  { %v3475_v23 = vadd.f32 %v3474_v48, %v3452_v56 }
 0x572   :  { %v3622_v15 = vpop.f32.mrf.mxu0 }
 0x573   :  { %v8528_v46 = vmul.f32 0.03125, %v3475_v23 }
 0x575   :  { %v3696_v0 = vmul.f32 %v8528_v46, %v8528_v46 }
 0x576   :  { %v3454_v55 = vpop.f32.mrf.mxu2  ;;  %v3477_v8 = vpop.f32.mrf.mxu3 }
 0x577   :  { %v3455_v32 = vadd.f32 %v3454_v55, %v3432_v16 }
 0x579   :  { %v3478_v37 = vadd.f32 %v3477_v8, %v3455_v32 }
 0x57b   :  { %v8532_v27 = vmul.f32 0.03125, %v3478_v37 }
 0x57d   :  { %v3697_v25 = vmul.f32 %v8532_v27, %v8532_v27 }
 0x57e   :  { %v3573_v49 = vpop.f32.mrf.mxu2  ;;  %v3596_v1 = vpop.f32.mrf.mxu3 }
 0x57f   :  { %v3574_v31 = vadd.f32 %v3573_v49, %v3551_v39 }
 0x581   :  { %v3597_v41 = vadd.f32 %v3596_v1, %v3574_v31 }
 0x583   :  { %v3620_v19 = vadd.f32 %v3619_v13, %v3597_v41 }
 0x585   :  { %v3643_v9 = vadd.f32 %v3642_v18, %v3620_v19 }
 0x586   :  { %v3576_v60 = vpop.f32.mrf.mxu2  ;;  %v3599_v6 = vpop.f32.mrf.mxu3 }
 0x587   :  { %v3577_v36 = vadd.f32 %v3576_v60, %v3554_v53 }
 0x589   :  { %v3600_v5 = vadd.f32 %v3599_v6, %v3577_v36 }
 0x58b   :  { %v3623_v43 = vadd.f32 %v3622_v15, %v3600_v5 }
 0x58d   :  { %v3646_v62 = vadd.f32 %v3645_v58, %v3623_v43 }
 0x59e   :  { %v3665_v20 = vpop.f32.mrf.mxu2  ;;  %v3688_v21 = vpop.f32.mrf.mxu3 }
 0x59f   :  { %v3666_v17 = vadd.f32 %v3665_v20, %v3643_v9 }
 0x5a1   :  { %v3689_v61 = vadd.f32 %v3688_v21, %v3666_v17 }
 0x5a3   :  { %v3694_v24 = vmul.f32 0.03125, %v3689_v61 }
 0x5a5   :  { %v3698_v54 = vsub.f32 %v3694_v24, %v3696_v0 }
 0x5a6   :  { %v3668_v48 = vpop.f32.mrf.mxu2  ;;  %v3691_v12 = vpop.f32.mrf.mxu3 }
 0x5a7   :  { %v3700_v47 = vadd.f32 1e-05, %v3698_v54  ;;  %v3669_v42 = vadd.f32 %v3668_v48, %v3646_v62 }
 0x5a9   :  { %4490 = vrsqrt.f32 %v3700_v47  ;;  %v3692_v55 = vadd.f32 %v3691_v12, %v3669_v42  ;;  %vm3708_vm2 = vweird.f32 %v3700_v47 }
 0x5ab   :  { %v3695_v38 = vmul.f32 0.03125, %v3692_v55 }
 0x5ad   :  { %v3699_v49 = vsub.f32 %v3695_v38, %v3697_v25  ;;  %v8596_v25 = vld [vmem:[%s8628_s4 + $0x1] ss:$2 sm:$0xf]  ;;  %s4687_s4 = smov [#allocation2]  }
 0x5af   :  { %v4491_v1 = vpop.eup %4490  ;;  %v3701_v30 = vadd.f32 1e-05, %v3699_v49 }
 0x5b0   :  { %v3703_v8 = vmul.f32 %v4491_v1, %v3700_v47  ;;  %vm3709_vm1 = vweird.f32 %v4491_v1 }
 0x5b1   :  { %4492 = vrsqrt.f32 %v3701_v30  ;;  %vm3710_vm4 = vmor %vm3708_vm2, %vm3709_vm1  ;;  %vm3718_vm6 = vweird.f32 %v3701_v30 }
 0x5b2   :  { %v3704_v22 = vmul.f32 %v4491_v1, %v3703_v8 }
 0x5b4   :  { %v3705_v57 = vmul.f32 0.5, %v3704_v22 }
 0x5b6   :  { %v3706_v33 = vsub.f32 1.5, %v3705_v57 }
 0x5b7   :  { %v4493_v39 = vpop.eup %4492 }
 0x5b8   :  { %v3707_v10 = vmul.f32 %v4491_v1, %v3706_v33  ;;  %v3713_v31 = vmul.f32 %v4493_v39, %v3701_v30  ;;  %vm3719_vm5 = vweird.f32 %v4493_v39 }
 0x5b9   :  { %vm3720_vm3 = vmor %vm3718_vm6, %vm3719_vm5 }
 0x5ba   :  { %v3711_v13 = vsel %vm3710_vm4, %v4491_v1, %v3707_v10  ;;  %v3714_v59 = vmul.f32 %v4493_v39, %v3713_v31  ;;  %v8601_v1 = vld [vmem:[%s8629_s5 + $0x1] ss:$2 sm:$0xf]  ;;  %v4148_v31 = vperm.slane %v8596_v25, 1  ;;  %s4210_s5 = sshll.u32 %s4687_s4, 4  ;;  %s4211_s5 = int_to_ptr.vmem [resolvable:$true] %s4210_s5 }
 0x5bb   :  { %v3722_v44 = vpack.c.bf16 %v3711_v13, %v3711_v13  ;;  %v3924_v36 = vmul.f32 %v3711_v13, %v8528_v46 }
 0x5bc   :  { %v3715_v60 = vmul.f32 0.5, %v3714_v59  ;;  %v4167_v59 = vperm.slane %v8601_v1, 1 }
 0x5bd   :  { %v3724_v6 = vunpack.c.l.bf16 %v3722_v44  ;;  %v3926_v16 = vpack.c.bf16 %v3924_v36, %v3924_v36 }
 0x5be   :  { %v3716_v56 = vsub.f32 1.5, %v3715_v60 }
 0x5bf   :  { %v3726_v41 = vsub.f32 %v3711_v13, %v3724_v6  ;;  %v4166_v13 = vperm.slane %v8601_v1, 0 }
 0x5c0   :  { %v3717_v28 = vmul.f32 %v4493_v39, %v3716_v56 }
 0x5c1   :  { %4336 = vmatmul.msk.f32.vlgmr.msra.gmra.mxu0 %vm129_vm0, %v3726_v41  ;;  %4338 = vmatmul.msk.f32.vlgmr.msra.gmra.mxu1 %vm129_vm0, %v3726_v41 }
 0x5c2   :  { %4340 = vmatmul.msk.f32.vlgmr.msra.gmra.mxu2 %vm129_vm0, %v3726_v41  ;;  %4342 = vmatmul.msk.f32.vlgmr.msra.gmra.mxu3 %vm129_vm0, %v3726_v41  ;;  %v3721_v53 = vsel %vm3720_vm3, %v4493_v39, %v3717_v28  ;;  %v4147_v39 = vperm.slane %v8596_v25, 0 }
 0x5c3   :  { %v3723_v19 = vpack.c.bf16 %v3721_v53, %v3721_v53  ;;  %3998 = vmatpush.msra.mxu2 %v8503_v4  ;;  %4021 = vmatpush.msra.mxu3 %v8509_v11 }
 0x5c4   :  { %3952 = vmatpush.msra.mxu0 %v8425_v26  ;;  %3975 = vmatpush.msra.mxu1 %v8431_v50 }
 0x5c5   :  { %v3725_v18 = vunpack.c.l.bf16 %v3723_v19  ;;  %3999 = vmatpush.msra.mxu2 %v8515_v45  ;;  %4022 = vmatpush.msra.mxu3 %v8521_v52 }
 0x5c6   :  { %3953 = vmatpush.msra.mxu0 %v8455_v51  ;;  %3976 = vmatpush.msra.mxu1 %v8461_v63 }
 0x5c7   :  { %v3727_v23 = vsub.f32 %v3721_v53, %v3725_v18 }
 0x5c9   :  { %4337 = vmatmul.msk.f32.gmra.mxu0 %vm129_vm0, %v3727_v23  ;;  %4339 = vmatmul.msk.f32.gmra.mxu1 %vm129_vm0, %v3727_v23 }
 0x5ca   :  { %4341 = vmatmul.msk.f32.gmra.mxu2 %vm129_vm0, %v3727_v23  ;;  %4343 = vmatmul.msk.f32.gmra.mxu3 %vm129_vm0, %v3727_v23 }
 0x5d1   :  { %4344 = vmatmul.msk.f32.vlgmr.msrb.gmra.mxu0 %vm129_vm0, %v3724_v6  ;;  %4346 = vmatmul.msk.f32.vlgmr.msrb.gmra.mxu1 %vm129_vm0, %v3724_v6 }
 0x5d2   :  { %4348 = vmatmul.msk.f32.vlgmr.msrb.gmra.mxu2 %vm129_vm0, %v3724_v6  ;;  %4350 = vmatmul.msk.f32.vlgmr.msrb.gmra.mxu3 %vm129_vm0, %v3724_v6 }
 0x5d3   :  { %4096 = vmatpush.msrb.mxu2 %v8503_v4  ;;  %4119 = vmatpush.msrb.mxu3 %v8509_v11 }
 0x5d4   :  { %4050 = vmatpush.msrb.mxu0 %v8425_v26  ;;  %4073 = vmatpush.msrb.mxu1 %v8431_v50  ;;  %v3928_v26 = vunpack.c.l.bf16 %v3926_v16  ;;  %v3925_v50 = vmul.f32 %v3721_v53, %v8532_v27 }
 0x5d5   :  { %4097 = vmatpush.msrb.mxu2 %v8515_v45  ;;  %4120 = vmatpush.msrb.mxu3 %v8521_v52 }
 0x5d6   :  { %4051 = vmatpush.msrb.mxu0 %v8455_v51  ;;  %4074 = vmatpush.msrb.mxu1 %v8461_v63  ;;  %v3930_v4 = vsub.f32 %v3924_v36, %v3928_v26  ;;  %v3927_v11 = vpack.c.bf16 %v3925_v50, %v3925_v50 }
 0x5d8   :  { %v3929_v51 = vunpack.c.l.bf16 %v3927_v11  ;;  %v4150_v11 = vperm.slane %v8596_v25, 3 }
 0x5d9   :  { %4345 = vmatmul.msk.f32.gmra.mxu0 %vm129_vm0, %v3725_v18  ;;  %4347 = vmatmul.msk.f32.gmra.mxu1 %vm129_vm0, %v3725_v18 }
 0x5da   :  { %4349 = vmatmul.msk.f32.gmra.mxu2 %vm129_vm0, %v3725_v18  ;;  %4351 = vmatmul.msk.f32.gmra.mxu3 %vm129_vm0, %v3725_v18  ;;  %v3931_v63 = vsub.f32 %v3925_v50, %v3929_v51  ;;  %v4149_v50 = vperm.slane %v8596_v25, 2 }
 0x5e1   :  { %4352 = vmatmul.msk.f32.vlgmr.msra.gmra.mxu0 %vm129_vm0, %v3930_v4  ;;  %4354 = vmatmul.msk.f32.vlgmr.msra.gmra.mxu1 %vm129_vm0, %v3930_v4 }
 0x5e2   :  { %4356 = vmatmul.msk.f32.vlgmr.msra.gmra.mxu2 %vm129_vm0, %v3930_v4  ;;  %4358 = vmatmul.msk.f32.vlgmr.msra.gmra.mxu3 %vm129_vm0, %v3930_v4 }
 0x5e9   :  { %4353 = vmatmul.msk.f32.gmra.mxu0 %vm129_vm0, %v3931_v63  ;;  %4355 = vmatmul.msk.f32.gmra.mxu1 %vm129_vm0, %v3931_v63 }
 0x5ea   :  { %4357 = vmatmul.msk.f32.gmra.mxu2 %vm129_vm0, %v3931_v63  ;;  %4359 = vmatmul.msk.f32.gmra.mxu3 %vm129_vm0, %v3931_v63 }
 0x5f1   :  { %4360 = vmatmul.msk.f32.vlgmr.msrb.gmra.mxu0 %vm129_vm0, %v3928_v26  ;;  %4362 = vmatmul.msk.f32.vlgmr.msrb.gmra.mxu1 %vm129_vm0, %v3928_v26 }
 0x5f2   :  { %4364 = vmatmul.msk.f32.vlgmr.msrb.gmra.mxu2 %vm129_vm0, %v3928_v26  ;;  %4366 = vmatmul.msk.f32.vlgmr.msrb.gmra.mxu3 %vm129_vm0, %v3928_v26 }
 0x5f9   :  { %4361 = vmatmul.msk.f32.gmra.mxu0 %vm129_vm0, %v3929_v51  ;;  %4363 = vmatmul.msk.f32.gmra.mxu1 %vm129_vm0, %v3929_v51 }
 0x5fa   :  { %4365 = vmatmul.msk.f32.gmra.mxu2 %vm129_vm0, %v3929_v51  ;;  %4367 = vmatmul.msk.f32.gmra.mxu3 %vm129_vm0, %v3929_v51 }
 0x63e   :  { %v3751_v45 = vpop.f32.mrf.mxu0  ;;  %v3774_v52 = vpop.f32.mrf.mxu1 }
 0x645   :  { %v3797_v9 = vpop.f32.mrf.mxu2  ;;  %v3820_v15 = vpop.f32.mrf.mxu3 }
 0x646   :  { %v3754_v20 = vpop.f32.mrf.mxu0  ;;  %v3777_v21 = vpop.f32.mrf.mxu1 }
 0x64d   :  { %v8589_v46 = vpop.f32.mrf.mxu2  ;;  %v8591_v32 = vpop.f32.mrf.mxu3 }
 0x64e   :  { %v3849_v5 = vpop.f32.mrf.mxu0  ;;  %v3872_v17 = vpop.f32.mrf.mxu1 }
 0x64f   :  { %v3850_v12 = vadd.f32 %v3849_v5, %v3751_v45  ;;  %v3873_v55 = vadd.f32 %v3872_v17, %v3774_v52 }
 0x651   :  { %v4128_v30 = vmul.f32 %v3850_v12, %v7886_v2  ;;  %v4129_v8 = vmul.f32 %v3873_v55, %v7879_v40 }
 0x655   :  { %v3895_v43 = vpop.f32.mrf.mxu2  ;;  %v3918_v61 = vpop.f32.mrf.mxu3 }
 0x656   :  { %v3852_v0 = vpop.f32.mrf.mxu0  ;;  %v3875_v37 = vpop.f32.mrf.mxu1  ;;  %v3896_v44 = vadd.f32 %v3895_v43, %v3797_v9  ;;  %v3919_v60 = vadd.f32 %v3918_v61, %v3820_v15  ;;  %v4168_v15 = vperm.slane %v8601_v1, 2 }
 0x657   :  { %v3853_v41 = vadd.f32 %v3852_v0, %v3754_v20  ;;  %v3876_v2 = vadd.f32 %v3875_v37, %v3777_v21  ;;  %v4169_v21 = vperm.slane %v8601_v1, 3 }
 0x658   :  { %v4130_v53 = vmul.f32 %v3896_v44, %v8160_v29  ;;  %v4131_v19 = vmul.f32 %v3919_v60, %v8167_v35 }
 0x659   :  { %v4132_v45 = vmul.f32 %v3853_v41, %v7893_v14  ;;  %v4133_v52 = vmul.f32 %v3876_v2, %v7896_v7 }
 0x65d   :  { %v3898_v24 = vpop.f32.mrf.mxu2  ;;  %v3921_v58 = vpop.f32.mrf.mxu3 }
 0x65e   :  { %v3955_v62 = vpop.f32.mrf.mxu0  ;;  %v3978_v54 = vpop.f32.mrf.mxu1  ;;  %v3899_v43 = vadd.f32 %v3898_v24, %v8589_v46  ;;  %v3922_v61 = vadd.f32 %v3921_v58, %v8591_v32 }
 0x660   :  { %v4134_v12 = vmul.f32 %v3899_v43, %v8177_v3  ;;  %v4135_v55 = vmul.f32 %v3922_v61, %v8180_v34 }
 0x665   :  { %v4001_v48 = vpop.f32.mrf.mxu2  ;;  %v4024_v27 = vpop.f32.mrf.mxu3 }
 0x666   :  { %v3958_v47 = vpop.f32.mrf.mxu0  ;;  %v3981_v42 = vpop.f32.mrf.mxu1 }
 0x66d   :  { %v4004_v38 = vpop.f32.mrf.mxu2  ;;  %v4027_v49 = vpop.f32.mrf.mxu3 }
 0x66e   :  { %v4053_v22 = vpop.f32.mrf.mxu0  ;;  %v4076_v57 = vpop.f32.mrf.mxu1 }
 0x66f   :  { %v4054_v33 = vadd.f32 %v4053_v22, %v3955_v62  ;;  %v4077_v10 = vadd.f32 %v4076_v57, %v3978_v54 }
 0x671   :  { %v4136_v6 = vsub.f32 %v4128_v30, %v4054_v33  ;;  %v4137_v56 = vsub.f32 %v4129_v8, %v4077_v10 }
 0x673   :  { %v4155_v28 = vmul.f32 %v4147_v39, %v4136_v6  ;;  %v4156_v40 = vmul.f32 %v4148_v31, %v4137_v56 }
 0x675   :  { %v4174_v18 = vadd.f32 %v4166_v13, %v4155_v28  ;;  %v4175_v23 = vadd.f32 %v4167_v59, %v4156_v40  ;;  %v4099_v36 = vpop.f32.mrf.mxu2  ;;  %v4122_v16 = vpop.f32.mrf.mxu3 }
 0x676   :  { %v4100_v26 = vadd.f32 %v4099_v36, %v4001_v48  ;;  %v4123_v4 = vadd.f32 %v4122_v16, %v4024_v27  ;;  %v4056_v51 = vpop.f32.mrf.mxu0  ;;  %v4079_v63 = vpop.f32.mrf.mxu1 }
 0x677   :  { %4182 = vst [vmem:[#allocation2] sm:$0xff] %v4174_v18  ;;  %v4057_v29 = vadd.f32 %v4056_v51, %v3958_v47  ;;  %v4080_v9 = vadd.f32 %v4079_v63, %v3981_v42 }
 0x678   :  { %4183 = vst [vmem:[#allocation2 + $0x8] sm:$0xff] %v4175_v23  ;;  %v4138_v35 = vsub.f32 %v4130_v53, %v4100_v26  ;;  %v4139_v20 = vsub.f32 %v4131_v19, %v4123_v4 }
 0x679   :  { %v4140_v5 = vsub.f32 %v4132_v45, %v4057_v29  ;;  %v4141_v17 = vsub.f32 %v4133_v52, %v4080_v9 }
 0x67a   :  { %v4157_v0 = vmul.f32 %v4149_v50, %v4138_v35  ;;  %v4158_v14 = vmul.f32 %v4150_v11, %v4139_v20 }
 0x67b   :  { %v4159_v37 = vmul.f32 %v4147_v39, %v4140_v5  ;;  %v4160_v7 = vmul.f32 %v4148_v31, %v4141_v17 }
 0x67c   :  { %v4176_v62 = vadd.f32 %v4168_v15, %v4157_v0  ;;  %v4177_v54 = vadd.f32 %v4169_v21, %v4158_v14 }
 0x67d   :  { %v4178_v48 = vadd.f32 %v4166_v13, %v4159_v37  ;;  %v4179_v27 = vadd.f32 %v4167_v59, %v4160_v7  ;;  %v4102_v47 = vpop.f32.mrf.mxu2  ;;  %v4125_v42 = vpop.f32.mrf.mxu3 }
 0x67e   :  { %4184 = vst [vmem:[#allocation2 + $0x10] sm:$0xff] %v4176_v62  ;;  %v4103_v25 = vadd.f32 %v4102_v47, %v4004_v38  ;;  %v4126_v1 = vadd.f32 %v4125_v42, %v4027_v49 }
 0x67f   :  { %4185 = vst [vmem:[#allocation2 + $0x18] sm:$0xff] %v4177_v54 }
 0x680   :  { %4186 = vst [vmem:[#allocation2 + $0x20] sm:$0xff] %v4178_v48  ;;  %v4142_v46 = vsub.f32 %v4134_v12, %v4103_v25  ;;  %v4143_v32 = vsub.f32 %v4135_v55, %v4126_v1 }
 0x681   :  { %4187 = vst [vmem:[#allocation2 + $0x28] sm:$0xff] %v4179_v27 }
 0x682   :  { %v4161_v24 = vmul.f32 %v4149_v50, %v4142_v46  ;;  %v4162_v58 = vmul.f32 %v4150_v11, %v4143_v32 }
 0x684   :  { %v4180_v30 = vadd.f32 %v4168_v15, %v4161_v24  ;;  %v4181_v3 = vadd.f32 %v4169_v21, %v4162_v58 }
 0x686   :  { %4188 = vst [vmem:[#allocation2 + $0x30] sm:$0xff] %v4180_v30 }
 0x687   :  { %4189 = vst [vmem:[#allocation2 + $0x38] sm:$0xff] %v4181_v3 }
 0x688   :  { %4218 = dma.vmem_to_hbm [thread:$0]  %s4211_s5, 1024, %s4213_s14, [#allocation3], %s4688_s15, %s4688_s15, %s4689_s16  }
 0x689   :  { %4682 = dma.done.wait [#allocation3], 1024  }
 0x68a   :  { %4683 = vsyncadd [#allocation3], 4294966272 }
 0x68b   :  { %4684 = dma.done.wait [#allocation5], 64  }
 0x68c   :  { %4685 = vsyncadd [#allocation5], 4294967232 }
 0x68d   :  { %4238 = vsyncpa [#allocation3], 1 }
 0x68e   :  { %4239 = vsyncpa [#allocation5], 1 }

// kernel: tpu_custom_call.1
= control target key start
LH: loop header
LB: loop body
LE: loop exit
PB: predicated region body
PF: predicated region fallthrough
CT: control target
= control target key end

     0   :  { %13 = vsyncpa [#allocation3], 0  ;;  %s8624_s0 = inlined_call_operand.vmem [shape: f32[16,512], index: 0, kind: input, shape index: {}]   ;;  %s8625_s1 = inlined_call_operand.vmem [shape: f32[16,16], index: 1, kind: input, shape index: {}]   ;;  %s8626_s2 = inlined_call_operand.vmem [shape: f32[512,16], index: 2, kind: input, shape index: {}]   ;;  %s8627_s3 = inlined_call_operand.vmem [shape: f32[16,512], index: 3, kind: input, shape index: {}]   ;;  %s8628_s4 = inlined_call_operand.vmem [shape: f32[2,512], index: 4, kind: input, shape index: {}]   ;;  %s8629_s5 = inlined_call_operand.vmem [shape: f32[2,512], index: 5, kind: input, shape index: {}]   ;;  %s8630_s6 = inlined_call_operand.hbm [shape: f32[16,512], index: 6, kind: output, shape index: {0}]   ;;  %s8631_s7 = inlined_call_operand.hbm [shape: f32[1,512], index: 7, kind: output, shape index: {1}]  }
   0x1   :  { %v4733_v0 = vld [vmem:[%s8624_s0 + $0x20] sm:$0xff]  ;;  %v4738_v1 = vld [vmem:[%s8624_s0 + $0x28] sm:$0xff]  ;;  %v4743_v2 = vld [vmem:[%s8624_s0 + $0x30] sm:$0xff] }
   0x2   :  { %v111_v3 = vpack.c.bf16 %v4738_v1, %v4733_v0  ;;  %v34_v4 = vld [vmem:[%s8624_s0 + $0x38] sm:$0xff]  ;;  %v4753_v5 = vld [vmem:[%s8624_s0] sm:$0xff]  ;;  %v4758_v6 = vld [vmem:[%s8624_s0 + $0x8] sm:$0xff] }
   0x3   :  { %v112_v7 = vpack.c.bf16 %v34_v4, %v4743_v2  ;;  %v109_v8 = vpack.c.bf16 %v4758_v6, %v4753_v5  ;;  %v4766_v9 = vld [vmem:[%s8624_s0 + $0x10] sm:$0xff]  ;;  %v30_v10 = vld [vmem:[%s8624_s0 + $0x18] sm:$0xff] }
   0x4   :  { %v117_v11 = vunpack.c.l.bf16 %v111_v3  ;;  %v118_v12 = vunpack.c.h.bf16 %v111_v3  ;;  %v110_v13 = vpack.c.bf16 %v30_v10, %v4766_v9 }
   0x5   :  { %14 = vsyncpa [#allocation5], 0  ;;  %v119_v14 = vunpack.c.l.bf16 %v112_v7  ;;  %v120_v15 = vunpack.c.h.bf16 %v112_v7  ;;  %v113_v16 = vunpack.c.l.bf16 %v109_v8  ;;  %v114_v17 = vunpack.c.h.bf16 %v109_v8  ;;  %v35_v28 = vld [vmem:[%s8625_s1] sm:$0xff]  ;;  %v36_v29 = vld [vmem:[%s8625_s1 + $0x8] sm:$0xff]  ;;  %s4226_s29 = sshll.u32 %s8631_s7, 4  ;;  %s4686_s30 = smov [#allocation4]   ;;  %s4227_s29 = int_to_ptr.hbm [resolvable:$true] %s4226_s29 }
   0x6   :  { %v125_v18 = vsub.f32 %v4733_v0, %v117_v11  ;;  %v126_v19 = vsub.f32 %v4738_v1, %v118_v12  ;;  %v115_v20 = vunpack.c.l.bf16 %v110_v13  ;;  %v116_v21 = vunpack.c.h.bf16 %v110_v13  ;;  %s4224_s8 = sshll.u32 %s4686_s30, 4  ;;  %s4212_s14 = sshll.u32 %s8630_s6, 4  ;;  %s4225_s8 = int_to_ptr.vmem [resolvable:$true] %s4224_s8  ;;  %s4213_s14 = int_to_ptr.hbm [resolvable:$true] %s4212_s14 }
   0x7   :  { %v127_v22 = vsub.f32 %v4743_v2, %v119_v14  ;;  %v128_v23 = vsub.f32 %v34_v4, %v120_v15  ;;  %v121_v24 = vsub.f32 %v4753_v5, %v113_v16  ;;  %v122_v25 = vsub.f32 %v4758_v6, %v114_v17  ;;  %s4688_s15 = smov 512   ;;  %s4689_s16 = smov 32  }
   0x8   :  { %150 = vmatpush.msra.mxu0 %v125_v18  ;;  %173 = vmatpush.msra.mxu1 %v126_v19  ;;  %v123_v26 = vsub.f32 %v4766_v9, %v115_v20  ;;  %v124_v27 = vsub.f32 %v30_v10, %v116_v21  ;;  %vm129_vm0 = vcmask 130048  }
   0x9   :  { %196 = vmatpush.msra.mxu2 %v127_v22  ;;  %219 = vmatpush.msra.mxu3 %v128_v23 }
   0xa   :  { %151 = vmatpush.msra.mxu0 %v121_v24  ;;  %174 = vmatpush.msra.mxu1 %v122_v25 }
   0xb   :  { %197 = vmatpush.msra.mxu2 %v123_v26  ;;  %220 = vmatpush.msra.mxu3 %v124_v27 }
   0xc   :  { %4240 = vmatmul.msk.f32.vlgmr.msra.gmra.mxu0 %vm129_vm0, %v35_v28  ;;  %4242 = vmatmul.msk.f32.vlgmr.msra.gmra.mxu1 %vm129_vm0, %v35_v28 }
   0xd   :  { %4244 = vmatmul.msk.f32.vlgmr.msra.gmra.mxu2 %vm129_vm0, %v35_v28  ;;  %4246 = vmatmul.msk.f32.vlgmr.msra.gmra.mxu3 %vm129_vm0, %v35_v28 }
   0xe   :  { %242 = vmatpush.msrb.mxu0 %v117_v11  ;;  %265 = vmatpush.msrb.mxu1 %v118_v12 }
   0xf   :  { %288 = vmatpush.msrb.mxu2 %v119_v14  ;;  %311 = vmatpush.msrb.mxu3 %v120_v15 }
  0x10   :  { %243 = vmatpush.msrb.mxu0 %v113_v16  ;;  %266 = vmatpush.msrb.mxu1 %v114_v17 }
  0x11   :  { %289 = vmatpush.msrb.mxu2 %v115_v20  ;;  %312 = vmatpush.msrb.mxu3 %v116_v21 }
  0x14   :  { %4241 = vmatmul.msk.f32.gmra.mxu0 %vm129_vm0, %v36_v29  ;;  %4243 = vmatmul.msk.f32.gmra.mxu1 %vm129_vm0, %v36_v29 }
  0x15   :  { %4245 = vmatmul.msk.f32.gmra.mxu2 %vm129_vm0, %v36_v29  ;;  %4247 = vmatmul.msk.f32.gmra.mxu3 %vm129_vm0, %v36_v29 }
  0x1c   :  { %4248 = vmatmul.msk.f32.vlgmr.msrb.gmra.mxu0 %vm129_vm0, %v35_v28  ;;  %4250 = vmatmul.msk.f32.vlgmr.msrb.gmra.mxu1 %vm129_vm0, %v35_v28 }
  0x1d   :  { %4252 = vmatmul.msk.f32.vlgmr.msrb.gmra.mxu2 %vm129_vm0, %v35_v28  ;;  %4254 = vmatmul.msk.f32.vlgmr.msrb.gmra.mxu3 %vm129_vm0, %v35_v28 }
  0x24   :  { %4249 = vmatmul.msk.f32.gmra.mxu0 %vm129_vm0, %v36_v29  ;;  %4251 = vmatmul.msk.f32.gmra.mxu1 %vm129_vm0, %v36_v29 }
  0x25   :  { %4253 = vmatmul.msk.f32.gmra.mxu2 %vm129_vm0, %v36_v29  ;;  %4255 = vmatmul.msk.f32.gmra.mxu3 %vm129_vm0, %v36_v29 }
  0x89   :  { %v153_v30 = vpop.f32.mrf.mxu0  ;;  %v176_v31 = vpop.f32.mrf.mxu1 }
  0x90   :  { %v199_v32 = vpop.f32.mrf.mxu2  ;;  %v222_v35 = vpop.f32.mrf.mxu3 }
  0x91   :  { %v156_v33 = vpop.f32.mrf.mxu0  ;;  %v4800_v34 = vpop.f32.mrf.mxu1 }
  0x98   :  { %v4802_v36 = vpop.f32.mrf.mxu2  ;;  %v4820_v47 = vpop.f32.mrf.mxu3 }
  0x99   :  { %v245_v37 = vpop.f32.mrf.mxu0  ;;  %v268_v38 = vpop.f32.mrf.mxu1 }
  0x9a   :  { %v4804_v39 = vadd.f32 %v245_v37, %v153_v30  ;;  %v4806_v40 = vadd.f32 %v268_v38, %v176_v31 }
  0x9c   :  { %v4809_v41 = vmul.f32 0.70710677, %v4804_v39  ;;  %v4812_v42 = vmul.f32 0.70710677, %v4806_v40  ;;  %v320_v13 = vmul.f32 %v4804_v39, %v4753_v5 }
  0x9e   :  { %v740_v43 = vmul.f32 %v4809_v41, %v4809_v41  ;;  %v780_v44 = vmul.f32 %v4812_v42, %v4812_v42 }
  0xa0   :  { %v4818_v45 = vmin.f32 %v740_v43, 16.0  ;;  %v291_v46 = vpop.f32.mrf.mxu2  ;;  %v4822_v48 = vmin.f32 %v780_v44, 16.0  ;;  %v314_v12 = vpop.f32.mrf.mxu3 }
  0xa1   :  { %v4824_v49 = vadd.f32 %v291_v46, %v199_v32  ;;  %v248_v54 = vpop.f32.mrf.mxu0  ;;  %v4849_v19 = vadd.f32 %v314_v12, %v222_v35 }
  0xa2   :  { %v742_v50 = vmul.f32 2.1237322e-06, %v4818_v45  ;;  %v753_v51 = vmul.f32 3.8918573e-05, %v4818_v45  ;;  %v782_v52 = vmul.f32 2.1237322e-06, %v4822_v48  ;;  %v4834_v61 = vadd.f32 %v248_v54, %v156_v33 }
  0xa3   :  { %v793_v53 = vmul.f32 3.8918573e-05, %v4822_v48  ;;  %v4831_v56 = vmul.f32 0.70710677, %v4824_v49  ;;  %v4857_v27 = vmul.f32 0.70710677, %v4849_v19 }
  0xa4   :  { %v754_v55 = vadd.f32 0.001143296, %v753_v51  ;;  %v743_v57 = vadd.f32 0.00028619796, %v742_v50  ;;  %v783_v60 = vadd.f32 0.00028619796, %v782_v52  ;;  %v324_v10 = vmul.f32 %v4834_v61, %v4733_v0 }
  0xa5   :  { %v794_v58 = vadd.f32 0.001143296, %v793_v53  ;;  %v820_v3 = vmul.f32 %v4831_v56, %v4831_v56  ;;  %v860_v37 = vmul.f32 %v4857_v27, %v4857_v27 }
  0xa6   :  { %v755_v59 = vmul.f32 %v754_v55, %v4818_v45  ;;  %v744_v4 = vmul.f32 %v743_v57, %v4818_v45  ;;  %v784_v8 = vmul.f32 %v783_v60, %v4822_v48  ;;  %v328_v20 = vadd.f32 %v324_v10, %v320_v13 }
  0xa7   :  { %v795_v62 = vmul.f32 %v794_v58, %v4822_v48  ;;  %v4846_v15 = vmin.f32 %v820_v3, 16.0  ;;  %v4869_v53 = vmin.f32 %v860_v37, 16.0  ;;  %v4911_v37 = vmul.f32 %v4824_v49, %v4766_v9 }
  0xa8   :  { %v756_v63 = vadd.f32 0.014752088, %v755_v59  ;;  %v745_v16 = vadd.f32 0.0036580483, %v744_v4  ;;  %v785_v18 = vadd.f32 0.0036580483, %v784_v8 }
  0xa9   :  { %v796_v11 = vadd.f32 0.014752088, %v795_v62  ;;  %v822_v23 = vmul.f32 2.1237322e-06, %v4846_v15  ;;  %v833_v26 = vmul.f32 3.8918573e-05, %v4846_v15 }
  0xaa   :  { %v757_v7 = vmul.f32 %v756_v63, %v4818_v45  ;;  %v746_v24 = vmul.f32 %v745_v16, %v4818_v45  ;;  %v786_v25 = vmul.f32 %v785_v18, %v4822_v48  ;;  %v329_v28 = vrot.slane %v328_v20, 4 }
  0xab   :  { %v797_v21 = vmul.f32 %v796_v11, %v4822_v48  ;;  %v823_v31 = vadd.f32 0.00028619796, %v822_v23  ;;  %v834_v35 = vadd.f32 0.001143296, %v833_v26  ;;  %v4873_v59 = vmul.f32 0.70710677, %v4834_v61 }
  0xac   :  { %v758_v14 = vadd.f32 0.112945676, %v757_v7  ;;  %v747_v32 = vadd.f32 0.05243302, %v746_v24  ;;  %v787_v33 = vadd.f32 0.05243302, %v786_v25  ;;  %v330_v38 = vadd.f32 %v329_v28, %v328_v20 }
  0xad   :  { %v798_v30 = vadd.f32 0.112945676, %v797_v21  ;;  %v824_v46 = vmul.f32 %v823_v31, %v4846_v15  ;;  %v835_v52 = vmul.f32 %v834_v35, %v4846_v15  ;;  %v862_v3 = vmul.f32 2.1237322e-06, %v4869_v53  ;;  %v271_v31 = vpop.f32.mrf.mxu1 }
  0xae   :  { %v759_v17 = vmul.f32 %v758_v14, %v4818_v45  ;;  %v748_v50 = vmul.f32 %v747_v32, %v4818_v45  ;;  %v788_v51 = vmul.f32 %v787_v33, %v4822_v48  ;;  %v331_v54 = vrot.slane %v330_v38, 2 }
  0xaf   :  { %v799_v44 = vmul.f32 %v798_v30, %v4822_v48  ;;  %v825_v57 = vadd.f32 0.0036580483, %v824_v46  ;;  %v836_v63 = vadd.f32 0.014752088, %v835_v52  ;;  %v873_v7 = vmul.f32 3.8918573e-05, %v4869_v53 }
  0xb0   :  { %v760_v22 = vadd.f32 0.4994258, %v759_v17  ;;  %v332_v58 = vadd.f32 %v331_v54, %v330_v38  ;;  %v749_v60 = vadd.f32 0.18741608, %v748_v50  ;;  %v789_v62 = vadd.f32 0.18741608, %v788_v51 }
  0xb1   :  { %v800_v55 = vadd.f32 0.4994258, %v799_v44  ;;  %v826_v10 = vmul.f32 %v825_v57, %v4846_v15  ;;  %v900_v11 = vmul.f32 %v4873_v59, %v4873_v59  ;;  %v837_v16 = vmul.f32 %v836_v63, %v4846_v15 }
  0xb2   :  { %v761_v29 = vmul.f32 %v760_v22, %v4818_v45  ;;  %v333_v8 = vrot.slane %v332_v58, 1  ;;  %v750_v13 = vmul.f32 %v749_v60, %v4818_v45  ;;  %v790_v14 = vmul.f32 %v789_v62, %v4822_v48 }
  0xb3   :  { %v801_v4 = vmul.f32 %v800_v55, %v4822_v48  ;;  %v863_v17 = vadd.f32 0.00028619796, %v862_v3  ;;  %v874_v20 = vadd.f32 0.001143296, %v873_v7  ;;  %v4888_v22 = vmin.f32 %v900_v11, 16.0 }
  0xb4   :  { %v4862_v43 = vadd.f32 1.0, %v761_v29  ;;  %v334_v21 = vadd.f32 %v333_v8, %v332_v58  ;;  %v827_v24 = vadd.f32 0.05243302, %v826_v10  ;;  %v4893_v25 = vmul.f32 0.5, %v4804_v39 }
  0xb5   :  { %v4886_v18 = vadd.f32 1.0, %v801_v4  ;;  %v751_v26 = vadd.f32 1.1283791, %v750_v13  ;;  %v4897_v45 = vmul.f32 %v4806_v40, %v4758_v6  ;;  %v791_v48 = vadd.f32 1.1283791, %v790_v14 }
  0xb6   :  { %4374 = vrcp.f32 %v4862_v43  ;;  %v838_v28 = vadd.f32 0.112945676, %v837_v16  ;;  %v864_v29 = vmul.f32 %v863_v17, %v4869_v53  ;;  %v4901_v30 = vmul.f32 %v334_v21, %v4753_v5 }
  0xb7   :  { %4376 = vrcp.f32 %v4886_v18  ;;  %v875_v32 = vmul.f32 %v874_v20, %v4869_v53  ;;  %v4906_v39 = vmul.f32 %v334_v21, %v4733_v0  ;;  %v902_v33 = vmul.f32 2.1237322e-06, %v4888_v22 }
  0xb8   :  { %v828_v38 = vmul.f32 %v827_v24, %v4846_v15  ;;  %v4915_v5 = vmul.f32 0.5, %v4834_v61  ;;  %v4918_v44 = vmul.f32 %v751_v26, %v4809_v41  ;;  %v772_v46 = vand.u32 2147483647, %v4862_v43 }
  0xb9   :  { %8743 = vst [vmem:[#allocation8_spill] sm:$0xff] %v4906_v39  ;;  %v774_v0 = vand.u32 2147483648, %v4862_v43  ;;  %v4923_v50 = vadd.f32 %v271_v31, %v4800_v34  ;;  %vm768_vm1 = vweird.f32 %v4862_v43  ;;  %v814_v51 = vand.u32 2147483648, %v4886_v18 }
  0xba   :  { %v839_v52 = vmul.f32 %v838_v28, %v4846_v15  ;;  %v865_v54 = vadd.f32 0.0036580483, %v864_v29  ;;  %v4929_v61 = vmul.f32 0.70710677, %v4901_v30  ;;  %v4932_v41 = vmul.f32 %v791_v48, %v4812_v42 }
  0xbb   :  { %v876_v55 = vadd.f32 0.014752088, %v875_v32  ;;  %v4935_v57 = vmul.f32 0.70710677, %v4906_v39  ;;  %v903_v58 = vadd.f32 0.00028619796, %v902_v33  ;;  %v325_v32 = vmul.f32 %v4923_v50, %v4738_v1 }
  0xbc   :  { %v4881_v12 = vpop.eup %4374  ;;  %v812_v60 = vand.u32 2147483647, %v4886_v18  ;;  %v829_v62 = vadd.f32 0.18741608, %v828_v38  ;;  %v380_v63 = vmul.f32 %v4929_v61, %v4929_v61  ;;  %v775_v4 = vor.u32 1.1754944e-38, %v774_v0 }
  0xbd   :  { %v764_v23 = vmul.f32 %v4881_v12, %v4862_v43  ;;  %v4941_v3 = vpop.eup %4376  ;;  %v540_v42 = vmul.f32 %v4935_v57, %v4935_v57  ;;  %v904_v7 = vmul.f32 %v903_v58, %v4888_v22  ;;  %v913_v8 = vmul.f32 3.8918573e-05, %v4888_v22 }
  0xbe   :  { %vm4947_vm2 = vcmp.eq.f32.partialorder %v772_v46, 8.507059e+37  ;;  %v4951_v11 = vor.u32 1.1754944e-38, %v814_v51  ;;  %v840_v13 = vadd.f32 0.4994258, %v839_v52  ;;  %v866_v14 = vmul.f32 %v865_v54, %v4869_v53 }
  0xbf   :  { %v765_v35 = vsub.f32 1.0, %v764_v23  ;;  %v4954_v16 = vmin.f32 %v380_v63, 16.0  ;;  %v877_v17 = vmul.f32 %v876_v55, %v4869_v53  ;;  %v4957_v20 = vmin.f32 %v540_v42, 16.0 }
  0xc0   :  { %v905_v21 = vadd.f32 0.0036580483, %v904_v7  ;;  %v914_v23 = vadd.f32 0.001143296, %v913_v8  ;;  %vm769_vm3 = vweird.f32 %v4881_v12  ;;  %v804_v26 = vmul.f32 %v4941_v3, %v4886_v18 }
  0xc1   :  { %v766_v34 = vmul.f32 %v4881_v12, %v765_v35  ;;  %v4964_v48 = vmul.f32 %v829_v62, %v4846_v15  ;;  %v382_v28 = vmul.f32 2.1237322e-06, %v4954_v16  ;;  %v393_v29 = vmul.f32 3.8918573e-05, %v4954_v16  ;;  %vm4976_vm4 = vmor %vm768_vm1, %vm769_vm3 }
  0xc2   :  { %v542_v31 = vmul.f32 2.1237322e-06, %v4957_v20  ;;  %v841_v33 = vmul.f32 %v840_v13, %v4846_v15  ;;  %v867_v35 = vadd.f32 0.05243302, %v866_v14  ;;  %v553_v38 = vmul.f32 3.8918573e-05, %v4957_v20 }
  0xc3   :  { %v767_v24 = vadd.f32 %v4881_v12, %v766_v34  ;;  %v906_v46 = vmul.f32 %v905_v21, %v4888_v22  ;;  %v383_v51 = vadd.f32 0.00028619796, %v382_v28  ;;  %v394_v52 = vadd.f32 0.001143296, %v393_v29 }
  0xc4   :  { %v543_v54 = vadd.f32 0.00028619796, %v542_v31  ;;  %v915_v55 = vmul.f32 %v914_v23, %v4888_v22  ;;  %v805_v58 = vsub.f32 1.0, %v804_v26  ;;  %v554_v34 = vadd.f32 0.001143296, %v553_v38 }
  0xc5   :  { %v771_v15 = vsel %vm4976_vm4, %v4881_v12, %v767_v24  ;;  %v907_v62 = vadd.f32 0.05243302, %v906_v46  ;;  %vm809_vm5 = vweird.f32 %v4941_v3  ;;  %v384_v43 = vmul.f32 %v383_v51, %v4954_v16 }
  0xc6   :  { %v395_v63 = vmul.f32 %v394_v52, %v4954_v16  ;;  %v544_v42 = vmul.f32 %v543_v54, %v4957_v20  ;;  %v916_v7 = vadd.f32 0.014752088, %v915_v55  ;;  %v4988_v8 = vadd.f32 1.0, %v841_v33 }
  0xc7   :  { %v878_v13 = vadd.f32 0.112945676, %v877_v17  ;;  %v555_v14 = vmul.f32 %v554_v34, %v4957_v20  ;;  %v908_v21 = vmul.f32 %v907_v62, %v4888_v22  ;;  %v776_v12 = vsel %vm4947_vm2, %v775_v4, %v771_v15 }
  0xc8   :  { %vm808_vm6 = vweird.f32 %v4886_v18  ;;  %v385_v23 = vadd.f32 0.0036580483, %v384_v43  ;;  %v396_v24 = vadd.f32 0.014752088, %v395_v63  ;;  %v545_v26 = vadd.f32 0.0036580483, %v544_v42  ;;  %v294_v42 = vpop.f32.mrf.mxu2 }
  0xc9   :  { %v806_v28 = vmul.f32 %v4941_v3, %v805_v58  ;;  %v868_v29 = vmul.f32 %v867_v35, %v4869_v53  ;;  %v556_v31 = vadd.f32 0.014752088, %v555_v14  ;;  %v335_v33 = vadd.f32 %v325_v32, %v4897_v45  ;;  %vm5025_vm8 = vmor %vm808_vm6, %vm809_vm5 }
  0xca   :  { %v386_v17 = vmul.f32 %v385_v23, %v4954_v16  ;;  %v397_v38 = vmul.f32 %v396_v24, %v4954_v16  ;;  %v546_v46 = vmul.f32 %v545_v26, %v4957_v20  ;;  %v917_v4 = vmul.f32 %v916_v7, %v4888_v22 }
  0xcb   :  { %v777_v10 = vmul.f32 %v776_v12, %v4918_v44  ;;  %v879_v0 = vmul.f32 %v878_v13, %v4869_v53  ;;  %v557_v51 = vmul.f32 %v556_v31, %v4957_v20  ;;  %v909_v52 = vadd.f32 0.18741608, %v908_v21 }
  0xcc   :  { %4378 = vrcp.f32 %v4988_v8  ;;  %v387_v35 = vadd.f32 0.05243302, %v386_v17  ;;  %v398_v54 = vadd.f32 0.112945676, %v397_v38  ;;  %v547_v45 = vadd.f32 0.05243302, %v546_v46 }
  0xcd   :  { %v807_v32 = vadd.f32 %v4941_v3, %v806_v28  ;;  %vm5009_vm7 = vcmp.eq.f32.partialorder %v812_v60, 8.507059e+37  ;;  %v5013_v15 = vadd.f32 0.18741608, %v868_v29  ;;  %v558_v44 = vadd.f32 0.112945676, %v557_v51 }
  0xce   :  { %v336_v58 = vrot.slane %v335_v33, 4  ;;  %v388_v34 = vmul.f32 %v387_v35, %v4954_v16  ;;  %v399_v62 = vmul.f32 %v398_v54, %v4954_v16  ;;  %v548_v43 = vmul.f32 %v547_v45, %v4957_v20 }
  0xcf   :  { %v918_v63 = vadd.f32 0.112945676, %v917_v4  ;;  %v4264_v7 = vclamps-f32 %v777_v10, 1.0  ;;  %v559_v13 = vmul.f32 %v558_v44, %v4957_v20  ;;  %v910_v60 = vmul.f32 %v909_v52, %v4888_v22 }
  0xd0   :  { %v337_v14 = vadd.f32 %v336_v58, %v335_v33  ;;  %v389_v21 = vadd.f32 0.18741608, %v388_v34  ;;  %v400_v12 = vadd.f32 0.4994258, %v399_v62  ;;  %v549_v23 = vadd.f32 0.18741608, %v548_v43 }
  0xd1   :  { %v919_v24 = vmul.f32 %v918_v63, %v4888_v22  ;;  %v5029_v28 = vadd.f32 0.4994258, %v879_v0  ;;  %v560_v29 = vadd.f32 0.4994258, %v559_v13  ;;  %v5032_v17 = vadd.f32 %v294_v42, %v4802_v36 }
  0xd2   :  { %v338_v31 = vrot.slane %v337_v14, 2  ;;  %v5034_v33 = vpop.eup %4378  ;;  %v811_v38 = vsel %vm5025_vm8, %v4941_v3, %v807_v32  ;;  %v390_v46 = vmul.f32 %v389_v21, %v4954_v16  ;;  %v401_v18 = vmul.f32 %v400_v12, %v4954_v16 }
  0xd3   :  { %v920_v4 = vadd.f32 0.4994258, %v919_v24  ;;  %v550_v10 = vmul.f32 %v549_v23, %v4957_v20  ;;  %v561_v0 = vmul.f32 %v560_v29, %v4957_v20  ;;  %v5044_v52 = vmul.f32 0.70710677, %v4923_v50 }
  0xd4   :  { %v339_v51 = vadd.f32 %v338_v31, %v337_v14  ;;  %v1060_v36 = vadd.f32 1.0, %v4264_v7  ;;  %v5046_v35 = vadd.f32 1.0, %v401_v18  ;;  %v911_v54 = vadd.f32 1.1283791, %v910_v60 }
  0xd5   :  { %v921_v45 = vmul.f32 %v920_v4, %v4888_v22  ;;  %v5049_v3 = vadd.f32 1.0, %v561_v0  ;;  %v940_v16 = vmul.f32 %v5044_v52, %v5044_v52  ;;  %v326_v44 = vmul.f32 %v5032_v17, %v4743_v2 }
  0xd6   :  { %v340_v32 = vrot.slane %v339_v51, 1  ;;  %v5058_v20 = vsel %vm5009_vm7, %v4951_v11, %v811_v38  ;;  %v5061_v58 = vmul.f32 0.5, %v4901_v30  ;;  %v391_v34 = vadd.f32 1.1283791, %v390_v46 }
  0xd7   :  { %4380 = vrcp.f32 %v5046_v35  ;;  %v5066_v22 = vmul.f32 %v5034_v33, %v4988_v8  ;;  %v5069_v62 = vmul.f32 0.5, %v4906_v39  ;;  %v551_v43 = vadd.f32 1.1283791, %v550_v10 }
  0xd8   :  { %4382 = vrcp.f32 %v5049_v3  ;;  %v5073_v55 = vmul.f32 %v1060_v36, %v4893_v25  ;;  %v412_v11 = vand.u32 2147483647, %v5046_v35  ;;  %v5077_v63 = vmul.f32 %v911_v54, %v4873_v59 }
  0xd9   :  { %v5079_v42 = vadd.f32 1.0, %v921_v45  ;;  %v414_v7 = vand.u32 2147483648, %v5046_v35  ;;  %v341_v13 = vadd.f32 %v340_v32, %v339_v51  ;;  %v5082_v60 = vmin.f32 %v940_v16, 16.0 }
  0xda   :  { %v342_v14 = vadd.f32 %v326_v44, %v4911_v37  ;;  %v392_v21 = vmul.f32 %v391_v34, %v4929_v61  ;;  %v572_v12 = vand.u32 2147483647, %v5049_v3  ;;  %v574_v25 = vand.u32 2147483648, %v5049_v3 }
  0xdb   :  { %4384 = vrcp.f32 %v5079_v42  ;;  %vm408_vm9 = vweird.f32 %v5046_v35  ;;  %v552_v59 = vmul.f32 %v551_v43, %v4935_v57  ;;  %v934_v23 = vand.u32 2147483648, %v5079_v42 }
  0xdc   :  { %v5093_v24 = vmul.f32 %v341_v13, %v4758_v6  ;;  %v5096_v26 = vmul.f32 %v341_v13, %v4738_v1  ;;  %vm568_vm10 = vweird.f32 %v5049_v3  ;;  %v942_v61 = vmul.f32 2.1237322e-06, %v5082_v60 }
  0xdd   :  { %v4381_v37 = vpop.eup %4380  ;;  %v953_v29 = vmul.f32 3.8918573e-05, %v5082_v60  ;;  %v343_v31 = vrot.slane %v342_v14, 4  ;;  %vm5102_vm11 = vcmp.eq.f32.partialorder %v412_v11, 8.507059e+37  ;;  %v415_v6 = vor.u32 1.1754944e-38, %v414_v7 }
  0xde   :  { %8752 = vst [vmem:[#allocation9_spill] sm:$0xff] %v5096_v26  ;;  %v4383_v38 = vpop.eup %4382  ;;  %v404_v46 = vmul.f32 %v4381_v37, %v5046_v35  ;;  %v932_v18 = vand.u32 2147483647, %v5079_v42  ;;  %vm409_vm12 = vweird.f32 %v4381_v37  ;;  %vm5108_vm13 = vcmp.eq.f32.partialorder %v572_v12, 8.507059e+37 }
  0xdf   :  { %v564_v1 = vmul.f32 %v4383_v38, %v5049_v3  ;;  %v575_v10 = vor.u32 1.1754944e-38, %v574_v25  ;;  %v935_v0 = vor.u32 1.1754944e-38, %v934_v23  ;;  %vm928_vm14 = vweird.f32 %v5079_v42  ;;  %vm410_vm3 = vmor %vm408_vm9, %vm409_vm12 }
  0xe0   :  { %v405_v51 = vsub.f32 1.0, %v404_v46  ;;  %v5114_v36 = vmul.f32 0.70710677, %v5093_v24  ;;  %v5117_v54 = vmul.f32 0.70710677, %v5096_v26  ;;  %v5119_v45 = vadd.f32 %v343_v31, %v342_v14 }
  0xe1   :  { %v4385_v32 = vpop.eup %4384  ;;  %v565_v16 = vsub.f32 1.0, %v564_v1  ;;  %vm569_vm15 = vweird.f32 %v4383_v38  ;;  %v943_v44 = vadd.f32 0.00028619796, %v942_v61  ;;  %v954_v34 = vadd.f32 0.001143296, %v953_v29 }
  0xe2   :  { %v406_v43 = vmul.f32 %v4381_v37, %v405_v51  ;;  %v924_v11 = vmul.f32 %v4385_v32, %v5079_v42  ;;  %vm929_vm1 = vweird.f32 %v4385_v32  ;;  %vm5122_vm2 = vcmp.eq.f32.partialorder %v932_v18, 8.507059e+37  ;;  %vm570_vm4 = vmor %vm568_vm10, %vm569_vm15 }
  0xe3   :  { %v420_v13 = vmul.f32 %v5114_v36, %v5114_v36  ;;  %v566_v12 = vmul.f32 %v4383_v38, %v565_v16  ;;  %v580_v14 = vmul.f32 %v5117_v54, %v5117_v54  ;;  %v944_v25 = vmul.f32 %v943_v44, %v5082_v60  ;;  %vm930_vm5 = vmor %vm928_vm14, %vm929_vm1 }
  0xe4   :  { %v955_v23 = vmul.f32 %v954_v34, %v5082_v60  ;;  %v407_v61 = vadd.f32 %v4381_v37, %v406_v43  ;;  %v925_v29 = vsub.f32 1.0, %v924_v11  ;;  %v345_v46 = vrot.slane %v5119_v45, 2 }
  0xe5   :  { %v5132_v31 = vmin.f32 %v420_v13, 16.0  ;;  %v567_v18 = vadd.f32 %v4383_v38, %v566_v12  ;;  %v5138_v1 = vmin.f32 %v580_v14, 16.0  ;;  %v945_v51 = vadd.f32 0.0036580483, %v944_v25 }
  0xe6   :  { %v956_v16 = vadd.f32 0.014752088, %v955_v23  ;;  %v411_v39 = vsel %vm410_vm3, %v4381_v37, %v407_v61  ;;  %v926_v44 = vmul.f32 %v4385_v32, %v925_v29  ;;  %vm848_vm14 = vweird.f32 %v4988_v8 }
  0xe7   :  { %v422_v34 = vmul.f32 2.1237322e-06, %v5132_v31  ;;  %v433_v43 = vmul.f32 3.8918573e-05, %v5132_v31  ;;  %v416_v11 = vsel %vm5102_vm11, %v415_v6, %v411_v39  ;;  %v571_v35 = vsel %vm570_vm4, %v4383_v38, %v567_v18 }
  0xe8   :  { %v582_v13 = vmul.f32 2.1237322e-06, %v5138_v1  ;;  %v593_v12 = vmul.f32 3.8918573e-05, %v5138_v1  ;;  %v417_v14 = vmul.f32 %v416_v11, %v392_v21  ;;  %v576_v37 = vsel %vm5108_vm13, %v575_v10, %v571_v35 }
  0xe9   :  { %v927_v25 = vadd.f32 %v4385_v32, %v926_v44  ;;  %v423_v3 = vadd.f32 0.00028619796, %v422_v34  ;;  %v577_v23 = vmul.f32 %v576_v37, %v552_v59  ;;  %v434_v61 = vadd.f32 0.001143296, %v433_v43 }
  0xea   :  { %v583_v29 = vadd.f32 0.00028619796, %v582_v13  ;;  %v594_v57 = vadd.f32 0.001143296, %v593_v12  ;;  %v4256_v39 = vclamps-f32 %v417_v14, 1.0  ;;  %v946_v18 = vmul.f32 %v945_v51, %v5082_v60 }
  0xeb   :  { %v931_v38 = vsel %vm930_vm5, %v4385_v32, %v927_v25  ;;  %v424_v6 = vmul.f32 %v423_v3, %v5132_v31  ;;  %v4260_v21 = vclamps-f32 %v577_v23, 1.0  ;;  %v435_v10 = vmul.f32 %v434_v61, %v5132_v31 }
  0xec   :  { %v936_v4 = vsel %vm5122_vm2, %v935_v0, %v931_v38  ;;  %v584_v59 = vmul.f32 %v583_v29, %v5138_v1  ;;  %v700_v44 = vadd.f32 1.0, %v4256_v39  ;;  %v595_v43 = vmul.f32 %v594_v57, %v5138_v1 }
  0xed   :  { %v937_v42 = vmul.f32 %v936_v4, %v5077_v63  ;;  %v425_v34 = vadd.f32 0.0036580483, %v424_v6  ;;  %v704_v11 = vadd.f32 1.0, %v4260_v21  ;;  %v436_v32 = vadd.f32 0.014752088, %v435_v10 }
  0xee   :  { %v585_v35 = vadd.f32 0.0036580483, %v584_v59  ;;  %v957_v13 = vmul.f32 %v956_v16, %v5082_v60  ;;  %v708_v51 = vmul.f32 %v700_v44, %v5061_v58  ;;  %v596_v7 = vadd.f32 0.014752088, %v595_v43 }
  0xef   :  { %v4268_v12 = vclamps-f32 %v937_v42, 1.0  ;;  %v426_v0 = vmul.f32 %v425_v34, %v5132_v31  ;;  %v712_v14 = vmul.f32 %v704_v11, %v5069_v62  ;;  %v437_v37 = vmul.f32 %v436_v32, %v5132_v31 }
  0xf0   :  { %v586_v63 = vmul.f32 %v585_v35, %v5138_v1  ;;  %v947_v25 = vadd.f32 0.05243302, %v946_v18  ;;  %v5168_v3 = vadd.f32 1.0, %v708_v51  ;;  %v597_v29 = vmul.f32 %v596_v7, %v5138_v1 }
  0xf1   :  { %v1064_v23 = vadd.f32 1.0, %v4268_v12  ;;  %v427_v61 = vadd.f32 0.05243302, %v426_v0  ;;  %v1076_v16 = vadd.f32 1.0, %v5073_v55  ;;  %v438_v58 = vadd.f32 0.112945676, %v437_v37 }
  0xf2   :  { %v587_v57 = vadd.f32 0.05243302, %v586_v63  ;;  %v948_v39 = vmul.f32 %v947_v25, %v5082_v60  ;;  %v5173_v38 = vadd.f32 1.0, %v712_v14  ;;  %v598_v21 = vadd.f32 0.112945676, %v597_v29 }
  0xf3   :  { %v1072_v62 = vmul.f32 %v1064_v23, %v4915_v5  ;;  %v428_v6 = vmul.f32 %v427_v61, %v5132_v31  ;;  %v1084_v18 = vmul.f32 %v1076_v16, %v5168_v3  ;;  %v439_v4 = vmul.f32 %v438_v58, %v5132_v31 }
  0xf4   :  { %v588_v10 = vmul.f32 %v587_v57, %v5138_v1  ;;  %v958_v59 = vadd.f32 0.112945676, %v957_v13  ;;  %v599_v55 = vmul.f32 %v598_v21, %v5138_v1  ;;  %v949_v42 = vadd.f32 0.18741608, %v948_v39 }
  0xf5   :  { %v1080_v44 = vadd.f32 1.0, %v1072_v62  ;;  %v346_v34 = vadd.f32 %v345_v46, %v5119_v45  ;;  %v817_v5 = vmul.f32 %v5058_v20, %v4932_v41  ;;  %v881_v43 = vmul.f32 %v5029_v28, %v4869_v53 }
  0xf6   :  { %v440_v11 = vadd.f32 0.4994258, %v439_v4  ;;  %v959_v32 = vmul.f32 %v958_v59, %v5082_v60  ;;  %v429_v13 = vadd.f32 0.18741608, %v428_v6  ;;  %v600_v51 = vadd.f32 0.4994258, %v599_v55 }
  0xf7   :  { %v1088_v35 = vmul.f32 %v1080_v44, %v5173_v38  ;;  %v347_v12 = vrot.slane %v346_v34, 1  ;;  %v845_v0 = vsub.f32 1.0, %v5066_v22  ;;  %v589_v14 = vadd.f32 0.18741608, %v588_v10 }
  0xf8   :  { %v441_v7 = vmul.f32 %v440_v11, %v5132_v31  ;;  %v960_v45 = vadd.f32 0.4994258, %v959_v32  ;;  %v601_v41 = vmul.f32 %v600_v51, %v5138_v1  ;;  %v950_v28 = vmul.f32 %v949_v42, %v5082_v60 }
  0xf9   :  { %v5192_v46 = vadd.f32 %v1088_v35, %v1084_v18  ;;  %v348_v20 = vadd.f32 %v347_v12, %v346_v34  ;;  %v831_v37 = vadd.f32 1.1283791, %v4964_v48  ;;  %v854_v63 = vand.u32 2147483648, %v4988_v8 }
  0xfa   :  { %v870_v25 = vmul.f32 %v5013_v15, %v4869_v53  ;;  %v5200_v23 = vadd.f32 1.0, %v441_v7  ;;  %v5202_v22 = vadd.f32 1.0, %v881_v43  ;;  %v430_v61 = vmul.f32 %v429_v13, %v5132_v31 }
  0xfb   :  { %v5205_v29 = vadd.f32 1.0, %v601_v41  ;;  %v961_v16 = vmul.f32 %v960_v45, %v5082_v60  ;;  %v4265_v58 = vclamps-f32 %v817_v5, 1.0  ;;  %v590_v48 = vmul.f32 %v589_v14, %v5138_v1 }
  0xfc   :  { %4386 = vrcp.f32 %v5200_v23  ;;  %v5211_v57 = vmul.f32 %v348_v20, %v4766_v9  ;;  %v5214_v53 = vmul.f32 0.5, %v4806_v40  ;;  %v846_v15 = vmul.f32 %v5034_v33, %v845_v0 }
  0xfd   :  { %4388 = vrcp.f32 %v5205_v29  ;;  %v951_v31 = vadd.f32 1.1283791, %v950_v28  ;;  %v5219_v39 = vmul.f32 0.5, %v4824_v49  ;;  %v5222_v60 = vmul.f32 %v831_v37, %v4831_v56 }
  0xfe   :  { %8759 = vst [vmem:[#allocation10_spill] sm:$0xff] %v5211_v57  ;;  %v852_v62 = vand.u32 2147483647, %v4988_v8  ;;  %v5225_v1 = vor.u32 1.1754944e-38, %v854_v63  ;;  %v5227_v9 = vadd.f32 1.1283791, %v870_v25  ;;  %v5232_v21 = vmul.f32 %v348_v20, %v4743_v2 }
  0xff   :  { %v431_v6 = vadd.f32 1.1283791, %v430_v61  ;;  %v5229_v40 = vadd.f32 1.0, %v961_v16  ;;  %v5234_v18 = vadd.f32 1.0, %v4265_v58  ;;  %4390 = vrcp.f32 %v5202_v22 }
 0x100   :  { %8760 = vst [vmem:[#allocation11_spill] sm:$0xff] %v5232_v21  ;;  %v591_v49 = vadd.f32 1.1283791, %v590_v48  ;;  %v5238_v56 = vmul.f32 0.70710677, %v5211_v57  ;;  %v5241_v4 = vadd.f32 %v5034_v33, %v846_v15  ;;  %v5244_v10 = vmul.f32 0.5, %v5093_v24 }
 0x101   :  { %v5247_v59 = vmul.f32 %v951_v31, %v5044_v52  ;;  %4392 = vrcp.f32 %v5229_v40  ;;  %v1093_v44 = vrot.slane %v5192_v46, 4  ;;  %v452_v55 = vand.u32 2147483647, %v5200_v23 }
 0x102   :  { %v4387_v2 = vpop.eup %4386  ;;  %v5253_v42 = vmul.f32 0.70710677, %v5232_v21  ;;  %v460_v34 = vmul.f32 %v5238_v56, %v5238_v56  ;;  %v432_v43 = vmul.f32 %v431_v6, %v5114_v36  ;;  %vm448_vm6 = vweird.f32 %v5200_v23 }
 0x103   :  { %v4389_v5 = vpop.eup %4388  ;;  %v444_v11 = vmul.f32 %v4387_v2, %v5200_v23  ;;  %v454_v52 = vand.u32 2147483648, %v5200_v23  ;;  %v592_v32 = vmul.f32 %v591_v49, %v5117_v54  ;;  %vm608_vm7 = vweird.f32 %v5205_v29 }
 0x104   :  { %v604_v35 = vmul.f32 %v4389_v5, %v5205_v29  ;;  %v5264_v13 = vmin.f32 %v460_v34, 16.0  ;;  %v612_v12 = vand.u32 2147483647, %v5205_v29  ;;  %v614_v0 = vand.u32 2147483648, %v5205_v29 }
 0x105   :  { %v445_v51 = vsub.f32 1.0, %v444_v11  ;;  %v620_v36 = vmul.f32 %v5253_v42, %v5253_v42  ;;  %v5270_v7 = vpop.eup %4390  ;;  %vm5272_vm8 = vcmp.eq.f32.partialorder %v452_v55, 8.507059e+37  ;;  %vm449_vm9 = vweird.f32 %v4387_v2 }
 0x106   :  { %v605_v54 = vsub.f32 1.0, %v604_v35  ;;  %v462_v45 = vmul.f32 2.1237322e-06, %v5264_v13  ;;  %v473_v41 = vmul.f32 3.8918573e-05, %v5264_v13  ;;  %v455_v37 = vor.u32 1.1754944e-38, %v454_v52  ;;  %vm450_vm13 = vmor %vm448_vm6, %vm449_vm9 }
 0x107   :  { %v4393_v28 = vpop.eup %4392  ;;  %v446_v20 = vmul.f32 %v4387_v2, %v445_v51  ;;  %v5278_v63 = vmin.f32 %v620_v36, 16.0  ;;  %vm609_vm10 = vweird.f32 %v4389_v5  ;;  %vm849_vm11 = vweird.f32 %v5034_v33 }
 0x108   :  { %v606_v25 = vmul.f32 %v4389_v5, %v605_v54  ;;  %v964_v61 = vmul.f32 %v4393_v28, %v5229_v40  ;;  %v463_v16 = vadd.f32 0.00028619796, %v462_v45  ;;  %vm5282_vm12 = vcmp.eq.f32.partialorder %v612_v12, 8.507059e+37  ;;  %vm610_vm15 = vmor %vm608_vm7, %vm609_vm10 }
 0x109   :  { %v447_v58 = vadd.f32 %v4387_v2, %v446_v20  ;;  %v615_v15 = vor.u32 1.1754944e-38, %v614_v0  ;;  %v474_v31 = vadd.f32 0.001143296, %v473_v41  ;;  %v974_v55 = vand.u32 2147483648, %v5229_v40  ;;  %vm5328_vm6 = vmor %vm848_vm14, %vm849_vm11 }
 0x10a   :  { %v607_v6 = vadd.f32 %v4389_v5, %v606_v25  ;;  %v965_v49 = vsub.f32 1.0, %v964_v61  ;;  %v464_v34 = vmul.f32 %v463_v16, %v5264_v13  ;;  %v972_v52 = vand.u32 2147483647, %v5229_v40 }
 0x10b   :  { %v451_v11 = vsel %vm450_vm13, %v4387_v2, %v447_v58  ;;  %v475_v35 = vmul.f32 %v474_v31, %v5264_v13  ;;  %v633_v23 = vmul.f32 3.8918573e-05, %v5278_v63  ;;  %vm969_vm1 = vweird.f32 %v4393_v28 }
 0x10c   :  { %v456_v51 = vsel %vm5272_vm8, %v455_v37, %v451_v11  ;;  %v611_v12 = vsel %vm610_vm15, %v4389_v5, %v607_v6  ;;  %v966_v0 = vmul.f32 %v4393_v28, %v965_v49  ;;  %vm968_vm2 = vweird.f32 %v5229_v40 }
 0x10d   :  { %v457_v36 = vmul.f32 %v456_v51, %v432_v43  ;;  %v616_v2 = vsel %vm5282_vm12, %v615_v15, %v611_v12  ;;  %v476_v29 = vadd.f32 0.014752088, %v475_v35  ;;  %v975_v41 = vor.u32 1.1754944e-38, %v974_v55  ;;  %vm970_vm3 = vmor %vm968_vm2, %vm969_vm1 }
 0x10e   :  { %v617_v54 = vmul.f32 %v616_v2, %v592_v32  ;;  %v967_v45 = vadd.f32 %v4393_v28, %v966_v0  ;;  %v465_v20 = vadd.f32 0.0036580483, %v464_v34  ;;  %v622_v14 = vmul.f32 2.1237322e-06, %v5278_v63 }
 0x10f   :  { %v4257_v25 = vclamps-f32 %v457_v36, 1.0  ;;  %v477_v61 = vmul.f32 %v476_v29, %v5264_v13  ;;  %v634_v5 = vadd.f32 0.001143296, %v633_v23  ;;  %vm5306_vm4 = vcmp.eq.f32.partialorder %v852_v62, 8.507059e+37 }
 0x110   :  { %v4261_v37 = vclamps-f32 %v617_v54, 1.0  ;;  %v971_v40 = vsel %vm970_vm3, %v4393_v28, %v967_v45  ;;  %vm973_vm5 = vcmp.eq.f32.partialorder %v972_v52, 8.507059e+37  ;;  %v5311_v32 = vmul.f32 0.70710677, %v5032_v17 }
 0x111   :  { %v1094_v16 = vadd.f32 %v1093_v44, %v5192_v46  ;;  %v701_v58 = vadd.f32 1.0, %v4257_v25  ;;  %v976_v48 = vsel %vm973_vm5, %v975_v41, %v971_v40  ;;  %v478_v15 = vadd.f32 0.112945676, %v477_v61 }
 0x112   :  { %v369_v31 = vmul.f32 0.5, %v5096_v26  ;;  %v705_v6 = vadd.f32 1.0, %v4261_v37  ;;  %v977_v62 = vmul.f32 %v976_v48, %v5247_v59  ;;  %v466_v49 = vmul.f32 %v465_v20, %v5264_v13  ;;  %v5360_v48 = vld [vmem:[%s8624_s0 + $0x18] sm:$0xff] }
 0x113   :  { %v709_v28 = vmul.f32 %v701_v58, %v5244_v10  ;;  %v479_v55 = vmul.f32 %v478_v15, %v5264_v13  ;;  %v623_v34 = vadd.f32 0.00028619796, %v622_v14  ;;  %v635_v11 = vmul.f32 %v634_v5, %v5278_v63  ;;  %v317_v14 = vpop.f32.mrf.mxu3 }
 0x114   :  { %v1069_v46 = vmul.f32 %v5234_v18, %v5214_v53  ;;  %v713_v59 = vmul.f32 %v705_v6, %v369_v31  ;;  %v4269_v52 = vclamps-f32 %v977_v62, 1.0  ;;  %v980_v10 = vmul.f32 %v5311_v32, %v5311_v32 }
 0x115   :  { %v851_v35 = vsel %vm5328_vm6, %v5034_v33, %v5241_v4  ;;  %v1095_v23 = vrot.slane %v1094_v16, 2  ;;  %v480_v53 = vadd.f32 0.4994258, %v479_v55  ;;  %v636_v18 = vadd.f32 0.014752088, %v635_v11 }
 0x116   :  { %v5338_v51 = vadd.f32 1.0, %v709_v28  ;;  %v729_v8 = vmul.f32 0.5, %v4923_v50  ;;  %v1065_v12 = vadd.f32 1.0, %v4269_v52  ;;  %v467_v0 = vadd.f32 0.05243302, %v466_v49 }
 0x117   :  { %v894_v36 = vand.u32 2147483648, %v5202_v22  ;;  %v481_v2 = vmul.f32 %v480_v53, %v5264_v13  ;;  %v624_v29 = vmul.f32 %v623_v34, %v5278_v63  ;;  %v637_v54 = vmul.f32 %v636_v18, %v5278_v63 }
 0x118   :  { %v1077_v45 = vadd.f32 1.0, %v1069_v46  ;;  %v5345_v41 = vadd.f32 1.0, %v713_v59  ;;  %v1073_v33 = vmul.f32 %v1065_v12, %v729_v8  ;;  %v5347_v4 = vmin.f32 %v980_v10, 16.0 }
 0x119   :  { %v856_v50 = vsel %vm5306_vm4, %v5225_v1, %v851_v35  ;;  %v1096_v20 = vadd.f32 %v1095_v23, %v1094_v16  ;;  %v5352_v25 = vadd.f32 1.0, %v481_v2  ;;  %v638_v61 = vadd.f32 0.112945676, %v637_v54  ;;  %v5386_v23 = vld [vmem:[%s8624_s0 + $0x38] sm:$0xff] }
 0x11a   :  { %v1081_v5 = vadd.f32 1.0, %v1073_v33  ;;  %v1085_v37 = vmul.f32 %v1077_v45, %v5338_v51  ;;  %v468_v40 = vmul.f32 %v467_v0, %v5264_v13  ;;  %v982_v58 = vmul.f32 2.1237322e-06, %v5347_v4 }
 0x11b   :  { %v323_v1 = vmul.f32 %v5360_v48, %v4849_v19  ;;  %v5366_v43 = vmul.f32 %v5227_v9, %v4857_v27  ;;  %4394 = vrcp.f32 %v5352_v25  ;;  %v625_v16 = vadd.f32 0.0036580483, %v624_v29 }
 0x11c   :  { %v857_v15 = vmul.f32 %v856_v50, %v5222_v60  ;;  %v884_v31 = vmul.f32 %v5270_v7, %v5202_v22  ;;  %v1089_v6 = vmul.f32 %v1081_v5, %v5345_v41  ;;  %v5374_v62 = vadd.f32 %v317_v14, %v4820_v47 }
 0x11d   :  { %v1097_v49 = vrot.slane %v1096_v20, 1  ;;  %v639_v28 = vmul.f32 %v638_v61, %v5278_v63  ;;  %v983_v55 = vadd.f32 0.00028619796, %v982_v58  ;;  %v993_v27 = vmul.f32 3.8918573e-05, %v5347_v4 }
 0x11e   :  { %v892_v9 = vand.u32 2147483647, %v5202_v22  ;;  %v5379_v34 = vor.u32 1.1754944e-38, %v894_v36  ;;  %v1099_v11 = vadd.f32 %v1089_v6, %v1085_v37  ;;  %v469_v60 = vadd.f32 0.18741608, %v468_v40 }
 0x11f   :  { %v626_v46 = vmul.f32 %v625_v16, %v5278_v63  ;;  %v640_v44 = vadd.f32 0.4994258, %v639_v28  ;;  %v984_v59 = vmul.f32 %v983_v55, %v5347_v4  ;;  %v994_v52 = vadd.f32 0.001143296, %v993_v27 }
 0x120   :  { %v4266_v47 = vclamps-f32 %v857_v15, 1.0  ;;  %v885_v10 = vsub.f32 1.0, %v884_v31  ;;  %v1100_v35 = vrot.slane %v1099_v11, 4  ;;  %v327_v53 = vmul.f32 %v5386_v23, %v5374_v62 }
 0x121   :  { %v4395_v18 = vpop.eup %4394  ;;  %v1098_v8 = vadd.f32 %v1097_v49, %v1096_v20  ;;  %v641_v12 = vmul.f32 %v640_v44, %v5278_v63  ;;  %v985_v0 = vadd.f32 0.0036580483, %v984_v59  ;;  %v995_v36 = vmul.f32 %v994_v52, %v5347_v4 }
 0x122   :  { %v1101_v2 = vadd.f32 %v1100_v35, %v1099_v11  ;;  %v470_v29 = vmul.f32 %v469_v60, %v5264_v13  ;;  %v484_v54 = vmul.f32 %v4395_v18, %v5352_v25  ;;  %v349_v45 = vadd.f32 %v327_v53, %v323_v1 }
 0x123   :  { %v627_v33 = vadd.f32 0.05243302, %v626_v46  ;;  %v5394_v50 = vadd.f32 1.0, %v641_v12  ;;  %v986_v61 = vmul.f32 %v985_v0, %v5347_v4  ;;  %v996_v14 = vadd.f32 0.014752088, %v995_v36 }
 0x124   :  { %v1102_v5 = vrot.slane %v1101_v2, 2  ;;  %v485_v37 = vsub.f32 1.0, %v484_v54  ;;  %v350_v20 = vrot.slane %v349_v45, 4  ;;  %v5398_v40 = vmul.f32 0.70710677, %v5374_v62 }
 0x125   :  { %v5401_v58 = vmul.f32 %v5270_v7, %v885_v10  ;;  %v1120_v13 = vmul.f32 %v1098_v8, %v5168_v3  ;;  %v1124_v16 = vmul.f32 %v1098_v8, %v5173_v38  ;;  %4396 = vrcp.f32 %v5394_v50 }
 0x126   :  { %v1103_v1 = vadd.f32 %v1102_v5, %v1101_v2  ;;  %v471_v15 = vadd.f32 1.1283791, %v470_v29  ;;  %v486_v31 = vmul.f32 %v4395_v18, %v485_v37  ;;  %v987_v6 = vadd.f32 0.05243302, %v986_v61 }
 0x127   :  { %vm489_vm7 = vweird.f32 %v4395_v18  ;;  %v628_v49 = vmul.f32 %v627_v33, %v5278_v63  ;;  %v997_v28 = vmul.f32 %v996_v14, %v5347_v4  ;;  %v351_v55 = vadd.f32 %v350_v20, %v349_v45 }
 0x128   :  { %v1104_v27 = vrot.slane %v1103_v1, 1  ;;  %v487_v11 = vadd.f32 %v4395_v18, %v486_v31  ;;  %v494_v60 = vand.u32 2147483648, %v5352_v25  ;;  %v1020_v3 = vmul.f32 %v5398_v40, %v5398_v40 }
 0x129   :  { %vm488_vm8 = vweird.f32 %v5352_v25  ;;  %v492_v38 = vand.u32 2147483647, %v5352_v25  ;;  %v998_v46 = vadd.f32 0.112945676, %v997_v28  ;;  %v352_v44 = vrot.slane %v351_v55, 2 }
 0x12a   :  { %v1062_v59 = vadd.f32 1.0, %v4266_v47  ;;  %v5413_v52 = vmul.f32 0.17677669, %v1120_v13  ;;  %v1105_v10 = vadd.f32 %v1104_v27, %v1103_v1  ;;  %vm5416_vm9 = vmor %vm488_vm8, %vm489_vm7  ;;  %v988_v53 = vmul.f32 %v987_v6, %v5347_v4 }
 0x12b   :  { %v4397_v8 = vpop.eup %4396  ;;  %v491_v12 = vsel %vm5416_vm9, %v4395_v18, %v487_v11  ;;  %v629_v0 = vadd.f32 0.18741608, %v628_v49  ;;  %v999_v25 = vmul.f32 %v998_v46, %v5347_v4  ;;  %v353_v36 = vadd.f32 %v352_v44, %v351_v55 }
 0x12c   :  { %v5424_v2 = vmul.f32 0.17677669, %v1124_v16  ;;  %v495_v47 = vor.u32 1.1754944e-38, %v494_v60  ;;  %v644_v29 = vmul.f32 %v4397_v8, %v5394_v50  ;;  %v5427_v54 = vmin.f32 %v1020_v3, 16.0 }
 0x12d   :  { %v472_v45 = vmul.f32 %v471_v15, %v5238_v56  ;;  %vm493_vm10 = vcmp.eq.f32.partialorder %v492_v38, 8.507059e+37  ;;  %v1000_v33 = vadd.f32 0.4994258, %v999_v25  ;;  %v354_v61 = vrot.slane %v353_v36, 1 }
 0x12e   :  { %v1121_v14 = vmul.f32 %v1105_v10, %v5338_v51  ;;  %v496_v5 = vsel %vm493_vm10, %v495_v47, %v491_v12  ;;  %v645_v18 = vsub.f32 1.0, %v644_v29  ;;  %v989_v37 = vadd.f32 0.18741608, %v988_v53 }
 0x12f   :  { %v1125_v20 = vmul.f32 %v1105_v10, %v5345_v41  ;;  %v630_v13 = vmul.f32 %v629_v0, %v5278_v63  ;;  %v1001_v16 = vmul.f32 %v1000_v33, %v5347_v4  ;;  %v355_v1 = vadd.f32 %v354_v61, %v353_v36 }
 0x130   :  { %v646_v31 = vmul.f32 %v4397_v8, %v645_v18  ;;  %vm648_vm11 = vweird.f32 %v5394_v50  ;;  %vm649_vm12 = vweird.f32 %v4397_v8  ;;  %v1022_v56 = vmul.f32 2.1237322e-06, %v5427_v54 }
 0x131   :  { %v497_v15 = vmul.f32 %v496_v5, %v472_v45  ;;  %v652_v6 = vand.u32 2147483647, %v5394_v50  ;;  %v654_v51 = vand.u32 2147483648, %v5394_v50  ;;  %v5438_v49 = vadd.f32 1.0, %v1001_v16  ;;  %vm5448_vm13 = vmor %vm648_vm11, %vm649_vm12 }
 0x132   :  { %v5440_v28 = vmul.f32 0.17677669, %v1121_v14  ;;  %v647_v41 = vadd.f32 %v4397_v8, %v646_v31  ;;  %v990_v63 = vmul.f32 %v989_v37, %v5347_v4  ;;  %v5444_v55 = vmul.f32 %v5360_v48, %v355_v1 }
 0x133   :  { %v5446_v27 = vmul.f32 0.17677669, %v1125_v20  ;;  %4398 = vrcp.f32 %v5438_v49  ;;  %v5454_v50 = vmul.f32 %v5386_v23, %v355_v1  ;;  %v1033_v60 = vmul.f32 3.8918573e-05, %v5427_v54 }
 0x134   :  { %8771 = vst [vmem:[#allocation12_spill] sm:$0xff] %v5444_v55  ;;  %v5459_v3 = vadd.f32 %v5270_v7, %v5401_v58  ;;  %v631_v4 = vadd.f32 1.1283791, %v630_v13  ;;  %v651_v48 = vsel %vm5448_vm13, %v4397_v8, %v647_v41  ;;  %v1023_v38 = vadd.f32 0.00028619796, %v1022_v56 }
 0x135   :  { %8774 = vst [vmem:[#allocation13_spill] sm:$0xff] %v5454_v50  ;;  %v5464_v46 = vmul.f32 %v1062_v59, %v5219_v39  ;;  %v5468_v44 = vmax.f32 %v5413_v52, %v5424_v2  ;;  %v655_v23 = vor.u32 1.1754944e-38, %v654_v51  ;;  %v5471_v10 = vmul.f32 0.5, %v5032_v17 }
 0x136   :  { %v4258_v35 = vclamps-f32 %v497_v15, 1.0  ;;  %vm653_vm14 = vcmp.eq.f32.partialorder %v652_v6, 8.507059e+37  ;;  %v991_v58 = vadd.f32 1.1283791, %v990_v63  ;;  %v5474_v53 = vmul.f32 0.70710677, %v5444_v55 }
 0x137   :  { %v1143_v8 = vmax.f32 %v5440_v28, %v5446_v27  ;;  %v656_v12 = vsel %vm653_vm14, %v655_v23, %v651_v48  ;;  %v5479_v39 = vmul.f32 0.70710677, %v5454_v50  ;;  %v1034_v59 = vadd.f32 0.001143296, %v1033_v60 }
 0x138   :  { %v366_v0 = vmul.f32 0.5, %v5211_v57  ;;  %v632_v25 = vmul.f32 %v631_v4, %v5253_v42  ;;  %v500_v17 = vmul.f32 %v5474_v53, %v5474_v53  ;;  %v1024_v36 = vmul.f32 %v1023_v38, %v5427_v54 }
 0x139   :  { %v4399_v47 = vpop.eup %4398  ;;  %v1137_v29 = vrot.slane %v5468_v44, 4  ;;  %v370_v45 = vmul.f32 0.5, %v5232_v21  ;;  %v660_v33 = vmul.f32 %v5479_v39, %v5479_v39  ;;  %v1035_v61 = vmul.f32 %v1034_v59, %v5427_v54  ;;  %v5937_v21 = vld [vmem:[%s8626_s2 + $0x90] sm:$0xff] }
 0x13a   :  { %v657_v14 = vmul.f32 %v656_v12, %v632_v25  ;;  %v702_v5 = vadd.f32 1.0, %v4258_v35  ;;  %v992_v18 = vmul.f32 %v991_v58, %v5311_v32  ;;  %v1004_v42 = vmul.f32 %v4399_v47, %v5438_v49  ;;  %8799 = vst [vmem:[#allocation32_spill] sm:$0xff] %v5937_v21 }
 0x13b   :  { %vm889_vm15 = vweird.f32 %v5270_v7  ;;  %v1144_v37 = vrot.slane %v1143_v8, 4  ;;  %v5494_v20 = vmin.f32 %v500_v17, 16.0  ;;  %v5496_v13 = vmin.f32 %v660_v33, 16.0 }
 0x13c   :  { %v1036_v16 = vadd.f32 0.014752088, %v1035_v61  ;;  %v1005_v1 = vsub.f32 1.0, %v1004_v42  ;;  %v1012_v31 = vand.u32 2147483647, %v5438_v49  ;;  %v1014_v56 = vand.u32 2147483648, %v5438_v49 }
 0x13d   :  { %v1025_v15 = vadd.f32 0.0036580483, %v1024_v36  ;;  %vm888_vm1 = vweird.f32 %v5202_v22  ;;  %vm1008_vm2 = vweird.f32 %v5438_v49  ;;  %v502_v32 = vmul.f32 2.1237322e-06, %v5494_v20 }
 0x13e   :  { %v513_v6 = vmul.f32 3.8918573e-05, %v5494_v20  ;;  %v662_v51 = vmul.f32 2.1237322e-06, %v5496_v13  ;;  %v4262_v41 = vclamps-f32 %v657_v14, 1.0  ;;  %v1006_v63 = vmul.f32 %v4399_v47, %v1005_v1  ;;  %vm5527_vm7 = vmor %vm888_vm1, %vm889_vm15 }
 0x13f   :  { %vm1009_vm3 = vweird.f32 %v4399_v47  ;;  %v1037_v11 = vmul.f32 %v1036_v16, %v5427_v54  ;;  %v1145_v60 = vmax.f32 %v1143_v8, %v1144_v37  ;;  %v503_v4 = vadd.f32 0.00028619796, %v502_v32 }
 0x140   :  { %v514_v48 = vadd.f32 0.001143296, %v513_v6  ;;  %v663_v38 = vadd.f32 0.00028619796, %v662_v51  ;;  %v1007_v23 = vadd.f32 %v4399_v47, %v1006_v63  ;;  %vm1013_vm4 = vcmp.eq.f32.partialorder %v1012_v31, 8.507059e+37  ;;  %vm1010_vm5 = vmor %vm1008_vm2, %vm1009_vm3 }
 0x141   :  { %v673_v35 = vmul.f32 3.8918573e-05, %v5496_v13  ;;  %v1026_v58 = vmul.f32 %v1025_v15, %v5427_v54  ;;  %v1015_v12 = vor.u32 1.1754944e-38, %v1014_v56  ;;  %v504_v59 = vmul.f32 %v503_v4, %v5494_v20 }
 0x142   :  { %v515_v25 = vmul.f32 %v514_v48, %v5494_v20  ;;  %v664_v17 = vmul.f32 %v663_v38, %v5496_v13  ;;  %vm5515_vm6 = vcmp.eq.f32.partialorder %v892_v9, 8.507059e+37  ;;  %v706_v36 = vadd.f32 1.0, %v4262_v41 }
 0x143   :  { %v1011_v33 = vsel %vm1010_vm5, %v4399_v47, %v1007_v23  ;;  %v674_v61 = vadd.f32 0.001143296, %v673_v35  ;;  %v1038_v14 = vadd.f32 0.112945676, %v1037_v11  ;;  %v710_v42 = vmul.f32 %v702_v5, %v366_v0 }
 0x144   :  { %v1016_v49 = vsel %vm1013_vm4, %v1015_v12, %v1011_v33  ;;  %v505_v37 = vadd.f32 0.0036580483, %v504_v59  ;;  %v516_v16 = vadd.f32 0.014752088, %v515_v25  ;;  %v665_v31 = vadd.f32 0.0036580483, %v664_v17 }
 0x145   :  { %v1017_v1 = vmul.f32 %v1016_v49, %v992_v18  ;;  %v675_v56 = vmul.f32 %v674_v61, %v5496_v13  ;;  %v1027_v15 = vadd.f32 0.05243302, %v1026_v58  ;;  %v1146_v32 = vrot.slane %v1145_v60, 2 }
 0x146   :  { %v506_v6 = vmul.f32 %v505_v37, %v5494_v20  ;;  %v517_v9 = vmul.f32 %v516_v16, %v5494_v20  ;;  %v1039_v51 = vmul.f32 %v1038_v14, %v5427_v54  ;;  %v714_v47 = vmul.f32 %v706_v36, %v370_v45 }
 0x147   :  { %v4270_v5 = vclamps-f32 %v1017_v1, 1.0  ;;  %v666_v18 = vmul.f32 %v665_v31, %v5496_v13  ;;  %v676_v41 = vadd.f32 0.014752088, %v675_v56  ;;  %v891_v63 = vsel %vm5527_vm7, %v5270_v7, %v5459_v3 }
 0x148   :  { %v507_v11 = vadd.f32 0.05243302, %v506_v6  ;;  %v518_v4 = vadd.f32 0.112945676, %v517_v9  ;;  %v1040_v48 = vadd.f32 0.4994258, %v1039_v51  ;;  %v1028_v35 = vmul.f32 %v1027_v15, %v5427_v54 }
 0x149   :  { %v5536_v38 = vadd.f32 1.0, %v710_v42  ;;  %v1066_v22 = vadd.f32 1.0, %v4270_v5  ;;  %v677_v23 = vmul.f32 %v676_v41, %v5496_v13  ;;  %v667_v12 = vadd.f32 0.05243302, %v666_v18 }
 0x14a   :  { %v508_v45 = vmul.f32 %v507_v11, %v5494_v20  ;;  %v519_v58 = vmul.f32 %v518_v4, %v5494_v20  ;;  %v1041_v59 = vmul.f32 %v1040_v48, %v5427_v54  ;;  %v1078_v25 = vadd.f32 1.0, %v5464_v46 }
 0x14b   :  { %v5544_v7 = vadd.f32 1.0, %v714_v47  ;;  %v1074_v3 = vmul.f32 %v1066_v22, %v5471_v10  ;;  %v678_v17 = vadd.f32 0.112945676, %v677_v23  ;;  %v896_v36 = vsel %vm5515_vm6, %v5379_v34, %v891_v63 }
 0x14c   :  { %v1138_v33 = vmax.f32 %v5468_v44, %v1137_v29  ;;  %v1147_v61 = vmax.f32 %v1145_v60, %v1146_v32  ;;  %v520_v14 = vadd.f32 0.4994258, %v519_v58  ;;  %v1086_v49 = vmul.f32 %v1078_v25, %v5536_v38 }
 0x14d   :  { %v1082_v42 = vadd.f32 1.0, %v1074_v3  ;;  %v679_v46 = vmul.f32 %v678_v17, %v5496_v13  ;;  %v1029_v37 = vadd.f32 0.18741608, %v1028_v35  ;;  %v509_v16 = vadd.f32 0.18741608, %v508_v45 }
 0x14e   :  { %v521_v10 = vmul.f32 %v520_v14, %v5494_v20  ;;  %v668_v1 = vmul.f32 %v667_v12, %v5496_v13  ;;  %v5557_v31 = vadd.f32 1.0, %v1041_v59  ;;  %v897_v34 = vmul.f32 %v896_v36, %v5366_v43 }
 0x14f   :  { %v1090_v8 = vmul.f32 %v1082_v42, %v5544_v7  ;;  %v680_v44 = vadd.f32 0.4994258, %v679_v46  ;;  %v1139_v29 = vrot.slane %v1138_v33, 2  ;;  %v1148_v60 = vrot.slane %v1147_v61, 1 }
 0x150   :  { %v522_v56 = vadd.f32 1.0, %v521_v10  ;;  %4400 = vrcp.f32 %v5557_v31  ;;  %v1030_v6 = vmul.f32 %v1029_v37, %v5427_v54  ;;  %v510_v9 = vmul.f32 %v509_v16, %v5494_v20 }
 0x151   :  { %v1106_v15 = vadd.f32 %v1090_v8, %v1086_v49  ;;  %v681_v32 = vmul.f32 %v680_v44, %v5496_v13  ;;  %v669_v51 = vadd.f32 0.18741608, %v668_v1  ;;  %v4267_v47 = vclamps-f32 %v897_v34, 1.0 }
 0x152   :  { %4402 = vrcp.f32 %v522_v56  ;;  %v5565_v43 = vmax.f32 %v1138_v33, %v1139_v29  ;;  %v5567_v5 = vmax.f32 %v1147_v61, %v1148_v60  ;;  %v1031_v63 = vadd.f32 1.1283791, %v1030_v6 }
 0x153   :  { %v1107_v0 = vrot.slane %v1106_v15, 4  ;;  %v5569_v18 = vadd.f32 1.0, %v681_v32  ;;  %v511_v4 = vadd.f32 1.1283791, %v510_v9  ;;  %v670_v48 = vmul.f32 %v669_v51, %v5496_v13 }
 0x154   :  { %v5574_v54 = vmul.f32 0.5, %v4849_v19  ;;  %v5577_v35 = vadd.f32 1.0, %v4267_v47  ;;  %v1141_v45 = vrot.slane %v5565_v43, 1  ;;  %v1165_v58 = vsub.f32 %v5440_v28, %v5567_v5 }
 0x155   :  { %v1108_v41 = vadd.f32 %v1107_v0, %v1106_v15  ;;  %4404 = vrcp.f32 %v5569_v18  ;;  %v532_v12 = vand.u32 2147483647, %v522_v56  ;;  %v1032_v13 = vmul.f32 %v1031_v63, %v5398_v40 }
 0x156   :  { %v4401_v11 = vpop.eup %4400  ;;  %v512_v19 = vmul.f32 %v511_v4, %v5474_v53  ;;  %v534_v17 = vand.u32 2147483648, %v522_v56  ;;  %v671_v36 = vadd.f32 1.1283791, %v670_v48  ;;  %vm1048_vm8 = vweird.f32 %v5557_v31 }
 0x157   :  { %v1109_v20 = vrot.slane %v1108_v41, 2  ;;  %v1044_v22 = vmul.f32 %v4401_v11, %v5557_v31  ;;  %vm528_vm9 = vweird.f32 %v522_v56  ;;  %vm5585_vm10 = vcmp.eq.f32.partialorder %v532_v12, 8.507059e+37 }
 0x158   :  { %v4403_v23 = vpop.eup %4402  ;;  %vm1049_vm11 = vweird.f32 %v4401_v11  ;;  %v1052_v28 = vand.u32 2147483647, %v5557_v31  ;;  %v1054_v40 = vand.u32 2147483648, %v5557_v31  ;;  %v535_v16 = vor.u32 1.1754944e-38, %v534_v17 }
 0x159   :  { %v1110_v59 = vadd.f32 %v1109_v20, %v1108_v41  ;;  %v524_v25 = vmul.f32 %v4403_v23, %v522_v56  ;;  %v1045_v3 = vsub.f32 1.0, %v1044_v22  ;;  %vm529_vm12 = vweird.f32 %v4403_v23  ;;  %vm1050_vm13 = vmor %vm1048_vm8, %vm1049_vm11 }
 0x15a   :  { %v692_v10 = vand.u32 2147483647, %v5569_v18  ;;  %v694_v1 = vand.u32 2147483648, %v5569_v18  ;;  %vm530_vm14 = vmor %vm528_vm9, %vm529_vm12  ;;  %vm1053_vm1 = vcmp.eq.f32.partialorder %v1052_v28, 8.507059e+37  ;;  %v1055_v32 = vor.u32 1.1754944e-38, %v1054_v40 }
 0x15b   :  { %v1111_v33 = vrot.slane %v1110_v59, 1  ;;  %v525_v61 = vsub.f32 1.0, %v524_v25  ;;  %v1046_v14 = vmul.f32 %v4401_v11, %v1045_v3  ;;  %v4405_v42 = vpop.eup %4404  ;;  %vm688_vm2 = vweird.f32 %v5569_v18 }
 0x15c   :  { %v684_v37 = vmul.f32 %v4405_v42, %v5569_v18  ;;  %vm689_vm15 = vweird.f32 %v4405_v42  ;;  %v672_v4 = vmul.f32 %v671_v36, %v5479_v39  ;;  %vm693_vm4 = vcmp.eq.f32.partialorder %v692_v10, 8.507059e+37 }
 0x15d   :  { %v1112_v46 = vadd.f32 %v1111_v33, %v1110_v59  ;;  %v526_v53 = vmul.f32 %v4403_v23, %v525_v61  ;;  %v1047_v34 = vadd.f32 %v4401_v11, %v1046_v14  ;;  %vm690_vm3 = vmor %vm688_vm2, %vm689_vm15  ;;  %v695_v48 = vor.u32 1.1754944e-38, %v694_v1 }
 0x15e   :  { %v685_v60 = vsub.f32 1.0, %v684_v37  ;;  %v1142_v18 = vmax.f32 %v5565_v43, %v1141_v45  ;;  %v367_v12 = vmul.f32 0.5, %v5444_v55  ;;  %v1071_v39 = vmul.f32 %v5577_v35, %v5574_v54  ;;  %v5631_v54 = vld [vmem:[%s8626_s2 + $0xf8] sm:$0xff]  ;;  %v5942_v55 = vld [vmem:[%s8626_s2 + $0x128] sm:$0xff] }
 0x15f   :  { %v1122_v8 = vmul.f32 %v1112_v46, %v5536_v38  ;;  %v1126_v44 = vmul.f32 %v1112_v46, %v5544_v7  ;;  %v527_v29 = vadd.f32 %v4403_v23, %v526_v53  ;;  %v1051_v15 = vsel %vm1050_vm13, %v4401_v11, %v1047_v34  ;;  %1287 = vmatpush.msra.mxu1 %v5631_v54  ;;  %v5638_v46 = vld [vmem:[%s8626_s2 + $0x70] sm:$0xff] }
 0x160   :  { %v686_v38 = vmul.f32 %v4405_v42, %v685_v60  ;;  %v1169_v7 = vsub.f32 %v5446_v27, %v5567_v5  ;;  %v1056_v31 = vsel %vm1053_vm1, %v1055_v32, %v1051_v15  ;;  %v1174_v11 = vmul.f32 1.442695, %v1165_v58  ;;  %8781 = vst [vmem:[#allocation14_spill] sm:$0xff] %v5638_v46  ;;  %v5643_v53 = vld [vmem:[%s8626_s2 + $0xf0] sm:$0xff]  ;;  %v5670_v32 = vld [vmem:[%s8626_s2 + $0x60] sm:$0xff] }
 0x161   :  { %v5600_v6 = vmul.f32 0.17677669, %v1122_v8  ;;  %v5602_v9 = vmul.f32 0.17677669, %v1126_v44  ;;  %v531_v51 = vsel %vm530_vm14, %v4403_v23, %v527_v29  ;;  %v1057_v63 = vmul.f32 %v1056_v31, %v1032_v13  ;;  %8782 = vst [vmem:[#allocation15_spill] sm:$0xff] %v5643_v53  ;;  %1288 = vmatpush.msra.mxu1 %v5643_v53  ;;  %v5657_v44 = vld [vmem:[%s8626_s2 + $0x68] sm:$0xff] }
 0x162   :  { %v536_v0 = vsel %vm5585_vm10, %v535_v16, %v531_v51  ;;  %v687_v41 = vadd.f32 %v4405_v42, %v686_v38  ;;  %v1182_v23 = vmul.f32 1.442695, %v1169_v7  ;;  %4406 = vpow2.f32 %v1174_v11  ;;  %v5662_v29 = vld [vmem:[%s8626_s2 + $0xe8] sm:$0xff]  ;;  %8784 = vst [vmem:[#allocation17_spill] sm:$0xff] %v5670_v32  ;;  %v5675_v51 = vld [vmem:[%s8626_s2 + $0xe0] sm:$0xff]  ;;  %v5680_v38 = vld [vmem:[%s8626_s2 + $0x178] sm:$0xff] }
 0x163   :  { %v1150_v56 = vmax.f32 %v5600_v6, %v5602_v9  ;;  %v537_v47 = vmul.f32 %v536_v0, %v512_v19  ;;  %v4271_v22 = vclamps-f32 %v1057_v63, 1.0  ;;  %v731_v19 = vmul.f32 0.5, %v5374_v62  ;;  %v5626_v62 = vld [vmem:[%s8626_s2 + $0x78] sm:$0xff]  ;;  %8783 = vst [vmem:[#allocation16_spill] sm:$0xff] %v5662_v29  ;;  %1289 = vmatpush.msra.mxu1 %v5662_v29  ;;  %1310 = vmatpush.msra.mxu2 %v5680_v38  ;;  %v5713_v11 = vld [vmem:[%s8626_s2 + $0x1f0] sm:$0xff] }
 0x164   :  { %v691_v20 = vsel %vm690_vm3, %v4405_v42, %v687_v41  ;;  %v1164_v61 = vsub.f32 %v5413_v52, %v1142_v18  ;;  %v1168_v43 = vsub.f32 %v5424_v2, %v1142_v18  ;;  %4408 = vpow2.f32 %v1182_v23  ;;  %1264 = vmatpush.msra.mxu0 %v5626_v62  ;;  %v5687_v0 = vld [vmem:[%s8626_s2 + $0x1f8] sm:$0xff]  ;;  %v5706_v41 = vld [vmem:[%s8626_s2 + $0x170] sm:$0xff]  ;;  %8800 = vst [vmem:[#allocation33_spill] sm:$0xff] %v5942_v55 }
 0x165   :  { %v1151_v27 = vrot.slane %v1150_v56, 4  ;;  %v4259_v5 = vclamps-f32 %v537_v47, 1.0  ;;  %v696_v59 = vsel %vm693_vm4, %v695_v48, %v691_v20  ;;  %v1067_v58 = vadd.f32 1.0, %v4271_v22  ;;  %1290 = vmatpush.msra.mxu1 %v5675_v51  ;;  %1333 = vmatpush.msra.mxu3 %v5687_v0  ;;  %v5701_v47 = vld [vmem:[%s8626_s2 + $0xd8] sm:$0xff]  ;;  %v5721_v48 = vld [vmem:[%s8626_s2 + $0x50] sm:$0xff]  ;;  %v5739_v22 = vld [vmem:[%s8626_s2 + $0x1e8] sm:$0xff] }
 0x166   :  { %v697_v3 = vmul.f32 %v696_v59, %v672_v4  ;;  %v371_v45 = vmul.f32 0.5, %v5454_v50  ;;  %v1079_v52 = vadd.f32 1.0, %v1071_v39  ;;  %v1172_v35 = vmul.f32 1.442695, %v1164_v61  ;;  %1265 = vmatpush.msra.mxu0 %v5638_v46  ;;  %1311 = vmatpush.msra.mxu2 %v5706_v41  ;;  %v5758_v59 = vld [vmem:[%s8626_s2 + $0x160] sm:$0xff]  ;;  %v5791_v61 = vld [vmem:[%s8626_s2 + $0x1d8] sm:$0xff] }
 0x167   :  { %v1152_v25 = vmax.f32 %v1150_v56, %v1151_v27  ;;  %v703_v13 = vadd.f32 1.0, %v4259_v5  ;;  %v1075_v28 = vmul.f32 %v1067_v58, %v731_v19  ;;  %v1180_v16 = vmul.f32 1.442695, %v1168_v43  ;;  %v5696_v56 = vld [vmem:[%s8626_s2 + $0x58] sm:$0xff]  ;;  %1291 = vmatpush.msra.mxu1 %v5701_v47  ;;  %1334 = vmatpush.msra.mxu3 %v5713_v11  ;;  %v5726_v27 = vld [vmem:[%s8626_s2 + $0xd0] sm:$0xff]  ;;  %v5731_v5 = vld [vmem:[%s8626_s2 + $0x168] sm:$0xff] }
 0x168   :  { %v4263_v36 = vclamps-f32 %v697_v3, 1.0  ;;  %v5645_v37 = vpop.eup %4406  ;;  %1266 = vmatpush.msra.mxu0 %v5657_v44  ;;  %4410 = vpow2.f32 %v1172_v35  ;;  %1312 = vmatpush.msra.mxu2 %v5731_v5  ;;  %v5774_v39 = vld [vmem:[%s8626_s2 + $0x40] sm:$0xff]  ;;  %v5824_v35 = vld [vmem:[%s8626_s2 + $0x30] sm:$0xff] }
 0x169   :  { %v1153_v17 = vrot.slane %v1152_v25, 2  ;;  %v711_v33 = vmul.f32 %v703_v13, %v367_v12  ;;  %v1083_v1 = vadd.f32 1.0, %v1075_v28  ;;  %4412 = vpow2.f32 %v1180_v16  ;;  %1292 = vmatpush.msra.mxu1 %v5726_v27  ;;  %1335 = vmatpush.msra.mxu3 %v5739_v22  ;;  %v5753_v12 = vld [vmem:[%s8626_s2 + $0xc8] sm:$0xff]  ;;  %v5767_v13 = vld [vmem:[%s8626_s2 + $0x1e0] sm:$0xff]  ;;  %v5810_v28 = vld [vmem:[%s8626_s2 + $0x150] sm:$0xff] }
 0x16a   :  { %v707_v42 = vadd.f32 1.0, %v4263_v36  ;;  %v5652_v8 = vpop.eup %4408  ;;  %1267 = vmatpush.msra.mxu0 %v5670_v32  ;;  %1313 = vmatpush.msra.mxu2 %v5758_v59  ;;  %v5779_v19 = vld [vmem:[%s8626_s2 + $0xc0] sm:$0xff]  ;;  %v5834_v16 = vld [vmem:[%s8626_s2 + $0x148] sm:$0xff]  ;;  %v5914_v50 = vld [vmem:[%s8626_s2 + $0x130] sm:$0xff] }
 0x16b   :  { %v1154_v14 = vmax.f32 %v1152_v25, %v1153_v17  ;;  %v5621_v49 = vadd.f32 1.0, %v711_v33  ;;  %v1195_v31 = vadd.f32 %v5652_v8, %v5645_v37  ;;  %1293 = vmatpush.msra.mxu1 %v5753_v12  ;;  %1336 = vmatpush.msra.mxu3 %v5767_v13  ;;  %v5784_v17 = vld [vmem:[%s8626_s2 + $0x158] sm:$0xff]  ;;  %8785 = vst [vmem:[#allocation18_spill] sm:$0xff] %v5834_v16 }
 0x16c   :  { %v715_v2 = vmul.f32 %v707_v42, %v371_v45  ;;  %1268 = vmatpush.msra.mxu0 %v5696_v56  ;;  %1314 = vmatpush.msra.mxu2 %v5784_v17  ;;  %v5805_v42 = vld [vmem:[%s8626_s2 + $0xb8] sm:$0xff]  ;;  %8795 = vst [vmem:[#allocation28_spill] sm:$0xff] %v5914_v50 }
 0x16d   :  { %v1155_v40 = vrot.slane %v1154_v14, 1  ;;  %v1087_v34 = vmul.f32 %v1079_v52, %v5621_v49  ;;  %v1196_v23 = vrot.slane %v1195_v31, 4  ;;  %1294 = vmatpush.msra.mxu1 %v5779_v19  ;;  %1337 = vmatpush.msra.mxu3 %v5791_v61 }
 0x16e   :  { %v5647_v10 = vadd.f32 1.0, %v715_v2  ;;  %1269 = vmatpush.msra.mxu0 %v5721_v48  ;;  %v5741_v18 = vpop.eup %4410  ;;  %v5817_v2 = vld [vmem:[%s8626_s2 + $0x1d0] sm:$0xff]  ;;  %1315 = vmatpush.msra.mxu2 %v5810_v28 }
 0x16f   :  { %v1156_v15 = vmax.f32 %v1154_v14, %v1155_v40  ;;  %v5760_v25 = vpop.eup %4412  ;;  %v1197_v45 = vadd.f32 %v1196_v23, %v1195_v31  ;;  %v5800_v14 = vld [vmem:[%s8626_s2 + $0x38] sm:$0xff]  ;;  %1295 = vmatpush.msra.mxu1 %v5805_v42  ;;  %1338 = vmatpush.msra.mxu3 %v5817_v2  ;;  %v5829_v40 = vld [vmem:[%s8626_s2 + $0xb0] sm:$0xff]  ;;  %v5853_v31 = vld [vmem:[%s8626_s2 + $0xa8] sm:$0xff] }
 0x170   :  { %v1091_v60 = vmul.f32 %v1083_v1, %v5647_v10  ;;  %v1188_v43 = vadd.f32 %v5760_v25, %v5741_v18  ;;  %1316 = vmatpush.msra.mxu2 %v5834_v16  ;;  %v5874_v23 = vld [vmem:[%s8626_s2 + $0x20] sm:$0xff] }
 0x171   :  { %v1166_v4 = vsub.f32 %v5600_v6, %v1156_v15  ;;  %v1170_v6 = vsub.f32 %v5602_v9, %v1156_v15  ;;  %v5748_v9 = vld [vmem:[%s8626_s2 + $0x48] sm:$0xff]  ;;  %1296 = vmatpush.msra.mxu1 %v5829_v40  ;;  %v1198_v15 = vrot.slane %v1197_v45, 2 }
 0x172   :  { %v1113_v7 = vadd.f32 %v1091_v60, %v1087_v34  ;;  %1270 = vmatpush.msra.mxu0 %v5748_v9  ;;  %v5841_v34 = vld [vmem:[%s8626_s2 + $0x1c8] sm:$0xff]  ;;  %v1189_v60 = vrot.slane %v1188_v43, 4 }
 0x173   :  { %v1176_v58 = vmul.f32 1.442695, %v1166_v4  ;;  %v1184_v36 = vmul.f32 1.442695, %v1170_v6  ;;  %8786 = vst [vmem:[#allocation19_spill] sm:$0xff] %v5841_v34  ;;  %1339 = vmatpush.msra.mxu3 %v5841_v34  ;;  %1297 = vmatpush.msra.mxu1 %v5853_v31 }
 0x174   :  { %v1114_v63 = vrot.slane %v1113_v7, 4  ;;  %1271 = vmatpush.msra.mxu0 %v5774_v39 }
 0x175   :  { %4414 = vpow2.f32 %v1176_v58 }
 0x176   :  { %v1115_v20 = vadd.f32 %v1114_v63, %v1113_v7  ;;  %1272 = vmatpush.msra.mxu0 %v5800_v14  ;;  %4416 = vpow2.f32 %v1184_v36  ;;  %v5848_v7 = vld [vmem:[%s8626_s2 + $0x28] sm:$0xff]  ;;  %v5858_v63 = vld [vmem:[%s8626_s2 + $0x140] sm:$0xff]  ;;  %v5895_v36 = vld [vmem:[%s8626_s2 + $0x1b8] sm:$0xff] }
 0x177   :  { %8787 = vst [vmem:[#allocation20_spill] sm:$0xff] %v5858_v63  ;;  %1317 = vmatpush.msra.mxu2 %v5858_v63 }
 0x178   :  { %v1116_v3 = vrot.slane %v1115_v20, 2  ;;  %1273 = vmatpush.msra.mxu0 %v5824_v35  ;;  %8791 = vst [vmem:[#allocation24_spill] sm:$0xff] %v5895_v36 }
 0x17a   :  { %v1117_v33 = vadd.f32 %v1116_v3, %v1115_v20  ;;  %1274 = vmatpush.msra.mxu0 %v5848_v7  ;;  %v5867_v20 = vld [vmem:[%s8626_s2 + $0x1c0] sm:$0xff] }
 0x17b   :  { %8788 = vst [vmem:[#allocation21_spill] sm:$0xff] %v5867_v20  ;;  %1340 = vmatpush.msra.mxu3 %v5867_v20 }
 0x17c   :  { %v1118_v52 = vrot.slane %v1117_v33, 1  ;;  %1275 = vmatpush.msra.mxu0 %v5874_v23 }
 0x17d   :  { %1341 = vmatpush.msra.mxu3 %v5895_v36  ;;  %v5968_v36 = vld [vmem:[%s8626_s2 + $0x120] sm:$0xff] }
 0x17e   :  { %v1119_v1 = vadd.f32 %v1118_v52, %v1117_v33  ;;  %v5897_v33 = vpop.eup %4414  ;;  %v1190_v52 = vadd.f32 %v1189_v60, %v1188_v43  ;;  %v5925_v60 = vld [vmem:[%s8626_s2 + $0x1b0] sm:$0xff]  ;;  %8804 = vst [vmem:[#allocation37_spill] sm:$0xff] %v5968_v36 }
 0x17f   :  { %8792 = vst [vmem:[#allocation25_spill] sm:$0xff] %v5897_v33  ;;  %v5916_v43 = vpop.eup %4416  ;;  %1342 = vmatpush.msra.mxu3 %v5925_v60 }
 0x180   :  { %v1123_v4 = vmul.f32 %v1119_v1, %v5621_v49  ;;  %v1127_v6 = vmul.f32 %v1119_v1, %v5647_v10  ;;  %v5879_v49 = vld [vmem:[%s8626_s2 + $0xa0] sm:$0xff]  ;;  %v5884_v10 = vld [vmem:[%s8626_s2 + $0x138] sm:$0xff]  ;;  %v1199_v1 = vadd.f32 %v1198_v15, %v1197_v45  ;;  %8796 = vst [vmem:[#allocation29_spill] sm:$0xff] %v5916_v43  ;;  %v5932_v15 = vld [vmem:[%s8626_s2 + $0x10] sm:$0xff] }
 0x181   :  { %8789 = vst [vmem:[#allocation22_spill] sm:$0xff] %v5879_v49  ;;  %1298 = vmatpush.msra.mxu1 %v5879_v49  ;;  %1318 = vmatpush.msra.mxu2 %v5884_v10  ;;  %v6023_v49 = vld [vmem:[%s8626_s2 + $0x188] sm:$0xff] }
 0x182   :  { %8790 = vst [vmem:[#allocation23_spill] sm:$0xff] %v5884_v10  ;;  %v5886_v3 = vmul.f32 0.17677669, %v1123_v4  ;;  %v5888_v58 = vmul.f32 0.17677669, %v1127_v6  ;;  %v5904_v4 = vld [vmem:[%s8626_s2 + $0x18] sm:$0xff] }
 0x183   :  { %8793 = vst [vmem:[#allocation26_spill] sm:$0xff] %v5904_v4  ;;  %v5909_v6 = vld [vmem:[%s8626_s2 + $0x98] sm:$0xff]  ;;  %1276 = vmatpush.msra.mxu0 %v5904_v4  ;;  %1319 = vmatpush.msra.mxu2 %v5914_v50  ;;  %v1191_v50 = vrot.slane %v1190_v52, 2  ;;  %v1202_v4 = vadd.f32 %v5916_v43, %v5897_v33  ;;  %v5975_v33 = vld [vmem:[%s8626_s2 + $0x1a0] sm:$0xff] }
 0x184   :  { %8794 = vst [vmem:[#allocation27_spill] sm:$0xff] %v5909_v6  ;;  %v1157_v45 = vmax.f32 %v5886_v3, %v5888_v58  ;;  %1299 = vmatpush.msra.mxu1 %v5909_v6  ;;  %v1200_v6 = vrot.slane %v1199_v1, 1 }
 0x185   :  { %8797 = vst [vmem:[#allocation30_spill] sm:$0xff] %v5925_v60  ;;  %1277 = vmatpush.msra.mxu0 %v5932_v15  ;;  %v5949_v60 = vld [vmem:[%s8626_s2 + $0x1a8] sm:$0xff]  ;;  %1320 = vmatpush.msra.mxu2 %v5942_v55  ;;  %v5985_v55 = vld [vmem:[%s8626_s2 + $0x80] sm:$0xff]  ;;  %v1192_v10 = vadd.f32 %v1191_v50, %v1190_v52 }
 0x186   :  { %8798 = vst [vmem:[#allocation31_spill] sm:$0xff] %v5932_v15  ;;  %v1158_v57 = vrot.slane %v1157_v45, 4  ;;  %1300 = vmatpush.msra.mxu1 %v5937_v21  ;;  %1343 = vmatpush.msra.mxu3 %v5949_v60  ;;  %v5958_v15 = vld [vmem:[%s8626_s2 + $0x8] sm:$0xff]  ;;  %v1201_v26 = vadd.f32 %v1200_v6, %v1199_v1  ;;  %v6032_v52 = vld [vmem:[%s8626_s2 + $0x100] sm:$0xff] }
 0x187   :  { %8801 = vst [vmem:[#allocation34_spill] sm:$0xff] %v5949_v60  ;;  %v5963_v21 = vld [vmem:[%s8626_s2 + $0x88] sm:$0xff]  ;;  %1278 = vmatpush.msra.mxu0 %v5958_v15  ;;  %v5980_v60 = vld [vmem:[%s8626_s2] sm:$0xff]  ;;  %1321 = vmatpush.msra.mxu2 %v5968_v36  ;;  %v6004_v36 = vld [vmem:[%s8626_s2 + $0x110] sm:$0xff]  ;;  %v1193_v50 = vrot.slane %v1192_v10, 1 }
 0x188   :  { %8802 = vst [vmem:[#allocation35_spill] sm:$0xff] %v5958_v15  ;;  %v1159_v43 = vmax.f32 %v1157_v45, %v1158_v57  ;;  %1301 = vmatpush.msra.mxu1 %v5963_v21  ;;  %1344 = vmatpush.msra.mxu3 %v5975_v33  ;;  %v5992_v57 = vld [vmem:[%s8626_s2 + $0x118] sm:$0xff]  ;;  %v1203_v15 = vrot.slane %v1202_v4, 4  ;;  %4418 = vrcp.f32 %v1201_v26  ;;  %v6037_v1 = vld [vmem:[%s8626_s2 + $0x180] sm:$0xff] }
 0x189   :  { %8803 = vst [vmem:[#allocation36_spill] sm:$0xff] %v5963_v21  ;;  %v5997_v45 = vld [vmem:[%s8626_s2 + $0x198] sm:$0xff]  ;;  %1279 = vmatpush.msra.mxu0 %v5980_v60  ;;  %1322 = vmatpush.msra.mxu2 %v5992_v57  ;;  %v1194_v26 = vadd.f32 %v1193_v50, %v1192_v10 }
 0x18a   :  { %8805 = vst [vmem:[#allocation38_spill] sm:$0xff] %v5975_v33  ;;  %v1160_v21 = vrot.slane %v1159_v43, 2  ;;  %1302 = vmatpush.msra.mxu1 %v5985_v55  ;;  %v6009_v33 = vld [vmem:[%s8626_s2 + $0x190] sm:$0xff]  ;;  %1345 = vmatpush.msra.mxu3 %v5997_v45  ;;  %v1204_v6 = vadd.f32 %v1203_v15, %v1202_v4 }
 0x18b   :  { %8806 = vst [vmem:[#allocation39_spill] sm:$0xff] %v5980_v60  ;;  %1356 = vmatpush.msrb.mxu0 %v5626_v62  ;;  %1323 = vmatpush.msra.mxu2 %v6004_v36  ;;  %4420 = vrcp.f32 %v1194_v26 }
 0x18c   :  { %8807 = vst [vmem:[#allocation40_spill] sm:$0xff] %v5985_v55  ;;  %v1161_v60 = vmax.f32 %v1159_v43, %v1160_v21  ;;  %1379 = vmatpush.msrb.mxu1 %v5631_v54  ;;  %v6018_v55 = vld [vmem:[%s8626_s2 + $0x108] sm:$0xff]  ;;  %1346 = vmatpush.msra.mxu3 %v6009_v33  ;;  %v1205_v10 = vrot.slane %v1204_v6, 2 }
 0x18d   :  { %8808 = vst [vmem:[#allocation41_spill] sm:$0xff] %v5992_v57  ;;  %1357 = vmatpush.msrb.mxu0 %v5638_v46  ;;  %1324 = vmatpush.msra.mxu2 %v6018_v55 }
 0x18e   :  { %8809 = vst [vmem:[#allocation42_spill] sm:$0xff] %v5997_v45  ;;  %v1162_v21 = vrot.slane %v1161_v60, 1  ;;  %1380 = vmatpush.msrb.mxu1 %v5643_v53  ;;  %1347 = vmatpush.msra.mxu3 %v6023_v49  ;;  %v4419_v4 = vpop.eup %4418 }
 0x18f   :  { %8810 = vst [vmem:[#allocation43_spill] sm:$0xff] %v6009_v33  ;;  %1358 = vmatpush.msrb.mxu0 %v5657_v44  ;;  %1325 = vmatpush.msra.mxu2 %v6032_v52 }
 0x190   :  { %8811 = vst [vmem:[#allocation44_spill] sm:$0xff] %v6018_v55  ;;  %v1163_v43 = vmax.f32 %v1161_v60, %v1162_v21  ;;  %1381 = vmatpush.msrb.mxu1 %v5662_v29  ;;  %1348 = vmatpush.msra.mxu3 %v6037_v1 }
 0x191   :  { %8812 = vst [vmem:[#allocation45_spill] sm:$0xff] %v6023_v49  ;;  %1359 = vmatpush.msrb.mxu0 %v5670_v32  ;;  %1402 = vmatpush.msrb.mxu2 %v5680_v38 }
 0x192   :  { %8813 = vst [vmem:[#allocation46_spill] sm:$0xff] %v6032_v52  ;;  %v1167_v53 = vsub.f32 %v5886_v3, %v1163_v43  ;;  %v1171_v46 = vsub.f32 %v5888_v58, %v1163_v43  ;;  %1382 = vmatpush.msrb.mxu1 %v5675_v51  ;;  %1425 = vmatpush.msrb.mxu3 %v5687_v0  ;;  %v4421_v58 = vpop.eup %4420 }
 0x193   :  { %8814 = vst [vmem:[#allocation47_spill] sm:$0xff] %v6037_v1  ;;  %1360 = vmatpush.msrb.mxu0 %v5696_v56  ;;  %v1221_v3 = vmul.f32 %v4419_v4, %v5645_v37  ;;  %1403 = vmatpush.msrb.mxu2 %v5706_v41 }
 0x194   :  { %v1178_v60 = vmul.f32 1.442695, %v1167_v53  ;;  %v1186_v15 = vmul.f32 1.442695, %v1171_v46  ;;  %1383 = vmatpush.msrb.mxu1 %v5701_v47  ;;  %1426 = vmatpush.msrb.mxu3 %v5713_v11  ;;  %v1206_v46 = vadd.f32 %v1205_v10, %v1204_v6  ;;  %v1220_v53 = vmul.f32 %v4421_v58, %v5741_v18 }
 0x195   :  { %1361 = vmatpush.msrb.mxu0 %v5721_v48  ;;  %1404 = vmatpush.msrb.mxu2 %v5731_v5  ;;  %v1229_v37 = vmul.f32 %v1221_v3, %v5093_v24 }
 0x196   :  { %4422 = vpow2.f32 %v1178_v60  ;;  %1384 = vmatpush.msrb.mxu1 %v5726_v27  ;;  %1427 = vmatpush.msrb.mxu3 %v5739_v22  ;;  %v1228_v50 = vmul.f32 %v1220_v53, %v4901_v30  ;;  %v1207_v21 = vrot.slane %v1206_v46, 1  ;;  %v1224_v60 = vmul.f32 %v4421_v58, %v5760_v25  ;;  %v8817_v58 = vld [vmem:[#allocation22_spill] sm:$0xff] }
 0x197   :  { %4424 = vpow2.f32 %v1186_v15  ;;  %1362 = vmatpush.msrb.mxu0 %v5748_v9  ;;  %1405 = vmatpush.msrb.mxu2 %v5758_v59  ;;  %v6079_v26 = vadd.f32 %v1229_v37, %v5093_v24  ;;  %v1225_v24 = vmul.f32 %v4419_v4, %v5652_v8  ;;  %v8819_v4 = vld [vmem:[#allocation9_spill] sm:$0xff]  ;;  %v8820_v37 = vld [vmem:[#allocation23_spill] sm:$0xff] }
 0x198   :  { %1385 = vmatpush.msrb.mxu1 %v5753_v12  ;;  %1428 = vmatpush.msrb.mxu3 %v5767_v13  ;;  %v6076_v18 = vadd.f32 %v1228_v50, %v4901_v30  ;;  %v1208_v30 = vadd.f32 %v1207_v21, %v1206_v46  ;;  %v8818_v46 = vld [vmem:[#allocation8_spill] sm:$0xff] }
 0x199   :  { %1363 = vmatpush.msrb.mxu0 %v5774_v39  ;;  %1406 = vmatpush.msrb.mxu2 %v5784_v17  ;;  %8816 = vst [vmem:[#allocation49_spill] sm:$0xff] %v6079_v26  ;;  %v1232_v8 = vmul.f32 %v1224_v60, %v8818_v46  ;;  %v1233_v53 = vmul.f32 %v1225_v24, %v8819_v4  ;;  %v8821_v50 = vld [vmem:[#allocation24_spill] sm:$0xff]  ;;  %v8826_v24 = vld [vmem:[#allocation31_spill] sm:$0xff] }
 0x19a   :  { %1386 = vmatpush.msrb.mxu1 %v5779_v19  ;;  %1429 = vmatpush.msrb.mxu3 %v5791_v61  ;;  %8815 = vst [vmem:[#allocation48_spill] sm:$0xff] %v6076_v18  ;;  %v6097_v3 = vpack.c.bf16 %v6079_v26, %v6076_v18  ;;  %4426 = vrcp.f32 %v1208_v30 }
 0x19b   :  { %1364 = vmatpush.msrb.mxu0 %v5800_v14  ;;  %1407 = vmatpush.msrb.mxu2 %v5810_v28  ;;  %v6116_v30 = vadd.f32 %v1232_v8, %v8818_v46 }
 0x19c   :  { %v6071_v6 = vpop.eup %4422  ;;  %1387 = vmatpush.msrb.mxu1 %v5805_v42  ;;  %1430 = vmatpush.msrb.mxu3 %v5817_v2 }
 0x19d   :  { %v6081_v43 = vpop.eup %4424  ;;  %1365 = vmatpush.msrb.mxu0 %v5824_v35  ;;  %1408 = vmatpush.msrb.mxu2 %v5834_v16  ;;  %v8825_v16 = vld [vmem:[#allocation30_spill] sm:$0xff]  ;;  %8828 = vst [vmem:[#allocation22_spill] sm:$0xff] %v6116_v30 }
 0x19e   :  { %v1209_v10 = vadd.f32 %v6081_v43, %v6071_v6  ;;  %1388 = vmatpush.msrb.mxu1 %v5829_v40  ;;  %1431 = vmatpush.msrb.mxu3 %v5841_v34  ;;  %v8822_v34 = vld [vmem:[#allocation26_spill] sm:$0xff] }
 0x19f   :  { %1366 = vmatpush.msrb.mxu0 %v5848_v7  ;;  %1409 = vmatpush.msrb.mxu2 %v5858_v63  ;;  %v8823_v63 = vld [vmem:[#allocation27_spill] sm:$0xff] }
 0x1a0   :  { %v1210_v15 = vrot.slane %v1209_v10, 4  ;;  %1389 = vmatpush.msrb.mxu1 %v5853_v31  ;;  %1432 = vmatpush.msrb.mxu3 %v5867_v20  ;;  %v8824_v20 = vld [vmem:[#allocation28_spill] sm:$0xff]  ;;  %v4427_v8 = vpop.eup %4426 }
 0x1a1   :  { %1367 = vmatpush.msrb.mxu0 %v5874_v23  ;;  %1410 = vmatpush.msrb.mxu2 %v8820_v37  ;;  %v8827_v37 = vld [vmem:[#allocation32_spill] sm:$0xff] }
 0x1a2   :  { %v1211_v25 = vadd.f32 %v1210_v15, %v1209_v10  ;;  %1390 = vmatpush.msrb.mxu1 %v8817_v58  ;;  %1433 = vmatpush.msrb.mxu3 %v8821_v50  ;;  %v6119_v50 = vadd.f32 %v1233_v53, %v8819_v4  ;;  %v8831_v10 = vld [vmem:[#allocation34_spill] sm:$0xff]  ;;  %v8836_v4 = vld [vmem:[#allocation37_spill] sm:$0xff] }
 0x1a3   :  { %1368 = vmatpush.msrb.mxu0 %v8822_v34  ;;  %1411 = vmatpush.msrb.mxu2 %v8824_v20  ;;  %v8832_v34 = vld [vmem:[#allocation35_spill] sm:$0xff]  ;;  %v8833_v20 = vld [vmem:[#allocation36_spill] sm:$0xff]  ;;  %v8837_v53 = vld [vmem:[#allocation38_spill] sm:$0xff] }
 0x1a4   :  { %v1212_v21 = vrot.slane %v1211_v25, 2  ;;  %1391 = vmatpush.msrb.mxu1 %v8823_v63  ;;  %1434 = vmatpush.msrb.mxu3 %v8825_v16  ;;  %8829 = vst [vmem:[#allocation8_spill] sm:$0xff] %v6119_v50  ;;  %v8830_v63 = vld [vmem:[#allocation33_spill] sm:$0xff]  ;;  %v8835_v16 = vunpack.c.h.bf16 %v6097_v3 }
 0x1a5   :  { %1369 = vmatpush.msrb.mxu0 %v8826_v24  ;;  %1412 = vmatpush.msrb.mxu2 %v8830_v63  ;;  %v8838_v63 = vld [vmem:[#allocation39_spill] sm:$0xff] }
 0x1a6   :  { %v1213_v60 = vadd.f32 %v1212_v21, %v1211_v25  ;;  %1392 = vmatpush.msrb.mxu1 %v8827_v37  ;;  %1435 = vmatpush.msrb.mxu3 %v8831_v10  ;;  %v8834_v25 = vunpack.c.l.bf16 %v6097_v3  ;;  %v1257_v46 = vsub.f32 %v6079_v26, %v8835_v16  ;;  %v8839_v10 = vld [vmem:[#allocation40_spill] sm:$0xff]  ;;  %v8840_v16 = vld [vmem:[#allocation25_spill] sm:$0xff] }
 0x1a7   :  { %1370 = vmatpush.msrb.mxu0 %v8832_v34  ;;  %1413 = vmatpush.msrb.mxu2 %v8836_v4 }
 0x1a8   :  { %v1214_v15 = vrot.slane %v1213_v60, 1  ;;  %1393 = vmatpush.msrb.mxu1 %v8833_v20  ;;  %v1256_v21 = vsub.f32 %v6076_v18, %v8834_v25  ;;  %1436 = vmatpush.msrb.mxu3 %v8837_v53  ;;  %v6137_v20 = vpack.c.bf16 %v6119_v50, %v6116_v30  ;;  %v1222_v25 = vmul.f32 %v4427_v8, %v8840_v16 }
 0x1a9   :  { %1371 = vmatpush.msrb.mxu0 %v8838_v63  ;;  %1414 = vmatpush.msrb.mxu2 %v5992_v57  ;;  %v8841_v57 = vld [vmem:[#allocation14_spill] sm:$0xff] }
 0x1aa   :  { %1394 = vmatpush.msrb.mxu1 %v8839_v10  ;;  %v1215_v34 = vadd.f32 %v1214_v15, %v1213_v60  ;;  %1437 = vmatpush.msrb.mxu3 %v5997_v45  ;;  %v8706_v15 = vunpack.c.l.bf16 %v6137_v20  ;;  %v8842_v45 = vld [vmem:[#allocation15_spill] sm:$0xff] }
 0x1ab   :  { %1280 = vmatmul.f32.vlgmr.msra.gmra.mxu0 %v1256_v21  ;;  %1303 = vmatmul.f32.vlgmr.msra.gmra.mxu1 %v1257_v46  ;;  %v8844_v46 = vld [vmem:[#allocation29_spill] sm:$0xff] }
 0x1ac   :  { %4428 = vrcp.f32 %v1215_v34  ;;  %1478 = vmatpush.msra.mxu0 %v5626_v62  ;;  %1501 = vmatpush.msra.mxu1 %v5631_v54  ;;  %v8843_v34 = vld [vmem:[#allocation10_spill] sm:$0xff]  ;;  %v1226_v16 = vmul.f32 %v4427_v8, %v8844_v46  ;;  %v1260_v60 = vsub.f32 %v6116_v30, %v8706_v15 }
 0x1ad   :  { %1415 = vmatpush.msrb.mxu2 %v6004_v36  ;;  %1438 = vmatpush.msrb.mxu3 %v6009_v33  ;;  %v1230_v21 = vmul.f32 %v1222_v25, %v8843_v34 }
 0x1ae   :  { %1479 = vmatpush.msra.mxu0 %v8841_v57  ;;  %1502 = vmatpush.msra.mxu1 %v8842_v45 }
 0x1af   :  { %1416 = vmatpush.msrb.mxu2 %v6018_v55  ;;  %1439 = vmatpush.msrb.mxu3 %v6023_v49  ;;  %v8845_v55 = vunpack.c.h.bf16 %v6137_v20  ;;  %v6169_v46 = vadd.f32 %v1230_v21, %v8843_v34  ;;  %v8854_v34 = vunpack.c.h.bf16 %v6097_v3 }
 0x1b0   :  { %1480 = vmatpush.msra.mxu0 %v5657_v44  ;;  %1503 = vmatpush.msra.mxu1 %v5662_v29 }
 0x1b1   :  { %1417 = vmatpush.msrb.mxu2 %v6032_v52  ;;  %1440 = vmatpush.msrb.mxu3 %v6037_v1  ;;  %v1261_v49 = vsub.f32 %v6119_v50, %v8845_v55  ;;  %8846 = vst [vmem:[#allocation9_spill] sm:$0xff] %v6169_v46  ;;  %v8847_v1 = vld [vmem:[#allocation12_spill] sm:$0xff]  ;;  %v8848_v55 = vld [vmem:[#allocation11_spill] sm:$0xff] }
 0x1b2   :  { %v4429_v33 = vpop.eup %4428  ;;  %1481 = vmatpush.msra.mxu0 %v5670_v32  ;;  %1504 = vmatpush.msra.mxu1 %v5675_v51  ;;  %v1234_v15 = vmul.f32 %v1226_v16, %v8848_v55 }
 0x1b3   :  { %v1223_v25 = vmul.f32 %v4429_v33, %v6071_v6  ;;  %v1227_v8 = vmul.f32 %v4429_v33, %v6081_v43  ;;  %1283 = vmatmul.f32.gmra.mxu0 %v1260_v60  ;;  %1306 = vmatmul.f32.gmra.mxu1 %v1261_v49  ;;  %v8849_v6 = vld [vmem:[#allocation13_spill] sm:$0xff] }
 0x1b4   :  { %1482 = vmatpush.msra.mxu0 %v5696_v56  ;;  %1505 = vmatpush.msra.mxu1 %v5701_v47  ;;  %v6186_v33 = vadd.f32 %v1234_v15, %v8848_v55  ;;  %v8855_v55 = vunpack.c.l.bf16 %v6137_v20 }
 0x1b5   :  { %v1231_v52 = vmul.f32 %v1223_v25, %v8847_v1  ;;  %v1235_v29 = vmul.f32 %v1227_v8, %v8849_v6 }
 0x1b6   :  { %1483 = vmatpush.msra.mxu0 %v5721_v48  ;;  %1506 = vmatpush.msra.mxu1 %v5726_v27  ;;  %8851 = vst [vmem:[#allocation25_spill] sm:$0xff] %v6186_v33 }
 0x1b7   :  { %v6177_v32 = vadd.f32 %v1231_v52, %v8847_v1  ;;  %v6189_v43 = vadd.f32 %v1235_v29, %v8849_v6  ;;  %v8853_v1 = vunpack.c.l.bf16 %v6097_v3  ;;  %v8856_v6 = vunpack.c.h.bf16 %v6137_v20  ;;  %v8861_v20 = vld [vmem:[#allocation20_spill] sm:$0xff] }
 0x1b8   :  { %1484 = vmatpush.msra.mxu0 %v5748_v9  ;;  %1507 = vmatpush.msra.mxu1 %v5753_v12 }
 0x1b9   :  { %8850 = vst [vmem:[#allocation38_spill] sm:$0xff] %v6177_v32  ;;  %v1245_v49 = vpack.c.bf16 %v6177_v32, %v6169_v46  ;;  %v6201_v29 = vpack.c.bf16 %v6189_v43, %v6186_v33 }
 0x1ba   :  { %8852 = vst [vmem:[#allocation14_spill] sm:$0xff] %v6189_v43  ;;  %1485 = vmatpush.msra.mxu0 %v5774_v39  ;;  %1508 = vmatpush.msra.mxu1 %v5779_v19 }
 0x1bb   :  { %v1250_v60 = vunpack.c.l.bf16 %v1245_v49  ;;  %v1251_v52 = vunpack.c.h.bf16 %v1245_v49  ;;  %1372 = vmatmul.f32.vlgmr.msrb.gmra.mxu0 %v8853_v1  ;;  %1395 = vmatmul.f32.vlgmr.msrb.gmra.mxu1 %v8854_v34  ;;  %v1254_v3 = vunpack.c.l.bf16 %v6201_v29  ;;  %v1255_v16 = vunpack.c.h.bf16 %v6201_v29  ;;  %v8857_v49 = vld [vmem:[#allocation26_spill] sm:$0xff]  ;;  %v8858_v1 = vld [vmem:[#allocation27_spill] sm:$0xff] }
 0x1bc   :  { %1486 = vmatpush.msra.mxu0 %v5800_v14  ;;  %1509 = vmatpush.msra.mxu1 %v5805_v42  ;;  %v1450_v34 = vmul.f32 %v6076_v18, %v6076_v18  ;;  %v8860_v29 = vld [vmem:[#allocation19_spill] sm:$0xff]  ;;  %v8866_v18 = vld [vmem:[#allocation36_spill] sm:$0xff] }
 0x1bd   :  { %v1258_v21 = vsub.f32 %v6169_v46, %v1250_v60  ;;  %v1259_v15 = vsub.f32 %v6177_v32, %v1251_v52  ;;  %v1262_v25 = vsub.f32 %v6186_v33, %v1254_v3  ;;  %v1263_v8 = vsub.f32 %v6189_v43, %v1255_v16 }
 0x1be   :  { %1487 = vmatpush.msra.mxu0 %v5824_v35  ;;  %1510 = vmatpush.msra.mxu1 %v5829_v40 }
 0x1bf   :  { %1326 = vmatmul.f32.vlgmr.msra.gmra.mxu2 %v1258_v21  ;;  %1349 = vmatmul.f32.vlgmr.msra.gmra.mxu3 %v1259_v15  ;;  %v1451_v21 = vmul.f32 %v6079_v26, %v6079_v26  ;;  %v8859_v15 = vld [vmem:[#allocation18_spill] sm:$0xff]  ;;  %v8865_v26 = vld [vmem:[#allocation35_spill] sm:$0xff] }
 0x1c0   :  { %1524 = vmatpush.msra.mxu2 %v5680_v38  ;;  %1547 = vmatpush.msra.mxu3 %v5687_v0 }
 0x1c1   :  { %1488 = vmatpush.msra.mxu0 %v5848_v7  ;;  %1511 = vmatpush.msra.mxu1 %v5853_v31 }
 0x1c2   :  { %1525 = vmatpush.msra.mxu2 %v5706_v41  ;;  %1548 = vmatpush.msra.mxu3 %v5713_v11 }
 0x1c3   :  { %1489 = vmatpush.msra.mxu0 %v5874_v23  ;;  %1512 = vmatpush.msra.mxu1 %v8817_v58 }
 0x1c4   :  { %1526 = vmatpush.msra.mxu2 %v5731_v5  ;;  %1549 = vmatpush.msra.mxu3 %v5739_v22 }
 0x1c5   :  { %1375 = vmatmul.f32.gmra.mxu0 %v8855_v55  ;;  %1398 = vmatmul.f32.gmra.mxu1 %v8856_v6  ;;  %v8863_v55 = vld [vmem:[#allocation23_spill] sm:$0xff]  ;;  %v8864_v6 = vld [vmem:[#allocation24_spill] sm:$0xff] }
 0x1c6   :  { %1527 = vmatpush.msra.mxu2 %v5758_v59  ;;  %1550 = vmatpush.msra.mxu3 %v5767_v13 }
 0x1c7   :  { %1329 = vmatmul.f32.gmra.mxu2 %v1262_v25  ;;  %1352 = vmatmul.f32.gmra.mxu3 %v1263_v8  ;;  %v8862_v25 = vld [vmem:[#allocation21_spill] sm:$0xff]  ;;  %v6243_v8 = vpack.c.bf16 %v1451_v21, %v1450_v34 }
 0x1c8   :  { %1528 = vmatpush.msra.mxu2 %v5784_v17  ;;  %1551 = vmatpush.msra.mxu3 %v5791_v61 }
 0x1c9   :  { %1490 = vmatpush.msra.mxu0 %v8857_v49  ;;  %1513 = vmatpush.msra.mxu1 %v8858_v1  ;;  %v8867_v1 = vld [vmem:[#allocation28_spill] sm:$0xff]  ;;  %v8869_v49 = vld [vmem:[#allocation33_spill] sm:$0xff] }
 0x1ca   :  { %1529 = vmatpush.msra.mxu2 %v5810_v28  ;;  %1552 = vmatpush.msra.mxu3 %v5817_v2 }
 0x1cb   :  { %1491 = vmatpush.msra.mxu0 %v8826_v24  ;;  %1514 = vmatpush.msra.mxu1 %v8827_v37  ;;  %v8868_v24 = vld [vmem:[#allocation30_spill] sm:$0xff]  ;;  %v1452_v37 = vmul.f32 %v6169_v46, %v6169_v46 }
 0x1cc   :  { %1530 = vmatpush.msra.mxu2 %v8859_v15  ;;  %1553 = vmatpush.msra.mxu3 %v8860_v29 }
 0x1cd   :  { %1492 = vmatpush.msra.mxu0 %v8865_v26  ;;  %1515 = vmatpush.msra.mxu1 %v8866_v18  ;;  %v1453_v26 = vmul.f32 %v6177_v32, %v6177_v32  ;;  %v8870_v18 = vld [vmem:[#allocation34_spill] sm:$0xff]  ;;  %v8871_v32 = vunpack.c.l.bf16 %v6243_v8 }
 0x1ce   :  { %1531 = vmatpush.msra.mxu2 %v8861_v20  ;;  %1554 = vmatpush.msra.mxu3 %v8862_v25 }
 0x1cf   :  { %1418 = vmatmul.f32.vlgmr.msrb.gmra.mxu2 %v1250_v60  ;;  %1441 = vmatmul.f32.vlgmr.msrb.gmra.mxu3 %v1251_v52  ;;  %v1454_v52 = vmul.f32 %v6116_v30, %v6116_v30  ;;  %v1455_v60 = vmul.f32 %v6119_v50, %v6119_v50  ;;  %v1470_v46 = vsub.f32 %v1450_v34, %v8871_v32  ;;  %v8875_v30 = vld [vmem:[#allocation43_spill] sm:$0xff]  ;;  %v8877_v34 = vld [vmem:[#allocation45_spill] sm:$0xff] }
 0x1d0   :  { %1532 = vmatpush.msra.mxu2 %v8863_v55  ;;  %1555 = vmatpush.msra.mxu3 %v8864_v6  ;;  %v8881_v50 = vld [vmem:[#allocation17_spill] sm:$0xff] }
 0x1d1   :  { %1493 = vmatpush.msra.mxu0 %v8838_v63  ;;  %1516 = vmatpush.msra.mxu1 %v8839_v10  ;;  %v8872_v10 = vunpack.c.h.bf16 %v6243_v8  ;;  %v6273_v63 = vpack.c.bf16 %v1453_v26, %v1452_v37 }
 0x1d2   :  { %1533 = vmatpush.msra.mxu2 %v8867_v1  ;;  %1556 = vmatpush.msra.mxu3 %v8868_v24 }
 0x1d3   :  { %1570 = vmatpush.msrb.mxu0 %v5626_v62  ;;  %1593 = vmatpush.msrb.mxu1 %v5631_v54  ;;  %v1471_v62 = vsub.f32 %v1451_v21, %v8872_v10  ;;  %v8873_v54 = vld [vmem:[#allocation41_spill] sm:$0xff]  ;;  %v1456_v21 = vmul.f32 %v6186_v33, %v6186_v33  ;;  %v8883_v33 = vunpack.c.h.bf16 %v6273_v63 }
 0x1d4   :  { %1534 = vmatpush.msra.mxu2 %v8869_v49  ;;  %1557 = vmatpush.msra.mxu3 %v8870_v18 }
 0x1d5   :  { %1494 = vmatmul.f32.vlgmr.msra.gmra.mxu0 %v1470_v46  ;;  %1517 = vmatmul.f32.vlgmr.msra.gmra.mxu1 %v1471_v62  ;;  %v8878_v46 = vld [vmem:[#allocation16_spill] sm:$0xff]  ;;  %v8879_v62 = vld [vmem:[#allocation46_spill] sm:$0xff] }
 0x1d6   :  { %1535 = vmatpush.msra.mxu2 %v8836_v4  ;;  %1558 = vmatpush.msra.mxu3 %v8837_v53  ;;  %v8874_v4 = vld [vmem:[#allocation42_spill] sm:$0xff] }
 0x1d7   :  { %1421 = vmatmul.f32.gmra.mxu2 %v1254_v3  ;;  %1444 = vmatmul.f32.gmra.mxu3 %v1255_v16  ;;  %v6279_v3 = vpack.c.bf16 %v1455_v60, %v1454_v52  ;;  %v8876_v16 = vld [vmem:[#allocation44_spill] sm:$0xff] }
 0x1d8   :  { %1536 = vmatpush.msra.mxu2 %v8873_v54  ;;  %1559 = vmatpush.msra.mxu3 %v8874_v4 }
 0x1d9   :  { %1571 = vmatpush.msrb.mxu0 %v8841_v57  ;;  %1594 = vmatpush.msrb.mxu1 %v8842_v45  ;;  %v1457_v57 = vmul.f32 %v6189_v43, %v6189_v43  ;;  %v8880_v45 = vld [vmem:[#allocation47_spill] sm:$0xff]  ;;  %v1466_v10 = vunpack.c.l.bf16 %v6279_v3  ;;  %v1467_v32 = vunpack.c.h.bf16 %v6279_v3 }
 0x1da   :  { %1537 = vmatpush.msra.mxu2 %v6004_v36  ;;  %1560 = vmatpush.msra.mxu3 %v8875_v30 }
 0x1db   :  { %1572 = vmatpush.msrb.mxu0 %v5657_v44  ;;  %1595 = vmatpush.msrb.mxu1 %v8878_v46  ;;  %v8882_v44 = vunpack.c.l.bf16 %v6273_v63  ;;  %v6305_v43 = vpack.c.bf16 %v1457_v57, %v1456_v21 }
 0x1dc   :  { %1538 = vmatpush.msra.mxu2 %v8876_v16  ;;  %1561 = vmatpush.msra.mxu3 %v8877_v34  ;;  %v1473_v34 = vsub.f32 %v1453_v26, %v8883_v33 }
 0x1dd   :  { %1573 = vmatpush.msrb.mxu0 %v8881_v50  ;;  %1596 = vmatpush.msrb.mxu1 %v5675_v51  ;;  %v1472_v46 = vsub.f32 %v1452_v37, %v8882_v44  ;;  %v1474_v51 = vsub.f32 %v1454_v52, %v1466_v10  ;;  %v1475_v37 = vsub.f32 %v1455_v60, %v1467_v32 }
 0x1de   :  { %1539 = vmatpush.msra.mxu2 %v8879_v62  ;;  %1562 = vmatpush.msra.mxu3 %v8880_v45 }
 0x1df   :  { %1540 = vmatmul.f32.vlgmr.msra.gmra.mxu2 %v1472_v46  ;;  %1563 = vmatmul.f32.vlgmr.msra.gmra.mxu3 %v1473_v34 }
 0x1e0   :  { %1616 = vmatpush.msrb.mxu2 %v5680_v38  ;;  %1639 = vmatpush.msrb.mxu3 %v5687_v0  ;;  %v1468_v38 = vunpack.c.l.bf16 %v6305_v43  ;;  %v1469_v0 = vunpack.c.h.bf16 %v6305_v43 }
 0x1e1   :  { %1574 = vmatpush.msrb.mxu0 %v5696_v56  ;;  %1597 = vmatpush.msrb.mxu1 %v5701_v47 }
 0x1e2   :  { %1617 = vmatpush.msrb.mxu2 %v5706_v41  ;;  %1640 = vmatpush.msrb.mxu3 %v5713_v11  ;;  %v1476_v56 = vsub.f32 %v1456_v21, %v1468_v38  ;;  %v1477_v47 = vsub.f32 %v1457_v57, %v1469_v0  ;;  %v8884_v41 = vld [vmem:[#allocation26_spill] sm:$0xff]  ;;  %v8885_v11 = vld [vmem:[#allocation27_spill] sm:$0xff] }
 0x1e3   :  { %1497 = vmatmul.f32.gmra.mxu0 %v1474_v51  ;;  %1520 = vmatmul.f32.gmra.mxu1 %v1475_v37 }
 0x1e4   :  { %1575 = vmatpush.msrb.mxu0 %v5721_v48  ;;  %1598 = vmatpush.msrb.mxu1 %v5726_v27  ;;  %v8886_v48 = vld [vmem:[#allocation31_spill] sm:$0xff]  ;;  %v8887_v27 = vld [vmem:[#allocation32_spill] sm:$0xff] }
 0x1e5   :  { %1618 = vmatpush.msrb.mxu2 %v5731_v5  ;;  %1641 = vmatpush.msrb.mxu3 %v5739_v22  ;;  %v8888_v5 = vld [vmem:[#allocation35_spill] sm:$0xff]  ;;  %v8889_v22 = vld [vmem:[#allocation36_spill] sm:$0xff] }
 0x1e6   :  { %1576 = vmatpush.msrb.mxu0 %v5748_v9  ;;  %1599 = vmatpush.msrb.mxu1 %v5753_v12  ;;  %v8890_v9 = vld [vmem:[#allocation37_spill] sm:$0xff]  ;;  %v8891_v12 = vld [vmem:[#allocation39_spill] sm:$0xff] }
 0x1e7   :  { %1619 = vmatpush.msrb.mxu2 %v5758_v59  ;;  %1642 = vmatpush.msrb.mxu3 %v5767_v13  ;;  %v8892_v59 = vld [vmem:[#allocation40_spill] sm:$0xff]  ;;  %v8893_v13 = vunpack.c.l.bf16 %v6243_v8 }
 0x1e8   :  { %1577 = vmatpush.msrb.mxu0 %v5774_v39  ;;  %1600 = vmatpush.msrb.mxu1 %v5779_v19  ;;  %v8894_v39 = vunpack.c.h.bf16 %v6243_v8  ;;  %v8895_v19 = vld [vmem:[#allocation45_spill] sm:$0xff] }
 0x1e9   :  { %1620 = vmatpush.msrb.mxu2 %v5784_v17  ;;  %1643 = vmatpush.msrb.mxu3 %v5791_v61  ;;  %v8896_v17 = vmov %v8882_v44  ;;  %v8897_v61 = vmov %v8883_v33 }
 0x1ea   :  { %1543 = vmatmul.f32.gmra.mxu2 %v1476_v56  ;;  %1566 = vmatmul.f32.gmra.mxu3 %v1477_v47  ;;  %v6382_v56 = vld [vmem:[%s8627_s3 + $0x20] sm:$0xff]  ;;  %v6387_v47 = vld [vmem:[%s8627_s3 + $0x28] sm:$0xff] }
 0x1eb   :  { %1578 = vmatpush.msrb.mxu0 %v5800_v14  ;;  %1601 = vmatpush.msrb.mxu1 %v5805_v42 }
 0x1ec   :  { %1621 = vmatpush.msrb.mxu2 %v5810_v28  ;;  %1644 = vmatpush.msrb.mxu3 %v5817_v2 }
 0x1ed   :  { %1579 = vmatpush.msrb.mxu0 %v5824_v35  ;;  %1602 = vmatpush.msrb.mxu1 %v5829_v40 }
 0x1ee   :  { %1622 = vmatpush.msrb.mxu2 %v8859_v15  ;;  %1645 = vmatpush.msrb.mxu3 %v8860_v29 }
 0x1ef   :  { %1580 = vmatpush.msrb.mxu0 %v5848_v7  ;;  %1603 = vmatpush.msrb.mxu1 %v5853_v31 }
 0x1f0   :  { %1623 = vmatpush.msrb.mxu2 %v8861_v20  ;;  %1646 = vmatpush.msrb.mxu3 %v8862_v25 }
 0x1f1   :  { %1581 = vmatpush.msrb.mxu0 %v5874_v23  ;;  %1604 = vmatpush.msrb.mxu1 %v8817_v58 }
 0x1f2   :  { %1624 = vmatpush.msrb.mxu2 %v8863_v55  ;;  %1647 = vmatpush.msrb.mxu3 %v8864_v6 }
 0x1f3   :  { %1582 = vmatpush.msrb.mxu0 %v8884_v41  ;;  %1605 = vmatpush.msrb.mxu1 %v8885_v11  ;;  %v6392_v41 = vld [vmem:[%s8627_s3 + $0x30] sm:$0xff] }
 0x1f4   :  { %1625 = vmatpush.msrb.mxu2 %v8867_v1  ;;  %1648 = vmatpush.msrb.mxu3 %v8868_v24 }
 0x1f5   :  { %1583 = vmatpush.msrb.mxu0 %v8886_v48  ;;  %1606 = vmatpush.msrb.mxu1 %v8887_v27 }
 0x1f6   :  { %1626 = vmatpush.msrb.mxu2 %v8869_v49  ;;  %1649 = vmatpush.msrb.mxu3 %v8870_v18 }
 0x1f7   :  { %1584 = vmatpush.msrb.mxu0 %v8888_v5  ;;  %1607 = vmatpush.msrb.mxu1 %v8889_v22  ;;  %v6401_v22 = vld [vmem:[%s8627_s3 + $0x38] sm:$0xff] }
 0x1f8   :  { %1627 = vmatpush.msrb.mxu2 %v8890_v9  ;;  %1650 = vmatpush.msrb.mxu3 %v8837_v53  ;;  %v6406_v9 = vld [vmem:[%s8627_s3] sm:$0xff] }
 0x1f9   :  { %1585 = vmatpush.msrb.mxu0 %v8891_v12  ;;  %1608 = vmatpush.msrb.mxu1 %v8892_v59  ;;  %v6411_v12 = vld [vmem:[%s8627_s3 + $0x8] sm:$0xff]  ;;  %v6418_v59 = vld [vmem:[%s8627_s3 + $0x10] sm:$0xff] }
 0x1fa   :  { %1628 = vmatpush.msrb.mxu2 %v8873_v54  ;;  %1651 = vmatpush.msrb.mxu3 %v8874_v4 }
 0x1fb   :  { %1586 = vmatmul.f32.vlgmr.msrb.gmra.mxu0 %v8893_v13  ;;  %1609 = vmatmul.f32.vlgmr.msrb.gmra.mxu1 %v8894_v39  ;;  %v6423_v13 = vld [vmem:[%s8627_s3 + $0x18] sm:$0xff] }
 0x1fc   :  { %1629 = vmatpush.msrb.mxu2 %v6004_v36  ;;  %1652 = vmatpush.msrb.mxu3 %v8875_v30 }
 0x1fd   :  { %1716 = vmatpush.msra.mxu0 %v6382_v56  ;;  %1739 = vmatpush.msra.mxu1 %v6387_v47 }
 0x1fe   :  { %1630 = vmatpush.msrb.mxu2 %v8876_v16  ;;  %1653 = vmatpush.msrb.mxu3 %v8895_v19 }
 0x1ff   :  { %1717 = vmatpush.msra.mxu0 %v6406_v9  ;;  %1740 = vmatpush.msra.mxu1 %v6411_v12 }
 0x200   :  { %1631 = vmatpush.msrb.mxu2 %v8879_v62  ;;  %1654 = vmatpush.msrb.mxu3 %v8880_v45 }
 0x201   :  { %1632 = vmatmul.f32.vlgmr.msrb.gmra.mxu2 %v8896_v17  ;;  %1655 = vmatmul.f32.vlgmr.msrb.gmra.mxu3 %v8897_v61 }
 0x202   :  { %1762 = vmatpush.msra.mxu2 %v6392_v41  ;;  %1785 = vmatpush.msra.mxu3 %v6401_v22 }
 0x203   :  { %1589 = vmatmul.f32.gmra.mxu0 %v1466_v10  ;;  %1612 = vmatmul.f32.gmra.mxu1 %v1467_v32 }
 0x204   :  { %1763 = vmatpush.msra.mxu2 %v6418_v59  ;;  %1786 = vmatpush.msra.mxu3 %v6423_v13 }
 0x205   :  { %1814 = vmatpush.msrb.mxu0 %v6382_v56  ;;  %1837 = vmatpush.msrb.mxu1 %v6387_v47 }
 0x206   :  { %1860 = vmatpush.msrb.mxu2 %v6392_v41  ;;  %1883 = vmatpush.msrb.mxu3 %v6401_v22 }
 0x207   :  { %1815 = vmatpush.msrb.mxu0 %v6406_v9  ;;  %1838 = vmatpush.msrb.mxu1 %v6411_v12 }
 0x208   :  { %1861 = vmatpush.msrb.mxu2 %v6418_v59  ;;  %1884 = vmatpush.msrb.mxu3 %v6423_v13 }
 0x209   :  { %1635 = vmatmul.f32.gmra.mxu2 %v1468_v38  ;;  %1658 = vmatmul.f32.gmra.mxu3 %v1469_v0 }
 0x228   :  { %v1281_v14 = vpop.f32.mrf.mxu0  ;;  %v1304_v42 = vpop.f32.mrf.mxu1 }
 0x229   :  { %v1305_v4 = vadd.f32 %v1304_v42, %v1281_v14 }
 0x230   :  { %v1284_v28 = vpop.f32.mrf.mxu0  ;;  %v1307_v40 = vpop.f32.mrf.mxu1 }
 0x231   :  { %v1308_v29 = vadd.f32 %v1307_v40, %v1284_v28 }
 0x238   :  { %v1373_v7 = vpop.f32.mrf.mxu0  ;;  %v1396_v36 = vpop.f32.mrf.mxu1 }
 0x242   :  { %v1327_v2 = vpop.f32.mrf.mxu2  ;;  %v1350_v35 = vpop.f32.mrf.mxu3 }
 0x243   :  { %v1376_v63 = vpop.f32.mrf.mxu0  ;;  %v1399_v58 = vpop.f32.mrf.mxu1  ;;  %v1328_v33 = vadd.f32 %v1327_v2, %v1305_v4 }
 0x245   :  { %v1351_v15 = vadd.f32 %v1350_v35, %v1328_v33 }
 0x247   :  { %v1374_v20 = vadd.f32 %v1373_v7, %v1351_v15 }
 0x249   :  { %v1397_v52 = vadd.f32 %v1396_v36, %v1374_v20 }
 0x24a   :  { %v1330_v31 = vpop.f32.mrf.mxu2  ;;  %v1353_v23 = vpop.f32.mrf.mxu3 }
 0x24b   :  { %v1331_v25 = vadd.f32 %v1330_v31, %v1308_v29 }
 0x24d   :  { %v1354_v54 = vadd.f32 %v1353_v23, %v1331_v25 }
 0x24f   :  { %v1377_v34 = vadd.f32 %v1376_v63, %v1354_v54 }
 0x251   :  { %v1400_v46 = vadd.f32 %v1399_v58, %v1377_v34 }
 0x252   :  { %v1419_v18 = vpop.f32.mrf.mxu2  ;;  %v1442_v26 = vpop.f32.mrf.mxu3 }
 0x253   :  { %v1495_v50 = vpop.f32.mrf.mxu0  ;;  %v1518_v53 = vpop.f32.mrf.mxu1  ;;  %v1420_v10 = vadd.f32 %v1419_v18, %v1397_v52 }
 0x254   :  { %v1519_v8 = vadd.f32 %v1518_v53, %v1495_v50 }
 0x255   :  { %v1443_v45 = vadd.f32 %v1442_v26, %v1420_v10 }
 0x257   :  { %v6394_v11 = vmul.f32 0.03125, %v1443_v45 }
 0x259   :  { %v1664_v17 = vmul.f32 %v6394_v11, %v6394_v11 }
 0x25a   :  { %v1422_v24 = vpop.f32.mrf.mxu2  ;;  %v1445_v30 = vpop.f32.mrf.mxu3 }
 0x25b   :  { %v1423_v48 = vadd.f32 %v1422_v24, %v1400_v46 }
 0x25d   :  { %v1446_v61 = vadd.f32 %v1445_v30, %v1423_v48 }
 0x25f   :  { %v6439_v40 = vmul.f32 0.03125, %v1446_v61 }
 0x260   :  { %v1498_v43 = vpop.f32.mrf.mxu0  ;;  %v1521_v55 = vpop.f32.mrf.mxu1 }
 0x261   :  { %v1522_v21 = vadd.f32 %v1521_v55, %v1498_v43  ;;  %v1665_v63 = vmul.f32 %v6439_v40, %v6439_v40 }
 0x262   :  { %v1541_v49 = vpop.f32.mrf.mxu2  ;;  %v1564_v1 = vpop.f32.mrf.mxu3 }
 0x263   :  { %v1542_v6 = vadd.f32 %v1541_v49, %v1519_v8 }
 0x265   :  { %v1565_v16 = vadd.f32 %v1564_v1, %v1542_v6 }
 0x26d   :  { %v1544_v3 = vpop.f32.mrf.mxu2  ;;  %v1567_v32 = vpop.f32.mrf.mxu3 }
 0x26e   :  { %v1545_v44 = vadd.f32 %v1544_v3, %v1522_v21 }
 0x270   :  { %v1568_v27 = vadd.f32 %v1567_v32, %v1545_v44 }
 0x278   :  { %v1587_v60 = vpop.f32.mrf.mxu0  ;;  %v1610_v62 = vpop.f32.mrf.mxu1 }
 0x279   :  { %v1588_v57 = vadd.f32 %v1587_v60, %v1565_v16 }
 0x27b   :  { %v1611_v51 = vadd.f32 %v1610_v62, %v1588_v57 }
 0x280   :  { %v1590_v37 = vpop.f32.mrf.mxu0  ;;  %v1613_v42 = vpop.f32.mrf.mxu1 }
 0x281   :  { %v1591_v39 = vadd.f32 %v1590_v37, %v1568_v27 }
 0x283   :  { %v1614_v28 = vadd.f32 %v1613_v42, %v1591_v39 }
 0x284   :  { %v1633_v38 = vpop.f32.mrf.mxu2  ;;  %v1656_v0 = vpop.f32.mrf.mxu3 }
 0x285   :  { %v1634_v5 = vadd.f32 %v1633_v38, %v1611_v51 }
 0x287   :  { %v1657_v19 = vadd.f32 %v1656_v0, %v1634_v5 }
 0x289   :  { %v1662_v14 = vmul.f32 0.03125, %v1657_v19 }
 0x28b   :  { %v1666_v2 = vsub.f32 %v1662_v14, %v1664_v17 }
 0x28c   :  { %v1636_v35 = vpop.f32.mrf.mxu2  ;;  %v1659_v23 = vpop.f32.mrf.mxu3 }
 0x28d   :  { %v1668_v7 = vadd.f32 1e-05, %v1666_v2  ;;  %v1637_v31 = vadd.f32 %v1636_v35, %v1614_v28 }
 0x28f   :  { %4430 = vrsqrt.f32 %v1668_v7  ;;  %v1660_v36 = vadd.f32 %v1659_v23, %v1637_v31  ;;  %vm1676_vm6 = vweird.f32 %v1668_v7  ;;  %v8898_v31 = vld [vmem:[#allocation48_spill] sm:$0xff] }
 0x291   :  { %v1663_v18 = vmul.f32 0.03125, %v1660_v36  ;;  %v8899_v36 = vld [vmem:[#allocation49_spill] sm:$0xff] }
 0x293   :  { %v1667_v26 = vsub.f32 %v1663_v18, %v1665_v63 }
 0x295   :  { %v4431_v58 = vpop.eup %4430  ;;  %v1669_v50 = vadd.f32 1e-05, %v1667_v26 }
 0x296   :  { %v1671_v24 = vmul.f32 %v4431_v58, %v1668_v7  ;;  %vm1677_vm5 = vweird.f32 %v4431_v58 }
 0x297   :  { %4432 = vrsqrt.f32 %v1669_v50  ;;  %vm1678_vm7 = vmor %vm1676_vm6, %vm1677_vm5  ;;  %vm1686_vm9 = vweird.f32 %v1669_v50 }
 0x298   :  { %v1672_v30 = vmul.f32 %v4431_v58, %v1671_v24 }
 0x29a   :  { %v1673_v4 = vmul.f32 0.5, %v1672_v30 }
 0x29c   :  { %v1674_v53 = vsub.f32 1.5, %v1673_v4 }
 0x29d   :  { %v4433_v33 = vpop.eup %4432 }
 0x29e   :  { %v1675_v43 = vmul.f32 %v4431_v58, %v1674_v53  ;;  %v1681_v49 = vmul.f32 %v4433_v33, %v1669_v50  ;;  %vm1687_vm8 = vweird.f32 %v4433_v33 }
 0x29f   :  { %vm1688_vm10 = vmor %vm1686_vm9, %vm1687_vm8 }
 0x2a0   :  { %v1679_v1 = vsel %vm1678_vm7, %v4431_v58, %v1675_v43  ;;  %v1682_v15 = vmul.f32 %v4433_v33, %v1681_v49 }
 0x2a1   :  { %v1690_v29 = vpack.c.bf16 %v1679_v1, %v1679_v1  ;;  %v1892_v32 = vmul.f32 %v1679_v1, %v6394_v11 }
 0x2a2   :  { %v1683_v20 = vmul.f32 0.5, %v1682_v15 }
 0x2a3   :  { %v1692_v25 = vunpack.c.l.bf16 %v1690_v29  ;;  %v1894_v10 = vpack.c.bf16 %v1892_v32, %v1892_v32 }
 0x2a4   :  { %v1684_v8 = vsub.f32 1.5, %v1683_v20 }
 0x2a5   :  { %v1694_v55 = vsub.f32 %v1679_v1, %v1692_v25  ;;  %v1896_v16 = vunpack.c.l.bf16 %v1894_v10 }
 0x2a6   :  { %v1685_v6 = vmul.f32 %v4433_v33, %v1684_v8 }
 0x2a7   :  { %4272 = vmatmul.msk.f32.vlgmr.msra.gmra.mxu0 %vm129_vm0, %v1694_v55  ;;  %4274 = vmatmul.msk.f32.vlgmr.msra.gmra.mxu1 %vm129_vm0, %v1694_v55  ;;  %v1898_v21 = vsub.f32 %v1892_v32, %v1896_v16 }
 0x2a8   :  { %4276 = vmatmul.msk.f32.vlgmr.msra.gmra.mxu2 %vm129_vm0, %v1694_v55  ;;  %4278 = vmatmul.msk.f32.vlgmr.msra.gmra.mxu3 %vm129_vm0, %v1694_v55  ;;  %v1689_v60 = vsel %vm1688_vm10, %v4433_v33, %v1685_v6  ;;  %v2130_v33 = vld [vmem:[%s8629_s5] ss:$2 sm:$0xf]  ;;  %v8900_v55 = vld [vmem:[#allocation9_spill] sm:$0xff] }
 0x2a9   :  { %v1691_v52 = vpack.c.bf16 %v1689_v60, %v1689_v60  ;;  %1920 = vmatpush.msra.mxu0 %v6382_v56  ;;  %1943 = vmatpush.msra.mxu1 %v6387_v47  ;;  %v1893_v34 = vmul.f32 %v1689_v60, %v6439_v40  ;;  %v6496_v40 = vld [vmem:[%s8628_s4] ss:$2 sm:$0xf]  ;;  %v2132_v15 = vperm.slane %v2130_v33, 0  ;;  %v2133_v20 = vperm.slane %v2130_v33, 1 }
 0x2aa   :  { %1966 = vmatpush.msra.mxu2 %v6392_v41  ;;  %1989 = vmatpush.msra.mxu3 %v6401_v22  ;;  %v2114_v50 = vperm.slane %v6496_v40, 0  ;;  %v2115_v30 = vperm.slane %v6496_v40, 1 }
 0x2ab   :  { %v1693_v54 = vunpack.c.l.bf16 %v1691_v52  ;;  %1921 = vmatpush.msra.mxu0 %v6406_v9  ;;  %1944 = vmatpush.msra.mxu1 %v6411_v12  ;;  %v1895_v57 = vpack.c.bf16 %v1893_v34, %v1893_v34 }
 0x2ac   :  { %1967 = vmatpush.msra.mxu2 %v6418_v59  ;;  %1990 = vmatpush.msra.mxu3 %v6423_v13 }
 0x2ad   :  { %v1695_v3 = vsub.f32 %v1689_v60, %v1693_v54  ;;  %v1897_v62 = vunpack.c.l.bf16 %v1895_v57  ;;  %v8901_v60 = vld [vmem:[#allocation38_spill] sm:$0xff] }
 0x2af   :  { %4273 = vmatmul.msk.f32.gmra.mxu0 %vm129_vm0, %v1695_v3  ;;  %4275 = vmatmul.msk.f32.gmra.mxu1 %vm129_vm0, %v1695_v3  ;;  %v1899_v45 = vsub.f32 %v1893_v34, %v1897_v62 }
 0x2b0   :  { %4277 = vmatmul.msk.f32.gmra.mxu2 %vm129_vm0, %v1695_v3  ;;  %4279 = vmatmul.msk.f32.gmra.mxu3 %vm129_vm0, %v1695_v3 }
 0x2b7   :  { %4280 = vmatmul.msk.f32.vlgmr.msrb.gmra.mxu0 %vm129_vm0, %v1692_v25  ;;  %4282 = vmatmul.msk.f32.vlgmr.msrb.gmra.mxu1 %vm129_vm0, %v1692_v25 }
 0x2b8   :  { %4284 = vmatmul.msk.f32.vlgmr.msrb.gmra.mxu2 %vm129_vm0, %v1692_v25  ;;  %4286 = vmatmul.msk.f32.vlgmr.msrb.gmra.mxu3 %vm129_vm0, %v1692_v25 }
 0x2b9   :  { %2018 = vmatpush.msrb.mxu0 %v6382_v56  ;;  %2041 = vmatpush.msrb.mxu1 %v6387_v47 }
 0x2ba   :  { %2064 = vmatpush.msrb.mxu2 %v6392_v41  ;;  %2087 = vmatpush.msrb.mxu3 %v6401_v22 }
 0x2bb   :  { %2019 = vmatpush.msrb.mxu0 %v6406_v9  ;;  %2042 = vmatpush.msrb.mxu1 %v6411_v12 }
 0x2bc   :  { %2065 = vmatpush.msrb.mxu2 %v6418_v59  ;;  %2088 = vmatpush.msrb.mxu3 %v6423_v13 }
 0x2bf   :  { %4281 = vmatmul.msk.f32.gmra.mxu0 %vm129_vm0, %v1693_v54  ;;  %4283 = vmatmul.msk.f32.gmra.mxu1 %vm129_vm0, %v1693_v54 }
 0x2c0   :  { %4285 = vmatmul.msk.f32.gmra.mxu2 %vm129_vm0, %v1693_v54  ;;  %4287 = vmatmul.msk.f32.gmra.mxu3 %vm129_vm0, %v1693_v54 }
 0x2c7   :  { %4288 = vmatmul.msk.f32.vlgmr.msra.gmra.mxu0 %vm129_vm0, %v1898_v21  ;;  %4290 = vmatmul.msk.f32.vlgmr.msra.gmra.mxu1 %vm129_vm0, %v1898_v21 }
 0x2c8   :  { %4292 = vmatmul.msk.f32.vlgmr.msra.gmra.mxu2 %vm129_vm0, %v1898_v21  ;;  %4294 = vmatmul.msk.f32.vlgmr.msra.gmra.mxu3 %vm129_vm0, %v1898_v21  ;;  %v8903_v21 = vld [vmem:[#allocation8_spill] sm:$0xff] }
 0x2cf   :  { %4289 = vmatmul.msk.f32.gmra.mxu0 %vm129_vm0, %v1899_v45  ;;  %4291 = vmatmul.msk.f32.gmra.mxu1 %vm129_vm0, %v1899_v45 }
 0x2d0   :  { %4293 = vmatmul.msk.f32.gmra.mxu2 %vm129_vm0, %v1899_v45  ;;  %4295 = vmatmul.msk.f32.gmra.mxu3 %vm129_vm0, %v1899_v45 }
 0x2d7   :  { %4296 = vmatmul.msk.f32.vlgmr.msrb.gmra.mxu0 %vm129_vm0, %v1896_v16  ;;  %4298 = vmatmul.msk.f32.vlgmr.msrb.gmra.mxu1 %vm129_vm0, %v1896_v16 }
 0x2d8   :  { %4300 = vmatmul.msk.f32.vlgmr.msrb.gmra.mxu2 %vm129_vm0, %v1896_v16  ;;  %4302 = vmatmul.msk.f32.vlgmr.msrb.gmra.mxu3 %vm129_vm0, %v1896_v16  ;;  %v8902_v16 = vld [vmem:[#allocation22_spill] sm:$0xff] }
 0x2df   :  { %4297 = vmatmul.msk.f32.gmra.mxu0 %vm129_vm0, %v1897_v62  ;;  %4299 = vmatmul.msk.f32.gmra.mxu1 %vm129_vm0, %v1897_v62 }
 0x2e0   :  { %4301 = vmatmul.msk.f32.gmra.mxu2 %vm129_vm0, %v1897_v62  ;;  %4303 = vmatmul.msk.f32.gmra.mxu3 %vm129_vm0, %v1897_v62 }
 0x324   :  { %v1719_v44 = vpop.f32.mrf.mxu0  ;;  %v1742_v46 = vpop.f32.mrf.mxu1 }
 0x32b   :  { %v1765_v51 = vpop.f32.mrf.mxu2  ;;  %v1788_v37 = vpop.f32.mrf.mxu3 }
 0x32c   :  { %v1722_v38 = vpop.f32.mrf.mxu0  ;;  %v1745_v0 = vpop.f32.mrf.mxu1 }
 0x333   :  { %v1768_v56 = vpop.f32.mrf.mxu2  ;;  %v1791_v47 = vpop.f32.mrf.mxu3 }
 0x334   :  { %v1817_v41 = vpop.f32.mrf.mxu0  ;;  %v1840_v11 = vpop.f32.mrf.mxu1 }
 0x335   :  { %v1818_v14 = vadd.f32 %v1817_v41, %v1719_v44  ;;  %v1841_v42 = vadd.f32 %v1840_v11, %v1742_v46  ;;  %v2116_v46 = vperm.slane %v6496_v40, 2 }
 0x337   :  { %v2096_v23 = vmul.f32 %v1818_v14, %v8898_v31  ;;  %v2097_v63 = vmul.f32 %v1841_v42, %v8899_v36  ;;  %v8909_v31 = vld [vmem:[#allocation14_spill] sm:$0xff] }
 0x33b   :  { %v1863_v48 = vpop.f32.mrf.mxu2  ;;  %v1886_v27 = vpop.f32.mrf.mxu3 }
 0x33c   :  { %v1820_v5 = vpop.f32.mrf.mxu0  ;;  %v1843_v22 = vpop.f32.mrf.mxu1  ;;  %v1864_v4 = vadd.f32 %v1863_v48, %v1765_v51  ;;  %v1887_v53 = vadd.f32 %v1886_v27, %v1788_v37  ;;  %v2117_v37 = vperm.slane %v6496_v40, 3  ;;  %v8908_v40 = vld [vmem:[#allocation25_spill] sm:$0xff] }
 0x33d   :  { %v1821_v43 = vadd.f32 %v1820_v5, %v1722_v38  ;;  %v1844_v49 = vadd.f32 %v1843_v22, %v1745_v0 }
 0x33e   :  { %v2098_v6 = vmul.f32 %v1864_v4, %v8900_v55  ;;  %v2099_v52 = vmul.f32 %v1887_v53, %v8901_v60 }
 0x33f   :  { %v2100_v34 = vmul.f32 %v1821_v43, %v8902_v16  ;;  %v2101_v57 = vmul.f32 %v1844_v49, %v8903_v21  ;;  %v6582_v16 = vld [vmem:[%s8626_s2 + $0x70] sm:$0xff]  ;;  %v6594_v21 = vld [vmem:[%s8626_s2 + $0x178] sm:$0xff] }
 0x343   :  { %v1866_v9 = vpop.f32.mrf.mxu2  ;;  %v1889_v12 = vpop.f32.mrf.mxu3 }
 0x344   :  { %v1923_v59 = vpop.f32.mrf.mxu0  ;;  %v1946_v13 = vpop.f32.mrf.mxu1  ;;  %v1867_v48 = vadd.f32 %v1866_v9, %v1768_v56  ;;  %v1890_v27 = vadd.f32 %v1889_v12, %v1791_v47 }
 0x346   :  { %v2103_v56 = vmul.f32 %v1890_v27, %v8909_v31  ;;  %v6668_v27 = vld [vmem:[%s8626_s2 + $0x1e8] sm:$0xff]  ;;  %v6748_v31 = vld [vmem:[%s8626_s2 + $0x1d8] sm:$0xff] }
 0x34b   :  { %v1969_v39 = vpop.f32.mrf.mxu2  ;;  %v1992_v19 = vpop.f32.mrf.mxu3 }
 0x34c   :  { %v1926_v17 = vpop.f32.mrf.mxu0  ;;  %v1949_v61 = vpop.f32.mrf.mxu1 }
 0x353   :  { %v1972_v28 = vpop.f32.mrf.mxu2  ;;  %v1995_v2 = vpop.f32.mrf.mxu3 }
 0x354   :  { %v2021_v35 = vpop.f32.mrf.mxu0  ;;  %v2044_v7 = vpop.f32.mrf.mxu1 }
 0x355   :  { %v2022_v18 = vadd.f32 %v2021_v35, %v1923_v59  ;;  %v2045_v26 = vadd.f32 %v2044_v7, %v1946_v13  ;;  %v2134_v13 = vperm.slane %v2130_v33, 2  ;;  %v2102_v7 = vmul.f32 %v1867_v48, %v8908_v40  ;;  %v6662_v48 = vld [vmem:[%s8626_s2 + $0x168] sm:$0xff]  ;;  %v6736_v40 = vld [vmem:[%s8626_s2 + $0xb8] sm:$0xff] }
 0x357   :  { %v2104_v58 = vsub.f32 %v2096_v23, %v2022_v18  ;;  %v2105_v24 = vsub.f32 %v2097_v63, %v2045_v26 }
 0x359   :  { %v2122_v1 = vmul.f32 %v2114_v50, %v2104_v58  ;;  %v2123_v29 = vmul.f32 %v2115_v30, %v2105_v24 }
 0x35b   :  { %v2067_v25 = vpop.f32.mrf.mxu2  ;;  %v2090_v8 = vpop.f32.mrf.mxu3  ;;  %v6511_v38 = vadd.f32 %v2132_v15, %v2122_v1  ;;  %v6513_v0 = vadd.f32 %v2133_v20, %v2123_v29  ;;  %v6544_v29 = vld [vmem:[%s8625_s1] sm:$0xff] }
 0x35c   :  { %v2068_v54 = vadd.f32 %v2067_v25, %v1969_v39  ;;  %v2091_v3 = vadd.f32 %v2090_v8, %v1992_v19  ;;  %v2024_v32 = vpop.f32.mrf.mxu0  ;;  %v2047_v10 = vpop.f32.mrf.mxu1  ;;  %v2135_v19 = vperm.slane %v2130_v33, 3 }
 0x35d   :  { %v2025_v62 = vadd.f32 %v2024_v32, %v1926_v17  ;;  %v2048_v45 = vadd.f32 %v2047_v10, %v1949_v61  ;;  %8904 = vst [vmem:[#allocation15_spill] sm:$0xff] %v6511_v38  ;;  %v2148_v35 = vpack.c.bf16 %v6513_v0, %v6511_v38  ;;  %v6563_v32 = vld [vmem:[%s8626_s2 + $0xf8] sm:$0xff]  ;;  %v6573_v10 = vld [vmem:[%s8625_s1 + $0x8] sm:$0xff] }
 0x35e   :  { %v2106_v44 = vsub.f32 %v2098_v6, %v2068_v54  ;;  %v2107_v51 = vsub.f32 %v2099_v52, %v2091_v3  ;;  %8905 = vst [vmem:[#allocation10_spill] sm:$0xff] %v6513_v0  ;;  %v6557_v3 = vld [vmem:[%s8626_s2 + $0x78] sm:$0xff] }
 0x35f   :  { %v2108_v41 = vsub.f32 %v2100_v34, %v2025_v62  ;;  %v2109_v11 = vsub.f32 %v2101_v57, %v2048_v45  ;;  %v2153_v24 = vunpack.c.h.bf16 %v2148_v35  ;;  %v6588_v34 = vld [vmem:[%s8626_s2 + $0xf0] sm:$0xff]  ;;  %v6600_v57 = vld [vmem:[%s8626_s2 + $0x1f8] sm:$0xff]  ;;  %v6606_v62 = vld [vmem:[%s8626_s2 + $0x68] sm:$0xff] }
 0x360   :  { %v2124_v59 = vmul.f32 %v2116_v46, %v2106_v44  ;;  %v2125_v39 = vmul.f32 %v2117_v37, %v2107_v51  ;;  %v6612_v45 = vld [vmem:[%s8626_s2 + $0xe8] sm:$0xff]  ;;  %v6618_v44 = vld [vmem:[%s8626_s2 + $0x170] sm:$0xff]  ;;  %v6634_v51 = vld [vmem:[%s8626_s2 + $0x60] sm:$0xff] }
 0x361   :  { %v2126_v5 = vmul.f32 %v2114_v50, %v2108_v41  ;;  %v2127_v22 = vmul.f32 %v2115_v30, %v2109_v11  ;;  %v2152_v50 = vunpack.c.l.bf16 %v2148_v35  ;;  %v2161_v1 = vsub.f32 %v6513_v0, %v2153_v24  ;;  %v6650_v41 = vld [vmem:[%s8626_s2 + $0x58] sm:$0xff] }
 0x362   :  { %v6525_v23 = vadd.f32 %v2134_v13, %v2124_v59  ;;  %v6527_v36 = vadd.f32 %v2135_v19, %v2125_v39  ;;  %v6656_v11 = vld [vmem:[%s8626_s2 + $0xd8] sm:$0xff]  ;;  %v6686_v59 = vld [vmem:[%s8626_s2 + $0x160] sm:$0xff]  ;;  %v6698_v39 = vld [vmem:[%s8626_s2 + $0x48] sm:$0xff] }
 0x363   :  { %v6515_v17 = vadd.f32 %v2132_v15, %v2126_v5  ;;  %v6517_v61 = vadd.f32 %v2133_v20, %v2127_v22  ;;  %v2070_v14 = vpop.f32.mrf.mxu2  ;;  %v2093_v42 = vpop.f32.mrf.mxu3  ;;  %v2160_v49 = vsub.f32 %v6511_v38, %v2152_v50  ;;  %v6674_v5 = vld [vmem:[%s8626_s2 + $0x50] sm:$0xff]  ;;  %v6730_v35 = vld [vmem:[%s8626_s2 + $0x38] sm:$0xff] }
 0x364   :  { %v2071_v47 = vadd.f32 %v2070_v14, %v1972_v28  ;;  %v2094_v9 = vadd.f32 %v2093_v42, %v1995_v2  ;;  %v2149_v43 = vpack.c.bf16 %v6527_v36, %v6525_v23  ;;  %v6680_v22 = vld [vmem:[%s8626_s2 + $0xd0] sm:$0xff]  ;;  %v6714_v14 = vld [vmem:[%s8626_s2 + $0x40] sm:$0xff] }
 0x365   :  { %8906 = vst [vmem:[#allocation29_spill] sm:$0xff] %v6515_v17  ;;  %v2150_v12 = vpack.c.bf16 %v6517_v61, %v6515_v17  ;;  %v6720_v42 = vld [vmem:[%s8626_s2 + $0xc0] sm:$0xff] }
 0x366   :  { %8907 = vst [vmem:[#allocation12_spill] sm:$0xff] %v6517_v61  ;;  %v2110_v63 = vsub.f32 %v2102_v7, %v2071_v47  ;;  %v2111_v18 = vsub.f32 %v2103_v56, %v2094_v9  ;;  %v2154_v8 = vunpack.c.l.bf16 %v2149_v43  ;;  %v2155_v55 = vunpack.c.h.bf16 %v2149_v43  ;;  %v6742_v7 = vld [vmem:[%s8626_s2 + $0x158] sm:$0xff]  ;;  %v6754_v56 = vld [vmem:[%s8626_s2 + $0x30] sm:$0xff] }
 0x367   :  { %v2156_v26 = vunpack.c.l.bf16 %v2150_v12  ;;  %v2157_v58 = vunpack.c.h.bf16 %v2150_v12  ;;  %v6760_v47 = vld [vmem:[%s8626_s2 + $0xb0] sm:$0xff] }
 0x368   :  { %v2128_v30 = vmul.f32 %v2116_v46, %v2110_v63  ;;  %v2129_v4 = vmul.f32 %v2117_v37, %v2111_v18  ;;  %v2162_v52 = vsub.f32 %v6525_v23, %v2154_v8  ;;  %v2163_v54 = vsub.f32 %v6527_v36, %v2155_v55  ;;  %v6624_v46 = vld [vmem:[%s8626_s2 + $0x1f0] sm:$0xff]  ;;  %v6640_v37 = vld [vmem:[%s8626_s2 + $0xe0] sm:$0xff]  ;;  %v6778_v63 = vld [vmem:[%s8626_s2 + $0x28] sm:$0xff] }
 0x369   :  { %v2164_v53 = vsub.f32 %v6515_v17, %v2156_v26  ;;  %v2165_v28 = vsub.f32 %v6517_v61, %v2157_v58  ;;  %v6766_v9 = vld [vmem:[%s8626_s2 + $0x150] sm:$0xff]  ;;  %v6784_v18 = vld [vmem:[%s8626_s2 + $0xa8] sm:$0xff] }
 0x36a   :  { %v6531_v2 = vadd.f32 %v2134_v13, %v2128_v30  ;;  %v6533_v33 = vadd.f32 %v2135_v19, %v2129_v4  ;;  %v6692_v13 = vld [vmem:[%s8626_s2 + $0x1e0] sm:$0xff]  ;;  %v6704_v19 = vld [vmem:[%s8626_s2 + $0xc8] sm:$0xff]  ;;  %v6772_v12 = vld [vmem:[%s8626_s2 + $0x1d0] sm:$0xff] }
 0x36b   :  { %2182 = vmatpush.msra.mxu0 %v2164_v53  ;;  %2205 = vmatpush.msra.mxu1 %v2165_v28  ;;  %v6818_v30 = vld [vmem:[%s8626_s2 + $0x18] sm:$0xff]  ;;  %v6830_v53 = vld [vmem:[%s8626_s2 + $0x140] sm:$0xff]  ;;  %v6842_v43 = vld [vmem:[%s8626_s2 + $0x10] sm:$0xff] }
 0x36c   :  { %8910 = vst [vmem:[#allocation11_spill] sm:$0xff] %v6531_v2  ;;  %v2151_v15 = vpack.c.bf16 %v6533_v33, %v6531_v2  ;;  %v6824_v4 = vld [vmem:[%s8626_s2 + $0x98] sm:$0xff]  ;;  %v6836_v28 = vld [vmem:[%s8626_s2 + $0x1c0] sm:$0xff] }
 0x36d   :  { %8911 = vst [vmem:[#allocation13_spill] sm:$0xff] %v6533_v33  ;;  %2183 = vmatpush.msra.mxu0 %v2160_v49  ;;  %2206 = vmatpush.msra.mxu1 %v2161_v1  ;;  %v6848_v49 = vld [vmem:[%s8626_s2 + $0x90] sm:$0xff]  ;;  %v6854_v1 = vld [vmem:[%s8626_s2 + $0x138] sm:$0xff] }
 0x36e   :  { %4304 = vmatmul.msk.f32.vlgmr.msra.gmra.mxu0 %vm129_vm0, %v6544_v29  ;;  %4306 = vmatmul.msk.f32.vlgmr.msra.gmra.mxu1 %vm129_vm0, %v6544_v29  ;;  %v2158_v20 = vunpack.c.l.bf16 %v2151_v15  ;;  %v2159_v25 = vunpack.c.h.bf16 %v2151_v15  ;;  %v6860_v15 = vld [vmem:[%s8626_s2 + $0x1b8] sm:$0xff] }
 0x36f   :  { %2274 = vmatpush.msrb.mxu0 %v2156_v26  ;;  %2297 = vmatpush.msrb.mxu1 %v2157_v58  ;;  %v6794_v26 = vld [vmem:[%s8626_s2 + $0x20] sm:$0xff] }
 0x370   :  { %v2166_v6 = vsub.f32 %v6531_v2, %v2158_v20  ;;  %v2167_v60 = vsub.f32 %v6533_v33, %v2159_v25  ;;  %v6800_v58 = vld [vmem:[%s8626_s2 + $0xa0] sm:$0xff]  ;;  %v6961_v33 = vld [vmem:[%s8626_s2 + $0x110] sm:$0xff] }
 0x371   :  { %2275 = vmatpush.msrb.mxu0 %v2152_v50  ;;  %2298 = vmatpush.msrb.mxu1 %v2153_v24  ;;  %v6806_v50 = vld [vmem:[%s8626_s2 + $0x148] sm:$0xff] }
 0x372   :  { %2228 = vmatpush.msra.mxu2 %v2166_v6  ;;  %2251 = vmatpush.msra.mxu3 %v2167_v60  ;;  %v6812_v24 = vld [vmem:[%s8626_s2 + $0x1c8] sm:$0xff]  ;;  %v6893_v6 = vld [vmem:[%s8626_s2] sm:$0xff] }
 0x373   :  { %3296 = vmatpush.msra.mxu0 %v6557_v3  ;;  %3319 = vmatpush.msra.mxu1 %v6563_v32  ;;  %v6899_v60 = vld [vmem:[%s8626_s2 + $0x80] sm:$0xff] }
 0x374   :  { %2229 = vmatpush.msra.mxu2 %v2162_v52  ;;  %2252 = vmatpush.msra.mxu3 %v2163_v54  ;;  %v6905_v52 = vmul.f32 0.70710677, %v6513_v0  ;;  %v6910_v54 = vld [vmem:[%s8626_s2 + $0x128] sm:$0xff]  ;;  %v6932_v0 = vld [vmem:[%s8626_s2 + $0x1a0] sm:$0xff] }
 0x375   :  { %4308 = vmatmul.msk.f32.vlgmr.msra.gmra.mxu2 %vm129_vm0, %v6544_v29  ;;  %4310 = vmatmul.msk.f32.vlgmr.msra.gmra.mxu3 %vm129_vm0, %v6544_v29 }
 0x376   :  { %2320 = vmatpush.msrb.mxu2 %v2158_v20  ;;  %2343 = vmatpush.msrb.mxu3 %v2159_v25  ;;  %v6872_v20 = vld [vmem:[%s8626_s2 + $0x88] sm:$0xff]  ;;  %v6878_v25 = vld [vmem:[%s8626_s2 + $0x130] sm:$0xff]  ;;  %8912 = vst [vmem:[#allocation18_spill] sm:$0xff] %v6905_v52 }
 0x377   :  { %4305 = vmatmul.msk.f32.gmra.mxu0 %vm129_vm0, %v6573_v10  ;;  %4307 = vmatmul.msk.f32.gmra.mxu1 %vm129_vm0, %v6573_v10 }
 0x378   :  { %2321 = vmatpush.msrb.mxu2 %v2154_v8  ;;  %2344 = vmatpush.msrb.mxu3 %v2155_v55  ;;  %v6884_v8 = vld [vmem:[%s8626_s2 + $0x1b0] sm:$0xff]  ;;  %v6888_v55 = vmul.f32 0.70710677, %v6511_v38  ;;  %v6948_v38 = vld [vmem:[%s8626_s2 + $0x198] sm:$0xff] }
 0x379   :  { %3297 = vmatpush.msra.mxu0 %v6582_v16  ;;  %3320 = vmatpush.msra.mxu1 %v6588_v34 }
 0x37a   :  { %3342 = vmatpush.msra.mxu2 %v6594_v21  ;;  %3365 = vmatpush.msra.mxu3 %v6600_v57 }
 0x37b   :  { %3298 = vmatpush.msra.mxu0 %v6606_v62  ;;  %3321 = vmatpush.msra.mxu1 %v6612_v45 }
 0x37c   :  { %3343 = vmatpush.msra.mxu2 %v6618_v44  ;;  %3366 = vmatpush.msra.mxu3 %v6624_v46 }
 0x37d   :  { %4309 = vmatmul.msk.f32.gmra.mxu2 %vm129_vm0, %v6573_v10  ;;  %4311 = vmatmul.msk.f32.gmra.mxu3 %vm129_vm0, %v6573_v10 }
 0x37e   :  { %3299 = vmatpush.msra.mxu0 %v6634_v51  ;;  %3322 = vmatpush.msra.mxu1 %v6640_v37 }
 0x37f   :  { %4312 = vmatmul.msk.f32.vlgmr.msrb.gmra.mxu0 %vm129_vm0, %v6544_v29  ;;  %4314 = vmatmul.msk.f32.vlgmr.msrb.gmra.mxu1 %vm129_vm0, %v6544_v29 }
 0x380   :  { %3300 = vmatpush.msra.mxu0 %v6650_v41  ;;  %3323 = vmatpush.msra.mxu1 %v6656_v11 }
 0x381   :  { %3344 = vmatpush.msra.mxu2 %v6662_v48  ;;  %3367 = vmatpush.msra.mxu3 %v6668_v27 }
 0x382   :  { %3301 = vmatpush.msra.mxu0 %v6674_v5  ;;  %3324 = vmatpush.msra.mxu1 %v6680_v22 }
 0x383   :  { %3345 = vmatpush.msra.mxu2 %v6686_v59  ;;  %3368 = vmatpush.msra.mxu3 %v6692_v13 }
 0x384   :  { %3302 = vmatpush.msra.mxu0 %v6698_v39  ;;  %3325 = vmatpush.msra.mxu1 %v6704_v19 }
 0x385   :  { %4316 = vmatmul.msk.f32.vlgmr.msrb.gmra.mxu2 %vm129_vm0, %v6544_v29  ;;  %4318 = vmatmul.msk.f32.vlgmr.msrb.gmra.mxu3 %vm129_vm0, %v6544_v29  ;;  %v6866_v29 = vld [vmem:[%s8626_s2 + $0x8] sm:$0xff] }
 0x386   :  { %3303 = vmatpush.msra.mxu0 %v6714_v14  ;;  %3326 = vmatpush.msra.mxu1 %v6720_v42 }
 0x387   :  { %4313 = vmatmul.msk.f32.gmra.mxu0 %vm129_vm0, %v6573_v10  ;;  %4315 = vmatmul.msk.f32.gmra.mxu1 %vm129_vm0, %v6573_v10 }
 0x388   :  { %3304 = vmatpush.msra.mxu0 %v6730_v35  ;;  %3327 = vmatpush.msra.mxu1 %v6736_v40 }
 0x389   :  { %3346 = vmatpush.msra.mxu2 %v6742_v7  ;;  %3369 = vmatpush.msra.mxu3 %v6748_v31 }
 0x38a   :  { %3305 = vmatpush.msra.mxu0 %v6754_v56  ;;  %3328 = vmatpush.msra.mxu1 %v6760_v47 }
 0x38b   :  { %3347 = vmatpush.msra.mxu2 %v6766_v9  ;;  %3370 = vmatpush.msra.mxu3 %v6772_v12 }
 0x38c   :  { %3306 = vmatpush.msra.mxu0 %v6778_v63  ;;  %3329 = vmatpush.msra.mxu1 %v6784_v18 }
 0x38d   :  { %4317 = vmatmul.msk.f32.gmra.mxu2 %vm129_vm0, %v6573_v10  ;;  %4319 = vmatmul.msk.f32.gmra.mxu3 %vm129_vm0, %v6573_v10  ;;  %v6916_v10 = vld [vmem:[%s8626_s2 + $0x1a8] sm:$0xff] }
 0x38e   :  { %3307 = vmatpush.msra.mxu0 %v6794_v26  ;;  %3330 = vmatpush.msra.mxu1 %v6800_v58 }
 0x38f   :  { %3348 = vmatpush.msra.mxu2 %v6806_v50  ;;  %3371 = vmatpush.msra.mxu3 %v6812_v24 }
 0x390   :  { %3308 = vmatpush.msra.mxu0 %v6818_v30  ;;  %3331 = vmatpush.msra.mxu1 %v6824_v4 }
 0x391   :  { %3349 = vmatpush.msra.mxu2 %v6830_v53  ;;  %3372 = vmatpush.msra.mxu3 %v6836_v28 }
 0x392   :  { %3309 = vmatpush.msra.mxu0 %v6842_v43  ;;  %3332 = vmatpush.msra.mxu1 %v6848_v49 }
 0x393   :  { %3350 = vmatpush.msra.mxu2 %v6854_v1  ;;  %3373 = vmatpush.msra.mxu3 %v6860_v15 }
 0x394   :  { %3310 = vmatpush.msra.mxu0 %v6866_v29  ;;  %3333 = vmatpush.msra.mxu1 %v6872_v20 }
 0x395   :  { %3351 = vmatpush.msra.mxu2 %v6878_v25  ;;  %3374 = vmatpush.msra.mxu3 %v6884_v8 }
 0x396   :  { %3311 = vmatpush.msra.mxu0 %v6893_v6  ;;  %3334 = vmatpush.msra.mxu1 %v6899_v60 }
 0x397   :  { %3352 = vmatpush.msra.mxu2 %v6910_v54  ;;  %3375 = vmatpush.msra.mxu3 %v6916_v10 }
 0x398   :  { %3388 = vmatpush.msrb.mxu0 %v6557_v3  ;;  %3411 = vmatpush.msrb.mxu1 %v6563_v32  ;;  %v2412_v3 = vmul.f32 %v6888_v55, %v6888_v55  ;;  %v6926_v32 = vld [vmem:[%s8626_s2 + $0x120] sm:$0xff] }
 0x399   :  { %3353 = vmatpush.msra.mxu2 %v6926_v32  ;;  %3376 = vmatpush.msra.mxu3 %v6932_v0 }
 0x39a   :  { %3389 = vmatpush.msrb.mxu0 %v6582_v16  ;;  %3412 = vmatpush.msrb.mxu1 %v6588_v34  ;;  %v2452_v16 = vmul.f32 %v6905_v52, %v6905_v52  ;;  %v6942_v34 = vld [vmem:[%s8626_s2 + $0x118] sm:$0xff]  ;;  %v6967_v52 = vld [vmem:[%s8626_s2 + $0x190] sm:$0xff] }
 0x39b   :  { %3354 = vmatpush.msra.mxu2 %v6942_v34  ;;  %3377 = vmatpush.msra.mxu3 %v6948_v38 }
 0x39c   :  { %3390 = vmatpush.msrb.mxu0 %v6606_v62  ;;  %3413 = vmatpush.msrb.mxu1 %v6612_v45  ;;  %v6953_v62 = vmin.f32 %v2412_v3, 16.0  ;;  %v6956_v45 = vmul.f32 0.70710677, %v6515_v17  ;;  %v6983_v3 = vld [vmem:[%s8626_s2 + $0x188] sm:$0xff]  ;;  %v7000_v17 = vld [vmem:[%s8626_s2 + $0x180] sm:$0xff] }
 0x39d   :  { %3355 = vmatpush.msra.mxu2 %v6961_v33  ;;  %3378 = vmatpush.msra.mxu3 %v6967_v52 }
 0x39e   :  { %3391 = vmatpush.msrb.mxu0 %v6634_v51  ;;  %3414 = vmatpush.msrb.mxu1 %v6640_v37  ;;  %8913 = vst [vmem:[#allocation19_spill] sm:$0xff] %v6956_v45  ;;  %v6971_v51 = vmin.f32 %v2452_v16, 16.0  ;;  %v6977_v37 = vld [vmem:[%s8626_s2 + $0x108] sm:$0xff]  ;;  %v6994_v16 = vld [vmem:[%s8626_s2 + $0x100] sm:$0xff] }
 0x39f   :  { %3356 = vmatpush.msra.mxu2 %v6977_v37  ;;  %3379 = vmatpush.msra.mxu3 %v6983_v3 }
 0x3a0   :  { %3392 = vmatpush.msrb.mxu0 %v6650_v41  ;;  %3415 = vmatpush.msrb.mxu1 %v6656_v11  ;;  %v2425_v41 = vmul.f32 3.8918573e-05, %v6953_v62  ;;  %v2572_v11 = vmul.f32 %v6956_v45, %v6956_v45 }
 0x3a1   :  { %3357 = vmatpush.msra.mxu2 %v6994_v16  ;;  %3380 = vmatpush.msra.mxu3 %v7000_v17 }
 0x3a2   :  { %3393 = vmatpush.msrb.mxu0 %v6674_v5  ;;  %3416 = vmatpush.msrb.mxu1 %v6680_v22  ;;  %v2465_v5 = vmul.f32 3.8918573e-05, %v6971_v51  ;;  %v7006_v22 = vmul.f32 0.70710677, %v6517_v61  ;;  %v2426_v45 = vadd.f32 0.001143296, %v2425_v41 }
 0x3a3   :  { %3434 = vmatpush.msrb.mxu2 %v6594_v21  ;;  %3457 = vmatpush.msrb.mxu3 %v6600_v57  ;;  %v7012_v2 = vmin.f32 %v2572_v11, 16.0 }
 0x3a4   :  { %3394 = vmatpush.msrb.mxu0 %v6698_v39  ;;  %3417 = vmatpush.msrb.mxu1 %v6704_v19  ;;  %v2466_v39 = vadd.f32 0.001143296, %v2465_v5  ;;  %v2612_v19 = vmul.f32 %v7006_v22, %v7006_v22  ;;  %v2427_v21 = vmul.f32 %v2426_v45, %v6953_v62 }
 0x3a5   :  { %3435 = vmatpush.msrb.mxu2 %v6618_v44  ;;  %3458 = vmatpush.msrb.mxu3 %v6624_v46  ;;  %v2585_v57 = vmul.f32 3.8918573e-05, %v7012_v2 }
 0x3a6   :  { %3395 = vmatpush.msrb.mxu0 %v6714_v14  ;;  %3418 = vmatpush.msrb.mxu1 %v6720_v42  ;;  %v2467_v44 = vmul.f32 %v2466_v39, %v6971_v51  ;;  %v7031_v46 = vmin.f32 %v2612_v19, 16.0 }
 0x3a7   :  { %3436 = vmatpush.msrb.mxu2 %v6662_v48  ;;  %3459 = vmatpush.msrb.mxu3 %v6668_v27  ;;  %v2428_v48 = vadd.f32 0.014752088, %v2427_v21  ;;  %v2586_v27 = vadd.f32 0.001143296, %v2585_v57 }
 0x3a8   :  { %3396 = vmatpush.msrb.mxu0 %v6730_v35  ;;  %3419 = vmatpush.msrb.mxu1 %v6736_v40  ;;  %v2414_v35 = vmul.f32 2.1237322e-06, %v6953_v62 }
 0x3a9   :  { %3437 = vmatpush.msrb.mxu2 %v6686_v59  ;;  %3460 = vmatpush.msrb.mxu3 %v6692_v13  ;;  %v2468_v59 = vadd.f32 0.014752088, %v2467_v44  ;;  %v2625_v13 = vmul.f32 3.8918573e-05, %v7031_v46  ;;  %v2429_v14 = vmul.f32 %v2428_v48, %v6953_v62  ;;  %v2587_v42 = vmul.f32 %v2586_v27, %v7012_v2 }
 0x3aa   :  { %3397 = vmatpush.msrb.mxu0 %v6754_v56  ;;  %3420 = vmatpush.msrb.mxu1 %v6760_v47  ;;  %v2415_v47 = vadd.f32 0.00028619796, %v2414_v35 }
 0x3ab   :  { %3438 = vmatpush.msrb.mxu2 %v6742_v7  ;;  %3461 = vmatpush.msrb.mxu3 %v6748_v31  ;;  %v2469_v40 = vmul.f32 %v2468_v59, %v6971_v51  ;;  %v2626_v7 = vadd.f32 0.001143296, %v2625_v13  ;;  %v2430_v31 = vadd.f32 0.112945676, %v2429_v14  ;;  %v2588_v56 = vadd.f32 0.014752088, %v2587_v42 }
 0x3ac   :  { %3398 = vmatpush.msrb.mxu0 %v6778_v63  ;;  %3421 = vmatpush.msrb.mxu1 %v6784_v18  ;;  %v2454_v63 = vmul.f32 2.1237322e-06, %v6971_v51  ;;  %v7112_v13 = vmul.f32 0.70710677, %v6527_v36 }
 0x3ad   :  { %3439 = vmatpush.msrb.mxu2 %v6766_v9  ;;  %3462 = vmatpush.msrb.mxu3 %v6772_v12  ;;  %v2470_v9 = vadd.f32 0.112945676, %v2469_v40  ;;  %v2627_v12 = vmul.f32 %v2626_v7, %v7031_v46  ;;  %v2431_v18 = vmul.f32 %v2430_v31, %v6953_v62 }
 0x3ae   :  { %3399 = vmatpush.msrb.mxu0 %v6794_v26  ;;  %3422 = vmatpush.msrb.mxu1 %v6800_v58  ;;  %v2589_v26 = vmul.f32 %v2588_v56, %v7012_v2  ;;  %v2416_v58 = vmul.f32 %v2415_v47, %v6953_v62 }
 0x3af   :  { %3440 = vmatpush.msrb.mxu2 %v6806_v50  ;;  %3463 = vmatpush.msrb.mxu3 %v6812_v24  ;;  %v2471_v50 = vmul.f32 %v2470_v9, %v6971_v51  ;;  %v2628_v24 = vadd.f32 0.014752088, %v2627_v12  ;;  %v2532_v9 = vmul.f32 %v7112_v13, %v7112_v13 }
 0x3b0   :  { %3400 = vmatpush.msrb.mxu0 %v6818_v30  ;;  %3423 = vmatpush.msrb.mxu1 %v6824_v4  ;;  %v2455_v30 = vadd.f32 0.00028619796, %v2454_v63  ;;  %v7073_v4 = vmul.f32 0.70710677, %v6525_v23 }
 0x3b1   :  { %3441 = vmatpush.msrb.mxu2 %v6830_v53  ;;  %3464 = vmatpush.msrb.mxu3 %v6836_v28  ;;  %v2432_v53 = vadd.f32 0.4994258, %v2431_v18  ;;  %v2590_v28 = vadd.f32 0.112945676, %v2589_v26 }
 0x3b2   :  { %3401 = vmatpush.msrb.mxu0 %v6842_v43  ;;  %3424 = vmatpush.msrb.mxu1 %v6848_v49  ;;  %v2417_v43 = vadd.f32 0.0036580483, %v2416_v58  ;;  %v2472_v49 = vadd.f32 0.4994258, %v2471_v50 }
 0x3b3   :  { %3442 = vmatpush.msrb.mxu2 %v6854_v1  ;;  %3465 = vmatpush.msrb.mxu3 %v6860_v15  ;;  %v2456_v1 = vmul.f32 %v2455_v30, %v6971_v51  ;;  %v2492_v15 = vmul.f32 %v7073_v4, %v7073_v4 }
 0x3b4   :  { %3402 = vmatpush.msrb.mxu0 %v6866_v29  ;;  %3425 = vmatpush.msrb.mxu1 %v6872_v20  ;;  %v2574_v29 = vmul.f32 2.1237322e-06, %v7012_v2  ;;  %v2418_v20 = vmul.f32 %v2417_v43, %v6953_v62 }
 0x3b5   :  { %3443 = vmatpush.msrb.mxu2 %v6878_v25  ;;  %3466 = vmatpush.msrb.mxu3 %v6884_v8  ;;  %v2473_v25 = vmul.f32 %v2472_v49, %v6971_v51 }
 0x3b6   :  { %3403 = vmatpush.msrb.mxu0 %v6893_v6  ;;  %3426 = vmatpush.msrb.mxu1 %v6899_v60  ;;  %v2457_v6 = vadd.f32 0.0036580483, %v2456_v1  ;;  %v7091_v60 = vmin.f32 %v2492_v15, 16.0 }
 0x3b7   :  { %3444 = vmatpush.msrb.mxu2 %v6910_v54  ;;  %3467 = vmatpush.msrb.mxu3 %v6916_v10  ;;  %v2575_v54 = vadd.f32 0.00028619796, %v2574_v29 }
 0x3b9   :  { %3445 = vmatpush.msrb.mxu2 %v6926_v32  ;;  %3468 = vmatpush.msrb.mxu3 %v6932_v0  ;;  %v2629_v0 = vmul.f32 %v2628_v24, %v7031_v46  ;;  %v2419_v32 = vadd.f32 0.05243302, %v2418_v20 }
 0x3bb   :  { %3446 = vmatpush.msrb.mxu2 %v6942_v34  ;;  %3469 = vmatpush.msrb.mxu3 %v6948_v38  ;;  %v2433_v38 = vmul.f32 %v2432_v53, %v6953_v62  ;;  %v2630_v8 = vadd.f32 0.112945676, %v2629_v0  ;;  %v7095_v34 = vadd.f32 1.0, %v2473_v25  ;;  %v2420_v11 = vmul.f32 %v2419_v32, %v6953_v62 }
 0x3bc   :  { %v7134_v53 = vmin.f32 %v2532_v9, 16.0 }
 0x3bd   :  { %3447 = vmatpush.msrb.mxu2 %v6961_v33  ;;  %3470 = vmatpush.msrb.mxu3 %v6967_v52  ;;  %v2591_v33 = vmul.f32 %v2590_v28, %v7012_v2  ;;  %v7093_v52 = vadd.f32 1.0, %v2433_v38  ;;  %v2631_v45 = vmul.f32 %v2630_v8, %v7031_v46  ;;  %v2421_v44 = vadd.f32 0.18741608, %v2420_v11 }
 0x3be   :  { %v2545_v8 = vmul.f32 3.8918573e-05, %v7134_v53  ;;  %vm2480_vm1 = vweird.f32 %v7095_v34 }
 0x3bf   :  { %3448 = vmatpush.msrb.mxu2 %v6977_v37  ;;  %3471 = vmatpush.msrb.mxu3 %v6983_v3  ;;  %v2592_v10 = vadd.f32 0.4994258, %v2591_v33  ;;  %v2458_v37 = vmul.f32 %v2457_v6, %v6971_v51  ;;  %v2505_v3 = vmul.f32 3.8918573e-05, %v7091_v60  ;;  %4434 = vrcp.f32 %v7093_v52 }
 0x3c0   :  { %4436 = vrcp.f32 %v7095_v34  ;;  %v2632_v5 = vadd.f32 0.4994258, %v2631_v45  ;;  %v2422_v7 = vmul.f32 %v2421_v44, %v6953_v62  ;;  %v2494_v62 = vmul.f32 2.1237322e-06, %v7091_v60 }
 0x3c1   :  { %3449 = vmatpush.msrb.mxu2 %v6994_v16  ;;  %3472 = vmatpush.msrb.mxu3 %v7000_v17  ;;  %v2576_v17 = vmul.f32 %v2575_v54, %v7012_v2  ;;  %v2593_v41 = vmul.f32 %v2592_v10, %v7012_v2  ;;  %v2614_v16 = vmul.f32 2.1237322e-06, %v7031_v46  ;;  %v2459_v39 = vadd.f32 0.05243302, %v2458_v37 }
 0x3c2   :  { %v2506_v19 = vadd.f32 0.001143296, %v2505_v3  ;;  %v2633_v59 = vmul.f32 %v2632_v5, %v7031_v46  ;;  %v2423_v58 = vadd.f32 1.1283791, %v2422_v7  ;;  %v2444_v28 = vand.u32 2147483647, %v7093_v52 }
 0x3c3   :  { %v2577_v21 = vadd.f32 0.0036580483, %v2576_v17  ;;  %v7106_v57 = vadd.f32 1.0, %v2593_v41  ;;  %v2615_v27 = vadd.f32 0.00028619796, %v2614_v16  ;;  %v2460_v14 = vmul.f32 %v2459_v39, %v6971_v51 }
 0x3c4   :  { %v2507_v42 = vmul.f32 %v2506_v19, %v7091_v60  ;;  %v7124_v47 = vadd.f32 1.0, %v2633_v59  ;;  %v2424_v15 = vmul.f32 %v2423_v58, %v6888_v55  ;;  %v2495_v33 = vadd.f32 0.00028619796, %v2494_v62 }
 0x3c5   :  { %v7108_v48 = vpop.eup %4434  ;;  %v2578_v40 = vmul.f32 %v2577_v21, %v7012_v2  ;;  %4438 = vrcp.f32 %v7106_v57  ;;  %v2616_v56 = vmul.f32 %v2615_v27, %v7031_v46  ;;  %v2461_v12 = vadd.f32 0.18741608, %v2460_v14 }
 0x3c6   :  { %v7116_v35 = vpop.eup %4436  ;;  %v2436_v31 = vmul.f32 %v7108_v48, %v7093_v52  ;;  %v2508_v18 = vadd.f32 0.014752088, %v2507_v42  ;;  %4440 = vrcp.f32 %v7124_v47  ;;  %v2446_v20 = vand.u32 2147483648, %v7093_v52 }
 0x3c7   :  { %v2476_v63 = vmul.f32 %v7116_v35, %v7095_v34  ;;  %v2579_v26 = vadd.f32 0.05243302, %v2578_v40  ;;  %v2617_v30 = vadd.f32 0.0036580483, %v2616_v56  ;;  %v2462_v43 = vmul.f32 %v2461_v12, %v6971_v51  ;;  %v8914_v51 = vld [vmem:[#allocation11_spill] sm:$0xff]  ;;  %v8919_v40 = vld [vmem:[#allocation18_spill] sm:$0xff] }
 0x3c8   :  { %v2437_v50 = vsub.f32 1.0, %v2436_v31  ;;  %v2509_v0 = vmul.f32 %v2508_v18, %v7091_v60  ;;  %v7148_v6 = vmul.f32 0.70710677, %v8914_v51  ;;  %vm7150_vm11 = vcmp.eq.f32.partialorder %v2444_v28, 8.507059e+37 }
 0x3c9   :  { %v2477_v49 = vsub.f32 1.0, %v2476_v63  ;;  %v2580_v1 = vmul.f32 %v2579_v26, %v7012_v2  ;;  %v2618_v25 = vmul.f32 %v2617_v30, %v7031_v46  ;;  %v2463_v55 = vadd.f32 1.1283791, %v2462_v43 }
 0x3ca   :  { %v2438_v38 = vmul.f32 %v7108_v48, %v2437_v50  ;;  %v2510_v32 = vadd.f32 0.112945676, %v2509_v0  ;;  %vm2440_vm12 = vweird.f32 %v7093_v52  ;;  %v2484_v37 = vand.u32 2147483647, %v7095_v34 }
 0x3cb   :  { %v7131_v24 = vpop.eup %4438  ;;  %v2478_v10 = vmul.f32 %v7116_v35, %v2477_v49  ;;  %v2581_v3 = vadd.f32 0.18741608, %v2580_v1  ;;  %v2534_v17 = vmul.f32 2.1237322e-06, %v7134_v53  ;;  %vm2441_vm13 = vweird.f32 %v7108_v48 }
 0x3cc   :  { %v2596_v29 = vmul.f32 %v7131_v24, %v7106_v57  ;;  %v7155_v45 = vpop.eup %4440  ;;  %v2439_v41 = vadd.f32 %v7108_v48, %v2438_v38  ;;  %v2496_v16 = vmul.f32 %v2495_v33, %v7091_v60  ;;  %v2486_v5 = vand.u32 2147483648, %v7095_v34  ;;  %vm7173_vm15 = vmor %vm2440_vm12, %vm2441_vm13 }
 0x3cd   :  { %v2619_v39 = vadd.f32 0.05243302, %v2618_v25  ;;  %v2546_v19 = vadd.f32 0.001143296, %v2545_v8  ;;  %v2652_v21 = vmul.f32 %v7148_v6, %v7148_v6  ;;  %v2479_v44 = vadd.f32 %v7116_v35, %v2478_v10 }
 0x3ce   :  { %v2597_v11 = vsub.f32 1.0, %v2596_v29  ;;  %vm2481_vm14 = vweird.f32 %v7116_v35  ;;  %v2636_v27 = vmul.f32 %v7155_v45, %v7124_v47  ;;  %v2511_v59 = vmul.f32 %v2510_v32, %v7091_v60 }
 0x3cf   :  { %v2447_v42 = vor.u32 1.1754944e-38, %v2446_v20  ;;  %v2464_v7 = vmul.f32 %v2463_v55, %v8919_v40  ;;  %v2582_v31 = vmul.f32 %v2581_v3, %v7012_v2  ;;  %v2535_v56 = vadd.f32 0.00028619796, %v2534_v17  ;;  %vm7184_vm2 = vmor %vm2480_vm1, %vm2481_vm14  ;;  %v8924_v55 = vld [vmem:[#allocation19_spill] sm:$0xff] }
 0x3d0   :  { %v2443_v9 = vsel %vm7173_vm15, %v7108_v48, %v2439_v41  ;;  %v2598_v12 = vmul.f32 %v7131_v24, %v2597_v11  ;;  %v2497_v63 = vadd.f32 0.0036580483, %v2496_v16  ;;  %vm7188_vm3 = vcmp.eq.f32.partialorder %v2484_v37, 8.507059e+37 }
 0x3d1   :  { %v2620_v2 = vmul.f32 %v2619_v39, %v7031_v46  ;;  %v2547_v26 = vmul.f32 %v2546_v19, %v7134_v53  ;;  %v7194_v58 = vmin.f32 %v2652_v21, 16.0  ;;  %v2483_v34 = vsel %vm7184_vm2, %v7116_v35, %v2479_v44 }
 0x3d2   :  { %v2487_v48 = vor.u32 1.1754944e-38, %v2486_v5  ;;  %v2637_v50 = vsub.f32 1.0, %v2636_v27  ;;  %v2512_v62 = vadd.f32 0.4994258, %v2511_v59  ;;  %v2448_v30 = vsel %vm7150_vm11, %v2447_v42, %v2443_v9 }
 0x3d3   :  { %v2583_v28 = vadd.f32 1.1283791, %v2582_v31  ;;  %v2604_v43 = vand.u32 2147483647, %v7106_v57  ;;  %v2536_v49 = vmul.f32 %v2535_v56, %v7134_v53  ;;  %v2599_v0 = vadd.f32 %v7131_v24, %v2598_v12 }
 0x3d4   :  { %vm2601_vm4 = vweird.f32 %v7131_v24  ;;  %v2606_v1 = vand.u32 2147483648, %v7106_v57  ;;  %v2498_v38 = vmul.f32 %v2497_v63, %v7091_v60  ;;  %v2488_v35 = vsel %vm7188_vm3, %v2487_v48, %v2483_v34  ;;  %v8931_v63 = vld [vmem:[#allocation13_spill] sm:$0xff] }
 0x3d5   :  { %v2621_v29 = vadd.f32 0.18741608, %v2620_v2  ;;  %v2548_v33 = vadd.f32 0.014752088, %v2547_v26  ;;  %v2665_v20 = vmul.f32 3.8918573e-05, %v7194_v58  ;;  %v2449_v25 = vmul.f32 %v2448_v30, %v2424_v15 }
 0x3d6   :  { %vm2600_vm5 = vweird.f32 %v7106_v57  ;;  %v2638_v8 = vmul.f32 %v7155_v45, %v2637_v50  ;;  %v2513_v54 = vmul.f32 %v2512_v62, %v7091_v60  ;;  %v2584_v10 = vmul.f32 %v2583_v28, %v8924_v55 }
 0x3d7   :  { %vm7214_vm6 = vmor %vm2600_vm5, %vm2601_vm4  ;;  %vm7218_vm7 = vcmp.eq.f32.partialorder %v2604_v43, 8.507059e+37  ;;  %v2537_v3 = vadd.f32 0.0036580483, %v2536_v49  ;;  %v2489_v57 = vmul.f32 %v2488_v35, %v2464_v7  ;;  %v2499_v11 = vadd.f32 0.05243302, %v2498_v38  ;;  %v8932_v38 = vld [vmem:[#allocation15_spill] sm:$0xff] }
 0x3d8   :  { %v2603_v41 = vsel %vm7214_vm6, %v7131_v24, %v2599_v0  ;;  %v2654_v16 = vmul.f32 2.1237322e-06, %v7194_v58  ;;  %v2607_v5 = vor.u32 1.1754944e-38, %v2606_v1  ;;  %v2622_v39 = vmul.f32 %v2621_v29, %v7031_v46 }
 0x3d9   :  { %v2549_v19 = vmul.f32 %v2548_v33, %v7134_v53  ;;  %v2666_v21 = vadd.f32 0.001143296, %v2665_v20  ;;  %v4320_v44 = vclamps-f32 %v2449_v25, 1.0  ;;  %v2639_v27 = vadd.f32 %v7155_v45, %v2638_v8  ;;  %v8933_v20 = vld [vmem:[#allocation10_spill] sm:$0xff] }
 0x3da   :  { %vm2641_vm8 = vweird.f32 %v7155_v45  ;;  %v7234_v59 = vadd.f32 1.0, %v2513_v54  ;;  %v2608_v14 = vsel %vm7218_vm7, %v2607_v5, %v2603_v41  ;;  %vm2640_vm9 = vweird.f32 %v7124_v47 }
 0x3db   :  { %v2646_v24 = vand.u32 2147483648, %v7124_v47  ;;  %v2538_v42 = vmul.f32 %v2537_v3, %v7134_v53  ;;  %v4321_v46 = vclamps-f32 %v2489_v57, 1.0  ;;  %v2644_v40 = vand.u32 2147483647, %v7124_v47  ;;  %vm7243_vm10 = vmor %vm2640_vm9, %vm2641_vm8 }
 0x3dc   :  { %v2500_v7 = vmul.f32 %v2499_v11, %v7091_v60  ;;  %v2655_v31 = vadd.f32 0.00028619796, %v2654_v16  ;;  %v2550_v9 = vadd.f32 0.112945676, %v2549_v19  ;;  %v2667_v12 = vmul.f32 %v2666_v21, %v7194_v58  ;;  %v8934_v16 = vld [vmem:[#allocation29_spill] sm:$0xff] }
 0x3dd   :  { %v7249_v52 = vmul.f32 0.70710677, %v8931_v63  ;;  %v2609_v18 = vmul.f32 %v2608_v14, %v2584_v10  ;;  %v2623_v2 = vadd.f32 1.1283791, %v2622_v39  ;;  %v2643_v26 = vsel %vm7243_vm10, %v7155_v45, %v2639_v27 }
 0x3de   :  { %4442 = vrcp.f32 %v7234_v59  ;;  %v2732_v47 = vadd.f32 1.0, %v4320_v44  ;;  %v2647_v34 = vor.u32 1.1754944e-38, %v2646_v24  ;;  %v2539_v48 = vadd.f32 0.05243302, %v2538_v42 }
 0x3df   :  { %v2733_v50 = vadd.f32 1.0, %v4321_v46  ;;  %vm2645_vm11 = vcmp.eq.f32.partialorder %v2644_v40, 8.507059e+37  ;;  %v2501_v62 = vadd.f32 0.18741608, %v2500_v7  ;;  %v2656_v30 = vmul.f32 %v2655_v31, %v7194_v58 }
 0x3e0   :  { %v2648_v49 = vsel %vm2645_vm11, %v2647_v34, %v2643_v26  ;;  %v2551_v0 = vmul.f32 %v2550_v9, %v7134_v53  ;;  %v2668_v1 = vadd.f32 0.014752088, %v2667_v12  ;;  %v2692_v45 = vmul.f32 %v7249_v52, %v7249_v52 }
 0x3e1   :  { %v2396_v35 = vmul.f32 0.5, %v8932_v38  ;;  %v4324_v29 = vclamps-f32 %v2609_v18, 1.0  ;;  %v2624_v33 = vmul.f32 %v2623_v2, %v7006_v22  ;;  %v2397_v25 = vmul.f32 0.5, %v8933_v20 }
 0x3e2   :  { %v2540_v8 = vmul.f32 %v2539_v48, %v7134_v53  ;;  %v2502_v32 = vmul.f32 %v2501_v62, %v7091_v60  ;;  %v2657_v37 = vadd.f32 0.0036580483, %v2656_v30  ;;  %v2552_v57 = vadd.f32 0.4994258, %v2551_v0 }
 0x3e3   :  { %v2740_v55 = vmul.f32 %v2732_v47, %v2396_v35  ;;  %v2649_v10 = vmul.f32 %v2648_v49, %v2624_v33  ;;  %v2741_v3 = vmul.f32 %v2733_v50, %v2397_v25  ;;  %v2669_v41 = vmul.f32 %v2668_v1, %v7194_v58 }
 0x3e4   :  { %v7267_v54 = vpop.eup %4442  ;;  %v7271_v11 = vmin.f32 %v2692_v45, 16.0  ;;  %v2400_v5 = vmul.f32 0.5, %v8934_v16  ;;  %v2736_v22 = vadd.f32 1.0, %v4324_v29  ;;  %v2401_v39 = vmul.f32 0.5, %v6517_v61 }
 0x3e5   :  { %v7276_v19 = vmul.f32 0.5, %v6525_v23  ;;  %v2516_v21 = vmul.f32 %v7267_v54, %v7234_v59  ;;  %v2541_v44 = vadd.f32 0.18741608, %v2540_v8  ;;  %v7281_v60 = vmul.f32 0.5, %v8914_v51 }
 0x3e6   :  { %v7283_v27 = vadd.f32 1.0, %v2740_v55  ;;  %v4325_v14 = vclamps-f32 %v2649_v10, 1.0  ;;  %v2503_v24 = vadd.f32 1.1283791, %v2502_v32  ;;  %v2658_v42 = vmul.f32 %v2657_v37, %v7194_v58 }
 0x3e7   :  { %8935 = vst [vmem:[#allocation20_spill] sm:$0xff] %v7281_v60  ;;  %v7286_v7 = vadd.f32 1.0, %v2741_v3  ;;  %v2553_v31 = vmul.f32 %v2552_v57, %v7134_v53  ;;  %v2670_v56 = vadd.f32 0.112945676, %v2669_v41  ;;  %v2694_v9 = vmul.f32 2.1237322e-06, %v7271_v11 }
 0x3e8   :  { %v2744_v2 = vmul.f32 %v2736_v22, %v2400_v5  ;;  %v2526_v26 = vand.u32 2147483648, %v7234_v59  ;;  %v2517_v47 = vsub.f32 1.0, %v2516_v21  ;;  %v2524_v34 = vand.u32 2147483647, %v7234_v59 }
 0x3e9   :  { %v2542_v48 = vmul.f32 %v2541_v44, %v7134_v53  ;;  %v2705_v50 = vmul.f32 3.8918573e-05, %v7271_v11  ;;  %v2737_v30 = vadd.f32 1.0, %v4325_v14  ;;  %v2659_v49 = vadd.f32 0.05243302, %v2658_v42 }
 0x3ea   :  { %v7309_v0 = vadd.f32 1.0, %v2553_v31  ;;  %v2671_v1 = vmul.f32 %v2670_v56, %v7194_v58  ;;  %v2695_v45 = vadd.f32 0.00028619796, %v2694_v9  ;;  %v7314_v35 = vadd.f32 1.0, %v2744_v2 }
 0x3eb   :  { %v7222_v17 = vpop.f32.mrf.mxu0  ;;  %v7224_v15 = vpop.f32.mrf.mxu1  ;;  %vm2520_vm12 = vweird.f32 %v7234_v59  ;;  %v2527_v29 = vor.u32 1.1754944e-38, %v2526_v26  ;;  %v2518_v33 = vmul.f32 %v7267_v54, %v2517_v47  ;;  %v2543_v25 = vadd.f32 1.1283791, %v2542_v48 }
 0x3ec   :  { %v2706_v8 = vadd.f32 0.001143296, %v2705_v50  ;;  %v2745_v32 = vmul.f32 %v2737_v30, %v2401_v39  ;;  %vm2521_vm13 = vweird.f32 %v7267_v54  ;;  %v2660_v37 = vmul.f32 %v2659_v49, %v7194_v58 }
 0x3ed   :  { %vm7328_vm14 = vcmp.eq.f32.partialorder %v2524_v34, 8.507059e+37  ;;  %4444 = vrcp.f32 %v7309_v0  ;;  %v2672_v22 = vadd.f32 0.4994258, %v2671_v1  ;;  %v2696_v21 = vmul.f32 %v2695_v45, %v7271_v11  ;;  %vm7367_vm15 = vmor %vm2520_vm12, %vm2521_vm13 }
 0x3ee   :  { %v2707_v31 = vmul.f32 %v2706_v8, %v7271_v11  ;;  %v7384_v59 = vmul.f32 %v2543_v25, %v7112_v13  ;;  %vm2560_vm1 = vweird.f32 %v7309_v0 }
 0x3f0   :  { %8942 = vst [vmem:[#allocation24_spill] sm:$0xff] %v7384_v59 }
 0x3f3   :  { %v7371_v45 = vpop.eup %4444 }
 0x3f4   :  { %v7256_v28 = vpop.f32.mrf.mxu0  ;;  %v7258_v43 = vpop.f32.mrf.mxu1  ;;  %vm2561_vm2 = vweird.f32 %v7371_v45 }
 0x3f5   :  { %vm7469_vm3 = vmor %vm2560_vm1, %vm2561_vm2 }
 0x3f8   :  { %v7320_v55 = vpop.f32.mrf.mxu2 }
 0x3fc   :  { %v2277_v46 = vpop.f32.mrf.mxu0  ;;  %v2300_v40 = vpop.f32.mrf.mxu1 }
 0x3fd   :  { %v7291_v12 = vadd.f32 %v2277_v46, %v7222_v17  ;;  %v7294_v18 = vadd.f32 %v2300_v40, %v7224_v15  ;;  %v7304_v17 = vmul.f32 %v2503_v24, %v7073_v4  ;;  %v2519_v40 = vadd.f32 %v7267_v54, %v2518_v33 }
 0x3ff   :  { %v7301_v62 = vmul.f32 0.70710677, %v7291_v12  ;;  %v7307_v15 = vmul.f32 0.70710677, %v7294_v18  ;;  %v2352_v56 = vmul.f32 %v7291_v12, %v8932_v38  ;;  %v2523_v8 = vsel %vm7367_vm15, %v7267_v54, %v2519_v40 }
 0x400   :  { %v2528_v54 = vsel %vm7328_vm14, %v2527_v29, %v2523_v8 }
 0x401   :  { %v2772_v53 = vmul.f32 %v7301_v62, %v7301_v62  ;;  %v2812_v4 = vmul.f32 %v7307_v15, %v7307_v15  ;;  %v2529_v29 = vmul.f32 %v2528_v54, %v7304_v17 }
 0x403   :  { %v7322_v10 = vmin.f32 %v2772_v53, 16.0  ;;  %v7326_v3 = vmin.f32 %v2812_v4, 16.0 }
 0x404   :  { %v2280_v57 = vpop.f32.mrf.mxu0  ;;  %v2303_v41 = vpop.f32.mrf.mxu1 }
 0x405   :  { %v2774_v44 = vmul.f32 2.1237322e-06, %v7322_v10  ;;  %v2785_v39 = vmul.f32 3.8918573e-05, %v7322_v10  ;;  %v7337_v14 = vadd.f32 %v2280_v57, %v7256_v28  ;;  %v7340_v24 = vadd.f32 %v2303_v41, %v7258_v43 }
 0x406   :  { %v2814_v42 = vmul.f32 2.1237322e-06, %v7326_v3  ;;  %v2825_v46 = vmul.f32 3.8918573e-05, %v7326_v3  ;;  %v2353_v43 = vmul.f32 %v7294_v18, %v8933_v20  ;;  %v7381_v41 = vadd.f32 1.0, %v2745_v32 }
 0x407   :  { %v2775_v9 = vadd.f32 0.00028619796, %v2774_v44  ;;  %v2786_v2 = vadd.f32 0.001143296, %v2785_v39  ;;  %v2356_v28 = vmul.f32 %v7337_v14, %v8934_v16  ;;  %4194 = vst [vmem:[#allocation1] sm:$0xff] %v7337_v14  ;;  %v2357_v34 = vmul.f32 %v7340_v24, %v6517_v61 }
 0x408   :  { %v2826_v26 = vadd.f32 0.001143296, %v2825_v46  ;;  %v7354_v47 = vmul.f32 0.70710677, %v7337_v14  ;;  %v2815_v30 = vadd.f32 0.00028619796, %v2814_v42  ;;  %v2673_v46 = vmul.f32 %v2672_v22, %v7194_v58 }
 0x409   :  { %v2776_v48 = vmul.f32 %v2775_v9, %v7322_v10  ;;  %v2787_v50 = vmul.f32 %v2786_v2, %v7322_v10  ;;  %v7360_v49 = vadd.f32 %v2356_v28, %v2352_v56  ;;  %4195 = vst [vmem:[#allocation1 + $0x9] sm:$0xff] %v7340_v24  ;;  %v7376_v33 = vadd.f32 %v2357_v34, %v2353_v43  ;;  %v7391_v43 = vpop.f32.mrf.mxu2  ;;  %v7402_v34 = vpop.f32.mrf.mxu3 }
 0x40a   :  { %v2827_v53 = vmul.f32 %v2826_v26, %v7326_v3  ;;  %v2932_v4 = vmul.f32 %v7354_v47, %v7354_v47  ;;  %v2661_v44 = vadd.f32 0.18741608, %v2660_v37  ;;  %v2697_v56 = vadd.f32 0.0036580483, %v2696_v21 }
 0x40b   :  { %8938 = vst [vmem:[#allocation21_spill] sm:$0xff] %v7360_v49  ;;  %v2788_v57 = vadd.f32 0.014752088, %v2787_v50  ;;  %v2777_v9 = vadd.f32 0.0036580483, %v2776_v48  ;;  %v2816_v28 = vmul.f32 %v2815_v30, %v7326_v3  ;;  %v2556_v22 = vmul.f32 %v7371_v45, %v7309_v0 }
 0x40c   :  { %8941 = vst [vmem:[#allocation23_spill] sm:$0xff] %v7376_v33  ;;  %v2828_v39 = vadd.f32 0.014752088, %v2827_v53  ;;  %v7386_v42 = vmin.f32 %v2932_v4, 16.0  ;;  %v2708_v37 = vadd.f32 0.014752088, %v2707_v31  ;;  %v2662_v8 = vmul.f32 %v2661_v44, %v7194_v58 }
 0x40d   :  { %v2789_v2 = vmul.f32 %v2788_v57, %v7322_v10  ;;  %v2566_v26 = vand.u32 2147483648, %v7309_v0  ;;  %v7405_v50 = vadd.f32 1.0, %v2673_v46  ;;  %v2778_v30 = vmul.f32 %v2777_v9, %v7322_v10 }
 0x40e   :  { %v2829_v13 = vmul.f32 %v2828_v39, %v7326_v3  ;;  %v2934_v25 = vmul.f32 2.1237322e-06, %v7386_v42  ;;  %v2945_v32 = vmul.f32 3.8918573e-05, %v7386_v42  ;;  %v2817_v1 = vadd.f32 0.0036580483, %v2816_v28 }
 0x40f   :  { %v2790_v40 = vadd.f32 0.112945676, %v2789_v2  ;;  %v2698_v57 = vmul.f32 %v2697_v56, %v7271_v11  ;;  %v2709_v39 = vmul.f32 %v2708_v37, %v7271_v11  ;;  %v2557_v46 = vsub.f32 1.0, %v2556_v22 }
 0x410   :  { %v2830_v48 = vadd.f32 0.112945676, %v2829_v13  ;;  %v2935_v5 = vadd.f32 0.00028619796, %v2934_v25  ;;  %v2946_v53 = vadd.f32 0.001143296, %v2945_v32  ;;  %4446 = vrcp.f32 %v7405_v50 }
 0x411   :  { %v2791_v31 = vmul.f32 %v2790_v40, %v7322_v10  ;;  %v7416_v9 = vmul.f32 0.70710677, %v7340_v24  ;;  %v4322_v28 = vclamps-f32 %v2529_v29, 1.0  ;;  %v2779_v25 = vadd.f32 0.05243302, %v2778_v30  ;;  %v2323_v29 = vpop.f32.mrf.mxu2 }
 0x412   :  { %v2831_v4 = vmul.f32 %v2830_v48, %v7326_v3  ;;  %v2936_v13 = vmul.f32 %v2935_v5, %v7386_v42  ;;  %v2947_v17 = vmul.f32 %v2946_v53, %v7386_v42  ;;  %v2818_v44 = vmul.f32 %v2817_v1, %v7326_v3 }
 0x413   :  { %v2792_v2 = vadd.f32 0.4994258, %v2791_v31  ;;  %v7423_v37 = vor.u32 1.1754944e-38, %v2566_v26  ;;  %v2699_v40 = vadd.f32 0.05243302, %v2698_v57  ;;  %v2558_v31 = vmul.f32 %v7371_v45, %v2557_v46 }
 0x414   :  { %v2832_v54 = vadd.f32 0.4994258, %v2831_v4  ;;  %v2948_v56 = vadd.f32 0.014752088, %v2947_v17  ;;  %v2710_v22 = vadd.f32 0.112945676, %v2709_v39  ;;  %v2780_v17 = vmul.f32 %v2779_v25, %v7322_v10 }
 0x415   :  { %v2793_v58 = vmul.f32 %v2792_v2, %v7322_v10  ;;  %v2937_v5 = vadd.f32 0.0036580483, %v2936_v13  ;;  %v2663_v30 = vadd.f32 1.1283791, %v2662_v8  ;;  %v2734_v4 = vadd.f32 1.0, %v4322_v28  ;;  %v7439_v8 = vpop.f32.mrf.mxu3 }
 0x416   :  { %v2833_v32 = vmul.f32 %v2832_v54, %v7326_v3  ;;  %v2949_v1 = vmul.f32 %v2948_v56, %v7386_v42  ;;  %v2686_v2 = vand.u32 2147483648, %v7405_v50  ;;  %v2819_v26 = vadd.f32 0.05243302, %v2818_v44  ;;  %v7436_v39 = vpop.eup %4446 }
 0x417   :  { %v7425_v48 = vadd.f32 1.0, %v2793_v58  ;;  %v2972_v57 = vmul.f32 %v7416_v9, %v7416_v9  ;;  %v7442_v13 = vadd.f32 %v2323_v29, %v7320_v55  ;;  %v2700_v46 = vmul.f32 %v2699_v40, %v7271_v11 }
 0x418   :  { %v7428_v53 = vadd.f32 1.0, %v2833_v32  ;;  %v2711_v54 = vmul.f32 %v2710_v22, %v7271_v11  ;;  %v2938_v28 = vmul.f32 %v2937_v5, %v7386_v42  ;;  %v7448_v25 = vadd.f32 %v7371_v45, %v2558_v31 }
 0x419   :  { %4448 = vrcp.f32 %v7425_v48  ;;  %v7452_v58 = vmul.f32 %v2663_v30, %v7148_v6  ;;  %v2950_v44 = vadd.f32 0.112945676, %v2949_v1  ;;  %v2742_v56 = vmul.f32 %v2734_v4, %v7276_v19 }
 0x41a   :  { %4450 = vrcp.f32 %v7428_v53  ;;  %v7456_v32 = vor.u32 1.1754944e-38, %v2686_v2  ;;  %v2781_v40 = vadd.f32 0.18741608, %v2780_v17  ;;  %v2820_v22 = vmul.f32 %v2819_v26, %v7326_v3 }
 0x41b   :  { %v7459_v29 = vmin.f32 %v2972_v57, 16.0  ;;  %v2676_v5 = vmul.f32 %v7436_v39, %v7405_v50  ;;  %v2951_v31 = vmul.f32 %v2950_v44, %v7386_v42  ;;  %v7465_v6 = vmul.f32 0.70710677, %v7442_v13 }
 0x41c   :  { %v7473_v30 = vadd.f32 0.18741608, %v2700_v46  ;;  %v2712_v1 = vadd.f32 0.4994258, %v2711_v54  ;;  %v2939_v2 = vadd.f32 0.05243302, %v2938_v28  ;;  %v2782_v54 = vmul.f32 %v2781_v40, %v7322_v10 }
 0x41d   :  { %8943 = vst [vmem:[#allocation28_spill] sm:$0xff] %v7465_v6  ;;  %v2974_v17 = vmul.f32 2.1237322e-06, %v7459_v29  ;;  %v2985_v26 = vmul.f32 3.8918573e-05, %v7459_v29  ;;  %v7484_v16 = vadd.f32 1.0, %v2742_v56  ;;  %v2852_v46 = vmul.f32 %v7465_v6, %v7465_v6 }
 0x41e   :  { %v2952_v21 = vadd.f32 0.4994258, %v2951_v31  ;;  %v2821_v28 = vadd.f32 0.18741608, %v2820_v22  ;;  %v2804_v31 = vand.u32 2147483647, %v7425_v48  ;;  %vm2800_vm5 = vweird.f32 %v7425_v48 }
 0x41f   :  { %v4449_v4 = vpop.eup %4448  ;;  %8946 = vst [vmem:[#allocation30_spill] sm:$0xff] %v7484_v16  ;;  %v2975_v20 = vadd.f32 0.00028619796, %v2974_v17  ;;  %v2986_v33 = vadd.f32 0.001143296, %v2985_v26  ;;  %v7492_v59 = vmin.f32 %v2852_v46, 16.0  ;;  %v2940_v16 = vmul.f32 %v2939_v2, %v7386_v42 }
 0x420   :  { %v7481_v44 = vpop.eup %4450  ;;  %v2796_v55 = vmul.f32 %v4449_v4, %v7425_v48  ;;  %v2953_v57 = vmul.f32 %v2952_v21, %v7386_v42  ;;  %v2806_v56 = vand.u32 2147483648, %v7425_v48  ;;  %vm2801_vm4 = vweird.f32 %v4449_v4  ;;  %v2326_v48 = vpop.f32.mrf.mxu2 }
 0x421   :  { %v2836_v61 = vmul.f32 %v7481_v44, %v7428_v53  ;;  %v2976_v60 = vmul.f32 %v2975_v20, %v7459_v29  ;;  %v2987_v22 = vmul.f32 %v2986_v33, %v7459_v29  ;;  %v2783_v17 = vadd.f32 1.1283791, %v2782_v54  ;;  %vm2802_vm6 = vmor %vm2800_vm5, %vm2801_vm4 }
 0x422   :  { %v2797_v38 = vsub.f32 1.0, %v2796_v55  ;;  %v7498_v40 = vadd.f32 1.0, %v2953_v57  ;;  %v2346_v55 = vpop.f32.mrf.mxu3  ;;  %v2822_v21 = vmul.f32 %v2821_v28, %v7326_v3  ;;  %v2865_v26 = vmul.f32 3.8918573e-05, %v7492_v59 }
 0x423   :  { %v2677_v46 = vsub.f32 1.0, %v2676_v5  ;;  %v2837_v49 = vsub.f32 1.0, %v2836_v61  ;;  %v2977_v20 = vadd.f32 0.0036580483, %v2976_v60  ;;  %v2988_v2 = vadd.f32 0.014752088, %v2987_v22 }
 0x424   :  { %v2798_v10 = vmul.f32 %v4449_v4, %v2797_v38  ;;  %4452 = vrcp.f32 %v7498_v40  ;;  %v2807_v38 = vor.u32 1.1754944e-38, %v2806_v56  ;;  %v7506_v57 = vadd.f32 %v2346_v55, %v7402_v34 }
 0x425   :  { %vm2805_vm7 = vcmp.eq.f32.partialorder %v2804_v31, 8.507059e+37  ;;  %v2941_v54 = vadd.f32 0.18741608, %v2940_v16  ;;  %v2866_v3 = vadd.f32 0.001143296, %v2865_v26  ;;  %v2784_v28 = vmul.f32 %v2783_v17, %v7301_v62 }
 0x426   :  { %v2799_v6 = vadd.f32 %v4449_v4, %v2798_v10  ;;  %v2844_v10 = vand.u32 2147483647, %v7428_v53  ;;  %v7511_v61 = vmul.f32 %v2712_v1, %v7271_v11  ;;  %v2756_v56 = vmul.f32 0.5, %v7291_v12 }
 0x427   :  { %v2838_v60 = vmul.f32 %v7481_v44, %v2837_v49  ;;  %v2989_v34 = vmul.f32 %v2988_v2, %v7459_v29  ;;  %v2867_v62 = vmul.f32 %v2866_v3, %v7492_v59  ;;  %v7522_v31 = vmul.f32 0.70710677, %v7506_v57 }
 0x428   :  { %v2803_v33 = vsel %vm2802_vm6, %v4449_v4, %v2799_v6  ;;  %v7517_v6 = vmul.f32 %v7436_v39, %v2677_v46  ;;  %v2978_v4 = vmul.f32 %v2977_v20, %v7459_v29  ;;  %v2823_v1 = vadd.f32 1.1283791, %v2822_v21 }
 0x429   :  { %v2808_v5 = vsel %vm2805_vm7, %v2807_v38, %v2803_v33  ;;  %v2942_v55 = vmul.f32 %v2941_v54, %v7386_v42  ;;  %v2990_v12 = vadd.f32 0.112945676, %v2989_v34  ;;  %v7526_v49 = vadd.f32 %v2326_v48, %v7391_v43 }
 0x42a   :  { %v2809_v16 = vmul.f32 %v2808_v5, %v2784_v28  ;;  %v4453_v22 = vpop.eup %4452  ;;  %vm2840_vm8 = vweird.f32 %v7428_v53  ;;  %vm7529_vm9 = vcmp.eq.f32.partialorder %v2844_v10, 8.507059e+37  ;;  %v2846_v26 = vand.u32 2147483648, %v7428_v53 }
 0x42b   :  { %v2956_v46 = vmul.f32 %v4453_v22, %v7498_v40  ;;  %v2839_v38 = vadd.f32 %v7481_v44, %v2838_v60  ;;  %vm2841_vm10 = vweird.f32 %v7481_v44  ;;  %v2991_v42 = vmul.f32 %v2990_v12, %v7459_v29  ;;  %4196 = vst [vmem:[#allocation1 + $0x12] sm:$0xff] %v7526_v49 }
 0x42c   :  { %v2868_v21 = vadd.f32 0.014752088, %v2867_v62  ;;  %v4328_v43 = vclamps-f32 %v2809_v16, 1.0  ;;  %v2979_v2 = vadd.f32 0.05243302, %v2978_v4  ;;  %v2892_v33 = vmul.f32 %v7522_v31, %v7522_v31  ;;  %vm7550_vm12 = vmor %vm2840_vm8, %vm2841_vm10 }
 0x42d   :  { %v2957_v20 = vsub.f32 1.0, %v2956_v46  ;;  %v2943_v54 = vadd.f32 1.1283791, %v2942_v55  ;;  %v2966_v3 = vand.u32 2147483648, %v7498_v40  ;;  %v2992_v28 = vadd.f32 0.4994258, %v2991_v42 }
 0x42e   :  { %v2869_v5 = vmul.f32 %v2868_v21, %v7492_v59  ;;  %vm2961_vm11 = vweird.f32 %v4453_v22  ;;  %v2964_v48 = vand.u32 2147483647, %v7498_v40  ;;  %v7544_v60 = vmin.f32 %v2892_v33, 16.0 }
 0x42f   :  { %v2958_v10 = vmul.f32 %v4453_v22, %v2957_v20  ;;  %vm2960_vm13 = vweird.f32 %v7498_v40  ;;  %v2993_v16 = vmul.f32 %v2992_v28, %v7459_v29  ;;  %v2854_v4 = vmul.f32 2.1237322e-06, %v7492_v59 }
 0x430   :  { %v2870_v62 = vadd.f32 0.112945676, %v2869_v5  ;;  %vm2681_vm14 = vweird.f32 %v7436_v39  ;;  %v3092_v55 = vadd.f32 1.0, %v4328_v43  ;;  %v2843_v12 = vsel %vm7550_vm12, %v7481_v44, %v2839_v38  ;;  %vm2962_vm15 = vmor %vm2960_vm13, %vm2961_vm11 }
 0x431   :  { %v2959_v46 = vadd.f32 %v4453_v22, %v2958_v10  ;;  %v2980_v53 = vmul.f32 %v2979_v2, %v7459_v29  ;;  %v2847_v42 = vor.u32 1.1754944e-38, %v2846_v26  ;;  %v2967_v21 = vor.u32 1.1754944e-38, %v2966_v3 }
 0x432   :  { %v7562_v20 = vadd.f32 1.0, %v2993_v16  ;;  %v2871_v40 = vmul.f32 %v2870_v62, %v7492_v59  ;;  %v8951_v33 = vand.u32 2147483647, %v7309_v0  ;;  %vm2680_vm2 = vweird.f32 %v7405_v50 }
 0x433   :  { %v2944_v44 = vmul.f32 %v2943_v54, %v7354_v47  ;;  %v2963_v38 = vsel %vm2962_vm15, %v4453_v22, %v2959_v46  ;;  %vm2965_vm4 = vcmp.eq.f32.partialorder %v2964_v48, 8.507059e+37  ;;  %v2905_v26 = vmul.f32 3.8918573e-05, %v7544_v60  ;;  %vm7623_vm6 = vmor %vm2680_vm2, %vm2681_vm14 }
 0x434   :  { %vm7567_vm1 = vcmp.eq.f32.partialorder %v8951_v33, 8.507059e+37  ;;  %v2848_v43 = vsel %vm7529_vm9, %v2847_v42, %v2843_v12  ;;  %v2968_v2 = vsel %vm2965_vm4, %v2967_v21, %v2963_v38  ;;  %4454 = vrcp.f32 %v7562_v20 }
 0x435   :  { %v2855_v3 = vadd.f32 0.00028619796, %v2854_v4  ;;  %v3100_v0 = vmul.f32 %v3092_v55, %v2756_v56  ;;  %v2969_v5 = vmul.f32 %v2968_v2, %v2944_v44  ;;  %v2981_v10 = vadd.f32 0.18741608, %v2980_v53 }
 0x436   :  { %v2872_v34 = vadd.f32 0.4994258, %v2871_v40  ;;  %v2824_v16 = vmul.f32 %v2823_v1, %v7307_v15  ;;  %v2354_v47 = vmul.f32 %v7442_v13, %v6525_v23  ;;  %v2906_v22 = vadd.f32 0.001143296, %v2905_v26  ;;  %v2349_v15 = vpop.f32.mrf.mxu3 }
 0x437   :  { %v2358_v54 = vmul.f32 %v7526_v49, %v8914_v51  ;;  %v4332_v48 = vclamps-f32 %v2969_v5, 1.0  ;;  %v2679_v62 = vadd.f32 %v7436_v39, %v7517_v6  ;;  %v8954_v56 = vand.u32 2147483647, %v7405_v50 }
 0x438   :  { %v2873_v17 = vmul.f32 %v2872_v34, %v7492_v59  ;;  %v7592_v1 = vadd.f32 1.0, %v7511_v61  ;;  %v2849_v55 = vmul.f32 %v2848_v43, %v2824_v16  ;;  %v2856_v12 = vmul.f32 %v2855_v3, %v7492_v59 }
 0x439   :  { %vm7587_vm5 = vcmp.eq.f32.partialorder %v8954_v56, 8.507059e+37  ;;  %v2907_v46 = vmul.f32 %v2906_v22, %v7544_v60  ;;  %v7596_v53 = vadd.f32 %v2358_v54, %v2354_v47  ;;  %v3108_v42 = vadd.f32 1.0, %v3100_v0 }
 0x43a   :  { %v2760_v6 = vmul.f32 0.5, %v7337_v14  ;;  %v3096_v21 = vadd.f32 1.0, %v4332_v48  ;;  %v2982_v40 = vmul.f32 %v2981_v10, %v7459_v29  ;;  %v4455_v33 = vpop.eup %4454  ;;  %v7600_v44 = vadd.f32 1.0, %v2873_v17 }
 0x43b   :  { %v2908_v38 = vadd.f32 0.014752088, %v2907_v46  ;;  %v7603_v61 = vmul.f32 0.70710677, %v7526_v49  ;;  %v7606_v26 = vadd.f32 %v2349_v15, %v7439_v8  ;;  %v2996_v2 = vmul.f32 %v4455_v33, %v7562_v20 }
 0x43c   :  { %v3104_v43 = vmul.f32 %v3096_v21, %v2760_v6  ;;  %v8957_v14 = vsel %vm7469_vm3, %v7371_v45, %v7448_v25  ;;  %v2702_v3 = vmul.f32 %v7473_v30, %v7271_v11  ;;  %v4329_v19 = vclamps-f32 %v2849_v55, 1.0 }
 0x43d   :  { %v7617_v29 = vsel %vm7567_vm1, %v7423_v37, %v8957_v14  ;;  %v2857_v0 = vadd.f32 0.0036580483, %v2856_v12  ;;  %v2683_v45 = vsel %vm7623_vm6, %v7436_v39, %v2679_v62  ;;  %4456 = vrcp.f32 %v7592_v1  ;;  %4197 = vst [vmem:[#allocation1 + $0x1b] sm:$0xff] %v7606_v26 }
 0x43e   :  { %v3112_v37 = vadd.f32 1.0, %v3104_v43  ;;  %v2983_v25 = vadd.f32 1.1283791, %v2982_v40  ;;  %v2997_v50 = vsub.f32 1.0, %v2996_v2  ;;  %v2909_v28 = vmul.f32 %v2908_v38, %v7544_v60 }
 0x43f   :  { %v3116_v5 = vmul.f32 %v3108_v42, %v7283_v27  ;;  %v3006_v10 = vand.u32 2147483648, %v7562_v20  ;;  %4458 = vrcp.f32 %v7600_v44  ;;  %v3012_v11 = vmul.f32 %v7603_v61, %v7603_v61 }
 0x440   :  { %v3120_v39 = vmul.f32 %v3112_v37, %v7314_v35  ;;  %v2998_v30 = vmul.f32 %v4455_v33, %v2997_v50  ;;  %vm3001_vm3 = vweird.f32 %v4455_v33  ;;  %v3004_v34 = vand.u32 2147483647, %v7562_v20 }
 0x441   :  { %v2757_v16 = vmul.f32 0.5, %v7294_v18  ;;  %v2910_v47 = vadd.f32 0.112945676, %v2909_v28  ;;  %v2688_v22 = vsel %vm7587_vm5, %v7456_v32, %v2683_v45  ;;  %v7646_v54 = vmin.f32 %v3012_v11, 16.0 }
 0x442   :  { %v3124_v48 = vadd.f32 %v3120_v39, %v3116_v5  ;;  %v2999_v17 = vadd.f32 %v4455_v33, %v2998_v30  ;;  %vm3000_vm7 = vweird.f32 %v7562_v20  ;;  %v2858_v62 = vmul.f32 %v2857_v0, %v7492_v59 }
 0x443   :  { %v7650_v56 = vpop.eup %4456  ;;  %v3093_v15 = vadd.f32 1.0, %v4329_v19  ;;  %vm3002_vm8 = vmor %vm3000_vm7, %vm3001_vm3  ;;  %v3007_v55 = vor.u32 1.1754944e-38, %v3006_v10  ;;  %v2894_v18 = vmul.f32 2.1237322e-06, %v7544_v60  ;;  %v3014_v12 = vmul.f32 2.1237322e-06, %v7646_v54 }
 0x444   :  { %v3125_v46 = vrot.slane %v3124_v48, 4  ;;  %v2984_v32 = vmul.f32 %v2983_v25, %v7416_v9  ;;  %v3003_v4 = vsel %vm3002_vm8, %v4455_v33, %v2999_v17  ;;  %vm3005_vm9 = vcmp.eq.f32.partialorder %v3004_v34, 8.507059e+37 }
 0x445   :  { %v7655_v42 = vpop.eup %4458  ;;  %v3008_v6 = vsel %vm3005_vm9, %v3007_v55, %v3003_v4  ;;  %v2911_v20 = vmul.f32 %v2910_v47, %v7544_v60  ;;  %v3015_v21 = vadd.f32 0.00028619796, %v3014_v12  ;;  %v2359_v40 = vmul.f32 %v7606_v26, %v8931_v63 }
 0x446   :  { %v3126_v38 = vadd.f32 %v3125_v46, %v3124_v48  ;;  %v3009_v43 = vmul.f32 %v3008_v6, %v2984_v32  ;;  %v2355_v2 = vmul.f32 %v7506_v57, %v6527_v36  ;;  %v2703_v14 = vadd.f32 1.1283791, %v2702_v3 }
 0x447   :  { %v3101_v8 = vmul.f32 %v3093_v15, %v2757_v16  ;;  %v2859_v19 = vadd.f32 0.05243302, %v2858_v62  ;;  %v2895_v9 = vadd.f32 0.00028619796, %v2894_v18  ;;  %v3025_v33 = vmul.f32 3.8918573e-05, %v7646_v54 }
 0x448   :  { %v3127_v0 = vrot.slane %v3126_v38, 2  ;;  %v4333_v45 = vclamps-f32 %v3009_v43, 1.0  ;;  %v2876_v37 = vmul.f32 %v7655_v42, %v7600_v44  ;;  %v2689_v25 = vmul.f32 %v2688_v22, %v7452_v58 }
 0x449   :  { %v2912_v50 = vadd.f32 0.4994258, %v2911_v20  ;;  %v3016_v28 = vmul.f32 %v3015_v21, %v7646_v54  ;;  %v3026_v5 = vadd.f32 0.001143296, %v3025_v33  ;;  %v7667_v10 = vadd.f32 %v2359_v40, %v2355_v2 }
 0x44a   :  { %v3128_v11 = vadd.f32 %v3127_v0, %v3126_v38  ;;  %v2761_v3 = vmul.f32 0.5, %v7340_v24  ;;  %v3097_v39 = vadd.f32 1.0, %v4333_v45  ;;  %v2716_v30 = vmul.f32 %v7650_v56, %v7592_v1 }
 0x44b   :  { %v3109_v34 = vadd.f32 1.0, %v3101_v8  ;;  %v2860_v16 = vmul.f32 %v2859_v19, %v7492_v59  ;;  %v2896_v47 = vmul.f32 %v2895_v9, %v7544_v60  ;;  %v7675_v58 = vmul.f32 %v2703_v14, %v7249_v52 }
 0x44c   :  { %v3129_v22 = vrot.slane %v3128_v11, 1  ;;  %v3105_v48 = vmul.f32 %v3097_v39, %v2761_v3  ;;  %v3027_v17 = vmul.f32 %v3026_v5, %v7646_v54  ;;  %v2724_v62 = vand.u32 2147483647, %v7592_v1 }
 0x44d   :  { %v2877_v15 = vsub.f32 1.0, %v2876_v37  ;;  %v2913_v24 = vmul.f32 %v2912_v50, %v7544_v60  ;;  %v4326_v55 = vclamps-f32 %v2689_v25, 1.0  ;;  %v3017_v18 = vadd.f32 0.0036580483, %v3016_v28 }
 0x44e   :  { %v3130_v12 = vadd.f32 %v3129_v22, %v3128_v11  ;;  %v3113_v46 = vadd.f32 1.0, %v3105_v48  ;;  %v3028_v32 = vadd.f32 0.014752088, %v3027_v17  ;;  %v2717_v4 = vsub.f32 1.0, %v2716_v30 }
 0x44f   :  { %v3117_v6 = vmul.f32 %v3109_v34, %v7286_v7  ;;  %v2861_v20 = vadd.f32 0.18741608, %v2860_v16  ;;  %v2897_v52 = vadd.f32 0.0036580483, %v2896_v47  ;;  %v7682_v21 = vmul.f32 0.70710677, %v7606_v26 }
 0x450   :  { %v3152_v40 = vmul.f32 %v3130_v12, %v7283_v27  ;;  %v3156_v38 = vmul.f32 %v3130_v12, %v7314_v35  ;;  %v3121_v43 = vmul.f32 %v3113_v46, %v7381_v41  ;;  %v3029_v2 = vmul.f32 %v3028_v32, %v7646_v54 }
 0x451   :  { %v2878_v14 = vmul.f32 %v7655_v42, %v2877_v15  ;;  %v7689_v8 = vadd.f32 1.0, %v2913_v24  ;;  %v2738_v19 = vadd.f32 1.0, %v4326_v55  ;;  %v3018_v9 = vmul.f32 %v3017_v18, %v7646_v54 }
 0x452   :  { %v7692_v33 = vmul.f32 0.17677669, %v3152_v40  ;;  %v7694_v0 = vmul.f32 0.17677669, %v3156_v38  ;;  %v3131_v45 = vadd.f32 %v3121_v43, %v3117_v6  ;;  %v3030_v37 = vadd.f32 0.112945676, %v3029_v2 }
 0x453   :  { %vm2721_vm10 = vweird.f32 %v7650_v56  ;;  %v2862_v27 = vmul.f32 %v2861_v20, %v7492_v59  ;;  %v2886_v35 = vand.u32 2147483648, %v7600_v44  ;;  %v2898_v25 = vmul.f32 %v2897_v52, %v7544_v60  ;;  %v8962_v43 = vld [vmem:[#allocation21_spill] sm:$0xff] }
 0x454   :  { %v2718_v50 = vmul.f32 %v7650_v56, %v2717_v4  ;;  %v3168_v28 = vmax.f32 %v7692_v33, %v7694_v0  ;;  %v3132_v5 = vrot.slane %v3131_v45, 4  ;;  %v3031_v11 = vmul.f32 %v3030_v37, %v7646_v54 }
 0x455   :  { %vm2720_vm11 = vweird.f32 %v7592_v1  ;;  %v3052_v3 = vmul.f32 %v7682_v21, %v7682_v21  ;;  %v2879_v39 = vadd.f32 %v7655_v42, %v2878_v14  ;;  %vm2881_vm12 = vweird.f32 %v7655_v42 }
 0x456   :  { %4460 = vrcp.f32 %v7689_v8  ;;  %v3019_v59 = vadd.f32 0.05243302, %v3018_v9  ;;  %v3169_v30 = vrot.slane %v3168_v28, 4  ;;  %v3133_v34 = vadd.f32 %v3132_v5, %v3131_v45  ;;  %vm7742_vm1 = vmor %vm2720_vm11, %vm2721_vm10 }
 0x457   :  { %v3032_v16 = vadd.f32 0.4994258, %v3031_v11  ;;  %v7710_v47 = vmin.f32 %v3052_v3, 16.0  ;;  %v2863_v22 = vadd.f32 1.1283791, %v2862_v27  ;;  %vm2880_vm13 = vweird.f32 %v7600_v44  ;;  %v8963_v27 = vld [vmem:[#allocation28_spill] sm:$0xff] }
 0x458   :  { %v2884_v48 = vand.u32 2147483647, %v7600_v44  ;;  %v7715_v17 = vadd.f32 %v7650_v56, %v2718_v50  ;;  %v3170_v15 = vmax.f32 %v3168_v28, %v3169_v30  ;;  %v3134_v24 = vrot.slane %v3133_v34, 2  ;;  %vm7717_vm14 = vmor %vm2880_vm13, %vm2881_vm12  ;;  %v8964_v50 = vld [vmem:[#allocation20_spill] sm:$0xff] }
 0x459   :  { %v3033_v18 = vmul.f32 %v3032_v16, %v7646_v54  ;;  %v3054_v12 = vmul.f32 2.1237322e-06, %v7710_v47  ;;  %v2883_v46 = vsel %vm7717_vm14, %v7655_v42, %v2879_v39  ;;  %v2899_v32 = vadd.f32 0.05243302, %v2898_v25 }
 0x45a   :  { %v3020_v44 = vmul.f32 %v3019_v59, %v7646_v54  ;;  %v3065_v4 = vmul.f32 3.8918573e-05, %v7710_v47  ;;  %v3171_v6 = vrot.slane %v3170_v15, 2  ;;  %v3135_v20 = vadd.f32 %v3134_v24, %v3133_v34 }
 0x45b   :  { %v2887_v52 = vor.u32 1.1754944e-38, %v2886_v35  ;;  %v7728_v40 = vadd.f32 1.0, %v3033_v18  ;;  %v2361_v2 = vrot.slane %v8962_v43, 4  ;;  %vm2885_vm15 = vcmp.eq.f32.partialorder %v2884_v48, 8.507059e+37 }
 0x45c   :  { %v7730_v38 = vpop.eup %4460  ;;  %v3055_v14 = vadd.f32 0.00028619796, %v3054_v12  ;;  %v3066_v9 = vadd.f32 0.001143296, %v3065_v4  ;;  %v3172_v45 = vmax.f32 %v3170_v15, %v3171_v6  ;;  %v3136_v37 = vrot.slane %v3135_v20, 1 }
 0x45d   :  { %v2888_v42 = vsel %vm2885_vm15, %v2887_v52, %v2883_v46  ;;  %4462 = vrcp.f32 %v7728_v40  ;;  %v2864_v25 = vmul.f32 %v2863_v22, %v8963_v27  ;;  %v7736_v28 = vmul.f32 %v2738_v19, %v8964_v50 }
 0x45e   :  { %v3021_v35 = vadd.f32 0.18741608, %v3020_v44  ;;  %v2726_v11 = vand.u32 2147483648, %v7592_v1  ;;  %v3173_v3 = vrot.slane %v3172_v45, 1  ;;  %v3137_v39 = vadd.f32 %v3136_v37, %v3135_v20 }
 0x45f   :  { %v2723_v59 = vsel %vm7742_vm1, %v7650_v56, %v7715_v17  ;;  %v3056_v19 = vmul.f32 %v3055_v14, %v7710_v47  ;;  %v2889_v30 = vmul.f32 %v2888_v42, %v2864_v25  ;;  %v2900_v34 = vmul.f32 %v2899_v32, %v7544_v60 }
 0x460   :  { %v2916_v16 = vmul.f32 %v7730_v38, %v7689_v8  ;;  %v3067_v22 = vmul.f32 %v3066_v9, %v7710_v47  ;;  %v7757_v48 = vadd.f32 %v2361_v2, %v8962_v43  ;;  %v3174_v15 = vmax.f32 %v3172_v45, %v3173_v3 }
 0x461   :  { %v3153_v24 = vmul.f32 %v3137_v39, %v7286_v7  ;;  %v3157_v55 = vmul.f32 %v3137_v39, %v7381_v41  ;;  %v3022_v18 = vmul.f32 %v3021_v35, %v7646_v54  ;;  %v3057_v12 = vadd.f32 0.0036580483, %v3056_v19  ;;  %v4199_v41 = vld [vmem:[#allocation1 + $0x7] ss:$9 sm:$0xff] }
 0x462   :  { %v3068_v46 = vadd.f32 0.014752088, %v3067_v22  ;;  %v4201_v44 = vlaneseq  ;;  %v3196_v32 = vsub.f32 %v7692_v33, %v3174_v15  ;;  %v3200_v6 = vsub.f32 %v7694_v0, %v3174_v15 }
 0x463   :  { %v4463_v4 = vpop.eup %4462  ;;  %v7764_v20 = vmul.f32 0.17677669, %v3153_v24  ;;  %v7766_v52 = vmul.f32 0.17677669, %v3157_v55  ;;  %v4330_v43 = vclamps-f32 %v2889_v30, 1.0  ;;  %v2917_v14 = vsub.f32 1.0, %v2916_v16 }
 0x464   :  { %v2901_v2 = vadd.f32 0.18741608, %v2900_v34  ;;  %v3036_v7 = vmul.f32 %v4463_v4, %v7728_v40  ;;  %v3204_v9 = vmul.f32 1.442695, %v3196_v32  ;;  %v3212_v54 = vmul.f32 1.442695, %v3200_v6 }
 0x465   :  { %v3175_v45 = vmax.f32 %v7764_v20, %v7766_v52  ;;  %v3069_v37 = vmul.f32 %v3068_v46, %v7710_v47  ;;  %v3023_v33 = vadd.f32 1.1283791, %v3022_v18  ;;  %v3046_v0 = vand.u32 2147483648, %v7728_v40 }
 0x466   :  { %v3037_v42 = vsub.f32 1.0, %v3036_v7  ;;  %vm4203_vm2 = vcmp.lt.s32.totalorder %v4201_v44, 512  ;;  %4464 = vpow2.f32 %v3204_v9  ;;  %v3058_v25 = vmul.f32 %v3057_v12, %v7710_v47 }
 0x467   :  { %v3176_v27 = vrot.slane %v3175_v45, 4  ;;  %v3070_v50 = vadd.f32 0.112945676, %v3069_v37  ;;  %4205 = vst.msk [vmem:[#allocation4] sm:$0xf] %vm4203_vm2, %v4199_v41  ;;  %4466 = vpow2.f32 %v3212_v54  ;;  %vm3041_vm4 = vweird.f32 %v4463_v4 }
 0x468   :  { %v3038_v35 = vmul.f32 %v4463_v4, %v3037_v42  ;;  %v3044_v3 = vand.u32 2147483647, %v7728_v40  ;;  %v2758_v19 = vmul.f32 0.5, %v7442_v13  ;;  %v2918_v30 = vmul.f32 %v7730_v38, %v2917_v14  ;;  %4229 = dma.vmem_to_hbm [thread:$0]  %s4225_s8, 64, %s4227_s29, [#allocation5]  }
 0x469   :  { %v3177_v39 = vmax.f32 %v3175_v45, %v3176_v27  ;;  %v3071_v34 = vmul.f32 %v3070_v50, %v7710_v47  ;;  %v3094_v16 = vadd.f32 1.0, %v4330_v43  ;;  %v2902_v22 = vmul.f32 %v2901_v2, %v7544_v60 }
 0x46a   :  { %v3039_v15 = vadd.f32 %v4463_v4, %v3038_v35  ;;  %vm3040_vm5 = vweird.f32 %v7728_v40  ;;  %v3047_v55 = vor.u32 1.1754944e-38, %v3046_v0  ;;  %v3059_v18 = vadd.f32 0.05243302, %v3058_v25 }
 0x46b   :  { %v3178_v24 = vrot.slane %v3177_v39, 2  ;;  %vm3042_vm6 = vmor %vm3040_vm5, %vm3041_vm4  ;;  %v3072_v12 = vadd.f32 0.4994258, %v3071_v34  ;;  %vm2921_vm3 = vweird.f32 %v7730_v38  ;;  %v3024_v46 = vmul.f32 %v3023_v33, %v7603_v61 }
 0x46c   :  { %v3043_v13 = vsel %vm3042_vm6, %v4463_v4, %v3039_v15  ;;  %vm3045_vm7 = vcmp.eq.f32.partialorder %v3044_v3, 8.507059e+37  ;;  %v7782_v44 = vpop.eup %4464  ;;  %v2919_v6 = vadd.f32 %v7730_v38, %v2918_v30  ;;  %vm7787_vm8 = vcmp.eq.f32.partialorder %v2724_v62, 8.507059e+37 }
 0x46d   :  { %v3179_v32 = vmax.f32 %v3177_v39, %v3178_v24  ;;  %v3048_v60 = vsel %vm3045_vm7, %v3047_v55, %v3043_v13  ;;  %v3073_v43 = vmul.f32 %v3072_v12, %v7710_v47  ;;  %v7792_v2 = vpop.eup %4466  ;;  %vm2920_vm9 = vweird.f32 %v7689_v8 }
 0x46e   :  { %v2924_v61 = vand.u32 2147483647, %v7689_v8  ;;  %v2926_v4 = vand.u32 2147483648, %v7689_v8  ;;  %v3049_v14 = vmul.f32 %v3048_v60, %v3024_v46  ;;  %v3220_v7 = vadd.f32 %v7792_v2, %v7782_v44  ;;  %vm7805_vm10 = vmor %vm2920_vm9, %vm2921_vm3  ;;  %v8973_v60 = vld [vmem:[#allocation23_spill] sm:$0xff] }
 0x46f   :  { %v3180_v41 = vrot.slane %v3179_v32, 1  ;;  %v3060_v62 = vmul.f32 %v3059_v18, %v7710_v47  ;;  %v7800_v9 = vadd.f32 1.0, %v3073_v43  ;;  %v2363_v54 = vrot.slane %v7757_v48, 2 }
 0x470   :  { %v3102_v45 = vmul.f32 %v3094_v16, %v2758_v19  ;;  %v2903_v37 = vadd.f32 1.1283791, %v2902_v22  ;;  %v4334_v8 = vclamps-f32 %v3049_v14, 1.0  ;;  %v3221_v42 = vrot.slane %v3220_v7, 4 }
 0x471   :  { %v3181_v0 = vmax.f32 %v3179_v32, %v3180_v41  ;;  %v2923_v27 = vsel %vm7805_vm10, %v7730_v38, %v2919_v6  ;;  %4468 = vrcp.f32 %v7800_v9  ;;  %vm2925_vm11 = vcmp.eq.f32.partialorder %v2924_v61, 8.507059e+37  ;;  %v8972_v6 = vld [vmem:[#allocation24_spill] sm:$0xff] }
 0x472   :  { %v2927_v25 = vor.u32 1.1754944e-38, %v2926_v4  ;;  %v2762_v50 = vmul.f32 0.5, %v7526_v49  ;;  %v3098_v35 = vadd.f32 1.0, %v4334_v8  ;;  %v3222_v3 = vadd.f32 %v3221_v42, %v3220_v7 }
 0x473   :  { %v3197_v39 = vsub.f32 %v7764_v20, %v3181_v0  ;;  %v3201_v19 = vsub.f32 %v7766_v52, %v3181_v0  ;;  %v3061_v30 = vadd.f32 0.18741608, %v3060_v62  ;;  %v3110_v34 = vadd.f32 1.0, %v3102_v45 }
 0x474   :  { %v2928_v16 = vsel %vm2925_vm11, %v2927_v25, %v2923_v27  ;;  %v3106_v22 = vmul.f32 %v3098_v35, %v2762_v50  ;;  %v2727_v15 = vor.u32 1.1754944e-38, %v2726_v11  ;;  %v3223_v38 = vrot.slane %v3222_v3, 2 }
 0x475   :  { %v3206_v24 = vmul.f32 1.442695, %v3197_v39  ;;  %v3214_v55 = vmul.f32 1.442695, %v3201_v19  ;;  %v2904_v18 = vmul.f32 %v2903_v37, %v7522_v31  ;;  %v2364_v49 = vadd.f32 %v2363_v54, %v7757_v48  ;;  %v8971_v48 = vld [vmem:[#allocation30_spill] sm:$0xff] }
 0x476   :  { %v7821_v12 = vadd.f32 1.0, %v7736_v28  ;;  %v3114_v20 = vadd.f32 1.0, %v3106_v22  ;;  %v2728_v1 = vsel %vm7787_vm8, %v2727_v15, %v2723_v59  ;;  %v3224_v52 = vadd.f32 %v3223_v38, %v3222_v3 }
 0x477   :  { %v4469_v11 = vpop.eup %4468  ;;  %4470 = vpow2.f32 %v3206_v24  ;;  %v2929_v46 = vmul.f32 %v2928_v16, %v2904_v18  ;;  %v3062_v31 = vmul.f32 %v3061_v30, %v7710_v47  ;;  %v3118_v13 = vmul.f32 %v3110_v34, %v8971_v48 }
 0x478   :  { %4472 = vpow2.f32 %v3214_v55  ;;  %v3122_v28 = vmul.f32 %v3114_v20, %v7821_v12  ;;  %v3076_v32 = vmul.f32 %v4469_v11, %v7800_v9  ;;  %v3225_v5 = vrot.slane %v3224_v52, 1  ;;  %v8974_v55 = vld [vmem:[#allocation15_spill] sm:$0xff] }
 0x479   :  { %v2569_v56 = vmul.f32 %v7617_v29, %v8972_v6  ;;  %v2729_v17 = vmul.f32 %v2728_v1, %v7675_v58  ;;  %v2365_v59 = vrot.slane %v2364_v49, 1  ;;  %v2368_v40 = vrot.slane %v8973_v60, 4 }
 0x47a   :  { %v3138_v43 = vadd.f32 %v3122_v28, %v3118_v13  ;;  %v3077_v61 = vsub.f32 1.0, %v3076_v32  ;;  %v3226_v4 = vadd.f32 %v3225_v5, %v3224_v52  ;;  %v4331_v47 = vclamps-f32 %v2929_v46, 1.0 }
 0x47b   :  { %v3063_v14 = vadd.f32 1.1283791, %v3062_v31  ;;  %v3086_v7 = vand.u32 2147483648, %v7800_v9  ;;  %vm3081_vm12 = vweird.f32 %v4469_v11  ;;  %v3084_v54 = vand.u32 2147483647, %v7800_v9 }
 0x47c   :  { %v3139_v41 = vrot.slane %v3138_v43, 4  ;;  %v3078_v62 = vmul.f32 %v4469_v11, %v3077_v61  ;;  %4474 = vrcp.f32 %v3226_v4  ;;  %v4323_v29 = vclamps-f32 %v2569_v56, 1.0 }
 0x47d   :  { %v7840_v45 = vpop.eup %4470  ;;  %v4327_v58 = vclamps-f32 %v2729_v17, 1.0  ;;  %v2369_v33 = vadd.f32 %v2368_v40, %v8973_v60  ;;  %vm3080_vm13 = vweird.f32 %v7800_v9  ;;  %v7846_v0 = vadd.f32 %v2365_v59, %v2364_v49 }
 0x47e   :  { %v7842_v37 = vpop.eup %4472  ;;  %v3140_v8 = vadd.f32 %v3139_v41, %v3138_v43  ;;  %v3079_v42 = vadd.f32 %v4469_v11, %v3078_v62  ;;  %v3095_v25 = vadd.f32 1.0, %v4331_v47  ;;  %vm3082_vm14 = vmor %vm3080_vm13, %vm3081_vm12  ;;  %v3087_v50 = vor.u32 1.1754944e-38, %v3086_v7 }
 0x47f   :  { %v3227_v27 = vadd.f32 %v7842_v37, %v7840_v45  ;;  %v3064_v3 = vmul.f32 %v3063_v14, %v7682_v21  ;;  %vm3085_vm15 = vcmp.eq.f32.partialorder %v3084_v54, 8.507059e+37  ;;  %v2735_v30 = vadd.f32 1.0, %v4323_v29 }
 0x480   :  { %v3141_v35 = vrot.slane %v3140_v8, 2  ;;  %v3083_v39 = vsel %vm3082_vm14, %v4469_v11, %v3079_v42  ;;  %v2739_v34 = vadd.f32 1.0, %v4327_v58  ;;  %v2399_v22 = vmul.f32 0.5, %v6527_v36 }
 0x481   :  { %v3228_v19 = vrot.slane %v3227_v27, 4  ;;  %v3088_v16 = vsel %vm3085_vm15, %v3087_v50, %v3083_v39  ;;  %v2759_v9 = vmul.f32 0.5, %v7506_v57  ;;  %v2388_v18 = vmul.f32 %v7846_v0, %v8974_v55  ;;  %v8975_v50 = vld [vmem:[#allocation10_spill] sm:$0xff] }
 0x482   :  { %v3142_v15 = vadd.f32 %v3141_v35, %v3140_v8  ;;  %v3089_v38 = vmul.f32 %v3088_v16, %v3064_v3  ;;  %v7853_v24 = vpop.eup %4474  ;;  %v2370_v49 = vrot.slane %v2369_v33, 2  ;;  %v2403_v21 = vmul.f32 0.5, %v8931_v63 }
 0x483   :  { %v3229_v20 = vadd.f32 %v3228_v19, %v3227_v27  ;;  %v3252_v1 = vmul.f32 %v7853_v24, %v7782_v44  ;;  %v3103_v11 = vmul.f32 %v3095_v25, %v2759_v9  ;;  %v2743_v13 = vmul.f32 %v2735_v30, %v2399_v22 }
 0x484   :  { %v3143_v52 = vrot.slane %v3142_v15, 1  ;;  %v4335_v46 = vclamps-f32 %v3089_v38, 1.0  ;;  %v2747_v57 = vmul.f32 %v2739_v34, %v2403_v21  ;;  %v2763_v5 = vmul.f32 0.5, %v7606_v26 }
 0x485   :  { %v3230_v31 = vrot.slane %v3229_v20, 2  ;;  %v7860_v28 = vmul.f32 %v3252_v1, %v2388_v18  ;;  %v2371_v56 = vadd.f32 %v2370_v49, %v2369_v33  ;;  %v3111_v59 = vadd.f32 1.0, %v3103_v11 }
 0x486   :  { %v3144_v32 = vadd.f32 %v3143_v52, %v3142_v15  ;;  %v3099_v6 = vadd.f32 1.0, %v4335_v46  ;;  %v2751_v61 = vadd.f32 1.0, %v2743_v13  ;;  %v2755_v14 = vadd.f32 1.0, %v2747_v57 }
 0x487   :  { %v3231_v17 = vadd.f32 %v3230_v31, %v3229_v20  ;;  %v2372_v62 = vrot.slane %v2371_v56, 1  ;;  %v2375_v57 = vrot.slane %v7596_v53, 4 }
 0x488   :  { %v3154_v60 = vmul.f32 %v3144_v32, %v8971_v48  ;;  %v3158_v40 = vmul.f32 %v3144_v32, %v7821_v12  ;;  %v3107_v44 = vmul.f32 %v3099_v6, %v2763_v5  ;;  %v3119_v54 = vmul.f32 %v3111_v59, %v2751_v61  ;;  %v8977_v32 = vld [vmem:[#allocation29_spill] sm:$0xff] }
 0x489   :  { %v3232_v43 = vrot.slane %v3231_v17, 1  ;;  %v2373_v8 = vadd.f32 %v2372_v62, %v2371_v56  ;;  %v2392_v5 = vmul.f32 %v7846_v0, %v8977_v32  ;;  %v3256_v6 = vmul.f32 %v7853_v24, %v7792_v2 }
 0x48a   :  { %v3162_v4 = vmul.f32 0.17677669, %v3154_v60  ;;  %v3166_v47 = vmul.f32 0.17677669, %v3158_v40  ;;  %v3115_v7 = vadd.f32 1.0, %v3107_v44  ;;  %v2376_v0 = vadd.f32 %v2375_v57, %v7596_v53 }
 0x48b   :  { %v3233_v41 = vadd.f32 %v3232_v43, %v3231_v17  ;;  %v2389_v35 = vmul.f32 %v2373_v8, %v8975_v50  ;;  %v3264_v44 = vmul.f32 %v3256_v6, %v2392_v5  ;;  %v7886_v2 = vadd.f32 %v7860_v28, %v8974_v55  ;;  %v7995_v5 = vld [vmem:[%s8626_s2 + $0xd0] sm:$0xff] }
 0x48c   :  { %v3182_v29 = vmax.f32 %v3162_v4, %v3166_v47  ;;  %v3123_v26 = vmul.f32 %v3115_v7, %v2755_v14 }
 0x48d   :  { %4476 = vrcp.f32 %v3233_v41 }
 0x48e   :  { %v3183_v58 = vrot.slane %v3182_v29, 4  ;;  %v3145_v33 = vadd.f32 %v3123_v26, %v3119_v54  ;;  %v2377_v54 = vrot.slane %v2376_v0, 2 }
 0x490   :  { %v3184_v42 = vmax.f32 %v3182_v29, %v3183_v58  ;;  %v3146_v48 = vrot.slane %v3145_v33, 4 }
 0x492   :  { %v3185_v27 = vrot.slane %v3184_v42, 2  ;;  %v3147_v12 = vadd.f32 %v3146_v48, %v3145_v33 }
 0x493   :  { %v4477_v25 = vpop.eup %4476 }
 0x494   :  { %v3253_v3 = vmul.f32 %v4477_v25, %v7840_v45  ;;  %v3186_v39 = vmax.f32 %v3184_v42, %v3185_v27  ;;  %v3148_v19 = vrot.slane %v3147_v12, 2  ;;  %v8976_v45 = vld [vmem:[#allocation12_spill] sm:$0xff]  ;;  %v3257_v56 = vmul.f32 %v4477_v25, %v7842_v37 }
 0x495   :  { %v2393_v31 = vmul.f32 %v2373_v8, %v8976_v45  ;;  %v2378_v27 = vadd.f32 %v2377_v54, %v2376_v0  ;;  %v8043_v54 = vld [vmem:[%s8626_s2 + $0xb8] sm:$0xff] }
 0x496   :  { %v3261_v30 = vmul.f32 %v3253_v3, %v2389_v35  ;;  %v3187_v34 = vrot.slane %v3186_v39, 1  ;;  %v3149_v16 = vadd.f32 %v3148_v19, %v3147_v12  ;;  %v7913_v35 = vld [vmem:[%s8626_s2 + $0x78] sm:$0xff] }
 0x497   :  { %v3265_v43 = vmul.f32 %v3257_v56, %v2393_v31  ;;  %v7919_v3 = vld [vmem:[%s8626_s2 + $0xf8] sm:$0xff] }
 0x498   :  { %v3188_v22 = vmax.f32 %v3186_v39, %v3187_v34  ;;  %v3150_v9 = vrot.slane %v3149_v16, 1  ;;  %v7879_v40 = vadd.f32 %v3261_v30, %v8975_v50  ;;  %v7927_v34 = vld [vmem:[%s8626_s2 + $0x70] sm:$0xff] }
 0x499   :  { %v7896_v7 = vadd.f32 %v3265_v43, %v8976_v45  ;;  %v8005_v43 = vld [vmem:[%s8626_s2 + $0x48] sm:$0xff] }
 0x49a   :  { %v3198_v15 = vsub.f32 %v3162_v4, %v3188_v22  ;;  %v3202_v38 = vsub.f32 %v3166_v47, %v3188_v22  ;;  %v3151_v18 = vadd.f32 %v3150_v9, %v3149_v16  ;;  %v7890_v47 = vpack.c.bf16 %v7879_v40, %v7886_v2  ;;  %v7933_v16 = vld [vmem:[%s8626_s2 + $0xf0] sm:$0xff]  ;;  %v7939_v9 = vld [vmem:[%s8626_s2 + $0x68] sm:$0xff] }
 0x49b   :  { %v2379_v22 = vrot.slane %v2378_v27, 1 }
 0x49c   :  { %v3208_v49 = vmul.f32 1.442695, %v3198_v15  ;;  %v3216_v20 = vmul.f32 1.442695, %v3202_v38  ;;  %v3155_v21 = vmul.f32 %v3151_v18, %v2751_v61  ;;  %v3159_v1 = vmul.f32 %v3151_v18, %v2755_v14  ;;  %v7945_v15 = vld [vmem:[%s8626_s2 + $0xe8] sm:$0xff] }
 0x49d   :  { %v7893_v14 = vadd.f32 %v3264_v44, %v8977_v32  ;;  %v3280_v53 = vunpack.c.l.bf16 %v7890_v47  ;;  %v3281_v55 = vunpack.c.h.bf16 %v7890_v47  ;;  %v2382_v38 = vrot.slane %v7667_v10, 4  ;;  %v7989_v32 = vld [vmem:[%s8626_s2 + $0x50] sm:$0xff] }
 0x49e   :  { %4478 = vpow2.f32 %v3208_v49  ;;  %v3163_v11 = vmul.f32 0.17677669, %v3155_v21  ;;  %v3167_v52 = vmul.f32 0.17677669, %v3159_v1  ;;  %v7964_v21 = vld [vmem:[%s8626_s2 + $0xe0] sm:$0xff]  ;;  %v2380_v1 = vadd.f32 %v2379_v22, %v2378_v27  ;;  %v8049_v47 = vld [vmem:[%s8626_s2 + $0x30] sm:$0xff] }
 0x49f   :  { %4480 = vpow2.f32 %v3216_v20  ;;  %v3288_v26 = vsub.f32 %v7886_v2, %v3280_v53  ;;  %v3289_v58 = vsub.f32 %v7879_v40, %v3281_v55  ;;  %v7908_v33 = vpack.c.bf16 %v7896_v7, %v7893_v14  ;;  %v7958_v20 = vld [vmem:[%s8626_s2 + $0x60] sm:$0xff]  ;;  %v8101_v22 = vld [vmem:[%s8626_s2 + $0x98] sm:$0xff] }
 0x4a0   :  { %v3189_v46 = vmax.f32 %v3163_v11, %v3167_v52  ;;  %v2383_v31 = vadd.f32 %v2382_v38, %v7667_v10  ;;  %v2390_v10 = vmul.f32 %v2380_v1, %v6525_v23  ;;  %v2394_v56 = vmul.f32 %v2380_v1, %v8914_v51 }
 0x4a1   :  { %3312 = vmatmul.f32.vlgmr.msra.gmra.mxu0 %v3288_v26  ;;  %3335 = vmatmul.f32.vlgmr.msra.gmra.mxu1 %v3289_v58  ;;  %v3284_v39 = vunpack.c.l.bf16 %v7908_v33  ;;  %v3285_v19 = vunpack.c.h.bf16 %v7908_v33  ;;  %v3483_v26 = vmul.f32 %v7879_v40, %v7879_v40  ;;  %v8107_v33 = vld [vmem:[%s8626_s2 + $0x10] sm:$0xff]  ;;  %v3487_v1 = vmul.f32 %v7896_v7, %v7896_v7 }
 0x4a2   :  { %v3190_v13 = vrot.slane %v3189_v46, 4  ;;  %3510 = vmatpush.msra.mxu0 %v7913_v35  ;;  %3533 = vmatpush.msra.mxu1 %v7919_v3 }
 0x4a3   :  { %v3292_v18 = vsub.f32 %v7893_v14, %v3284_v39  ;;  %v3293_v49 = vsub.f32 %v7896_v7, %v3285_v19 }
 0x4a4   :  { %v7874_v17 = vpop.eup %4478  ;;  %v3191_v59 = vmax.f32 %v3189_v46, %v3190_v13  ;;  %3511 = vmatpush.msra.mxu0 %v7927_v34  ;;  %3534 = vmatpush.msra.mxu1 %v7933_v16  ;;  %v7978_v46 = vld [vmem:[%s8626_s2 + $0xd8] sm:$0xff] }
 0x4a5   :  { %v7876_v60 = vpop.eup %4480 }
 0x4a6   :  { %v3234_v61 = vadd.f32 %v7876_v60, %v7874_v17  ;;  %v3192_v4 = vrot.slane %v3191_v59, 2  ;;  %3512 = vmatpush.msra.mxu0 %v7939_v9  ;;  %3535 = vmatpush.msra.mxu1 %v7945_v15 }
 0x4a8   :  { %v3235_v37 = vrot.slane %v3234_v61, 4  ;;  %v3193_v24 = vmax.f32 %v3191_v59, %v3192_v4  ;;  %3513 = vmatpush.msra.mxu0 %v7958_v20  ;;  %3536 = vmatpush.msra.mxu1 %v7964_v21  ;;  %v2384_v4 = vrot.slane %v2383_v31, 2 }
 0x4a9   :  { %3315 = vmatmul.f32.gmra.mxu0 %v3292_v18  ;;  %3338 = vmatmul.f32.gmra.mxu1 %v3293_v49  ;;  %v3486_v49 = vmul.f32 %v7893_v14, %v7893_v14 }
 0x4aa   :  { %v3236_v41 = vadd.f32 %v3235_v37, %v3234_v61  ;;  %v3194_v62 = vrot.slane %v3193_v24, 1  ;;  %3537 = vmatpush.msra.mxu1 %v7978_v46  ;;  %v8011_v61 = vld [vmem:[%s8626_s2 + $0xc8] sm:$0xff]  ;;  %v8021_v37 = vld [vmem:[%s8626_s2 + $0x40] sm:$0xff] }
 0x4ac   :  { %v3237_v28 = vrot.slane %v3236_v41, 2  ;;  %v3195_v29 = vmax.f32 %v3193_v24, %v3194_v62  ;;  %3538 = vmatpush.msra.mxu1 %v7995_v5  ;;  %v8027_v24 = vld [vmem:[%s8626_s2 + $0xc0] sm:$0xff]  ;;  %v8037_v62 = vld [vmem:[%s8626_s2 + $0x38] sm:$0xff] }
 0x4ae   :  { %v3238_v8 = vadd.f32 %v3237_v28, %v3236_v41  ;;  %v3199_v42 = vsub.f32 %v3163_v11, %v3195_v29  ;;  %v3203_v48 = vsub.f32 %v3167_v52, %v3195_v29  ;;  %v7972_v52 = vld [vmem:[%s8626_s2 + $0x58] sm:$0xff]  ;;  %3539 = vmatpush.msra.mxu1 %v8011_v61  ;;  %v2385_v28 = vadd.f32 %v2384_v4, %v2383_v31  ;;  %v8125_v31 = vld [vmem:[%s8626_s2 + $0x8] sm:$0xff] }
 0x4af   :  { %3514 = vmatpush.msra.mxu0 %v7972_v52  ;;  %v3482_v29 = vmul.f32 %v7886_v2, %v7886_v2  ;;  %v8151_v4 = vpack.c.bf16 %v3487_v1, %v3486_v49 }
 0x4b0   :  { %v3239_v12 = vrot.slane %v3238_v8, 1  ;;  %v3210_v25 = vmul.f32 1.442695, %v3199_v42  ;;  %v3218_v50 = vmul.f32 1.442695, %v3203_v48  ;;  %3540 = vmatpush.msra.mxu1 %v8027_v24  ;;  %v8071_v42 = vld [vmem:[%s8626_s2 + $0xa8] sm:$0xff] }
 0x4b1   :  { %3515 = vmatpush.msra.mxu0 %v7989_v32  ;;  %3427 = vmatmul.f32.vlgmr.msrb.gmra.mxu1 %v3281_v55  ;;  %v8055_v55 = vld [vmem:[%s8626_s2 + $0xb0] sm:$0xff]  ;;  %v2386_v48 = vrot.slane %v2385_v28, 1 }
 0x4b2   :  { %v3240_v30 = vadd.f32 %v3239_v12, %v3238_v8  ;;  %4482 = vpow2.f32 %v3210_v25  ;;  %3404 = vmatmul.f32.vlgmr.msrb.gmra.mxu0 %v3280_v53  ;;  %3541 = vmatpush.msra.mxu1 %v8043_v54  ;;  %v8065_v8 = vld [vmem:[%s8626_s2 + $0x28] sm:$0xff]  ;;  %v8077_v12 = vld [vmem:[%s8626_s2 + $0x20] sm:$0xff] }
 0x4b3   :  { %4484 = vpow2.f32 %v3218_v50  ;;  %3516 = vmatpush.msra.mxu0 %v8005_v43  ;;  %v8083_v25 = vld [vmem:[%s8626_s2 + $0xa0] sm:$0xff]  ;;  %v8086_v50 = vpack.c.bf16 %v3483_v26, %v3482_v29  ;;  %v2387_v38 = vadd.f32 %v2386_v48, %v2385_v28  ;;  %v8279_v48 = vld [vmem:[%s8626_s2 + $0x150] sm:$0xff] }
 0x4b4   :  { %4486 = vrcp.f32 %v3240_v30  ;;  %3542 = vmatpush.msra.mxu1 %v8055_v55  ;;  %v8095_v30 = vld [vmem:[%s8626_s2 + $0x18] sm:$0xff] }
 0x4b5   :  { %3517 = vmatpush.msra.mxu0 %v8021_v37  ;;  %v3495_v18 = vunpack.c.h.bf16 %v8086_v50 }
 0x4b6   :  { %3543 = vmatpush.msra.mxu1 %v8071_v42 }
 0x4b7   :  { %3518 = vmatpush.msra.mxu0 %v8037_v62 }
 0x4b8   :  { %v7967_v11 = vpop.eup %4482  ;;  %3544 = vmatpush.msra.mxu1 %v8083_v25 }
 0x4b9   :  { %v7981_v45 = vpop.eup %4484  ;;  %3519 = vmatpush.msra.mxu0 %v8049_v47  ;;  %3430 = vmatmul.f32.gmra.mxu1 %v3285_v19  ;;  %v3494_v19 = vunpack.c.l.bf16 %v8086_v50  ;;  %v8431_v50 = vld [vmem:[%s8627_s3 + $0x28] sm:$0xff] }
 0x4ba   :  { %v4487_v13 = vpop.eup %4486  ;;  %v3241_v57 = vadd.f32 %v7981_v45, %v7967_v11  ;;  %3407 = vmatmul.f32.gmra.mxu0 %v3284_v39  ;;  %3545 = vmatpush.msra.mxu1 %v8101_v22  ;;  %v8113_v39 = vld [vmem:[%s8626_s2 + $0x90] sm:$0xff] }
 0x4bb   :  { %v3254_v6 = vmul.f32 %v4487_v13, %v7874_v17  ;;  %v3258_v59 = vmul.f32 %v4487_v13, %v7876_v60  ;;  %3520 = vmatpush.msra.mxu0 %v8065_v8  ;;  %v8131_v13 = vld [vmem:[%s8626_s2 + $0x88] sm:$0xff] }
 0x4bc   :  { %v3242_v44 = vrot.slane %v3241_v57, 4  ;;  %3546 = vmatpush.msra.mxu1 %v8113_v39 }
 0x4bd   :  { %v8014_v17 = vmul.f32 %v3254_v6, %v2390_v10  ;;  %v8016_v0 = vmul.f32 %v3258_v59, %v2394_v56  ;;  %3521 = vmatpush.msra.mxu0 %v8077_v12  ;;  %v8138_v6 = vld [vmem:[%s8626_s2] sm:$0xff]  ;;  %v3502_v59 = vsub.f32 %v3482_v29, %v3494_v19 }
 0x4be   :  { %v3243_v60 = vadd.f32 %v3242_v44, %v3241_v57  ;;  %3547 = vmatpush.msra.mxu1 %v8131_v13  ;;  %v2391_v57 = vmul.f32 %v2387_v38, %v6527_v36  ;;  %v8144_v56 = vld [vmem:[%s8626_s2 + $0x80] sm:$0xff]  ;;  %v3503_v44 = vsub.f32 %v3483_v26, %v3495_v18 }
 0x4bf   :  { %3522 = vmatpush.msra.mxu0 %v8095_v30  ;;  %v8160_v29 = vadd.f32 %v8014_v17, %v6525_v23  ;;  %v8225_v17 = vld [vmem:[%s8626_s2 + $0x1f0] sm:$0xff] }
 0x4c0   :  { %v3244_v41 = vrot.slane %v3243_v60, 2  ;;  %3548 = vmatpush.msra.mxu1 %v8144_v56 }
 0x4c1   :  { %3523 = vmatpush.msra.mxu0 %v8107_v33  ;;  %3549 = vmatmul.f32.vlgmr.msra.gmra.mxu1 %v3503_v44  ;;  %v8403_v44 = vld [vmem:[%s8626_s2 + $0x190] sm:$0xff] }
 0x4c2   :  { %v3245_v53 = vadd.f32 %v3244_v41, %v3243_v60  ;;  %v2395_v60 = vmul.f32 %v2387_v38, %v8931_v63  ;;  %3625 = vmatpush.msrb.mxu1 %v7919_v3  ;;  %v8177_v3 = vadd.f32 %v8016_v0, %v8914_v51  ;;  %v8333_v38 = vld [vmem:[%s8626_s2 + $0x130] sm:$0xff] }
 0x4c3   :  { %3524 = vmatpush.msra.mxu0 %v8125_v31 }
 0x4c4   :  { %v3246_v58 = vrot.slane %v3245_v53, 1  ;;  %3626 = vmatpush.msrb.mxu1 %v7933_v16 }
 0x4c5   :  { %3525 = vmatpush.msra.mxu0 %v8138_v6 }
 0x4c6   :  { %v3247_v27 = vadd.f32 %v3246_v58, %v3245_v53  ;;  %3526 = vmatmul.f32.vlgmr.msra.gmra.mxu0 %v3502_v59  ;;  %3627 = vmatpush.msrb.mxu1 %v7945_v15  ;;  %v8259_v58 = vld [vmem:[%s8626_s2 + $0x1e0] sm:$0xff]  ;;  %v8397_v59 = vld [vmem:[%s8626_s2 + $0x110] sm:$0xff] }
 0x4c7   :  { %3602 = vmatpush.msrb.mxu0 %v7913_v35 }
 0x4c8   :  { %4488 = vrcp.f32 %v3247_v27  ;;  %3628 = vmatpush.msrb.mxu1 %v7964_v21  ;;  %v8203_v21 = vld [vmem:[%s8626_s2 + $0x178] sm:$0xff]  ;;  %v8285_v27 = vld [vmem:[%s8626_s2 + $0x1d0] sm:$0xff] }
 0x4c9   :  { %3603 = vmatpush.msrb.mxu0 %v7927_v34 }
 0x4ca   :  { %3629 = vmatpush.msrb.mxu1 %v7978_v46 }
 0x4cb   :  { %3604 = vmatpush.msrb.mxu0 %v7939_v9 }
 0x4cc   :  { %3630 = vmatpush.msrb.mxu1 %v7995_v5  ;;  %v8219_v5 = vld [vmem:[%s8626_s2 + $0x170] sm:$0xff] }
 0x4cd   :  { %3605 = vmatpush.msrb.mxu0 %v7958_v20 }
 0x4ce   :  { %v4489_v10 = vpop.eup %4488  ;;  %3631 = vmatpush.msrb.mxu1 %v8011_v61  ;;  %v8239_v61 = vld [vmem:[%s8626_s2 + $0x1e8] sm:$0xff] }
 0x4cf   :  { %v3255_v41 = vmul.f32 %v4489_v10, %v7967_v11  ;;  %v3259_v28 = vmul.f32 %v4489_v10, %v7981_v45  ;;  %v3498_v11 = vunpack.c.l.bf16 %v8151_v4  ;;  %v3499_v45 = vunpack.c.h.bf16 %v8151_v4  ;;  %3606 = vmatpush.msrb.mxu0 %v7972_v52  ;;  %v8209_v52 = vld [vmem:[%s8626_s2 + $0x1f8] sm:$0xff]  ;;  %v8503_v4 = vld [vmem:[%s8627_s3 + $0x30] sm:$0xff] }
 0x4d0   :  { %3632 = vmatpush.msrb.mxu1 %v8027_v24  ;;  %v8253_v24 = vld [vmem:[%s8626_s2 + $0x160] sm:$0xff] }
 0x4d1   :  { %v3263_v53 = vmul.f32 %v3255_v41, %v2391_v57  ;;  %v3267_v26 = vmul.f32 %v3259_v28, %v2395_v60  ;;  %v3507_v16 = vsub.f32 %v3487_v1, %v3499_v45  ;;  %3607 = vmatpush.msrb.mxu0 %v7989_v32  ;;  %v3484_v1 = vmul.f32 %v8160_v29, %v8160_v29  ;;  %v8357_v57 = vld [vmem:[%s8626_s2 + $0x1a8] sm:$0xff] }
 0x4d2   :  { %3633 = vmatpush.msrb.mxu1 %v8043_v54  ;;  %v8271_v54 = vld [vmem:[%s8626_s2 + $0x1d8] sm:$0xff]  ;;  %v4622_v28 = vld [vmem:[%s8626_s2 + $0x108] sm:$0xff] }
 0x4d3   :  { %v8167_v35 = vadd.f32 %v3263_v53, %v6527_v36  ;;  %v8180_v34 = vadd.f32 %v3267_v26, %v8931_v63  ;;  %v3506_v36 = vsub.f32 %v3486_v49, %v3498_v11  ;;  %3552 = vmatmul.f32.gmra.mxu1 %v3507_v16  ;;  %3608 = vmatpush.msrb.mxu0 %v8005_v43  ;;  %v8233_v43 = vld [vmem:[%s8626_s2 + $0x168] sm:$0xff]  ;;  %v8339_v49 = vld [vmem:[%s8626_s2 + $0x1b0] sm:$0xff]  ;;  %v8425_v26 = vld [vmem:[%s8627_s3 + $0x20] sm:$0xff] }
 0x4d4   :  { %3634 = vmatpush.msrb.mxu1 %v8055_v55  ;;  %v8299_v55 = vld [vmem:[%s8626_s2 + $0x1c8] sm:$0xff] }
 0x4d5   :  { %v8173_v23 = vpack.c.bf16 %v8167_v35, %v8160_v29  ;;  %3529 = vmatmul.f32.gmra.mxu0 %v3506_v36  ;;  %v8196_v20 = vpack.c.bf16 %v8180_v34, %v8177_v3  ;;  %v3489_v41 = vmul.f32 %v8180_v34, %v8180_v34  ;;  %v4623_v53 = vld [vmem:[%s8626_s2 + $0x188] sm:$0xff] }
 0x4d6   :  { %3609 = vmatpush.msrb.mxu0 %v8021_v37  ;;  %3635 = vmatpush.msrb.mxu1 %v8071_v42  ;;  %v8313_v42 = vld [vmem:[%s8626_s2 + $0x1c0] sm:$0xff] }
 0x4d7   :  { %v3282_v9 = vunpack.c.l.bf16 %v8173_v23  ;;  %v3283_v15 = vunpack.c.h.bf16 %v8173_v23  ;;  %v3286_v46 = vunpack.c.l.bf16 %v8196_v20  ;;  %v3287_v32 = vunpack.c.h.bf16 %v8196_v20 }
 0x4d8   :  { %3610 = vmatpush.msrb.mxu0 %v8037_v62  ;;  %v8265_v62 = vld [vmem:[%s8626_s2 + $0x158] sm:$0xff]  ;;  %3636 = vmatpush.msrb.mxu1 %v8083_v25 }
 0x4d9   :  { %v3290_v51 = vsub.f32 %v8160_v29, %v3282_v9  ;;  %v3291_v63 = vsub.f32 %v8167_v35, %v3283_v15  ;;  %v3294_v0 = vsub.f32 %v8177_v3, %v3286_v46  ;;  %v3295_v37 = vsub.f32 %v8180_v34, %v3287_v32  ;;  %v8325_v25 = vld [vmem:[%s8626_s2 + $0x1b8] sm:$0xff] }
 0x4da   :  { %3611 = vmatpush.msrb.mxu0 %v8049_v47  ;;  %v8293_v47 = vld [vmem:[%s8626_s2 + $0x148] sm:$0xff]  ;;  %3637 = vmatpush.msrb.mxu1 %v8101_v22 }
 0x4db   :  { %3358 = vmatmul.f32.vlgmr.msra.gmra.mxu2 %v3290_v51  ;;  %3381 = vmatmul.f32.vlgmr.msra.gmra.mxu3 %v3291_v63  ;;  %v8351_v22 = vld [vmem:[%s8626_s2 + $0x128] sm:$0xff]  ;;  %v8455_v51 = vld [vmem:[%s8627_s3] sm:$0xff] }
 0x4dc   :  { %3556 = vmatpush.msra.mxu2 %v8203_v21  ;;  %3579 = vmatpush.msra.mxu3 %v8209_v52  ;;  %v8461_v63 = vld [vmem:[%s8627_s3 + $0x8] sm:$0xff] }
 0x4dd   :  { %3612 = vmatpush.msrb.mxu0 %v8065_v8  ;;  %v8307_v8 = vld [vmem:[%s8626_s2 + $0x140] sm:$0xff]  ;;  %3638 = vmatpush.msrb.mxu1 %v8113_v39 }
 0x4de   :  { %3557 = vmatpush.msra.mxu2 %v8219_v5  ;;  %3580 = vmatpush.msra.mxu3 %v8225_v17  ;;  %v8371_v39 = vld [vmem:[%s8626_s2 + $0x1a0] sm:$0xff] }
 0x4df   :  { %3613 = vmatpush.msrb.mxu0 %v8077_v12  ;;  %v8319_v12 = vld [vmem:[%s8626_s2 + $0x138] sm:$0xff]  ;;  %3639 = vmatpush.msrb.mxu1 %v8131_v13 }
 0x4e0   :  { %3558 = vmatpush.msra.mxu2 %v8233_v43  ;;  %3581 = vmatpush.msra.mxu3 %v8239_v61  ;;  %v8389_v13 = vld [vmem:[%s8626_s2 + $0x198] sm:$0xff] }
 0x4e1   :  { %3614 = vmatpush.msrb.mxu0 %v8095_v30  ;;  %v3485_v30 = vmul.f32 %v8167_v35, %v8167_v35  ;;  %3640 = vmatpush.msrb.mxu1 %v8144_v56  ;;  %v3488_v56 = vmul.f32 %v8177_v3, %v8177_v3 }
 0x4e2   :  { %3559 = vmatpush.msra.mxu2 %v8253_v24  ;;  %3582 = vmatpush.msra.mxu3 %v8259_v58 }
 0x4e3   :  { %3361 = vmatmul.f32.gmra.mxu2 %v3294_v0  ;;  %3384 = vmatmul.f32.gmra.mxu3 %v3295_v37  ;;  %v8374_v10 = vpack.c.bf16 %v3485_v30, %v3484_v1  ;;  %v8444_v16 = vpack.c.bf16 %v3489_v41, %v3488_v56 }
 0x4e4   :  { %3560 = vmatpush.msra.mxu2 %v8265_v62  ;;  %3583 = vmatpush.msra.mxu3 %v8271_v54 }
 0x4e5   :  { %3615 = vmatpush.msrb.mxu0 %v8107_v33  ;;  %v8365_v33 = vld [vmem:[%s8626_s2 + $0x120] sm:$0xff]  ;;  %v3496_v60 = vunpack.c.l.bf16 %v8374_v10  ;;  %3641 = vmatmul.f32.vlgmr.msrb.gmra.mxu1 %v3495_v18 }
 0x4e6   :  { %3561 = vmatpush.msra.mxu2 %v8279_v48  ;;  %3584 = vmatpush.msra.mxu3 %v8285_v27  ;;  %v4627_v18 = vld [vmem:[%s8626_s2 + $0x180] sm:$0xff] }
 0x4e7   :  { %3616 = vmatpush.msrb.mxu0 %v8125_v31  ;;  %v8383_v31 = vld [vmem:[%s8626_s2 + $0x118] sm:$0xff]  ;;  %3771 = vmatpush.msra.mxu1 %v8431_v50  ;;  %v3504_v23 = vsub.f32 %v3484_v1, %v3496_v60 }
 0x4e8   :  { %3562 = vmatpush.msra.mxu2 %v8293_v47  ;;  %3585 = vmatpush.msra.mxu3 %v8299_v55 }
 0x4e9   :  { %3617 = vmatpush.msrb.mxu0 %v8138_v6  ;;  %v3497_v6 = vunpack.c.h.bf16 %v8374_v10  ;;  %3772 = vmatpush.msra.mxu1 %v8461_v63 }
 0x4ea   :  { %3563 = vmatpush.msra.mxu2 %v8307_v8  ;;  %3586 = vmatpush.msra.mxu3 %v8313_v42 }
 0x4eb   :  { %3450 = vmatmul.f32.vlgmr.msrb.gmra.mxu2 %v3282_v9  ;;  %3473 = vmatmul.f32.vlgmr.msrb.gmra.mxu3 %v3283_v15  ;;  %v3505_v36 = vsub.f32 %v3485_v30, %v3497_v6  ;;  %v3500_v9 = vunpack.c.l.bf16 %v8444_v16  ;;  %v3501_v15 = vunpack.c.h.bf16 %v8444_v16 }
 0x4ec   :  { %3564 = vmatpush.msra.mxu2 %v8319_v12  ;;  %3587 = vmatpush.msra.mxu3 %v8325_v25 }
 0x4ed   :  { %3618 = vmatmul.f32.vlgmr.msrb.gmra.mxu0 %v3494_v19  ;;  %v4626_v19 = vld [vmem:[%s8626_s2 + $0x100] sm:$0xff]  ;;  %3644 = vmatmul.f32.gmra.mxu1 %v3499_v45  ;;  %v3508_v20 = vsub.f32 %v3488_v56, %v3500_v9  ;;  %v8515_v45 = vld [vmem:[%s8627_s3 + $0x10] sm:$0xff] }
 0x4ee   :  { %3565 = vmatpush.msra.mxu2 %v8333_v38  ;;  %3588 = vmatpush.msra.mxu3 %v8339_v49 }
 0x4ef   :  { %3748 = vmatpush.msra.mxu0 %v8425_v26  ;;  %3869 = vmatpush.msrb.mxu1 %v8431_v50 }
 0x4f0   :  { %3566 = vmatpush.msra.mxu2 %v8351_v22  ;;  %3589 = vmatpush.msra.mxu3 %v8357_v57 }
 0x4f1   :  { %3749 = vmatpush.msra.mxu0 %v8455_v51  ;;  %3870 = vmatpush.msrb.mxu1 %v8461_v63 }
 0x4f2   :  { %3567 = vmatpush.msra.mxu2 %v8365_v33  ;;  %3590 = vmatpush.msra.mxu3 %v8371_v39 }
 0x4f3   :  { %3453 = vmatmul.f32.gmra.mxu2 %v3286_v46  ;;  %3476 = vmatmul.f32.gmra.mxu3 %v3287_v32 }
 0x4f4   :  { %3568 = vmatpush.msra.mxu2 %v8383_v31  ;;  %3591 = vmatpush.msra.mxu3 %v8389_v13 }
 0x4f5   :  { %3621 = vmatmul.f32.gmra.mxu0 %v3498_v11  ;;  %v8509_v11 = vld [vmem:[%s8627_s3 + $0x38] sm:$0xff] }
 0x4f6   :  { %3569 = vmatpush.msra.mxu2 %v8397_v59  ;;  %3592 = vmatpush.msra.mxu3 %v8403_v44 }
 0x4f7   :  { %3846 = vmatpush.msrb.mxu0 %v8425_v26 }
 0x4f8   :  { %3570 = vmatpush.msra.mxu2 %v4622_v28  ;;  %3593 = vmatpush.msra.mxu3 %v4623_v53 }
 0x4f9   :  { %3847 = vmatpush.msrb.mxu0 %v8455_v51 }
 0x4fa   :  { %3571 = vmatpush.msra.mxu2 %v4626_v19  ;;  %3594 = vmatpush.msra.mxu3 %v4627_v18 }
 0x4fb   :  { %3572 = vmatmul.f32.vlgmr.msra.gmra.mxu2 %v3504_v23  ;;  %3595 = vmatmul.f32.vlgmr.msra.gmra.mxu3 %v3505_v36 }
 0x4fc   :  { %3648 = vmatpush.msrb.mxu2 %v8203_v21  ;;  %3671 = vmatpush.msrb.mxu3 %v8209_v52  ;;  %v3509_v21 = vsub.f32 %v3489_v41, %v3501_v15  ;;  %v8521_v52 = vld [vmem:[%s8627_s3 + $0x18] sm:$0xff] }
 0x4fe   :  { %3649 = vmatpush.msrb.mxu2 %v8219_v5  ;;  %3672 = vmatpush.msrb.mxu3 %v8225_v17 }
 0x500   :  { %3650 = vmatpush.msrb.mxu2 %v8233_v43  ;;  %3673 = vmatpush.msrb.mxu3 %v8239_v61 }
 0x502   :  { %3651 = vmatpush.msrb.mxu2 %v8253_v24  ;;  %3674 = vmatpush.msrb.mxu3 %v8259_v58 }
 0x503   :  { %3575 = vmatmul.f32.gmra.mxu2 %v3508_v20  ;;  %3598 = vmatmul.f32.gmra.mxu3 %v3509_v21 }
 0x504   :  { %3652 = vmatpush.msrb.mxu2 %v8265_v62  ;;  %3675 = vmatpush.msrb.mxu3 %v8271_v54 }
 0x506   :  { %3653 = vmatpush.msrb.mxu2 %v8279_v48  ;;  %3676 = vmatpush.msrb.mxu3 %v8285_v27 }
 0x508   :  { %3654 = vmatpush.msrb.mxu2 %v8293_v47  ;;  %3677 = vmatpush.msrb.mxu3 %v8299_v55 }
 0x50a   :  { %3655 = vmatpush.msrb.mxu2 %v8307_v8  ;;  %3678 = vmatpush.msrb.mxu3 %v8313_v42 }
 0x50c   :  { %3656 = vmatpush.msrb.mxu2 %v8319_v12  ;;  %3679 = vmatpush.msrb.mxu3 %v8325_v25 }
 0x50e   :  { %3657 = vmatpush.msrb.mxu2 %v8333_v38  ;;  %3680 = vmatpush.msrb.mxu3 %v8339_v49 }
 0x510   :  { %3658 = vmatpush.msrb.mxu2 %v8351_v22  ;;  %3681 = vmatpush.msrb.mxu3 %v8357_v57 }
 0x512   :  { %3659 = vmatpush.msrb.mxu2 %v8365_v33  ;;  %3682 = vmatpush.msrb.mxu3 %v8371_v39 }
 0x514   :  { %3660 = vmatpush.msrb.mxu2 %v8383_v31  ;;  %3683 = vmatpush.msrb.mxu3 %v8389_v13 }
 0x516   :  { %3661 = vmatpush.msrb.mxu2 %v8397_v59  ;;  %3684 = vmatpush.msrb.mxu3 %v8403_v44 }
 0x518   :  { %3662 = vmatpush.msrb.mxu2 %v4622_v28  ;;  %3685 = vmatpush.msrb.mxu3 %v4623_v53 }
 0x51a   :  { %3663 = vmatpush.msrb.mxu2 %v4626_v19  ;;  %3686 = vmatpush.msrb.mxu3 %v4627_v18 }
 0x51b   :  { %3664 = vmatmul.f32.vlgmr.msrb.gmra.mxu2 %v3496_v60  ;;  %3687 = vmatmul.f32.vlgmr.msrb.gmra.mxu3 %v3497_v6 }
 0x51c   :  { %3794 = vmatpush.msra.mxu2 %v8503_v4  ;;  %3817 = vmatpush.msra.mxu3 %v8509_v11 }
 0x51e   :  { %3795 = vmatpush.msra.mxu2 %v8515_v45  ;;  %3818 = vmatpush.msra.mxu3 %v8521_v52  ;;  %v3313_v46 = vpop.f32.mrf.mxu0  ;;  %v3336_v32 = vpop.f32.mrf.mxu1 }
 0x51f   :  { %v3337_v42 = vadd.f32 %v3336_v32, %v3313_v46 }
 0x520   :  { %3892 = vmatpush.msrb.mxu2 %v8503_v4  ;;  %3915 = vmatpush.msrb.mxu3 %v8509_v11 }
 0x522   :  { %3893 = vmatpush.msrb.mxu2 %v8515_v45  ;;  %3916 = vmatpush.msrb.mxu3 %v8521_v52 }
 0x523   :  { %3667 = vmatmul.f32.gmra.mxu2 %v3500_v9  ;;  %3690 = vmatmul.f32.gmra.mxu3 %v3501_v15 }
 0x526   :  { %v3316_v5 = vpop.f32.mrf.mxu0  ;;  %v3339_v61 = vpop.f32.mrf.mxu1 }
 0x527   :  { %v3340_v22 = vadd.f32 %v3339_v61, %v3316_v5 }
 0x52e   :  { %v3428_v58 = vpop.f32.mrf.mxu1 }
 0x52f   :  { %v3405_v0 = vpop.f32.mrf.mxu0 }
 0x536   :  { %v3431_v27 = vpop.f32.mrf.mxu1 }
 0x537   :  { %v3408_v62 = vpop.f32.mrf.mxu0 }
 0x53e   :  { %v3550_v12 = vpop.f32.mrf.mxu1 }
 0x543   :  { %v3527_v47 = vpop.f32.mrf.mxu0 }
 0x544   :  { %v3551_v39 = vadd.f32 %v3550_v12, %v3527_v47 }
 0x550   :  { %v3553_v10 = vpop.f32.mrf.mxu1 }
 0x552   :  { %v3530_v38 = vpop.f32.mrf.mxu0 }
 0x553   :  { %v3554_v53 = vadd.f32 %v3553_v10, %v3530_v38 }
 0x55e   :  { %v3359_v17 = vpop.f32.mrf.mxu2  ;;  %v3382_v43 = vpop.f32.mrf.mxu3 }
 0x55f   :  { %v3360_v25 = vadd.f32 %v3359_v17, %v3337_v42 }
 0x561   :  { %v3383_v30 = vadd.f32 %v3382_v43, %v3360_v25 }
 0x562   :  { %v3642_v18 = vpop.f32.mrf.mxu1 }
 0x563   :  { %v3406_v57 = vadd.f32 %v3405_v0, %v3383_v30 }
 0x565   :  { %v3429_v44 = vadd.f32 %v3428_v58, %v3406_v57 }
 0x566   :  { %v3362_v37 = vpop.f32.mrf.mxu2  ;;  %v3385_v24 = vpop.f32.mrf.mxu3 }
 0x567   :  { %v3363_v33 = vadd.f32 %v3362_v37, %v3340_v22 }
 0x569   :  { %v3386_v59 = vadd.f32 %v3385_v24, %v3363_v33 }
 0x56a   :  { %v3619_v13 = vpop.f32.mrf.mxu0  ;;  %v3645_v58 = vpop.f32.mrf.mxu1 }
 0x56b   :  { %v3409_v28 = vadd.f32 %v3408_v62, %v3386_v59 }
 0x56d   :  { %v3432_v16 = vadd.f32 %v3431_v27, %v3409_v28 }
 0x56e   :  { %v3451_v54 = vpop.f32.mrf.mxu2  ;;  %v3474_v48 = vpop.f32.mrf.mxu3 }
 0x56f   :  { %v3452_v56 = vadd.f32 %v3451_v54, %v3429_v44 }
 0x571   :  { %v3475_v23 = vadd.f32 %v3474_v48, %v3452_v56 }
 0x572   :  { %v3622_v15 = vpop.f32.mrf.mxu0 }
 0x573   :  { %v8528_v46 = vmul.f32 0.03125, %v3475_v23 }
 0x575   :  { %v3696_v0 = vmul.f32 %v8528_v46, %v8528_v46 }
 0x576   :  { %v3454_v55 = vpop.f32.mrf.mxu2  ;;  %v3477_v8 = vpop.f32.mrf.mxu3 }
 0x577   :  { %v3455_v32 = vadd.f32 %v3454_v55, %v3432_v16 }
 0x579   :  { %v3478_v37 = vadd.f32 %v3477_v8, %v3455_v32 }
 0x57b   :  { %v8532_v27 = vmul.f32 0.03125, %v3478_v37 }
 0x57d   :  { %v3697_v25 = vmul.f32 %v8532_v27, %v8532_v27 }
 0x57e   :  { %v3573_v49 = vpop.f32.mrf.mxu2  ;;  %v3596_v1 = vpop.f32.mrf.mxu3 }
 0x57f   :  { %v3574_v31 = vadd.f32 %v3573_v49, %v3551_v39 }
 0x581   :  { %v3597_v41 = vadd.f32 %v3596_v1, %v3574_v31 }
 0x583   :  { %v3620_v19 = vadd.f32 %v3619_v13, %v3597_v41 }
 0x585   :  { %v3643_v9 = vadd.f32 %v3642_v18, %v3620_v19 }
 0x586   :  { %v3576_v60 = vpop.f32.mrf.mxu2  ;;  %v3599_v6 = vpop.f32.mrf.mxu3 }
 0x587   :  { %v3577_v36 = vadd.f32 %v3576_v60, %v3554_v53 }
 0x589   :  { %v3600_v5 = vadd.f32 %v3599_v6, %v3577_v36 }
 0x58b   :  { %v3623_v43 = vadd.f32 %v3622_v15, %v3600_v5 }
 0x58d   :  { %v3646_v62 = vadd.f32 %v3645_v58, %v3623_v43 }
 0x59e   :  { %v3665_v20 = vpop.f32.mrf.mxu2  ;;  %v3688_v21 = vpop.f32.mrf.mxu3 }
 0x59f   :  { %v3666_v17 = vadd.f32 %v3665_v20, %v3643_v9 }
 0x5a1   :  { %v3689_v61 = vadd.f32 %v3688_v21, %v3666_v17 }
 0x5a3   :  { %v3694_v24 = vmul.f32 0.03125, %v3689_v61 }
 0x5a5   :  { %v3698_v54 = vsub.f32 %v3694_v24, %v3696_v0 }
 0x5a6   :  { %v3668_v48 = vpop.f32.mrf.mxu2  ;;  %v3691_v12 = vpop.f32.mrf.mxu3 }
 0x5a7   :  { %v3700_v47 = vadd.f32 1e-05, %v3698_v54  ;;  %v3669_v42 = vadd.f32 %v3668_v48, %v3646_v62 }
 0x5a9   :  { %4490 = vrsqrt.f32 %v3700_v47  ;;  %v3692_v55 = vadd.f32 %v3691_v12, %v3669_v42  ;;  %vm3708_vm2 = vweird.f32 %v3700_v47 }
 0x5ab   :  { %v3695_v38 = vmul.f32 0.03125, %v3692_v55 }
 0x5ad   :  { %v3699_v49 = vsub.f32 %v3695_v38, %v3697_v25  ;;  %v8596_v25 = vld [vmem:[%s8628_s4 + $0x1] ss:$2 sm:$0xf]  ;;  %s4687_s4 = smov [#allocation2]  }
 0x5af   :  { %v4491_v1 = vpop.eup %4490  ;;  %v3701_v30 = vadd.f32 1e-05, %v3699_v49 }
 0x5b0   :  { %v3703_v8 = vmul.f32 %v4491_v1, %v3700_v47  ;;  %vm3709_vm1 = vweird.f32 %v4491_v1 }
 0x5b1   :  { %4492 = vrsqrt.f32 %v3701_v30  ;;  %vm3710_vm4 = vmor %vm3708_vm2, %vm3709_vm1  ;;  %vm3718_vm6 = vweird.f32 %v3701_v30 }
 0x5b2   :  { %v3704_v22 = vmul.f32 %v4491_v1, %v3703_v8 }
 0x5b4   :  { %v3705_v57 = vmul.f32 0.5, %v3704_v22 }
 0x5b6   :  { %v3706_v33 = vsub.f32 1.5, %v3705_v57 }
 0x5b7   :  { %v4493_v39 = vpop.eup %4492 }
 0x5b8   :  { %v3707_v10 = vmul.f32 %v4491_v1, %v3706_v33  ;;  %v3713_v31 = vmul.f32 %v4493_v39, %v3701_v30  ;;  %vm3719_vm5 = vweird.f32 %v4493_v39 }
 0x5b9   :  { %vm3720_vm3 = vmor %vm3718_vm6, %vm3719_vm5 }
 0x5ba   :  { %v3711_v13 = vsel %vm3710_vm4, %v4491_v1, %v3707_v10  ;;  %v3714_v59 = vmul.f32 %v4493_v39, %v3713_v31  ;;  %v8601_v1 = vld [vmem:[%s8629_s5 + $0x1] ss:$2 sm:$0xf]  ;;  %v4148_v31 = vperm.slane %v8596_v25, 1  ;;  %s4210_s5 = sshll.u32 %s4687_s4, 4  ;;  %s4211_s5 = int_to_ptr.vmem [resolvable:$true] %s4210_s5 }
 0x5bb   :  { %v3722_v44 = vpack.c.bf16 %v3711_v13, %v3711_v13  ;;  %v3924_v36 = vmul.f32 %v3711_v13, %v8528_v46 }
 0x5bc   :  { %v3715_v60 = vmul.f32 0.5, %v3714_v59  ;;  %v4167_v59 = vperm.slane %v8601_v1, 1 }
 0x5bd   :  { %v3724_v6 = vunpack.c.l.bf16 %v3722_v44  ;;  %v3926_v16 = vpack.c.bf16 %v3924_v36, %v3924_v36 }
 0x5be   :  { %v3716_v56 = vsub.f32 1.5, %v3715_v60 }
 0x5bf   :  { %v3726_v41 = vsub.f32 %v3711_v13, %v3724_v6  ;;  %v4166_v13 = vperm.slane %v8601_v1, 0 }
 0x5c0   :  { %v3717_v28 = vmul.f32 %v4493_v39, %v3716_v56 }
 0x5c1   :  { %4336 = vmatmul.msk.f32.vlgmr.msra.gmra.mxu0 %vm129_vm0, %v3726_v41  ;;  %4338 = vmatmul.msk.f32.vlgmr.msra.gmra.mxu1 %vm129_vm0, %v3726_v41 }
 0x5c2   :  { %4340 = vmatmul.msk.f32.vlgmr.msra.gmra.mxu2 %vm129_vm0, %v3726_v41  ;;  %4342 = vmatmul.msk.f32.vlgmr.msra.gmra.mxu3 %vm129_vm0, %v3726_v41  ;;  %v3721_v53 = vsel %vm3720_vm3, %v4493_v39, %v3717_v28  ;;  %v4147_v39 = vperm.slane %v8596_v25, 0 }
 0x5c3   :  { %v3723_v19 = vpack.c.bf16 %v3721_v53, %v3721_v53  ;;  %3998 = vmatpush.msra.mxu2 %v8503_v4  ;;  %4021 = vmatpush.msra.mxu3 %v8509_v11 }
 0x5c4   :  { %3952 = vmatpush.msra.mxu0 %v8425_v26  ;;  %3975 = vmatpush.msra.mxu1 %v8431_v50 }
 0x5c5   :  { %v3725_v18 = vunpack.c.l.bf16 %v3723_v19  ;;  %3999 = vmatpush.msra.mxu2 %v8515_v45  ;;  %4022 = vmatpush.msra.mxu3 %v8521_v52 }
 0x5c6   :  { %3953 = vmatpush.msra.mxu0 %v8455_v51  ;;  %3976 = vmatpush.msra.mxu1 %v8461_v63 }
 0x5c7   :  { %v3727_v23 = vsub.f32 %v3721_v53, %v3725_v18 }
 0x5c9   :  { %4337 = vmatmul.msk.f32.gmra.mxu0 %vm129_vm0, %v3727_v23  ;;  %4339 = vmatmul.msk.f32.gmra.mxu1 %vm129_vm0, %v3727_v23 }
 0x5ca   :  { %4341 = vmatmul.msk.f32.gmra.mxu2 %vm129_vm0, %v3727_v23  ;;  %4343 = vmatmul.msk.f32.gmra.mxu3 %vm129_vm0, %v3727_v23 }
 0x5d1   :  { %4344 = vmatmul.msk.f32.vlgmr.msrb.gmra.mxu0 %vm129_vm0, %v3724_v6  ;;  %4346 = vmatmul.msk.f32.vlgmr.msrb.gmra.mxu1 %vm129_vm0, %v3724_v6 }
 0x5d2   :  { %4348 = vmatmul.msk.f32.vlgmr.msrb.gmra.mxu2 %vm129_vm0, %v3724_v6  ;;  %4350 = vmatmul.msk.f32.vlgmr.msrb.gmra.mxu3 %vm129_vm0, %v3724_v6 }
 0x5d3   :  { %4096 = vmatpush.msrb.mxu2 %v8503_v4  ;;  %4119 = vmatpush.msrb.mxu3 %v8509_v11 }
 0x5d4   :  { %4050 = vmatpush.msrb.mxu0 %v8425_v26  ;;  %4073 = vmatpush.msrb.mxu1 %v8431_v50  ;;  %v3928_v26 = vunpack.c.l.bf16 %v3926_v16  ;;  %v3925_v50 = vmul.f32 %v3721_v53, %v8532_v27 }
 0x5d5   :  { %4097 = vmatpush.msrb.mxu2 %v8515_v45  ;;  %4120 = vmatpush.msrb.mxu3 %v8521_v52 }
 0x5d6   :  { %4051 = vmatpush.msrb.mxu0 %v8455_v51  ;;  %4074 = vmatpush.msrb.mxu1 %v8461_v63  ;;  %v3930_v4 = vsub.f32 %v3924_v36, %v3928_v26  ;;  %v3927_v11 = vpack.c.bf16 %v3925_v50, %v3925_v50 }
 0x5d8   :  { %v3929_v51 = vunpack.c.l.bf16 %v3927_v11  ;;  %v4150_v11 = vperm.slane %v8596_v25, 3 }
 0x5d9   :  { %4345 = vmatmul.msk.f32.gmra.mxu0 %vm129_vm0, %v3725_v18  ;;  %4347 = vmatmul.msk.f32.gmra.mxu1 %vm129_vm0, %v3725_v18 }
 0x5da   :  { %4349 = vmatmul.msk.f32.gmra.mxu2 %vm129_vm0, %v3725_v18  ;;  %4351 = vmatmul.msk.f32.gmra.mxu3 %vm129_vm0, %v3725_v18  ;;  %v3931_v63 = vsub.f32 %v3925_v50, %v3929_v51  ;;  %v4149_v50 = vperm.slane %v8596_v25, 2 }
 0x5e1   :  { %4352 = vmatmul.msk.f32.vlgmr.msra.gmra.mxu0 %vm129_vm0, %v3930_v4  ;;  %4354 = vmatmul.msk.f32.vlgmr.msra.gmra.mxu1 %vm129_vm0, %v3930_v4 }
 0x5e2   :  { %4356 = vmatmul.msk.f32.vlgmr.msra.gmra.mxu2 %vm129_vm0, %v3930_v4  ;;  %4358 = vmatmul.msk.f32.vlgmr.msra.gmra.mxu3 %vm129_vm0, %v3930_v4 }
 0x5e9   :  { %4353 = vmatmul.msk.f32.gmra.mxu0 %vm129_vm0, %v3931_v63  ;;  %4355 = vmatmul.msk.f32.gmra.mxu1 %vm129_vm0, %v3931_v63 }
 0x5ea   :  { %4357 = vmatmul.msk.f32.gmra.mxu2 %vm129_vm0, %v3931_v63  ;;  %4359 = vmatmul.msk.f32.gmra.mxu3 %vm129_vm0, %v3931_v63 }
 0x5f1   :  { %4360 = vmatmul.msk.f32.vlgmr.msrb.gmra.mxu0 %vm129_vm0, %v3928_v26  ;;  %4362 = vmatmul.msk.f32.vlgmr.msrb.gmra.mxu1 %vm129_vm0, %v3928_v26 }
 0x5f2   :  { %4364 = vmatmul.msk.f32.vlgmr.msrb.gmra.mxu2 %vm129_vm0, %v3928_v26  ;;  %4366 = vmatmul.msk.f32.vlgmr.msrb.gmra.mxu3 %vm129_vm0, %v3928_v26 }
 0x5f9   :  { %4361 = vmatmul.msk.f32.gmra.mxu0 %vm129_vm0, %v3929_v51  ;;  %4363 = vmatmul.msk.f32.gmra.mxu1 %vm129_vm0, %v3929_v51 }
 0x5fa   :  { %4365 = vmatmul.msk.f32.gmra.mxu2 %vm129_vm0, %v3929_v51  ;;  %4367 = vmatmul.msk.f32.gmra.mxu3 %vm129_vm0, %v3929_v51 }
 0x63e   :  { %v3751_v45 = vpop.f32.mrf.mxu0  ;;  %v3774_v52 = vpop.f32.mrf.mxu1 }
 0x645   :  { %v3797_v9 = vpop.f32.mrf.mxu2  ;;  %v3820_v15 = vpop.f32.mrf.mxu3 }
 0x646   :  { %v3754_v20 = vpop.f32.mrf.mxu0  ;;  %v3777_v21 = vpop.f32.mrf.mxu1 }
 0x64d   :  { %v8589_v46 = vpop.f32.mrf.mxu2  ;;  %v8591_v32 = vpop.f32.mrf.mxu3 }
 0x64e   :  { %v3849_v5 = vpop.f32.mrf.mxu0  ;;  %v3872_v17 = vpop.f32.mrf.mxu1 }
 0x64f   :  { %v3850_v12 = vadd.f32 %v3849_v5, %v3751_v45  ;;  %v3873_v55 = vadd.f32 %v3872_v17, %v3774_v52 }
 0x651   :  { %v4128_v30 = vmul.f32 %v3850_v12, %v7886_v2  ;;  %v4129_v8 = vmul.f32 %v3873_v55, %v7879_v40 }
 0x655   :  { %v3895_v43 = vpop.f32.mrf.mxu2  ;;  %v3918_v61 = vpop.f32.mrf.mxu3 }
 0x656   :  { %v3852_v0 = vpop.f32.mrf.mxu0  ;;  %v3875_v37 = vpop.f32.mrf.mxu1  ;;  %v3896_v44 = vadd.f32 %v3895_v43, %v3797_v9  ;;  %v3919_v60 = vadd.f32 %v3918_v61, %v3820_v15  ;;  %v4168_v15 = vperm.slane %v8601_v1, 2 }
 0x657   :  { %v3853_v41 = vadd.f32 %v3852_v0, %v3754_v20  ;;  %v3876_v2 = vadd.f32 %v3875_v37, %v3777_v21  ;;  %v4169_v21 = vperm.slane %v8601_v1, 3 }
 0x658   :  { %v4130_v53 = vmul.f32 %v3896_v44, %v8160_v29  ;;  %v4131_v19 = vmul.f32 %v3919_v60, %v8167_v35 }
 0x659   :  { %v4132_v45 = vmul.f32 %v3853_v41, %v7893_v14  ;;  %v4133_v52 = vmul.f32 %v3876_v2, %v7896_v7 }
 0x65d   :  { %v3898_v24 = vpop.f32.mrf.mxu2  ;;  %v3921_v58 = vpop.f32.mrf.mxu3 }
 0x65e   :  { %v3955_v62 = vpop.f32.mrf.mxu0  ;;  %v3978_v54 = vpop.f32.mrf.mxu1  ;;  %v3899_v43 = vadd.f32 %v3898_v24, %v8589_v46  ;;  %v3922_v61 = vadd.f32 %v3921_v58, %v8591_v32 }
 0x660   :  { %v4134_v12 = vmul.f32 %v3899_v43, %v8177_v3  ;;  %v4135_v55 = vmul.f32 %v3922_v61, %v8180_v34 }
 0x665   :  { %v4001_v48 = vpop.f32.mrf.mxu2  ;;  %v4024_v27 = vpop.f32.mrf.mxu3 }
 0x666   :  { %v3958_v47 = vpop.f32.mrf.mxu0  ;;  %v3981_v42 = vpop.f32.mrf.mxu1 }
 0x66d   :  { %v4004_v38 = vpop.f32.mrf.mxu2  ;;  %v4027_v49 = vpop.f32.mrf.mxu3 }
 0x66e   :  { %v4053_v22 = vpop.f32.mrf.mxu0  ;;  %v4076_v57 = vpop.f32.mrf.mxu1 }
 0x66f   :  { %v4054_v33 = vadd.f32 %v4053_v22, %v3955_v62  ;;  %v4077_v10 = vadd.f32 %v4076_v57, %v3978_v54 }
 0x671   :  { %v4136_v6 = vsub.f32 %v4128_v30, %v4054_v33  ;;  %v4137_v56 = vsub.f32 %v4129_v8, %v4077_v10 }
 0x673   :  { %v4155_v28 = vmul.f32 %v4147_v39, %v4136_v6  ;;  %v4156_v40 = vmul.f32 %v4148_v31, %v4137_v56 }
 0x675   :  { %v4174_v18 = vadd.f32 %v4166_v13, %v4155_v28  ;;  %v4175_v23 = vadd.f32 %v4167_v59, %v4156_v40  ;;  %v4099_v36 = vpop.f32.mrf.mxu2  ;;  %v4122_v16 = vpop.f32.mrf.mxu3 }
 0x676   :  { %v4100_v26 = vadd.f32 %v4099_v36, %v4001_v48  ;;  %v4123_v4 = vadd.f32 %v4122_v16, %v4024_v27  ;;  %v4056_v51 = vpop.f32.mrf.mxu0  ;;  %v4079_v63 = vpop.f32.mrf.mxu1 }
 0x677   :  { %4182 = vst [vmem:[#allocation2] sm:$0xff] %v4174_v18  ;;  %v4057_v29 = vadd.f32 %v4056_v51, %v3958_v47  ;;  %v4080_v9 = vadd.f32 %v4079_v63, %v3981_v42 }
 0x678   :  { %4183 = vst [vmem:[#allocation2 + $0x8] sm:$0xff] %v4175_v23  ;;  %v4138_v35 = vsub.f32 %v4130_v53, %v4100_v26  ;;  %v4139_v20 = vsub.f32 %v4131_v19, %v4123_v4 }
 0x679   :  { %v4140_v5 = vsub.f32 %v4132_v45, %v4057_v29  ;;  %v4141_v17 = vsub.f32 %v4133_v52, %v4080_v9 }
 0x67a   :  { %v4157_v0 = vmul.f32 %v4149_v50, %v4138_v35  ;;  %v4158_v14 = vmul.f32 %v4150_v11, %v4139_v20 }
 0x67b   :  { %v4159_v37 = vmul.f32 %v4147_v39, %v4140_v5  ;;  %v4160_v7 = vmul.f32 %v4148_v31, %v4141_v17 }
 0x67c   :  { %v4176_v62 = vadd.f32 %v4168_v15, %v4157_v0  ;;  %v4177_v54 = vadd.f32 %v4169_v21, %v4158_v14 }
 0x67d   :  { %v4178_v48 = vadd.f32 %v4166_v13, %v4159_v37  ;;  %v4179_v27 = vadd.f32 %v4167_v59, %v4160_v7  ;;  %v4102_v47 = vpop.f32.mrf.mxu2  ;;  %v4125_v42 = vpop.f32.mrf.mxu3 }
 0x67e   :  { %4184 = vst [vmem:[#allocation2 + $0x10] sm:$0xff] %v4176_v62  ;;  %v4103_v25 = vadd.f32 %v4102_v47, %v4004_v38  ;;  %v4126_v1 = vadd.f32 %v4125_v42, %v4027_v49 }
 0x67f   :  { %4185 = vst [vmem:[#allocation2 + $0x18] sm:$0xff] %v4177_v54 }
 0x680   :  { %4186 = vst [vmem:[#allocation2 + $0x20] sm:$0xff] %v4178_v48  ;;  %v4142_v46 = vsub.f32 %v4134_v12, %v4103_v25  ;;  %v4143_v32 = vsub.f32 %v4135_v55, %v4126_v1 }
 0x681   :  { %4187 = vst [vmem:[#allocation2 + $0x28] sm:$0xff] %v4179_v27 }
 0x682   :  { %v4161_v24 = vmul.f32 %v4149_v50, %v4142_v46  ;;  %v4162_v58 = vmul.f32 %v4150_v11, %v4143_v32 }
 0x684   :  { %v4180_v30 = vadd.f32 %v4168_v15, %v4161_v24  ;;  %v4181_v3 = vadd.f32 %v4169_v21, %v4162_v58 }
 0x686   :  { %4188 = vst [vmem:[#allocation2 + $0x30] sm:$0xff] %v4180_v30 }
 0x687   :  { %4189 = vst [vmem:[#allocation2 + $0x38] sm:$0xff] %v4181_v3 }
 0x688   :  { %4218 = dma.vmem_to_hbm [thread:$0]  %s4211_s5, 1024, %s4213_s14, [#allocation3], %s4688_s15, %s4688_s15, %s4689_s16  }
 0x689   :  { %4682 = dma.done.wait [#allocation3], 1024  }
 0x68a   :  { %4683 = vsyncadd [#allocation3], 4294966272 }
 0x68b   :  { %4684 = dma.done.wait [#allocation5], 64  }
 0x68c   :  { %4685 = vsyncadd [#allocation5], 4294967232 }
 0x68d   :  { %4238 = vsyncpa [#allocation3], 1 }
 0x68e   :  { %4239 = vsyncpa [#allocation5], 1 }

</bundles_post_ra>
